<compile_context>
chip_gen: v5e
topology: v5e:2x2
jax: 0.10.0
libtpu: 0.0.40
codegen_flags: <defaults>
</compile_context>

<pallas_src>
import math
from functools import partial

import jax
import jax.numpy as jnp
from jax.experimental import pallas as pl
from jax.experimental.pallas import tpu as pltpu


def _upsample_conv_kernel(xp_ref, w_ref, b_ref, o_ref, xs_ref, acc_ref):
    # xp_ref : (1, H+2, W+2, Cin)   zero-padded ORIGINAL input (compute dtype)
    # w_ref  : (4, 4, Cin, Ct)      phase-decomposed 2x2 taps (compute dtype)
    # b_ref  : (1, Ct)              bias slice (f32)
    # o_ref  : (1, 4, H, W, Ct)     phase-major output slab (compute dtype)
    # xs_ref : (3, H+2, W, Cin)     VMEM scratch: W-shifted input copies
    # acc_ref: (H*W, Ct)            f32 VMEM accumulator (one phase at a time)
    _, _, H, W, ct = o_ref.shape
    HW = acc_ref.shape[0]
    cin = xp_ref.shape[-1]

    # Hoist the unaligned W-shift: one sublane relayout per column offset
    # (3 total) instead of one per (phase, tap) slice (16 total).
    for dx in range(3):
        xs_ref[dx] = xp_ref[0, :, pl.ds(dx, W), :]

    bias = b_ref[...]  # (1, Ct), f32

    # Output phase (py, px) of "3x3 conv on nearest-2x upsample" only ever sees
    # a 2x2 window of the original image: 4 MXU matmuls per phase with f32
    # accumulation; the bias is folded into the first tap (no init pass).
    for py in range(2):
        for px in range(2):
            p = py * 2 + px
            for ry in range(2):
                for rx in range(2):
                    lhs = xs_ref[px + rx, pl.ds(py + ry, H)].reshape(HW, cin)
                    contrib = jnp.dot(lhs, w_ref[p, ry * 2 + rx],
                                      preferred_element_type=jnp.float32)
                    if ry == 0 and rx == 0:
                        acc_ref[...] = contrib + bias
                    else:
                        acc_ref[...] += contrib
            o_ref[0, p] = acc_ref[...].reshape(H, W, ct).astype(o_ref.dtype)


def _round_up(n, m):
    return ((n + m - 1) // m) * m


@partial(jax.jit, static_argnames=("compute_dtype", "out_dtype"))
def upsample_forward(x_nchw, weight_oihw, bias, *,
                     compute_dtype=jnp.bfloat16, out_dtype=None):
    """UpSample.forward: nearest-2x upsample + 3x3 same-pad conv (PyTorch NCHW).

    Matmuls and the 4x-sized output run in `compute_dtype` (bf16 by default —
    fine for diffusion inference; pass compute_dtype=jnp.float32 for an f32
    escape hatch) with f32 accumulation.  The result is returned in `out_dtype`
    (defaults to x's dtype); the final cast fuses with the output transpose.
    """
    B, C, H, W = x_nchw.shape
    assert weight_oihw.shape == (C, C, 3, 3)
    assert bias.shape == (C,)
    out_dtype = x_nchw.dtype if out_dtype is None else out_dtype

    # ---- channel padding & Cout tiling --------------------------------------
    # Lane-multiple channels keep output stores dense (unmasked vst) and the
    # MXU well fed; ct = 256 fills the 256-wide MXU on v6e/v7x.  The tiny-C
    # path (e.g. the C=4 smoke test below) is kept correct but is not the
    # performance target.
    if C >= 128:
        Cp = _round_up(C, 128)
        ct = 256 if Cp % 256 == 0 else 128
    else:
        Cp, ct = C, C
    n_ct = Cp // ct

    # ---- glue: NCHW->NHWC, 1-px zero halo, channel pad, compute-dtype cast --
    # One fused XLA pass over the small ORIGINAL image; the 2x upsample is
    # never materialised in HBM.
    x_nhwc = jnp.transpose(x_nchw, (0, 2, 3, 1))
    xp = jnp.pad(x_nhwc, ((0, 0), (1, 1), (1, 1), (0, Cp - C))).astype(compute_dtype)

    # ---- phase-decomposed weights --------------------------------------------
    # Taps of the 3x3 kernel that land on the same original pixel for a given
    # output phase are pre-summed in f32, then cast to the compute dtype.
    w = jnp.transpose(weight_oihw, (2, 3, 1, 0)).astype(jnp.float32)  # (ky,kx,Ci,Co)
    wr = jnp.stack(
        [jnp.stack([w[0], w[1] + w[2]], axis=0),            # output phase py = 0
         jnp.stack([w[0] + w[1], w[2]], axis=0)],           # output phase py = 1
        axis=0)                                              # (py, ry, kx, Ci, Co)
    wp = jnp.stack(
        [jnp.stack([wr[:, :, 0], wr[:, :, 1] + wr[:, :, 2]], axis=2),   # px = 0
         jnp.stack([wr[:, :, 0] + wr[:, :, 1], wr[:, :, 2]], axis=2)],  # px = 1
        axis=1)                                              # (py, px, ry, rx, Ci, Co)
    wp = wp.reshape(4, 4, C, C)
    wp = jnp.pad(wp, ((0, 0), (0, 0), (0, Cp - C), (0, Cp - C))).astype(compute_dtype)
    b2 = jnp.pad(bias, (0, Cp - C)).reshape(1, Cp).astype(jnp.float32)

    # ---- per-step VMEM estimate; only raise the scoped limit when needed -----
    csize = jnp.dtype(compute_dtype).itemsize
    vmem_est = (2 * (H + 2) * (W + 2) * Cp * csize      # input block (double buffered)
                + 2 * 16 * Cp * ct * csize               # weight block
                + 2 * 4 * H * W * ct * csize             # output block
                + 3 * (H + 2) * W * Cp * csize           # shifted-copy scratch
                + H * W * ct * 4)                        # f32 accumulator
    vmem_limit = None
    if vmem_est > 30 * 1024 * 1024:
        # TODO(synk): for very large feature maps on v7x (64 MiB VMEM), add
        # H-row tiling with a 2-row halo instead of raising the limit.
        vmem_limit = min(int(vmem_est * 1.3), 100 * 1024 * 1024)

    out_p = pl.pallas_call(
        _upsample_conv_kernel,
        out_shape=jax.ShapeDtypeStruct((B, 4, H, W, Cp), compute_dtype),
        grid=(B, n_ct),
        in_specs=[
            pl.BlockSpec((1, H + 2, W + 2, Cp), lambda b, n: (b, 0, 0, 0)),
            pl.BlockSpec((4, 4, Cp, ct), lambda b, n: (0, 0, 0, n)),
            pl.BlockSpec((1, ct), lambda b, n: (0, n)),
        ],
        out_specs=pl.BlockSpec((1, 4, H, W, ct), lambda b, n: (b, 0, 0, 0, n)),
        scratch_shapes=[
            pltpu.VMEM((3, H + 2, W, Cp), compute_dtype),
            pltpu.VMEM((H * W, ct), jnp.float32),
        ],
        compiler_params=pltpu.CompilerParams(
            dimension_semantics=("parallel", "parallel"),
            vmem_limit_bytes=vmem_limit,
        ),
    )(xp, wp, b2)

    # Epilogue (runs in compute dtype; final cast fuses into the same pass):
    # phase interleave + NHWC->NCHW,
    #   out_p[b, py*2+px, i, j, c] -> out[b, c, 2*i+py, 2*j+px].
    # TODO(synk): if the consumer accepts NHWC (B, 2H, 2W, C), return before the
    # channel transpose to save one full HBM pass over the 4x-sized output.
    out_p = out_p[..., :C]                                   # drop Cout padding
    out_p = out_p.reshape(B, 2, 2, H, W, C)
    out = jnp.transpose(out_p, (0, 5, 3, 1, 4, 2)).reshape(B, C, 2 * H, 2 * W)
    return out.astype(out_dtype)


if __name__ == "__main__":
    key = jax.random.PRNGKey(0)
    B, C, H, W = 2, 4, 16, 16
    kx, kw, kb = jax.random.split(key, 3)

    x = jax.random.normal(kx, (B, C, H, W), dtype=jnp.float32)

    # Deterministic Conv2d(C, C, 3, padding=1) params (PyTorch-style uniform init).
    fan_in = C * 3 * 3
    bound = 1.0 / math.sqrt(fan_in)
    weight = jax.random.uniform(kw, (C, C, 3, 3), jnp.float32, -bound, bound)  # OIHW
    bias = jax.random.uniform(kb, (C,), jnp.float32, -bound, bound)

    out = jax.block_until_ready(upsample_forward(x, weight, bias))

    # Pure-JAX f32 reference: nearest-2x upsample then 3x3 same-pad conv.
    x_up = jnp.repeat(jnp.repeat(x, 2, axis=2), 2, axis=3)
    ref = jax.lax.conv_general_dilated(
        x_up, weight, window_strides=(1, 1), padding=((1, 1), (1, 1)),
        dimension_numbers=("NCHW", "OIHW", "NCHW"),
    ) + bias[None, :, None, None]

    assert out.shape == (B, C, 2 * H, 2 * W), out.shape
    max_err = float(jnp.max(jnp.abs(out - ref)))
    # bf16 matmuls/storage with f32 accumulation -> small tolerance vs f32 ref.
    assert max_err < 4e-2, max_err
    print("KERNEL_OK")
</pallas_src>

<mosaic_0001>
module attributes {stable_mosaic.version = 11 : i64} {
  func.func @_upsample_conv_kernel(%arg0: i32, %arg1: i32, %arg2: memref<1x18x18x4xbf16, #tpu.memory_space<vmem>>, %arg3: memref<4x4x4x4xbf16, #tpu.memory_space<vmem>>, %arg4: memref<1x4xf32, #tpu.memory_space<vmem>>, %arg5: memref<1x4x16x16x4xbf16, #tpu.memory_space<vmem>>, %arg6: memref<3x18x16x4xbf16, #tpu.memory_space<vmem>>, %arg7: memref<256x4xf32, #tpu.memory_space<vmem>>) attributes {dimension_semantics = [#tpu.dimension_semantics<parallel>, #tpu.dimension_semantics<parallel>], iteration_bounds = array<i64: 2, 1>, scalar_prefetch = 0 : i64, scratch_operands = 2 : i64, tpu.core_type = #tpu.core_type<tc>, window_params = [{transform_indices = @transform_0, window_bounds = array<i64: 1, 18, 18, 4>}, {transform_indices = @transform_1, window_bounds = array<i64: 4, 4, 4, 4>}, {transform_indices = @transform_2, window_bounds = array<i64: 1, 4>}, {transform_indices = @transform_3, window_bounds = array<i64: 1, 4, 16, 16, 4>}]} {
    %c0 = arith.constant 0 : index
    %c0_0 = arith.constant 0 : index
    %c0_1 = arith.constant 0 : index
    %c0_2 = arith.constant 0 : index
    %0 = vector.load %arg2[%c0, %c0_0, %c0_1, %c0_2] : memref<1x18x18x4xbf16, #tpu.memory_space<vmem>>, vector<1x18x16x4xbf16>
    %1 = vector.shape_cast %0 : vector<1x18x16x4xbf16> to vector<18x16x4xbf16>
    %c0_3 = arith.constant 0 : index
    %c0_4 = arith.constant 0 : index
    %c0_5 = arith.constant 0 : index
    %c0_6 = arith.constant 0 : index
    %2 = vector.load %arg6[%c0_3, %c0_4, %c0_5, %c0_6] : memref<3x18x16x4xbf16, #tpu.memory_space<vmem>>, vector<1x18x16x4xbf16>
    %3 = vector.shape_cast %2 : vector<1x18x16x4xbf16> to vector<18x16x4xbf16>
    %4 = vector.shape_cast %1 : vector<18x16x4xbf16> to vector<1x18x16x4xbf16>
    tpu.vector_store %arg6[%c0_3, %c0_4, %c0_5, %c0_6], %4 {strides = array<i32>} : memref<3x18x16x4xbf16, #tpu.memory_space<vmem>>, vector<1x18x16x4xbf16>,
    %c0_7 = arith.constant 0 : index
    %c0_8 = arith.constant 0 : index
    %c1 = arith.constant 1 : index
    %c0_9 = arith.constant 0 : index
    %5 = vector.load %arg2[%c0_7, %c0_8, %c1, %c0_9] : memref<1x18x18x4xbf16, #tpu.memory_space<vmem>>, vector<1x18x16x4xbf16>
    %6 = vector.shape_cast %5 : vector<1x18x16x4xbf16> to vector<18x16x4xbf16>
    %c1_10 = arith.constant 1 : index
    %c0_11 = arith.constant 0 : index
    %c0_12 = arith.constant 0 : index
    %c0_13 = arith.constant 0 : index
    %7 = vector.load %arg6[%c1_10, %c0_11, %c0_12, %c0_13] : memref<3x18x16x4xbf16, #tpu.memory_space<vmem>>, vector<1x18x16x4xbf16>
    %8 = vector.shape_cast %7 : vector<1x18x16x4xbf16> to vector<18x16x4xbf16>
    %9 = vector.shape_cast %6 : vector<18x16x4xbf16> to vector<1x18x16x4xbf16>
    tpu.vector_store %arg6[%c1_10, %c0_11, %c0_12, %c0_13], %9 {strides = array<i32>} : memref<3x18x16x4xbf16, #tpu.memory_space<vmem>>, vector<1x18x16x4xbf16>,
    %c0_14 = arith.constant 0 : index
    %c0_15 = arith.constant 0 : index
    %c2 = arith.constant 2 : index
    %c0_16 = arith.constant 0 : index
    %10 = vector.load %arg2[%c0_14, %c0_15, %c2, %c0_16] : memref<1x18x18x4xbf16, #tpu.memory_space<vmem>>, vector<1x18x16x4xbf16>
    %11 = vector.shape_cast %10 : vector<1x18x16x4xbf16> to vector<18x16x4xbf16>
    %c2_17 = arith.constant 2 : index
    %c0_18 = arith.constant 0 : index
    %c0_19 = arith.constant 0 : index
    %c0_20 = arith.constant 0 : index
    %12 = vector.load %arg6[%c2_17, %c0_18, %c0_19, %c0_20] : memref<3x18x16x4xbf16, #tpu.memory_space<vmem>>, vector<1x18x16x4xbf16>
    %13 = vector.shape_cast %12 : vector<1x18x16x4xbf16> to vector<18x16x4xbf16>
    %14 = vector.shape_cast %11 : vector<18x16x4xbf16> to vector<1x18x16x4xbf16>
    tpu.vector_store %arg6[%c2_17, %c0_18, %c0_19, %c0_20], %14 {strides = array<i32>} : memref<3x18x16x4xbf16, #tpu.memory_space<vmem>>, vector<1x18x16x4xbf16>,
    %c0_21 = arith.constant 0 : index
    %c0_22 = arith.constant 0 : index
    %15 = vector.load %arg4[%c0_21, %c0_22] : memref<1x4xf32, #tpu.memory_space<vmem>>, vector<1x4xf32>
    %c0_23 = arith.constant 0 : index
    %c0_24 = arith.constant 0 : index
    %c0_25 = arith.constant 0 : index
    %c0_26 = arith.constant 0 : index
    %16 = vector.load %arg6[%c0_23, %c0_24, %c0_25, %c0_26] : memref<3x18x16x4xbf16, #tpu.memory_space<vmem>>, vector<1x16x16x4xbf16>
    %17 = vector.shape_cast %16 : vector<1x16x16x4xbf16> to vector<16x16x4xbf16>
    %18 = vector.shape_cast %17 : vector<16x16x4xbf16> to vector<256x4xbf16>
    %c0_27 = arith.constant 0 : index
    %c0_28 = arith.constant 0 : index
    %c0_29 = arith.constant 0 : index
    %c0_30 = arith.constant 0 : index
    %19 = vector.load %arg3[%c0_27, %c0_28, %c0_29, %c0_30] : memref<4x4x4x4xbf16, #tpu.memory_space<vmem>>, vector<1x1x4x4xbf16>
    %20 = vector.shape_cast %19 : vector<1x1x4x4xbf16> to vector<4x4xbf16>
    %cst = arith.constant dense<0.000000e+00> : vector<256x4xf32>
    %21 = tpu.matmul %18, %20, %cst {dimension_numbers = #tpu.dot_dimension_numbers<[1], [0], [0], [1], [0, 0, 1, 1], [], []>} : vector<256x4xbf16>, vector<4x4xbf16>, vector<256x4xf32> -> vector<256x4xf32>
    %22 = vector.broadcast %15 : vector<1x4xf32> to vector<256x4xf32>
    %23 = arith.addf %21, %22 : vector<256x4xf32>
    %c0_31 = arith.constant 0 : index
    %c0_32 = arith.constant 0 : index
    %24 = vector.load %arg7[%c0_31, %c0_32] : memref<256x4xf32, #tpu.memory_space<vmem>>, vector<256x4xf32>
    tpu.vector_store %arg7[%c0_31, %c0_32], %23 {strides = array<i32>} : memref<256x4xf32, #tpu.memory_space<vmem>>, vector<256x4xf32>,
    %c1_33 = arith.constant 1 : index
    %c0_34 = arith.constant 0 : index
    %c0_35 = arith.constant 0 : index
    %c0_36 = arith.constant 0 : index
    %25 = vector.load %arg6[%c1_33, %c0_34, %c0_35, %c0_36] : memref<3x18x16x4xbf16, #tpu.memory_space<vmem>>, vector<1x16x16x4xbf16>
    %26 = vector.shape_cast %25 : vector<1x16x16x4xbf16> to vector<16x16x4xbf16>
    %27 = vector.shape_cast %26 : vector<16x16x4xbf16> to vector<256x4xbf16>
    %c0_37 = arith.constant 0 : index
    %c1_38 = arith.constant 1 : index
    %c0_39 = arith.constant 0 : index
    %c0_40 = arith.constant 0 : index
    %28 = vector.load %arg3[%c0_37, %c1_38, %c0_39, %c0_40] : memref<4x4x4x4xbf16, #tpu.memory_space<vmem>>, vector<1x1x4x4xbf16>
    %29 = vector.shape_cast %28 : vector<1x1x4x4xbf16> to vector<4x4xbf16>
    %cst_41 = arith.constant dense<0.000000e+00> : vector<256x4xf32>
    %30 = tpu.matmul %27, %29, %cst_41 {dimension_numbers = #tpu.dot_dimension_numbers<[1], [0], [0], [1], [0, 0, 1, 1], [], []>} : vector<256x4xbf16>, vector<4x4xbf16>, vector<256x4xf32> -> vector<256x4xf32>
    %c0_42 = arith.constant 0 : index
    %c0_43 = arith.constant 0 : index
    %31 = vector.load %arg7[%c0_42, %c0_43] : memref<256x4xf32, #tpu.memory_space<vmem>>, vector<256x4xf32>
    %32 = arith.addf %31, %30 : vector<256x4xf32>
    %c0_44 = arith.constant 0 : index
    %c0_45 = arith.constant 0 : index
    %33 = vector.load %arg7[%c0_44, %c0_45] : memref<256x4xf32, #tpu.memory_space<vmem>>, vector<256x4xf32>
    tpu.vector_store %arg7[%c0_44, %c0_45], %32 {strides = array<i32>} : memref<256x4xf32, #tpu.memory_space<vmem>>, vector<256x4xf32>,
    %c0_46 = arith.constant 0 : index
    %c1_47 = arith.constant 1 : index
    %c0_48 = arith.constant 0 : index
    %c0_49 = arith.constant 0 : index
    %34 = vector.load %arg6[%c0_46, %c1_47, %c0_48, %c0_49] : memref<3x18x16x4xbf16, #tpu.memory_space<vmem>>, vector<1x16x16x4xbf16>
    %35 = vector.shape_cast %34 : vector<1x16x16x4xbf16> to vector<16x16x4xbf16>
    %36 = vector.shape_cast %35 : vector<16x16x4xbf16> to vector<256x4xbf16>
    %c0_50 = arith.constant 0 : index
    %c2_51 = arith.constant 2 : index
    %c0_52 = arith.constant 0 : index
    %c0_53 = arith.constant 0 : index
    %37 = vector.load %arg3[%c0_50, %c2_51, %c0_52, %c0_53] : memref<4x4x4x4xbf16, #tpu.memory_space<vmem>>, vector<1x1x4x4xbf16>
    %38 = vector.shape_cast %37 : vector<1x1x4x4xbf16> to vector<4x4xbf16>
    %cst_54 = arith.constant dense<0.000000e+00> : vector<256x4xf32>
    %39 = tpu.matmul %36, %38, %cst_54 {dimension_numbers = #tpu.dot_dimension_numbers<[1], [0], [0], [1], [0, 0, 1, 1], [], []>} : vector<256x4xbf16>, vector<4x4xbf16>, vector<256x4xf32> -> vector<256x4xf32>
    %c0_55 = arith.constant 0 : index
    %c0_56 = arith.constant 0 : index
    %40 = vector.load %arg7[%c0_55, %c0_56] : memref<256x4xf32, #tpu.memory_space<vmem>>, vector<256x4xf32>
    %41 = arith.addf %40, %39 : vector<256x4xf32>
    %c0_57 = arith.constant 0 : index
    %c0_58 = arith.constant 0 : index
    %42 = vector.load %arg7[%c0_57, %c0_58] : memref<256x4xf32, #tpu.memory_space<vmem>>, vector<256x4xf32>
    tpu.vector_store %arg7[%c0_57, %c0_58], %41 {strides = array<i32>} : memref<256x4xf32, #tpu.memory_space<vmem>>, vector<256x4xf32>,
    %c1_59 = arith.constant 1 : index
    %c1_60 = arith.constant 1 : index
    %c0_61 = arith.constant 0 : index
    %c0_62 = arith.constant 0 : index
    %43 = vector.load %arg6[%c1_59, %c1_60, %c0_61, %c0_62] : memref<3x18x16x4xbf16, #tpu.memory_space<vmem>>, vector<1x16x16x4xbf16>
    %44 = vector.shape_cast %43 : vector<1x16x16x4xbf16> to vector<16x16x4xbf16>
    %45 = vector.shape_cast %44 : vector<16x16x4xbf16> to vector<256x4xbf16>
    %c0_63 = arith.constant 0 : index
    %c3 = arith.constant 3 : index
    %c0_64 = arith.constant 0 : index
    %c0_65 = arith.constant 0 : index
    %46 = vector.load %arg3[%c0_63, %c3, %c0_64, %c0_65] : memref<4x4x4x4xbf16, #tpu.memory_space<vmem>>, vector<1x1x4x4xbf16>
    %47 = vector.shape_cast %46 : vector<1x1x4x4xbf16> to vector<4x4xbf16>
    %cst_66 = arith.constant dense<0.000000e+00> : vector<256x4xf32>
    %48 = tpu.matmul %45, %47, %cst_66 {dimension_numbers = #tpu.dot_dimension_numbers<[1], [0], [0], [1], [0, 0, 1, 1], [], []>} : vector<256x4xbf16>, vector<4x4xbf16>, vector<256x4xf32> -> vector<256x4xf32>
    %c0_67 = arith.constant 0 : index
    %c0_68 = arith.constant 0 : index
    %49 = vector.load %arg7[%c0_67, %c0_68] : memref<256x4xf32, #tpu.memory_space<vmem>>, vector<256x4xf32>
    %50 = arith.addf %49, %48 : vector<256x4xf32>
    %c0_69 = arith.constant 0 : index
    %c0_70 = arith.constant 0 : index
    %51 = vector.load %arg7[%c0_69, %c0_70] : memref<256x4xf32, #tpu.memory_space<vmem>>, vector<256x4xf32>
    tpu.vector_store %arg7[%c0_69, %c0_70], %50 {strides = array<i32>} : memref<256x4xf32, #tpu.memory_space<vmem>>, vector<256x4xf32>,
    %c0_71 = arith.constant 0 : index
    %c0_72 = arith.constant 0 : index
    %52 = vector.load %arg7[%c0_71, %c0_72] : memref<256x4xf32, #tpu.memory_space<vmem>>, vector<256x4xf32>
    %53 = vector.shape_cast %52 : vector<256x4xf32> to vector<16x16x4xf32>
    %54 = arith.truncf %53 : vector<16x16x4xf32> to vector<16x16x4xbf16>
    %c0_73 = arith.constant 0 : index
    %c0_74 = arith.constant 0 : index
    %c0_75 = arith.constant 0 : index
    %c0_76 = arith.constant 0 : index
    %c0_77 = arith.constant 0 : index
    %55 = vector.load %arg5[%c0_73, %c0_74, %c0_75, %c0_76, %c0_77] : memref<1x4x16x16x4xbf16, #tpu.memory_space<vmem>>, vector<1x1x16x16x4xbf16>
    %56 = vector.shape_cast %55 : vector<1x1x16x16x4xbf16> to vector<16x16x4xbf16>
    %57 = vector.shape_cast %54 : vector<16x16x4xbf16> to vector<1x1x16x16x4xbf16>
    tpu.vector_store %arg5[%c0_73, %c0_74, %c0_75, %c0_76, %c0_77], %57 {strides = array<i32>} : memref<1x4x16x16x4xbf16, #tpu.memory_space<vmem>>, vector<1x1x16x16x4xbf16>,
    %c1_78 = arith.constant 1 : index
    %c0_79 = arith.constant 0 : index
    %c0_80 = arith.constant 0 : index
    %c0_81 = arith.constant 0 : index
    %58 = vector.load %arg6[%c1_78, %c0_79, %c0_80, %c0_81] : memref<3x18x16x4xbf16, #tpu.memory_space<vmem>>, vector<1x16x16x4xbf16>
    %59 = vector.shape_cast %58 : vector<1x16x16x4xbf16> to vector<16x16x4xbf16>
    %60 = vector.shape_cast %59 : vector<16x16x4xbf16> to vector<256x4xbf16>
    %c1_82 = arith.constant 1 : index
    %c0_83 = arith.constant 0 : index
    %c0_84 = arith.constant 0 : index
    %c0_85 = arith.constant 0 : index
    %61 = vector.load %arg3[%c1_82, %c0_83, %c0_84, %c0_85] : memref<4x4x4x4xbf16, #tpu.memory_space<vmem>>, vector<1x1x4x4xbf16>
    %62 = vector.shape_cast %61 : vector<1x1x4x4xbf16> to vector<4x4xbf16>
    %cst_86 = arith.constant dense<0.000000e+00> : vector<256x4xf32>
    %63 = tpu.matmul %60, %62, %cst_86 {dimension_numbers = #tpu.dot_dimension_numbers<[1], [0], [0], [1], [0, 0, 1, 1], [], []>} : vector<256x4xbf16>, vector<4x4xbf16>, vector<256x4xf32> -> vector<256x4xf32>
    %64 = vector.broadcast %15 : vector<1x4xf32> to vector<256x4xf32>
    %65 = arith.addf %63, %64 : vector<256x4xf32>
    %c0_87 = arith.constant 0 : index
    %c0_88 = arith.constant 0 : index
    %66 = vector.load %arg7[%c0_87, %c0_88] : memref<256x4xf32, #tpu.memory_space<vmem>>, vector<256x4xf32>
    tpu.vector_store %arg7[%c0_87, %c0_88], %65 {strides = array<i32>} : memref<256x4xf32, #tpu.memory_space<vmem>>, vector<256x4xf32>,
    %c2_89 = arith.constant 2 : index
    %c0_90 = arith.constant 0 : index
    %c0_91 = arith.constant 0 : index
    %c0_92 = arith.constant 0 : index
    %67 = vector.load %arg6[%c2_89, %c0_90, %c0_91, %c0_92] : memref<3x18x16x4xbf16, #tpu.memory_space<vmem>>, vector<1x16x16x4xbf16>
    %68 = vector.shape_cast %67 : vector<1x16x16x4xbf16> to vector<16x16x4xbf16>
    %69 = vector.shape_cast %68 : vector<16x16x4xbf16> to vector<256x4xbf16>
    %c1_93 = arith.constant 1 : index
    %c1_94 = arith.constant 1 : index
    %c0_95 = arith.constant 0 : index
    %c0_96 = arith.constant 0 : index
    %70 = vector.load %arg3[%c1_93, %c1_94, %c0_95, %c0_96] : memref<4x4x4x4xbf16, #tpu.memory_space<vmem>>, vector<1x1x4x4xbf16>
    %71 = vector.shape_cast %70 : vector<1x1x4x4xbf16> to vector<4x4xbf16>
    %cst_97 = arith.constant dense<0.000000e+00> : vector<256x4xf32>
    %72 = tpu.matmul %69, %71, %cst_97 {dimension_numbers = #tpu.dot_dimension_numbers<[1], [0], [0], [1], [0, 0, 1, 1], [], []>} : vector<256x4xbf16>, vector<4x4xbf16>, vector<256x4xf32> -> vector<256x4xf32>
    %c0_98 = arith.constant 0 : index
    %c0_99 = arith.constant 0 : index
    %73 = vector.load %arg7[%c0_98, %c0_99] : memref<256x4xf32, #tpu.memory_space<vmem>>, vector<256x4xf32>
    %74 = arith.addf %73, %72 : vector<256x4xf32>
    %c0_100 = arith.constant 0 : index
    %c0_101 = arith.constant 0 : index
    %75 = vector.load %arg7[%c0_100, %c0_101] : memref<256x4xf32, #tpu.memory_space<vmem>>, vector<256x4xf32>
    tpu.vector_store %arg7[%c0_100, %c0_101], %74 {strides = array<i32>} : memref<256x4xf32, #tpu.memory_space<vmem>>, vector<256x4xf32>,
    %c1_102 = arith.constant 1 : index
    %c1_103 = arith.constant 1 : index
    %c0_104 = arith.constant 0 : index
    %c0_105 = arith.constant 0 : index
    %76 = vector.load %arg6[%c1_102, %c1_103, %c0_104, %c0_105] : memref<3x18x16x4xbf16, #tpu.memory_space<vmem>>, vector<1x16x16x4xbf16>
    %77 = vector.shape_cast %76 : vector<1x16x16x4xbf16> to vector<16x16x4xbf16>
    %78 = vector.shape_cast %77 : vector<16x16x4xbf16> to vector<256x4xbf16>
    %c1_106 = arith.constant 1 : index
    %c2_107 = arith.constant 2 : index
    %c0_108 = arith.constant 0 : index
    %c0_109 = arith.constant 0 : index
    %79 = vector.load %arg3[%c1_106, %c2_107, %c0_108, %c0_109] : memref<4x4x4x4xbf16, #tpu.memory_space<vmem>>, vector<1x1x4x4xbf16>
    %80 = vector.shape_cast %79 : vector<1x1x4x4xbf16> to vector<4x4xbf16>
    %cst_110 = arith.constant dense<0.000000e+00> : vector<256x4xf32>
    %81 = tpu.matmul %78, %80, %cst_110 {dimension_numbers = #tpu.dot_dimension_numbers<[1], [0], [0], [1], [0, 0, 1, 1], [], []>} : vector<256x4xbf16>, vector<4x4xbf16>, vector<256x4xf32> -> vector<256x4xf32>
    %c0_111 = arith.constant 0 : index
    %c0_112 = arith.constant 0 : index
    %82 = vector.load %arg7[%c0_111, %c0_112] : memref<256x4xf32, #tpu.memory_space<vmem>>, vector<256x4xf32>
    %83 = arith.addf %82, %81 : vector<256x4xf32>
    %c0_113 = arith.constant 0 : index
    %c0_114 = arith.constant 0 : index
    %84 = vector.load %arg7[%c0_113, %c0_114] : memref<256x4xf32, #tpu.memory_space<vmem>>, vector<256x4xf32>
    tpu.vector_store %arg7[%c0_113, %c0_114], %83 {strides = array<i32>} : memref<256x4xf32, #tpu.memory_space<vmem>>, vector<256x4xf32>,
    %c2_115 = arith.constant 2 : index
    %c1_116 = arith.constant 1 : index
    %c0_117 = arith.constant 0 : index
    %c0_118 = arith.constant 0 : index
    %85 = vector.load %arg6[%c2_115, %c1_116, %c0_117, %c0_118] : memref<3x18x16x4xbf16, #tpu.memory_space<vmem>>, vector<1x16x16x4xbf16>
    %86 = vector.shape_cast %85 : vector<1x16x16x4xbf16> to vector<16x16x4xbf16>
    %87 = vector.shape_cast %86 : vector<16x16x4xbf16> to vector<256x4xbf16>
    %c1_119 = arith.constant 1 : index
    %c3_120 = arith.constant 3 : index
    %c0_121 = arith.constant 0 : index
    %c0_122 = arith.constant 0 : index
    %88 = vector.load %arg3[%c1_119, %c3_120, %c0_121, %c0_122] : memref<4x4x4x4xbf16, #tpu.memory_space<vmem>>, vector<1x1x4x4xbf16>
    %89 = vector.shape_cast %88 : vector<1x1x4x4xbf16> to vector<4x4xbf16>
    %cst_123 = arith.constant dense<0.000000e+00> : vector<256x4xf32>
    %90 = tpu.matmul %87, %89, %cst_123 {dimension_numbers = #tpu.dot_dimension_numbers<[1], [0], [0], [1], [0, 0, 1, 1], [], []>} : vector<256x4xbf16>, vector<4x4xbf16>, vector<256x4xf32> -> vector<256x4xf32>
    %c0_124 = arith.constant 0 : index
    %c0_125 = arith.constant 0 : index
    %91 = vector.load %arg7[%c0_124, %c0_125] : memref<256x4xf32, #tpu.memory_space<vmem>>, vector<256x4xf32>
    %92 = arith.addf %91, %90 : vector<256x4xf32>
    %c0_126 = arith.constant 0 : index
    %c0_127 = arith.constant 0 : index
    %93 = vector.load %arg7[%c0_126, %c0_127] : memref<256x4xf32, #tpu.memory_space<vmem>>, vector<256x4xf32>
    tpu.vector_store %arg7[%c0_126, %c0_127], %92 {strides = array<i32>} : memref<256x4xf32, #tpu.memory_space<vmem>>, vector<256x4xf32>,
    %c0_128 = arith.constant 0 : index
    %c0_129 = arith.constant 0 : index
    %94 = vector.load %arg7[%c0_128, %c0_129] : memref<256x4xf32, #tpu.memory_space<vmem>>, vector<256x4xf32>
    %95 = vector.shape_cast %94 : vector<256x4xf32> to vector<16x16x4xf32>
    %96 = arith.truncf %95 : vector<16x16x4xf32> to vector<16x16x4xbf16>
    %c0_130 = arith.constant 0 : index
    %c1_131 = arith.constant 1 : index
    %c0_132 = arith.constant 0 : index
    %c0_133 = arith.constant 0 : index
    %c0_134 = arith.constant 0 : index
    %97 = vector.load %arg5[%c0_130, %c1_131, %c0_132, %c0_133, %c0_134] : memref<1x4x16x16x4xbf16, #tpu.memory_space<vmem>>, vector<1x1x16x16x4xbf16>
    %98 = vector.shape_cast %97 : vector<1x1x16x16x4xbf16> to vector<16x16x4xbf16>
    %99 = vector.shape_cast %96 : vector<16x16x4xbf16> to vector<1x1x16x16x4xbf16>
    tpu.vector_store %arg5[%c0_130, %c1_131, %c0_132, %c0_133, %c0_134], %99 {strides = array<i32>} : memref<1x4x16x16x4xbf16, #tpu.memory_space<vmem>>, vector<1x1x16x16x4xbf16>,
    %c0_135 = arith.constant 0 : index
    %c1_136 = arith.constant 1 : index
    %c0_137 = arith.constant 0 : index
    %c0_138 = arith.constant 0 : index
    %100 = vector.load %arg6[%c0_135, %c1_136, %c0_137, %c0_138] : memref<3x18x16x4xbf16, #tpu.memory_space<vmem>>, vector<1x16x16x4xbf16>
    %101 = vector.shape_cast %100 : vector<1x16x16x4xbf16> to vector<16x16x4xbf16>
    %102 = vector.shape_cast %101 : vector<16x16x4xbf16> to vector<256x4xbf16>
    %c2_139 = arith.constant 2 : index
    %c0_140 = arith.constant 0 : index
    %c0_141 = arith.constant 0 : index
    %c0_142 = arith.constant 0 : index
    %103 = vector.load %arg3[%c2_139, %c0_140, %c0_141, %c0_142] : memref<4x4x4x4xbf16, #tpu.memory_space<vmem>>, vector<1x1x4x4xbf16>
    %104 = vector.shape_cast %103 : vector<1x1x4x4xbf16> to vector<4x4xbf16>
    %cst_143 = arith.constant dense<0.000000e+00> : vector<256x4xf32>
    %105 = tpu.matmul %102, %104, %cst_143 {dimension_numbers = #tpu.dot_dimension_numbers<[1], [0], [0], [1], [0, 0, 1, 1], [], []>} : vector<256x4xbf16>, vector<4x4xbf16>, vector<256x4xf32> -> vector<256x4xf32>
    %106 = vector.broadcast %15 : vector<1x4xf32> to vector<256x4xf32>
    %107 = arith.addf %105, %106 : vector<256x4xf32>
    %c0_144 = arith.constant 0 : index
    %c0_145 = arith.constant 0 : index
    %108 = vector.load %arg7[%c0_144, %c0_145] : memref<256x4xf32, #tpu.memory_space<vmem>>, vector<256x4xf32>
    tpu.vector_store %arg7[%c0_144, %c0_145], %107 {strides = array<i32>} : memref<256x4xf32, #tpu.memory_space<vmem>>, vector<256x4xf32>,
    %c1_146 = arith.constant 1 : index
    %c1_147 = arith.constant 1 : index
    %c0_148 = arith.constant 0 : index
    %c0_149 = arith.constant 0 : index
    %109 = vector.load %arg6[%c1_146, %c1_147, %c0_148, %c0_149] : memref<3x18x16x4xbf16, #tpu.memory_space<vmem>>, vector<1x16x16x4xbf16>
    %110 = vector.shape_cast %109 : vector<1x16x16x4xbf16> to vector<16x16x4xbf16>
    %111 = vector.shape_cast %110 : vector<16x16x4xbf16> to vector<256x4xbf16>
    %c2_150 = arith.constant 2 : index
    %c1_151 = arith.constant 1 : index
    %c0_152 = arith.constant 0 : index
    %c0_153 = arith.constant 0 : index
    %112 = vector.load %arg3[%c2_150, %c1_151, %c0_152, %c0_153] : memref<4x4x4x4xbf16, #tpu.memory_space<vmem>>, vector<1x1x4x4xbf16>
    %113 = vector.shape_cast %112 : vector<1x1x4x4xbf16> to vector<4x4xbf16>
    %cst_154 = arith.constant dense<0.000000e+00> : vector<256x4xf32>
    %114 = tpu.matmul %111, %113, %cst_154 {dimension_numbers = #tpu.dot_dimension_numbers<[1], [0], [0], [1], [0, 0, 1, 1], [], []>} : vector<256x4xbf16>, vector<4x4xbf16>, vector<256x4xf32> -> vector<256x4xf32>
    %c0_155 = arith.constant 0 : index
    %c0_156 = arith.constant 0 : index
    %115 = vector.load %arg7[%c0_155, %c0_156] : memref<256x4xf32, #tpu.memory_space<vmem>>, vector<256x4xf32>
    %116 = arith.addf %115, %114 : vector<256x4xf32>
    %c0_157 = arith.constant 0 : index
    %c0_158 = arith.constant 0 : index
    %117 = vector.load %arg7[%c0_157, %c0_158] : memref<256x4xf32, #tpu.memory_space<vmem>>, vector<256x4xf32>
    tpu.vector_store %arg7[%c0_157, %c0_158], %116 {strides = array<i32>} : memref<256x4xf32, #tpu.memory_space<vmem>>, vector<256x4xf32>,
    %c0_159 = arith.constant 0 : index
    %c2_160 = arith.constant 2 : index
    %c0_161 = arith.constant 0 : index
    %c0_162 = arith.constant 0 : index
    %118 = vector.load %arg6[%c0_159, %c2_160, %c0_161, %c0_162] : memref<3x18x16x4xbf16, #tpu.memory_space<vmem>>, vector<1x16x16x4xbf16>
    %119 = vector.shape_cast %118 : vector<1x16x16x4xbf16> to vector<16x16x4xbf16>
    %120 = vector.shape_cast %119 : vector<16x16x4xbf16> to vector<256x4xbf16>
    %c2_163 = arith.constant 2 : index
    %c2_164 = arith.constant 2 : index
    %c0_165 = arith.constant 0 : index
    %c0_166 = arith.constant 0 : index
    %121 = vector.load %arg3[%c2_163, %c2_164, %c0_165, %c0_166] : memref<4x4x4x4xbf16, #tpu.memory_space<vmem>>, vector<1x1x4x4xbf16>
    %122 = vector.shape_cast %121 : vector<1x1x4x4xbf16> to vector<4x4xbf16>
    %cst_167 = arith.constant dense<0.000000e+00> : vector<256x4xf32>
    %123 = tpu.matmul %120, %122, %cst_167 {dimension_numbers = #tpu.dot_dimension_numbers<[1], [0], [0], [1], [0, 0, 1, 1], [], []>} : vector<256x4xbf16>, vector<4x4xbf16>, vector<256x4xf32> -> vector<256x4xf32>
    %c0_168 = arith.constant 0 : index
    %c0_169 = arith.constant 0 : index
    %124 = vector.load %arg7[%c0_168, %c0_169] : memref<256x4xf32, #tpu.memory_space<vmem>>, vector<256x4xf32>
    %125 = arith.addf %124, %123 : vector<256x4xf32>
    %c0_170 = arith.constant 0 : index
    %c0_171 = arith.constant 0 : index
    %126 = vector.load %arg7[%c0_170, %c0_171] : memref<256x4xf32, #tpu.memory_space<vmem>>, vector<256x4xf32>
    tpu.vector_store %arg7[%c0_170, %c0_171], %125 {strides = array<i32>} : memref<256x4xf32, #tpu.memory_space<vmem>>, vector<256x4xf32>,
    %c1_172 = arith.constant 1 : index
    %c2_173 = arith.constant 2 : index
    %c0_174 = arith.constant 0 : index
    %c0_175 = arith.constant 0 : index
    %127 = vector.load %arg6[%c1_172, %c2_173, %c0_174, %c0_175] : memref<3x18x16x4xbf16, #tpu.memory_space<vmem>>, vector<1x16x16x4xbf16>
    %128 = vector.shape_cast %127 : vector<1x16x16x4xbf16> to vector<16x16x4xbf16>
    %129 = vector.shape_cast %128 : vector<16x16x4xbf16> to vector<256x4xbf16>
    %c2_176 = arith.constant 2 : index
    %c3_177 = arith.constant 3 : index
    %c0_178 = arith.constant 0 : index
    %c0_179 = arith.constant 0 : index
    %130 = vector.load %arg3[%c2_176, %c3_177, %c0_178, %c0_179] : memref<4x4x4x4xbf16, #tpu.memory_space<vmem>>, vector<1x1x4x4xbf16>
    %131 = vector.shape_cast %130 : vector<1x1x4x4xbf16> to vector<4x4xbf16>
    %cst_180 = arith.constant dense<0.000000e+00> : vector<256x4xf32>
    %132 = tpu.matmul %129, %131, %cst_180 {dimension_numbers = #tpu.dot_dimension_numbers<[1], [0], [0], [1], [0, 0, 1, 1], [], []>} : vector<256x4xbf16>, vector<4x4xbf16>, vector<256x4xf32> -> vector<256x4xf32>
    %c0_181 = arith.constant 0 : index
    %c0_182 = arith.constant 0 : index
    %133 = vector.load %arg7[%c0_181, %c0_182] : memref<256x4xf32, #tpu.memory_space<vmem>>, vector<256x4xf32>
    %134 = arith.addf %133, %132 : vector<256x4xf32>
    %c0_183 = arith.constant 0 : index
    %c0_184 = arith.constant 0 : index
    %135 = vector.load %arg7[%c0_183, %c0_184] : memref<256x4xf32, #tpu.memory_space<vmem>>, vector<256x4xf32>
    tpu.vector_store %arg7[%c0_183, %c0_184], %134 {strides = array<i32>} : memref<256x4xf32, #tpu.memory_space<vmem>>, vector<256x4xf32>,
    %c0_185 = arith.constant 0 : index
    %c0_186 = arith.constant 0 : index
    %136 = vector.load %arg7[%c0_185, %c0_186] : memref<256x4xf32, #tpu.memory_space<vmem>>, vector<256x4xf32>
    %137 = vector.shape_cast %136 : vector<256x4xf32> to vector<16x16x4xf32>
    %138 = arith.truncf %137 : vector<16x16x4xf32> to vector<16x16x4xbf16>
    %c0_187 = arith.constant 0 : index
    %c2_188 = arith.constant 2 : index
    %c0_189 = arith.constant 0 : index
    %c0_190 = arith.constant 0 : index
    %c0_191 = arith.constant 0 : index
    %139 = vector.load %arg5[%c0_187, %c2_188, %c0_189, %c0_190, %c0_191] : memref<1x4x16x16x4xbf16, #tpu.memory_space<vmem>>, vector<1x1x16x16x4xbf16>
    %140 = vector.shape_cast %139 : vector<1x1x16x16x4xbf16> to vector<16x16x4xbf16>
    %141 = vector.shape_cast %138 : vector<16x16x4xbf16> to vector<1x1x16x16x4xbf16>
    tpu.vector_store %arg5[%c0_187, %c2_188, %c0_189, %c0_190, %c0_191], %141 {strides = array<i32>} : memref<1x4x16x16x4xbf16, #tpu.memory_space<vmem>>, vector<1x1x16x16x4xbf16>,
    %c1_192 = arith.constant 1 : index
    %c1_193 = arith.constant 1 : index
    %c0_194 = arith.constant 0 : index
    %c0_195 = arith.constant 0 : index
    %142 = vector.load %arg6[%c1_192, %c1_193, %c0_194, %c0_195] : memref<3x18x16x4xbf16, #tpu.memory_space<vmem>>, vector<1x16x16x4xbf16>
    %143 = vector.shape_cast %142 : vector<1x16x16x4xbf16> to vector<16x16x4xbf16>
    %144 = vector.shape_cast %143 : vector<16x16x4xbf16> to vector<256x4xbf16>
    %c3_196 = arith.constant 3 : index
    %c0_197 = arith.constant 0 : index
    %c0_198 = arith.constant 0 : index
    %c0_199 = arith.constant 0 : index
    %145 = vector.load %arg3[%c3_196, %c0_197, %c0_198, %c0_199] : memref<4x4x4x4xbf16, #tpu.memory_space<vmem>>, vector<1x1x4x4xbf16>
    %146 = vector.shape_cast %145 : vector<1x1x4x4xbf16> to vector<4x4xbf16>
    %cst_200 = arith.constant dense<0.000000e+00> : vector<256x4xf32>
    %147 = tpu.matmul %144, %146, %cst_200 {dimension_numbers = #tpu.dot_dimension_numbers<[1], [0], [0], [1], [0, 0, 1, 1], [], []>} : vector<256x4xbf16>, vector<4x4xbf16>, vector<256x4xf32> -> vector<256x4xf32>
    %148 = vector.broadcast %15 : vector<1x4xf32> to vector<256x4xf32>
    %149 = arith.addf %147, %148 : vector<256x4xf32>
    %c0_201 = arith.constant 0 : index
    %c0_202 = arith.constant 0 : index
    %150 = vector.load %arg7[%c0_201, %c0_202] : memref<256x4xf32, #tpu.memory_space<vmem>>, vector<256x4xf32>
    tpu.vector_store %arg7[%c0_201, %c0_202], %149 {strides = array<i32>} : memref<256x4xf32, #tpu.memory_space<vmem>>, vector<256x4xf32>,
    %c2_203 = arith.constant 2 : index
    %c1_204 = arith.constant 1 : index
    %c0_205 = arith.constant 0 : index
    %c0_206 = arith.constant 0 : index
    %151 = vector.load %arg6[%c2_203, %c1_204, %c0_205, %c0_206] : memref<3x18x16x4xbf16, #tpu.memory_space<vmem>>, vector<1x16x16x4xbf16>
    %152 = vector.shape_cast %151 : vector<1x16x16x4xbf16> to vector<16x16x4xbf16>
    %153 = vector.shape_cast %152 : vector<16x16x4xbf16> to vector<256x4xbf16>
    %c3_207 = arith.constant 3 : index
    %c1_208 = arith.constant 1 : index
    %c0_209 = arith.constant 0 : index
    %c0_210 = arith.constant 0 : index
    %154 = vector.load %arg3[%c3_207, %c1_208, %c0_209, %c0_210] : memref<4x4x4x4xbf16, #tpu.memory_space<vmem>>, vector<1x1x4x4xbf16>
    %155 = vector.shape_cast %154 : vector<1x1x4x4xbf16> to vector<4x4xbf16>
    %cst_211 = arith.constant dense<0.000000e+00> : vector<256x4xf32>
    %156 = tpu.matmul %153, %155, %cst_211 {dimension_numbers = #tpu.dot_dimension_numbers<[1], [0], [0], [1], [0, 0, 1, 1], [], []>} : vector<256x4xbf16>, vector<4x4xbf16>, vector<256x4xf32> -> vector<256x4xf32>
    %c0_212 = arith.constant 0 : index
    %c0_213 = arith.constant 0 : index
    %157 = vector.load %arg7[%c0_212, %c0_213] : memref<256x4xf32, #tpu.memory_space<vmem>>, vector<256x4xf32>
    %158 = arith.addf %157, %156 : vector<256x4xf32>
    %c0_214 = arith.constant 0 : index
    %c0_215 = arith.constant 0 : index
    %159 = vector.load %arg7[%c0_214, %c0_215] : memref<256x4xf32, #tpu.memory_space<vmem>>, vector<256x4xf32>
    tpu.vector_store %arg7[%c0_214, %c0_215], %158 {strides = array<i32>} : memref<256x4xf32, #tpu.memory_space<vmem>>, vector<256x4xf32>,
    %c1_216 = arith.constant 1 : index
    %c2_217 = arith.constant 2 : index
    %c0_218 = arith.constant 0 : index
    %c0_219 = arith.constant 0 : index
    %160 = vector.load %arg6[%c1_216, %c2_217, %c0_218, %c0_219] : memref<3x18x16x4xbf16, #tpu.memory_space<vmem>>, vector<1x16x16x4xbf16>
    %161 = vector.shape_cast %160 : vector<1x16x16x4xbf16> to vector<16x16x4xbf16>
    %162 = vector.shape_cast %161 : vector<16x16x4xbf16> to vector<256x4xbf16>
    %c3_220 = arith.constant 3 : index
    %c2_221 = arith.constant 2 : index
    %c0_222 = arith.constant 0 : index
    %c0_223 = arith.constant 0 : index
    %163 = vector.load %arg3[%c3_220, %c2_221, %c0_222, %c0_223] : memref<4x4x4x4xbf16, #tpu.memory_space<vmem>>, vector<1x1x4x4xbf16>
    %164 = vector.shape_cast %163 : vector<1x1x4x4xbf16> to vector<4x4xbf16>
    %cst_224 = arith.constant dense<0.000000e+00> : vector<256x4xf32>
    %165 = tpu.matmul %162, %164, %cst_224 {dimension_numbers = #tpu.dot_dimension_numbers<[1], [0], [0], [1], [0, 0, 1, 1], [], []>} : vector<256x4xbf16>, vector<4x4xbf16>, vector<256x4xf32> -> vector<256x4xf32>
    %c0_225 = arith.constant 0 : index
    %c0_226 = arith.constant 0 : index
    %166 = vector.load %arg7[%c0_225, %c0_226] : memref<256x4xf32, #tpu.memory_space<vmem>>, vector<256x4xf32>
    %167 = arith.addf %166, %165 : vector<256x4xf32>
    %c0_227 = arith.constant 0 : index
    %c0_228 = arith.constant 0 : index
    %168 = vector.load %arg7[%c0_227, %c0_228] : memref<256x4xf32, #tpu.memory_space<vmem>>, vector<256x4xf32>
    tpu.vector_store %arg7[%c0_227, %c0_228], %167 {strides = array<i32>} : memref<256x4xf32, #tpu.memory_space<vmem>>, vector<256x4xf32>,
    %c2_229 = arith.constant 2 : index
    %c2_230 = arith.constant 2 : index
    %c0_231 = arith.constant 0 : index
    %c0_232 = arith.constant 0 : index
    %169 = vector.load %arg6[%c2_229, %c2_230, %c0_231, %c0_232] : memref<3x18x16x4xbf16, #tpu.memory_space<vmem>>, vector<1x16x16x4xbf16>
    %170 = vector.shape_cast %169 : vector<1x16x16x4xbf16> to vector<16x16x4xbf16>
    %171 = vector.shape_cast %170 : vector<16x16x4xbf16> to vector<256x4xbf16>
    %c3_233 = arith.constant 3 : index
    %c3_234 = arith.constant 3 : index
    %c0_235 = arith.constant 0 : index
    %c0_236 = arith.constant 0 : index
    %172 = vector.load %arg3[%c3_233, %c3_234, %c0_235, %c0_236] : memref<4x4x4x4xbf16, #tpu.memory_space<vmem>>, vector<1x1x4x4xbf16>
    %173 = vector.shape_cast %172 : vector<1x1x4x4xbf16> to vector<4x4xbf16>
    %cst_237 = arith.constant dense<0.000000e+00> : vector<256x4xf32>
    %174 = tpu.matmul %171, %173, %cst_237 {dimension_numbers = #tpu.dot_dimension_numbers<[1], [0], [0], [1], [0, 0, 1, 1], [], []>} : vector<256x4xbf16>, vector<4x4xbf16>, vector<256x4xf32> -> vector<256x4xf32>
    %c0_238 = arith.constant 0 : index
    %c0_239 = arith.constant 0 : index
    %175 = vector.load %arg7[%c0_238, %c0_239] : memref<256x4xf32, #tpu.memory_space<vmem>>, vector<256x4xf32>
    %176 = arith.addf %175, %174 : vector<256x4xf32>
    %c0_240 = arith.constant 0 : index
    %c0_241 = arith.constant 0 : index
    %177 = vector.load %arg7[%c0_240, %c0_241] : memref<256x4xf32, #tpu.memory_space<vmem>>, vector<256x4xf32>
    tpu.vector_store %arg7[%c0_240, %c0_241], %176 {strides = array<i32>} : memref<256x4xf32, #tpu.memory_space<vmem>>, vector<256x4xf32>,
    %c0_242 = arith.constant 0 : index
    %c0_243 = arith.constant 0 : index
    %178 = vector.load %arg7[%c0_242, %c0_243] : memref<256x4xf32, #tpu.memory_space<vmem>>, vector<256x4xf32>
    %179 = vector.shape_cast %178 : vector<256x4xf32> to vector<16x16x4xf32>
    %180 = arith.truncf %179 : vector<16x16x4xf32> to vector<16x16x4xbf16>
    %c0_244 = arith.constant 0 : index
    %c3_245 = arith.constant 3 : index
    %c0_246 = arith.constant 0 : index
    %c0_247 = arith.constant 0 : index
    %c0_248 = arith.constant 0 : index
    %181 = vector.load %arg5[%c0_244, %c3_245, %c0_246, %c0_247, %c0_248] : memref<1x4x16x16x4xbf16, #tpu.memory_space<vmem>>, vector<1x1x16x16x4xbf16>
    %182 = vector.shape_cast %181 : vector<1x1x16x16x4xbf16> to vector<16x16x4xbf16>
    %183 = vector.shape_cast %180 : vector<16x16x4xbf16> to vector<1x1x16x16x4xbf16>
    tpu.vector_store %arg5[%c0_244, %c3_245, %c0_246, %c0_247, %c0_248], %183 {strides = array<i32>} : memref<1x4x16x16x4xbf16, #tpu.memory_space<vmem>>, vector<1x1x16x16x4xbf16>,
    return
  }
  func.func @transform_0(%arg0: i32, %arg1: i32) -> (i32, i32, i32, i32) {
    %c0_i32 = arith.constant 0 : i32
    %c0_i32_0 = arith.constant 0 : i32
    %c0_i32_1 = arith.constant 0 : i32
    %c0_i32_2 = arith.constant 0 : i32
    return %arg0, %c0_i32, %c0_i32_0, %c0_i32_1 : i32, i32, i32, i32
  }
  func.func @transform_1(%arg0: i32, %arg1: i32) -> (i32, i32, i32, i32) {
    %c0_i32 = arith.constant 0 : i32
    %c0_i32_0 = arith.constant 0 : i32
    %c0_i32_1 = arith.constant 0 : i32
    %c0_i32_2 = arith.constant 0 : i32
    return %c0_i32, %c0_i32_0, %c0_i32_1, %arg1 : i32, i32, i32, i32
  }
  func.func @transform_2(%arg0: i32, %arg1: i32) -> (i32, i32) {
    %c0_i32 = arith.constant 0 : i32
    %c0_i32_0 = arith.constant 0 : i32
    return %c0_i32, %arg1 : i32, i32
  }
  func.func @transform_3(%arg0: i32, %arg1: i32) -> (i32, i32, i32, i32, i32) {
    %c0_i32 = arith.constant 0 : i32
    %c0_i32_0 = arith.constant 0 : i32
    %c0_i32_1 = arith.constant 0 : i32
    %c0_i32_2 = arith.constant 0 : i32
    return %arg0, %c0_i32, %c0_i32_0, %c0_i32_1, %arg1 : i32, i32, i32, i32, i32
  }
}

</mosaic_0001>

<bundles_post_ra>
// kernel: upsample_forward.1
= control target key start
LH: loop header
LB: loop body
LE: loop exit
PB: predicated region body
PF: predicated region fallthrough
CT: control target
= control target key end

     0   :  { %s8768_s12 = smov 0   ;;  %s8770_s13 = smov 0   ;;  %s10461_s0 = inlined_call_operand.vmem [shape: bf16[2,18,18,4], index: 0, kind: input, shape index: {}]   ;;  %s10462_s1 = inlined_call_operand.vmem [shape: bf16[4,4,4,4], index: 1, kind: input, shape index: {}]   ;;  %s10463_s2 = inlined_call_operand.vmem [shape: f32[1,4], index: 2, kind: input, shape index: {}]   ;;  %s10464_s3 = inlined_call_operand.vmem [shape: bf16[2,4,16,16,4], index: 3, kind: output, shape index: {}]  }
   0x1   :  { %s8772_s14 = smov 0  }
   0x2 LB: > { %s25_s15 = sadd.s32 1, %s8742_s13  ;;  %p7021_p0 = scmp.ge.s32.totalorder %s8746_s14, 1  ;;  %s8746_s14 = sphi %s8772_s14, %s13_s14   ;;  %s8742_s13 = sphi %s8770_s13, %s10470_s13   ;;  %s8738_s12 = sphi %s8768_s12, %s10469_s12  }
   0x3   : > { %p27_p1 = scmp.ge.s32.totalorder %s25_s15, 2  ;;  %p168_p2 = scmp.lt.s32.totalorder %s8746_s14, 3 }
   0x5   : > { %s10472_s15 = smov (%p27_p1, %s25_s15), 0  ;;  %p169_p3 = pnand %p7021_p0, %p168_p2 }
   0x6   : > { %p202_p4 = scmp.lt.s32.totalorder (!%p169_p3), %s8738_s12, 1 }
   0x7   : > { %172 = sbr.rel (%p169_p3) target bundleno = 1213 (0x4bd), region = 32 }
   0xc   : > { %v1201_v0 = vld [vmem:[%s10462_s1] sm:$0x3]  ;;  %vm1334_vm0 = vcmask 1041408   ;;  %v7366_v2 = vld [vmem:[%s10462_s1 + $0x8] sm:$0x3]  ;;  %s10474_s12 = smov (!%p202_p4, %s8738_s12), 1 }
   0xd   : > { %v1336_v1 = vsel %vm1334_vm0, %v1201_v0, 0  ;;  %v7204_v3 = vld [vmem:[%s10462_s1 + $0x4] sm:$0x3]  ;;  %v2770_v4 = vsel %vm1334_vm0, %v7366_v2, 0  ;;  %v7123_v6 = vld [vmem:[%s10462_s1 + $0x2] sm:$0x3] }
   0xe   : > { %1345 = vmatpush.bf16.msra.mxu0 %v1336_v1  ;;  %v1973_v5 = vsel %vm1334_vm0, %v7204_v3, 0  ;;  %v1622_v7 = vsel %vm1334_vm0, %v7123_v6, 0  ;;  %s8693_s24 = smul.u32 216, %s10474_s12  ;;  %vm259_vm1 = vcmask 27648   ;;  %vm350_vm2 = vsmask.f32 3328 }
   0xf   : > { %1982 = vmatpush.bf16.msra.mxu2 %v1973_v5  ;;  %1631 = vmatpush.bf16.msra.mxu1 %v1622_v7  ;;  %v7447_v8 = vld [vmem:[%s10462_s1 + $0xa] sm:$0x3]  ;;  %v7285_v9 = vld [vmem:[%s10462_s1 + $0x6] sm:$0x3]  ;;  %v7528_v12 = vld [vmem:[%s10462_s1 + $0xc] sm:$0x3] }
  0x10   : > { %v3056_v10 = vsel %vm1334_vm0, %v7447_v8, 0  ;;  %v2324_v11 = vsel %vm1334_vm0, %v7285_v9, 0  ;;  %v7609_v13 = vld [vmem:[%s10462_s1 + $0xe] sm:$0x3]  ;;  %s8822_s8 = scalar_lea.vmem %s10461_s0, %s8693_s24  ;;  %vm351_vm3 = vsmask.f32 7440 }
  0x11   : > { %2333 = vmatpush.bf16.msra.mxu3 %v2324_v11  ;;  %v3406_v14 = vsel %vm1334_vm0, %v7528_v12, 0  ;;  %v3757_v15 = vsel %vm1334_vm0, %v7609_v13, 0  ;;  %v223_v16 = vld [vmem:[%s8822_s8] sm:$0xf]  ;;  %v224_v17 = vld [vmem:[%s8822_s8 + $0x4] sm:$0xf]  ;;  %vm8844_vm5 = vmor %vm350_vm2, %vm351_vm3 }
  0x12   : > { %2779 = vmatpush.bf16.msrb.mxu0 %v2770_v4  ;;  %v225_v18 = vld [vmem:[%s8822_s8 + $0xc] sm:$0xf]  ;;  %260 = vst.msk [vmem:[#allocation2] sm:$0xf] %vm259_vm1, %v223_v16  ;;  %v226_v19 = vld [vmem:[%s8822_s8 + $0x10] sm:$0xf] }
  0x13   : > { %3065 = vmatpush.bf16.msrb.mxu1 %v3056_v10  ;;  %3415 = vmatpush.bf16.msrb.mxu2 %v3406_v14  ;;  %v296_v20 = vld [vmem:[%s8822_s8] sm:$0xf]  ;;  %261 = vst.msk [vmem:[#allocation2 + $0x4] sm:$0xf] %vm259_vm1, %v224_v17  ;;  %v297_v21 = vld [vmem:[%s8822_s8 + $0x4] sm:$0xf] }
  0x14   : > { %v298_v22 = vld [vmem:[%s8822_s8 + $0x8] sm:$0x1]  ;;  %262 = vst.msk [vmem:[#allocation2 + $0x8] sm:$0xf] %vm259_vm1, %v225_v18  ;;  %v354_v23 = vshrl.u32 %v296_v20, 16  ;;  %v357_v24 = vshll.u32 %v296_v20, 16 }
  0x15   : > { %3766 = vmatpush.bf16.msrb.mxu3 %v3757_v15  ;;  %v363_v25 = vshll.u32 %v297_v21, 16  ;;  %v367_v26 = vshrl.u32 %v297_v21, 16  ;;  %263 = vst.msk [vmem:[#allocation2 + $0xc] sm:$0xf] %vm259_vm1, %v226_v19  ;;  %v373_v27 = vshll.u32 %v298_v22, 16  ;;  %vm1285_vm4 = vcmask 31744  }
  0x16   : > { %v299_v28 = vld [vmem:[%s8822_s8 + $0xc] sm:$0xf]  ;;  %v356_v29 = vrot.slane %v354_v23, 4  ;;  %v359_v30 = vrot.slane %v357_v24, 5  ;;  %v300_v33 = vld [vmem:[%s8822_s8 + $0x10] sm:$0xf] }
  0x17   : > { %v365_v31 = vrot.slane %v363_v25, 5  ;;  %v369_v32 = vrot.slane %v367_v26, 4  ;;  %v375_v34 = vrot.slane %v373_v27, 5  ;;  %v301_v35 = vld [vmem:[%s8822_s8 + $0x14] sm:$0x1]  ;;  %v378_v36 = vshrl.u32 %v299_v28, 16 }
  0x18   : > { %v381_v37 = vshll.u32 %v299_v28, 16  ;;  %v387_v38 = vshll.u32 %v300_v33, 16  ;;  %v360_v39 = vor.u32 %v359_v30, %v356_v29  ;;  %v391_v41 = vshrl.u32 %v300_v33, 16  ;;  %v227_v43 = vld [vmem:[%s8822_s8 + $0x18] sm:$0xf]  ;;  %s8436_s11 = sshll.u32 %s10474_s12, 9 }
  0x19   : > { %v370_v40 = vor.u32 %v369_v32, %v365_v31  ;;  %v397_v42 = vshll.u32 %v301_v35, 16  ;;  %v228_v44 = vld [vmem:[%s8822_s8 + $0x1c] sm:$0xf]  ;;  %v380_v46 = vrot.slane %v378_v36, 4  ;;  %264 = vst.msk [vmem:[#allocation2 + $0x10] sm:$0xf] %vm259_vm1, %v227_v43  ;;  %s9085_s17 = scalar_lea.vmem %s10464_s3, %s8436_s11 }
  0x1a   : > { %v383_v47 = vrot.slane %v381_v37, 5  ;;  %v389_v48 = vrot.slane %v387_v38, 5  ;;  %v8437_v49 = vld [vmem:[#allocation2] sm:$0xff]  ;;  %v361_v50 = vrot.slane %v360_v39, 4  ;;  %v393_v52 = vrot.slane %v391_v41, 4 }
  0x1b   : > { %v371_v51 = vrot.slane %v370_v40, 4  ;;  %v399_v53 = vrot.slane %v397_v42, 5  ;;  %265 = vst.msk [vmem:[#allocation2 + $0x14] sm:$0xf] %vm259_vm1, %v228_v44  ;;  %v302_v55 = vld [vmem:[%s8822_s8 + $0x18] sm:$0xf]  ;;  %7107 = vmatmul.msk.bf16.vlgmr.msra.gmra.mxu0 %vm1285_vm4, %v8437_v49 }
  0x1c   : > { %v384_v54 = vor.u32 %v383_v47, %v380_v46  ;;  %v303_v56 = vld [vmem:[%s8822_s8 + $0x1c] sm:$0xf]  ;;  %v8469_v57 = vld [vmem:[#allocation2 + $0x8] sm:$0xff]  ;;  %v366_v58 = vsel %vm8844_vm5, %v361_v50, %v365_v31  ;;  %v394_v60 = vor.u32 %v393_v52, %v389_v48  ;;  %v304_v61 = vld [vmem:[%s8822_s8 + $0x20] sm:$0x1]  ;;  %v402_v62 = vshrl.u32 %v302_v55, 16 }
  0x1d   : > { %v376_v59 = vsel %vm8844_vm5, %v371_v51, %v375_v34  ;;  %822 = vst.msk [vmem:[#allocation2 + $0x90] sm:$0xf] %vm259_vm1, %v366_v58  ;;  %v405_v0 = vshll.u32 %v302_v55, 16  ;;  %v411_v1 = vshll.u32 %v303_v56, 16  ;;  %v415_v2 = vshrl.u32 %v303_v56, 16  ;;  %7269 = vmatmul.msk.bf16.vlgmr.msra.gmra.mxu2 %vm1285_vm4, %v8469_v57  ;;  %v8438_v34 = vld [vmem:[#allocation2 + $0x8] sm:$0xff] }
  0x1e   : > { %v385_v63 = vrot.slane %v384_v54, 4  ;;  %823 = vst.msk [vmem:[#allocation2 + $0x94] sm:$0xf] %vm259_vm1, %v376_v59  ;;  %v395_v3 = vrot.slane %v394_v60, 4  ;;  %v404_v4 = vrot.slane %v402_v62, 4  ;;  %v421_v5 = vshll.u32 %v304_v61, 16 }
  0x1f   : > { %v407_v7 = vrot.slane %v405_v0, 5  ;;  %v413_v8 = vrot.slane %v411_v1, 5  ;;  %v417_v9 = vrot.slane %v415_v2, 4  ;;  %v229_v10 = vld [vmem:[%s8822_s8 + $0x24] sm:$0xf]  ;;  %vm966_vm6 = vcmask 1042432  }
  0x20   : > { %v390_v6 = vsel %vm8844_vm5, %v385_v63, %v389_v48  ;;  %v400_v11 = vsel %vm8844_vm5, %v395_v3, %v399_v53  ;;  %v423_v12 = vrot.slane %v421_v5, 5  ;;  %v230_v13 = vld [vmem:[%s8822_s8 + $0x28] sm:$0xf]  ;;  %v305_v16 = vld [vmem:[%s8822_s8 + $0x24] sm:$0xf]  ;;  %vm967_vm7 = vcmask 1046532  }
  0x21   : > { %824 = vst.msk [vmem:[#allocation2 + $0x98] sm:$0xf] %vm259_vm1, %v390_v6  ;;  %v408_v14 = vor.u32 %v407_v7, %v404_v4  ;;  %v418_v15 = vor.u32 %v417_v9, %v413_v8  ;;  %v306_v17 = vld [vmem:[%s8822_s8 + $0x28] sm:$0xf]  ;;  %v307_v18 = vld [vmem:[%s8822_s8 + $0x2c] sm:$0x1]  ;;  %vm9194_vm8 = vmor %vm966_vm6, %vm967_vm7 }
  0x22   : > { %825 = vst.msk [vmem:[#allocation2 + $0x9c] sm:$0xf] %vm259_vm1, %v400_v11  ;;  %v426_v21 = vshrl.u32 %v305_v16, 16  ;;  %v429_v22 = vshll.u32 %v305_v16, 16  ;;  %v435_v23 = vshll.u32 %v306_v17, 16  ;;  %v439_v24 = vshrl.u32 %v306_v17, 16 }
  0x23   : > { %266 = vst.msk [vmem:[#allocation2 + $0x18] sm:$0xf] %vm259_vm1, %v229_v10  ;;  %v409_v19 = vrot.slane %v408_v14, 4  ;;  %v419_v20 = vrot.slane %v418_v15, 4  ;;  %v445_v25 = vshll.u32 %v307_v18, 16  ;;  %v8470_v39 = vld [vmem:[#allocation2 + $0x10] sm:$0xff] }
  0x24   : > { %267 = vst.msk [vmem:[#allocation2 + $0x1c] sm:$0xf] %vm259_vm1, %v230_v13  ;;  %v428_v29 = vrot.slane %v426_v21, 4  ;;  %v431_v30 = vrot.slane %v429_v22, 5  ;;  %v437_v31 = vrot.slane %v435_v23, 5  ;;  %v441_v32 = vrot.slane %v439_v24, 4 }
  0x25   : > { %v8453_v26 = vld [vmem:[#allocation2 + $0x90] sm:$0xff]  ;;  %v414_v27 = vsel %vm8844_vm5, %v409_v19, %v413_v8  ;;  %v424_v28 = vsel %vm8844_vm5, %v419_v20, %v423_v12  ;;  %v447_v37 = vrot.slane %v445_v25, 5  ;;  %v310_v54 = vld [vmem:[%s8822_s8 + $0x38] sm:$0x1]  ;;  %v233_v5 = vld [vmem:[%s8822_s8 + $0x3c] sm:$0xf] }
  0x26   : > { %826 = vst.msk [vmem:[#allocation2 + $0xa0] sm:$0xf] %vm259_vm1, %v414_v27  ;;  %7188 = vmatmul.msk.bf16.vlgmr.msra.gmra.mxu1 %vm1285_vm4, %v8453_v26  ;;  %v432_v33 = vor.u32 %v431_v30, %v428_v29  ;;  %v442_v36 = vor.u32 %v441_v32, %v437_v31  ;;  %v231_v41 = vld [vmem:[%s8822_s8 + $0x30] sm:$0xf]  ;;  %v232_v43 = vld [vmem:[%s8822_s8 + $0x34] sm:$0xf] }
  0x27   : > { %827 = vst.msk [vmem:[#allocation2 + $0xa4] sm:$0xf] %vm259_vm1, %v424_v28  ;;  %v308_v44 = vld [vmem:[%s8822_s8 + $0x30] sm:$0xf]  ;;  %v309_v47 = vld [vmem:[%s8822_s8 + $0x34] sm:$0xf] }
  0x28   : > { %v433_v38 = vrot.slane %v432_v33, 4  ;;  %v443_v40 = vrot.slane %v442_v36, 4  ;;  %268 = vst.msk [vmem:[#allocation2 + $0x20] sm:$0xf] %vm259_vm1, %v231_v41  ;;  %v450_v48 = vshrl.u32 %v308_v44, 16  ;;  %v453_v49 = vshll.u32 %v308_v44, 16 }
  0x29   : > { %v8485_v35 = vld [vmem:[#allocation2 + $0x98] sm:$0xff]  ;;  %v459_v50 = vshll.u32 %v309_v47, 16  ;;  %v463_v51 = vshrl.u32 %v309_v47, 16  ;;  %269 = vst.msk [vmem:[#allocation2 + $0x24] sm:$0xf] %vm259_vm1, %v232_v43  ;;  %v469_v58 = vshll.u32 %v310_v54, 16 }
  0x2a   : > { %7350 = vmatmul.msk.bf16.vlgmr.msra.gmra.mxu3 %vm1285_vm4, %v8485_v35  ;;  %v438_v42 = vsel %vm8844_vm5, %v433_v38, %v437_v31  ;;  %v448_v46 = vsel %vm8844_vm5, %v443_v40, %v447_v37  ;;  %v452_v52 = vrot.slane %v450_v48, 4  ;;  %v455_v53 = vrot.slane %v453_v49, 5  ;;  %v8454_v62 = vld [vmem:[#allocation2 + $0x98] sm:$0xff]  ;;  %v8439_v3 = vld [vmem:[#allocation2 + $0x10] sm:$0xff]  ;;  %v234_v6 = vld [vmem:[%s8822_s8 + $0x40] sm:$0xf] }
  0x2b   : > { %7108 = vmatmul.msk.bf16.gmra.mxu0 %vm1285_vm4, %v8438_v34  ;;  %828 = vst.msk [vmem:[#allocation2 + $0xa8] sm:$0xf] %vm259_vm1, %v438_v42  ;;  %v461_v55 = vrot.slane %v459_v50, 5  ;;  %v465_v56 = vrot.slane %v463_v51, 4  ;;  %v471_v61 = vrot.slane %v469_v58, 5  ;;  %v8471_v4 = vld [vmem:[#allocation2 + $0x18] sm:$0xff] }
  0x2c   : > { %829 = vst.msk [vmem:[#allocation2 + $0xac] sm:$0xf] %vm259_vm1, %v448_v46  ;;  %v456_v57 = vor.u32 %v455_v53, %v452_v52  ;;  %v311_v7 = vld [vmem:[%s8822_s8 + $0x3c] sm:$0xf]  ;;  %v312_v8 = vld [vmem:[%s8822_s8 + $0x40] sm:$0xf] }
  0x2d   : > { %7270 = vmatmul.msk.bf16.gmra.mxu2 %vm1285_vm4, %v8470_v39  ;;  %v466_v59 = vor.u32 %v465_v56, %v461_v55  ;;  %270 = vst.msk [vmem:[#allocation2 + $0x28] sm:$0xf] %vm259_vm1, %v233_v5  ;;  %v474_v9 = vshrl.u32 %v311_v7, 16  ;;  %v477_v10 = vshll.u32 %v311_v7, 16  ;;  %v483_v11 = vshll.u32 %v312_v8, 16  ;;  %v8440_v28 = vld [vmem:[#allocation2 + $0x18] sm:$0xff] }
  0x2e   : > { %v457_v60 = vrot.slane %v456_v57, 4  ;;  %v8486_v2 = vld [vmem:[#allocation2 + $0xa0] sm:$0xff]  ;;  %271 = vst.msk [vmem:[#allocation2 + $0x2c] sm:$0xf] %vm259_vm1, %v234_v6  ;;  %v487_v12 = vshrl.u32 %v312_v8, 16 }
  0x2f   : > { %v467_v63 = vrot.slane %v466_v59, 4  ;;  %v476_v13 = vrot.slane %v474_v9, 4  ;;  %v479_v14 = vrot.slane %v477_v10, 5  ;;  %v485_v15 = vrot.slane %v483_v11, 5  ;;  %v313_v17 = vld [vmem:[%s8822_s8 + $0x44] sm:$0x1] }
  0x30   : > { %v462_v0 = vsel %vm8844_vm5, %v457_v60, %v461_v55  ;;  %v489_v16 = vrot.slane %v487_v12, 4  ;;  %v493_v20 = vshll.u32 %v313_v17, 16  ;;  %v8455_v24 = vld [vmem:[#allocation2 + $0xa0] sm:$0xff]  ;;  %v235_v30 = vld [vmem:[%s8822_s8 + $0x48] sm:$0xf] }
  0x31   : > { %v472_v1 = vsel %vm8844_vm5, %v467_v63, %v471_v61  ;;  %830 = vst.msk [vmem:[#allocation2 + $0xb0] sm:$0xf] %vm259_vm1, %v462_v0  ;;  %v480_v18 = vor.u32 %v479_v14, %v476_v13  ;;  %v8472_v29 = vld [vmem:[#allocation2 + $0x20] sm:$0xff]  ;;  %v236_v31 = vld [vmem:[%s8822_s8 + $0x4c] sm:$0xf] }
  0x32   : > { %831 = vst.msk [vmem:[#allocation2 + $0xb4] sm:$0xf] %vm259_vm1, %v472_v1  ;;  %v490_v19 = vor.u32 %v489_v16, %v485_v15  ;;  %v495_v23 = vrot.slane %v493_v20, 5  ;;  %v314_v32 = vld [vmem:[%s8822_s8 + $0x48] sm:$0xf]  ;;  %v8441_v54 = vld [vmem:[#allocation2 + $0x20] sm:$0xff] }
  0x33   : > { %v481_v21 = vrot.slane %v480_v18, 4  ;;  %v8487_v27 = vld [vmem:[#allocation2 + $0xa8] sm:$0xff]  ;;  %272 = vst.msk [vmem:[#allocation2 + $0x30] sm:$0xf] %vm259_vm1, %v235_v30  ;;  %v498_v34 = vshrl.u32 %v314_v32, 16  ;;  %v501_v35 = vshll.u32 %v314_v32, 16 }
  0x34   : > { %v491_v22 = vrot.slane %v490_v19, 4  ;;  %v315_v33 = vld [vmem:[%s8822_s8 + $0x4c] sm:$0xf]  ;;  %273 = vst.msk [vmem:[#allocation2 + $0x34] sm:$0xf] %vm259_vm1, %v236_v31 }
  0x35   : > { %v486_v25 = vsel %vm8844_vm5, %v481_v21, %v485_v15  ;;  %v507_v36 = vshll.u32 %v315_v33, 16  ;;  %v511_v37 = vshrl.u32 %v315_v33, 16  ;;  %v500_v38 = vrot.slane %v498_v34, 4  ;;  %v316_v42 = vld [vmem:[%s8822_s8 + $0x50] sm:$0x1]  ;;  %v8456_v50 = vld [vmem:[#allocation2 + $0xa8] sm:$0xff] }
  0x36   : > { %7189 = vmatmul.msk.bf16.gmra.mxu1 %vm1285_vm4, %v8454_v62  ;;  %v496_v26 = vsel %vm8844_vm5, %v491_v22, %v495_v23  ;;  %832 = vst.msk [vmem:[#allocation2 + $0xb8] sm:$0xf] %vm259_vm1, %v486_v25  ;;  %v503_v39 = vrot.slane %v501_v35, 5  ;;  %v517_v46 = vshll.u32 %v316_v42, 16  ;;  %v8473_v55 = vld [vmem:[#allocation2 + $0x28] sm:$0xff] }
  0x37   : > { %833 = vst.msk [vmem:[#allocation2 + $0xbc] sm:$0xf] %vm259_vm1, %v496_v26  ;;  %v509_v40 = vrot.slane %v507_v36, 5  ;;  %v513_v41 = vrot.slane %v511_v37, 4  ;;  %v237_v56 = vld [vmem:[%s8822_s8 + $0x54] sm:$0xf] }
  0x38   : > { %v504_v43 = vor.u32 %v503_v39, %v500_v38  ;;  %v519_v49 = vrot.slane %v517_v46, 5  ;;  %v238_v57 = vld [vmem:[%s8822_s8 + $0x58] sm:$0xf]  ;;  %274 = vst.msk [vmem:[#allocation2 + $0x38] sm:$0xf] %vm259_vm1, %v237_v56  ;;  %v8442_v15 = vld [vmem:[#allocation2 + $0x28] sm:$0xff] }
  0x39   : > { %v514_v44 = vor.u32 %v513_v41, %v509_v40  ;;  %v8488_v53 = vld [vmem:[#allocation2 + $0xb0] sm:$0xff]  ;;  %v318_v59 = vld [vmem:[%s8822_s8 + $0x58] sm:$0xf]  ;;  %275 = vst.msk [vmem:[#allocation2 + $0x3c] sm:$0xf] %vm259_vm1, %v238_v57 }
  0x3a   : > { %7351 = vmatmul.msk.bf16.gmra.mxu3 %vm1285_vm4, %v8486_v2  ;;  %v505_v47 = vrot.slane %v504_v43, 4  ;;  %v317_v58 = vld [vmem:[%s8822_s8 + $0x54] sm:$0xf]  ;;  %v531_v62 = vshll.u32 %v318_v59, 16  ;;  %v535_v63 = vshrl.u32 %v318_v59, 16 }
  0x3b   : > { %7109 = vmatmul.msk.bf16.gmra.mxu0 %vm1285_vm4, %v8439_v3  ;;  %v515_v48 = vrot.slane %v514_v44, 4  ;;  %v522_v60 = vshrl.u32 %v317_v58, 16  ;;  %v525_v61 = vshll.u32 %v317_v58, 16  ;;  %v8457_v11 = vld [vmem:[#allocation2 + $0xb0] sm:$0xff]  ;;  %v239_v17 = vld [vmem:[%s8822_s8 + $0x60] sm:$0xf] }
  0x3c   : > { %v510_v51 = vsel %vm8844_vm5, %v505_v47, %v509_v40  ;;  %v533_v2 = vrot.slane %v531_v62, 5  ;;  %v537_v3 = vrot.slane %v535_v63, 4  ;;  %v8474_v16 = vld [vmem:[#allocation2 + $0x30] sm:$0xff]  ;;  %v240_v18 = vld [vmem:[%s8822_s8 + $0x64] sm:$0xf] }
  0x3d   : > { %7271 = vmatmul.msk.bf16.gmra.mxu2 %vm1285_vm4, %v8471_v4  ;;  %v520_v52 = vsel %vm8844_vm5, %v515_v48, %v519_v49  ;;  %834 = vst.msk [vmem:[#allocation2 + $0xc0] sm:$0xf] %vm259_vm1, %v510_v51  ;;  %v524_v0 = vrot.slane %v522_v60, 4  ;;  %v527_v1 = vrot.slane %v525_v61, 5  ;;  %v319_v4 = vld [vmem:[%s8822_s8 + $0x5c] sm:$0x1] }
  0x3e   : > { %835 = vst.msk [vmem:[#allocation2 + $0xc4] sm:$0xf] %vm259_vm1, %v520_v52  ;;  %v538_v6 = vor.u32 %v537_v3, %v533_v2  ;;  %v541_v7 = vshll.u32 %v319_v4, 16  ;;  %v8489_v14 = vld [vmem:[#allocation2 + $0xb8] sm:$0xff]  ;;  %v320_v19 = vld [vmem:[%s8822_s8 + $0x60] sm:$0xf] }
  0x3f   : > { %v528_v5 = vor.u32 %v527_v1, %v524_v0  ;;  %276 = vst.msk [vmem:[#allocation2 + $0x40] sm:$0xf] %vm259_vm1, %v239_v17  ;;  %v321_v20 = vld [vmem:[%s8822_s8 + $0x64] sm:$0xf]  ;;  %v546_v21 = vshrl.u32 %v320_v19, 16  ;;  %v549_v22 = vshll.u32 %v320_v19, 16 }
  0x40   : > { %v539_v9 = vrot.slane %v538_v6, 4  ;;  %v543_v10 = vrot.slane %v541_v7, 5  ;;  %277 = vst.msk [vmem:[#allocation2 + $0x44] sm:$0xf] %vm259_vm1, %v240_v18  ;;  %v555_v23 = vshll.u32 %v321_v20, 16  ;;  %v8458_v36 = vld [vmem:[#allocation2 + $0xb8] sm:$0xff] }
  0x41   : > { %v529_v8 = vrot.slane %v528_v5, 4  ;;  %v548_v25 = vrot.slane %v546_v21, 4  ;;  %v551_v26 = vrot.slane %v549_v22, 5  ;;  %v8443_v40 = vld [vmem:[#allocation2 + $0x30] sm:$0xff]  ;;  %v8475_v41 = vld [vmem:[#allocation2 + $0x38] sm:$0xff] }
  0x42   : > { %v544_v13 = vsel %vm8844_vm5, %v539_v9, %v543_v10  ;;  %v241_v42 = vld [vmem:[%s8822_s8 + $0x6c] sm:$0xf]  ;;  %v242_v43 = vld [vmem:[%s8822_s8 + $0x70] sm:$0xf]  ;;  %v243_v4 = vld [vmem:[%s8822_s8 + $0x78] sm:$0xf] }
  0x43   : > { %v534_v12 = vsel %vm8844_vm5, %v529_v8, %v533_v2  ;;  %837 = vst.msk [vmem:[#allocation2 + $0xcc] sm:$0xf] %vm259_vm1, %v544_v13  ;;  %v552_v30 = vor.u32 %v551_v26, %v548_v25  ;;  %v323_v44 = vld [vmem:[%s8822_s8 + $0x6c] sm:$0xf]  ;;  %v324_v46 = vld [vmem:[%s8822_s8 + $0x70] sm:$0xf] }
  0x44   : > { %836 = vst.msk [vmem:[#allocation2 + $0xc8] sm:$0xf] %vm259_vm1, %v534_v12  ;;  %v570_v47 = vshrl.u32 %v323_v44, 16  ;;  %v573_v48 = vshll.u32 %v323_v44, 16  ;;  %v579_v49 = vshll.u32 %v324_v46, 16  ;;  %v8444_v2 = vld [vmem:[#allocation2 + $0x38] sm:$0xff] }
  0x45   : > { %v553_v33 = vrot.slane %v552_v30, 4  ;;  %v8490_v39 = vld [vmem:[#allocation2 + $0xc0] sm:$0xff]  ;;  %278 = vst.msk [vmem:[#allocation2 + $0x48] sm:$0xf] %vm259_vm1, %v241_v42  ;;  %v244_v5 = vld [vmem:[%s8822_s8 + $0x7c] sm:$0xf] }
  0x46   : > { %7190 = vmatmul.msk.bf16.gmra.mxu1 %vm1285_vm4, %v8455_v24  ;;  %v559_v24 = vshrl.u32 %v321_v20, 16  ;;  %279 = vst.msk [vmem:[#allocation2 + $0x4c] sm:$0xf] %vm259_vm1, %v242_v43  ;;  %v572_v51 = vrot.slane %v570_v47, 4  ;;  %v575_v52 = vrot.slane %v573_v48, 5  ;;  %v8459_v61 = vld [vmem:[#allocation2 + $0xc0] sm:$0xff] }
  0x47   : > { %v8476_v3 = vld [vmem:[#allocation2 + $0x40] sm:$0xff]  ;;  %280 = vst.msk [vmem:[#allocation2 + $0x50] sm:$0xf] %vm259_vm1, %v243_v4  ;;  %v326_v6 = vld [vmem:[%s8822_s8 + $0x78] sm:$0xf] }
  0x48   : > { %v576_v56 = vor.u32 %v575_v52, %v572_v51  ;;  %v327_v7 = vld [vmem:[%s8822_s8 + $0x7c] sm:$0xf]  ;;  %281 = vst.msk [vmem:[#allocation2 + $0x54] sm:$0xf] %vm259_vm1, %v244_v5  ;;  %v594_v8 = vshrl.u32 %v326_v6, 16  ;;  %v597_v9 = vshll.u32 %v326_v6, 16 }
  0x49   : > { %v603_v10 = vshll.u32 %v327_v7, 16  ;;  %v9007_v26 = vld [vmem:[%s10463_s2] ss:$0 sm:$0xff]  ;;  %v331_v44 = vld [vmem:[%s8822_s8 + $0x8c] sm:$0x1] }
  0x4a   : > { %7352 = vmatmul.msk.bf16.gmra.mxu3 %vm1285_vm4, %v8487_v27  ;;  %v557_v27 = vrot.slane %v555_v23, 5  ;;  %v577_v59 = vrot.slane %v576_v56, 4  ;;  %v596_v12 = vrot.slane %v594_v8, 4  ;;  %v599_v13 = vrot.slane %v597_v9, 5  ;;  %v248_v4 = vld [vmem:[%s8822_s8 + $0x94] sm:$0xf] }
  0x4b   : > { %7110 = vmatmul.msk.bf16.gmra.mxu0 %vm1285_vm4, %v8440_v28  ;;  %v561_v28 = vrot.slane %v559_v24, 4  ;;  %v8491_v1 = vld [vmem:[#allocation2 + $0xc8] sm:$0xff]  ;;  %v637_v48 = vshll.u32 %v331_v44, 16  ;;  %v332_v6 = vld [vmem:[%s8822_s8 + $0x90] sm:$0xf] }
  0x4c   : > { %v558_v37 = vsel %vm8844_vm5, %v553_v33, %v557_v27  ;;  %v600_v17 = vor.u32 %v599_v13, %v596_v12  ;;  %v8460_v22 = vld [vmem:[#allocation2 + $0xc8] sm:$0xff]  ;;  %v333_v8 = vld [vmem:[%s8822_s8 + $0x94] sm:$0xf]  ;;  %v642_v9 = vshrl.u32 %v332_v6, 16  ;;  %285 = vst.msk [vmem:[#allocation2 + $0x64] sm:$0xf] %vm259_vm1, %v248_v4 }
  0x4d   : > { %7272 = vmatmul.msk.bf16.gmra.mxu2 %vm1285_vm4, %v8472_v29  ;;  %v322_v29 = vld [vmem:[%s8822_s8 + $0x68] sm:$0x1]  ;;  %v562_v31 = vor.u32 %v561_v28, %v557_v27  ;;  %838 = vst.msk [vmem:[#allocation2 + $0xd0] sm:$0xf] %vm259_vm1, %v558_v37  ;;  %v8445_v28 = vld [vmem:[#allocation2 + $0x40] sm:$0xff]  ;;  %v651_v13 = vshll.u32 %v333_v8, 16 }
  0x4e   : > { %v565_v32 = vshll.u32 %v322_v29, 16  ;;  %v601_v20 = vrot.slane %v600_v17, 4  ;;  %v246_v33 = vld [vmem:[%s8822_s8 + $0x88] sm:$0xf] }
  0x4f   : > { %v563_v34 = vrot.slane %v562_v31, 4  ;;  %v8477_v31 = vld [vmem:[#allocation2 + $0x48] sm:$0xff]  ;;  %283 = vst.msk [vmem:[#allocation2 + $0x5c] sm:$0xf] %vm259_vm1, %v246_v33 }
  0x50   : > { %v567_v35 = vrot.slane %v565_v32, 5  ;;  %v245_v32 = vld [vmem:[%s8822_s8 + $0x84] sm:$0xf] }
  0x51   : > { %282 = vst.msk [vmem:[#allocation2 + $0x58] sm:$0xf] %vm259_vm1, %v245_v32 }
  0x52   : > { %v568_v38 = vsel %vm8844_vm5, %v563_v34, %v567_v35  ;;  %v329_v34 = vld [vmem:[%s8822_s8 + $0x84] sm:$0xf]  ;;  %v330_v35 = vld [vmem:[%s8822_s8 + $0x88] sm:$0xf] }
  0x53   : > { %839 = vst.msk [vmem:[#allocation2 + $0xd4] sm:$0xf] %vm259_vm1, %v568_v38  ;;  %v621_v37 = vshll.u32 %v329_v34, 16  ;;  %v627_v38 = vshll.u32 %v330_v35, 16 }
  0x55   : > { %v629_v42 = vrot.slane %v627_v38, 5 }
  0x56   : > { %7191 = vmatmul.msk.bf16.gmra.mxu1 %vm1285_vm4, %v8456_v50  ;;  %v583_v50 = vshrl.u32 %v324_v46, 16 }
  0x5a   : > { %7353 = vmatmul.msk.bf16.gmra.mxu3 %vm1285_vm4, %v8488_v53  ;;  %v581_v53 = vrot.slane %v579_v49, 5  ;;  %v8492_v27 = vld [vmem:[#allocation2 + $0xd0] sm:$0xff] }
  0x5b   : > { %7111 = vmatmul.msk.bf16.gmra.mxu0 %vm1285_vm4, %v8441_v54  ;;  %v325_v54 = vld [vmem:[%s8822_s8 + $0x74] sm:$0x1] }
  0x5c   : > { %v589_v57 = vshll.u32 %v325_v54, 16  ;;  %v582_v63 = vsel %vm8844_vm5, %v577_v59, %v581_v53  ;;  %v639_v54 = vrot.slane %v637_v48, 5  ;;  %v8461_v56 = vld [vmem:[#allocation2 + $0xd0] sm:$0xff] }
  0x5d   : > { %7273 = vmatmul.msk.bf16.gmra.mxu2 %vm1285_vm4, %v8473_v55  ;;  %v585_v55 = vrot.slane %v583_v50, 4  ;;  %840 = vst.msk [vmem:[#allocation2 + $0xd8] sm:$0xf] %vm259_vm1, %v582_v63 }
  0x5e   : > { %v591_v60 = vrot.slane %v589_v57, 5 }
  0x5f   : > { %v586_v58 = vor.u32 %v585_v55, %v581_v53 }
  0x61   : > { %v587_v62 = vrot.slane %v586_v58, 4 }
  0x63   : > { %v592_v0 = vsel %vm8844_vm5, %v587_v62, %v591_v60  ;;  %v8446_v62 = vld [vmem:[#allocation2 + $0x48] sm:$0xff] }
  0x64   : > { %841 = vst.msk [vmem:[#allocation2 + $0xdc] sm:$0xf] %vm259_vm1, %v592_v0 }
  0x66   : > { %7192 = vmatmul.msk.bf16.gmra.mxu1 %vm1285_vm4, %v8457_v11  ;;  %v607_v11 = vshrl.u32 %v327_v7, 16 }
  0x6a   : > { %7354 = vmatmul.msk.bf16.gmra.mxu3 %vm1285_vm4, %v8489_v14  ;;  %v605_v14 = vrot.slane %v603_v10, 5  ;;  %v645_v10 = vshll.u32 %v332_v6, 16 }
  0x6b   : > { %7112 = vmatmul.msk.bf16.gmra.mxu0 %vm1285_vm4, %v8442_v15  ;;  %v328_v15 = vld [vmem:[%s8822_s8 + $0x80] sm:$0x1]  ;;  %v8462_v32 = vld [vmem:[#allocation2 + $0xd8] sm:$0xff] }
  0x6c   : > { %v613_v18 = vshll.u32 %v328_v15, 16  ;;  %v606_v24 = vsel %vm8844_vm5, %v601_v20, %v605_v14  ;;  %v647_v17 = vrot.slane %v645_v10, 5  ;;  %v653_v20 = vrot.slane %v651_v13, 5 }
  0x6d   : > { %7274 = vmatmul.msk.bf16.gmra.mxu2 %vm1285_vm4, %v8474_v16  ;;  %v609_v16 = vrot.slane %v607_v11, 4  ;;  %842 = vst.msk [vmem:[#allocation2 + $0xe0] sm:$0xf] %vm259_vm1, %v606_v24 }
  0x6e   : > { %v615_v21 = vrot.slane %v613_v18, 5 }
  0x6f   : > { %v610_v19 = vor.u32 %v609_v16, %v605_v14  ;;  %v655_v14 = vshrl.u32 %v333_v8, 16  ;;  %v644_v16 = vrot.slane %v642_v9, 4 }
  0x71   : > { %v611_v23 = vrot.slane %v610_v19, 4  ;;  %v334_v19 = vld [vmem:[%s8822_s8 + $0x98] sm:$0x1] }
  0x73   : > { %v616_v25 = vsel %vm8844_vm5, %v611_v23, %v615_v21  ;;  %v657_v21 = vrot.slane %v655_v14, 4  ;;  %v661_v23 = vshll.u32 %v334_v19, 16 }
  0x74   : > { %843 = vst.msk [vmem:[#allocation2 + $0xe4] sm:$0xf] %vm259_vm1, %v616_v25 }
  0x76   : > { %7193 = vmatmul.msk.bf16.gmra.mxu1 %vm1285_vm4, %v8458_v36  ;;  %v618_v36 = vshrl.u32 %v329_v34, 16 }
  0x7a   : > { %7355 = vmatmul.msk.bf16.gmra.mxu3 %vm1285_vm4, %v8490_v39  ;;  %v631_v39 = vshrl.u32 %v330_v35, 16 }
  0x7b   : > { %7113 = vmatmul.msk.bf16.gmra.mxu0 %vm1285_vm4, %v8443_v40  ;;  %v620_v40 = vrot.slane %v618_v36, 4 }
  0x7c   : > { %v633_v43 = vrot.slane %v631_v39, 4 }
  0x7d   : > { %7275 = vmatmul.msk.bf16.gmra.mxu2 %vm1285_vm4, %v8475_v41  ;;  %v623_v41 = vrot.slane %v621_v37, 5 }
  0x7e   : > { %v634_v47 = vor.u32 %v633_v43, %v629_v42  ;;  %v8447_v43 = vld [vmem:[#allocation2 + $0x50] sm:$0xff] }
  0x7f   : > { %v624_v46 = vor.u32 %v623_v41, %v620_v40  ;;  %v8494_v40 = vld [vmem:[#allocation2 + $0xe0] sm:$0xff] }
  0x80   : > { %v635_v53 = vrot.slane %v634_v47, 4 }
  0x81   : > { %v625_v52 = vrot.slane %v624_v46, 4 }
  0x82   : > { %v640_v59 = vsel %vm8844_vm5, %v635_v53, %v639_v54  ;;  %v335_v53 = vld [vmem:[%s8822_s8 + $0x9c] sm:$0xf]  ;;  %v336_v54 = vld [vmem:[%s8822_s8 + $0xa0] sm:$0xf] }
  0x83   : > { %v630_v58 = vsel %vm8844_vm5, %v625_v52, %v629_v42  ;;  %845 = vst.msk [vmem:[#allocation2 + $0xec] sm:$0xf] %vm259_vm1, %v640_v59  ;;  %v679_v59 = vshrl.u32 %v336_v54, 16 }
  0x84   : > { %844 = vst.msk [vmem:[#allocation2 + $0xe8] sm:$0xf] %vm259_vm1, %v630_v58  ;;  %v675_v58 = vshll.u32 %v336_v54, 16 }
  0x85   : > { %v681_v4 = vrot.slane %v679_v59, 4 }
  0x86   : > { %7194 = vmatmul.msk.bf16.gmra.mxu1 %vm1285_vm4, %v8459_v61  ;;  %v8493_v61 = vld [vmem:[#allocation2 + $0xd8] sm:$0xff] }
  0x8a   : > { %7356 = vmatmul.msk.bf16.gmra.mxu3 %vm1285_vm4, %v8491_v1 }
  0x8b   : > { %7114 = vmatmul.msk.bf16.gmra.mxu0 %vm1285_vm4, %v8444_v2  ;;  %v8478_v2 = vld [vmem:[#allocation2 + $0x50] sm:$0xff] }
  0x8d   : > { %7276 = vmatmul.msk.bf16.gmra.mxu2 %vm1285_vm4, %v8476_v3  ;;  %v247_v3 = vld [vmem:[%s8822_s8 + $0x90] sm:$0xf] }
  0x8e   : > { %284 = vst.msk [vmem:[#allocation2 + $0x60] sm:$0xf] %vm259_vm1, %v247_v3  ;;  %v337_v3 = vld [vmem:[%s8822_s8 + $0xa4] sm:$0x1] }
  0x96   : > { %7195 = vmatmul.msk.bf16.gmra.mxu1 %vm1285_vm4, %v8460_v22  ;;  %v648_v22 = vor.u32 %v647_v17, %v644_v16  ;;  %v8463_v17 = vld [vmem:[#allocation2 + $0xe0] sm:$0xff] }
  0x98   : > { %v1347_v29 = vpop.f32.mrf.mxu0 }
  0x99   : > { %v1348_v30 = vadd.f32 %v9007_v26, %v1347_v29  ;;  %v649_v29 = vrot.slane %v648_v22, 4 }
  0x9a   : > { %7357 = vmatmul.msk.bf16.gmra.mxu3 %vm1285_vm4, %v8492_v27  ;;  %v658_v27 = vor.u32 %v657_v21, %v653_v20 }
  0x9b   : > { %1427 = vst.msk [vmem:[#allocation3] sm:$0xff] %vm1285_vm4, %v1348_v30  ;;  %7115 = vmatmul.msk.bf16.gmra.mxu0 %vm1285_vm4, %v8445_v28  ;;  %v663_v30 = vrot.slane %v661_v23, 5  ;;  %v654_v35 = vsel %vm8844_vm5, %v649_v29, %v653_v20 }
  0x9c   : > { %v659_v33 = vrot.slane %v658_v27, 4  ;;  %846 = vst.msk [vmem:[#allocation2 + $0xf0] sm:$0xf] %vm259_vm1, %v654_v35  ;;  %v8495_v27 = vld [vmem:[#allocation2 + $0xe8] sm:$0xff] }
  0x9d   : > { %7277 = vmatmul.msk.bf16.gmra.mxu2 %vm1285_vm4, %v8477_v31 }
  0x9e   : > { %v664_v38 = vsel %vm8844_vm5, %v659_v33, %v663_v30  ;;  %v8448_v30 = vld [vmem:[#allocation2 + $0x58] sm:$0xff] }
  0x9f   : > { %847 = vst.msk [vmem:[#allocation2 + $0xf4] sm:$0xf] %vm259_vm1, %v664_v38 }
  0xa0   : > { %v1349_v49 = vpop.f32.mrf.mxu0  ;;  %v1984_v50 = vpop.f32.mrf.mxu2 }
  0xa1   : > { %v1350_v51 = vadd.f32 %v9007_v26, %v1349_v49  ;;  %v8479_v49 = vld [vmem:[#allocation2 + $0x58] sm:$0xff] }
  0xa2   : > { %v1713_v55 = vld [vmem:[#allocation3] sm:$0xff] }
  0xa3   : > { %1428 = vst.msk [vmem:[#allocation3 + $0x8] sm:$0xff] %vm1285_vm4, %v1350_v51  ;;  %v1633_v57 = vpop.f32.mrf.mxu1  ;;  %v250_v51 = vld [vmem:[%s8822_s8 + $0xa0] sm:$0xf] }
  0xa4   : > { %v1745_v60 = vadd.f32 %v1713_v55, %v1633_v57  ;;  %v669_v57 = vshll.u32 %v335_v53, 16  ;;  %287 = vst.msk [vmem:[#allocation2 + $0x6c] sm:$0xf] %vm259_vm1, %v250_v51 }
  0xa6   : > { %1777 = vst.msk [vmem:[#allocation3] sm:$0xff] %vm1285_vm4, %v1745_v60  ;;  %7196 = vmatmul.msk.bf16.gmra.mxu1 %vm1285_vm4, %v8461_v56  ;;  %v666_v56 = vshrl.u32 %v335_v53, 16 }
  0xa8   : > { %v1352_v63 = vpop.f32.mrf.mxu0  ;;  %v1986_v0 = vpop.f32.mrf.mxu2 }
  0xa9   : > { %v1353_v1 = vadd.f32 %v9007_v26, %v1352_v63  ;;  %v668_v63 = vrot.slane %v666_v56, 4  ;;  %v340_v56 = vld [vmem:[%s8822_s8 + $0xb0] sm:$0x1] }
  0xaa   : > { %7358 = vmatmul.msk.bf16.gmra.mxu3 %vm1285_vm4, %v8493_v61  ;;  %v1714_v5 = vld [vmem:[#allocation3 + $0x8] sm:$0xff] }
  0xab   : > { %1429 = vst.msk [vmem:[#allocation3 + $0x10] sm:$0xff] %vm1285_vm4, %v1353_v1  ;;  %v1635_v7 = vpop.f32.mrf.mxu1  ;;  %7116 = vmatmul.msk.bf16.gmra.mxu0 %vm1285_vm4, %v8446_v62  ;;  %v677_v1 = vrot.slane %v675_v58, 5 }
  0xac   : > { %v1746_v11 = vadd.f32 %v1714_v5, %v1635_v7  ;;  %v685_v7 = vshll.u32 %v337_v3, 16 }
  0xad   : > { %v2335_v12 = vpop.f32.mrf.mxu3  ;;  %v2064_v15 = vld [vmem:[#allocation3] sm:$0xff]  ;;  %7278 = vmatmul.msk.bf16.gmra.mxu2 %vm1285_vm4, %v8478_v2 }
  0xae   : > { %v2096_v18 = vadd.f32 %v2064_v15, %v1984_v50  ;;  %1778 = vst.msk [vmem:[#allocation3 + $0x8] sm:$0xff] %vm1285_vm4, %v1746_v11  ;;  %v249_v50 = vld [vmem:[%s8822_s8 + $0x9c] sm:$0xf]  ;;  %v682_v11 = vor.u32 %v681_v4, %v677_v1  ;;  %v687_v14 = vrot.slane %v685_v7, 5 }
  0xaf   : > { %286 = vst.msk [vmem:[#allocation2 + $0x68] sm:$0xf] %vm259_vm1, %v249_v50 }
  0xb0   : > { %2128 = vst.msk [vmem:[#allocation3] sm:$0xff] %vm1285_vm4, %v2096_v18  ;;  %v1354_v24 = vpop.f32.mrf.mxu0  ;;  %v1989_v25 = vpop.f32.mrf.mxu2  ;;  %v683_v18 = vrot.slane %v682_v11, 4 }
  0xb1   : > { %v1355_v28 = vadd.f32 %v9007_v26, %v1354_v24 }
  0xb2   : > { %v1715_v31 = vld [vmem:[#allocation3 + $0x10] sm:$0xff]  ;;  %v688_v24 = vsel %vm8844_vm5, %v683_v18, %v687_v14 }
  0xb3   : > { %1430 = vst.msk [vmem:[#allocation3 + $0x18] sm:$0xff] %vm1285_vm4, %v1355_v28  ;;  %v1638_v34 = vpop.f32.mrf.mxu1  ;;  %v8449_v18 = vld [vmem:[#allocation2 + $0x60] sm:$0xff] }
  0xb4   : > { %v1747_v36 = vadd.f32 %v1715_v31, %v1638_v34  ;;  %849 = vst.msk [vmem:[#allocation2 + $0xfc] sm:$0xf] %vm259_vm1, %v688_v24  ;;  %v8480_v34 = vld [vmem:[#allocation2 + $0x60] sm:$0xff]  ;;  %v253_v24 = vld [vmem:[%s8822_s8 + $0xb4] sm:$0xf] }
  0xb5   : > { %v2337_v37 = vpop.f32.mrf.mxu3  ;;  %v2065_v39 = vld [vmem:[#allocation3 + $0x8] sm:$0xff]  ;;  %290 = vst.msk [vmem:[#allocation2 + $0x78] sm:$0xf] %vm259_vm1, %v253_v24 }
  0xb6   : > { %v2097_v41 = vadd.f32 %v2065_v39, %v1986_v0  ;;  %1779 = vst.msk [vmem:[#allocation3 + $0x10] sm:$0xff] %vm1285_vm4, %v1747_v36  ;;  %7197 = vmatmul.msk.bf16.gmra.mxu1 %vm1285_vm4, %v8462_v32  ;;  %v671_v0 = vrot.slane %v669_v57, 5  ;;  %v251_v36 = vld [vmem:[%s8822_s8 + $0xa8] sm:$0xf] }
  0xb7   : > { %v2415_v42 = vld [vmem:[#allocation3] sm:$0xff]  ;;  %288 = vst.msk [vmem:[#allocation2 + $0x70] sm:$0xf] %vm259_vm1, %v251_v36 }
  0xb8   : > { %2129 = vst.msk [vmem:[#allocation3 + $0x8] sm:$0xff] %vm1285_vm4, %v2097_v41  ;;  %v2447_v44 = vadd.f32 %v2415_v42, %v2335_v12  ;;  %v1357_v46 = vpop.f32.mrf.mxu0  ;;  %v1991_v47 = vpop.f32.mrf.mxu2  ;;  %v672_v6 = vor.u32 %v671_v0, %v668_v63  ;;  %v339_v41 = vld [vmem:[%s8822_s8 + $0xac] sm:$0xf] }
  0xb9   : > { %v1358_v48 = vadd.f32 %v9007_v26, %v1357_v46 }
  0xba   : > { %7359 = vmatmul.msk.bf16.gmra.mxu3 %vm1285_vm4, %v8494_v40  ;;  %2479 = vst.msk [vmem:[#allocation3] sm:$0xff] %vm1285_vm4, %v2447_v44  ;;  %v1716_v52 = vld [vmem:[#allocation3 + $0x18] sm:$0xff]  ;;  %v673_v13 = vrot.slane %v672_v6, 4 }
  0xbb   : > { %1431 = vst.msk [vmem:[#allocation3 + $0x20] sm:$0xff] %vm1285_vm4, %v1358_v48  ;;  %v1640_v55 = vpop.f32.mrf.mxu1  ;;  %7117 = vmatmul.msk.bf16.gmra.mxu0 %vm1285_vm4, %v8447_v43  ;;  %v338_v40 = vld [vmem:[%s8822_s8 + $0xa8] sm:$0xf]  ;;  %v703_v48 = vshrl.u32 %v339_v41, 16 }
  0xbc   : > { %v1748_v60 = vadd.f32 %v1716_v52, %v1640_v55  ;;  %v678_v20 = vsel %vm8844_vm5, %v673_v13, %v677_v1  ;;  %v690_v44 = vshrl.u32 %v338_v40, 16  ;;  %v693_v46 = vshll.u32 %v338_v40, 16  ;;  %v8464_v6 = vld [vmem:[#allocation2 + $0xe8] sm:$0xff] }
  0xbd   : > { %v2340_v61 = vpop.f32.mrf.mxu3  ;;  %v2066_v62 = vld [vmem:[#allocation3 + $0x10] sm:$0xff]  ;;  %7279 = vmatmul.msk.bf16.gmra.mxu2 %vm1285_vm4, %v8479_v49  ;;  %848 = vst.msk [vmem:[#allocation2 + $0xf8] sm:$0xf] %vm259_vm1, %v678_v20  ;;  %v705_v57 = vrot.slane %v703_v48, 4 }
  0xbe   : > { %v2098_v2 = vadd.f32 %v2066_v62, %v1989_v25  ;;  %1780 = vst.msk [vmem:[#allocation3 + $0x18] sm:$0xff] %vm1285_vm4, %v1748_v60  ;;  %v692_v52 = vrot.slane %v690_v44, 4  ;;  %v695_v53 = vrot.slane %v693_v46, 5  ;;  %v709_v60 = vshll.u32 %v340_v56, 16  ;;  %v343_v44 = vld [vmem:[%s8822_s8 + $0xbc] sm:$0x1] }
  0xbf   : > { %v2416_v5 = vld [vmem:[#allocation3 + $0x8] sm:$0xff] }
  0xc0   : > { %2130 = vst.msk [vmem:[#allocation3 + $0x10] sm:$0xff] %vm1285_vm4, %v2098_v2  ;;  %v2448_v8 = vadd.f32 %v2416_v5, %v2337_v37  ;;  %v1359_v9 = vpop.f32.mrf.mxu0  ;;  %v1994_v10 = vpop.f32.mrf.mxu2  ;;  %v252_v37 = vld [vmem:[%s8822_s8 + $0xac] sm:$0xf]  ;;  %v696_v59 = vor.u32 %v695_v53, %v692_v52  ;;  %v711_v3 = vrot.slane %v709_v60, 5 }
  0xc1   : > { %v1360_v12 = vadd.f32 %v9007_v26, %v1359_v9  ;;  %v2511_v15 = vld [vmem:[#allocation3] sm:$0xff]  ;;  %289 = vst.msk [vmem:[#allocation2 + $0x74] sm:$0xf] %vm259_vm1, %v252_v37 }
  0xc2   : > { %2480 = vst.msk [vmem:[#allocation3 + $0x8] sm:$0xff] %vm1285_vm4, %v2448_v8  ;;  %v1717_v16 = vld [vmem:[#allocation3 + $0x20] sm:$0xff]  ;;  %v2543_v21 = vpack.c.bf16 %v2511_v15, %v2511_v15  ;;  %v697_v2 = vrot.slane %v696_v59, 4 }
  0xc3   : > { %1432 = vst.msk [vmem:[#allocation3 + $0x28] sm:$0xff] %vm1285_vm4, %v1360_v12  ;;  %v1643_v19 = vpop.f32.mrf.mxu1  ;;  %v8496_v15 = vld [vmem:[#allocation2 + $0xf0] sm:$0xff] }
  0xc4   : > { %v1749_v22 = vadd.f32 %v1717_v16, %v1643_v19  ;;  %2575 = vst.msk [vmem:[%s9085_s17] sm:$0xf] %vm259_vm1, %v2543_v21  ;;  %v8465_v59 = vld [vmem:[#allocation2 + $0xf0] sm:$0xff] }
  0xc5   : > { %v2342_v23 = vpop.f32.mrf.mxu3  ;;  %v2067_v25 = vld [vmem:[#allocation3 + $0x18] sm:$0xff] }
  0xc6   : > { %v2099_v28 = vadd.f32 %v2067_v25, %v1991_v47  ;;  %1781 = vst.msk [vmem:[#allocation3 + $0x20] sm:$0xff] %vm1285_vm4, %v1749_v22  ;;  %7198 = vmatmul.msk.bf16.gmra.mxu1 %vm1285_vm4, %v8463_v17  ;;  %v699_v47 = vshll.u32 %v339_v41, 16  ;;  %v8481_v22 = vld [vmem:[#allocation2 + $0x68] sm:$0xff]  ;;  %v254_v25 = vld [vmem:[%s8822_s8 + $0xb8] sm:$0xf] }
  0xc7   : > { %v2417_v29 = vld [vmem:[#allocation3 + $0x10] sm:$0xff]  ;;  %291 = vst.msk [vmem:[#allocation2 + $0x7c] sm:$0xf] %vm259_vm1, %v254_v25 }
  0xc8   : > { %2131 = vst.msk [vmem:[#allocation3 + $0x18] sm:$0xff] %vm1285_vm4, %v2099_v28  ;;  %v2449_v31 = vadd.f32 %v2417_v29, %v2340_v61  ;;  %v1362_v32 = vpop.f32.mrf.mxu0  ;;  %v1996_v33 = vpop.f32.mrf.mxu2  ;;  %v701_v54 = vrot.slane %v699_v47, 5  ;;  %v341_v29 = vld [vmem:[%s8822_s8 + $0xb4] sm:$0xf] }
  0xc9   : > { %v1363_v35 = vadd.f32 %v9007_v26, %v1362_v32  ;;  %v2512_v38 = vld [vmem:[#allocation3 + $0x8] sm:$0xff] }
  0xca   : > { %7360 = vmatmul.msk.bf16.gmra.mxu3 %vm1285_vm4, %v8495_v27  ;;  %2481 = vst.msk [vmem:[#allocation3 + $0x10] sm:$0xff] %vm1285_vm4, %v2449_v31  ;;  %v1718_v39 = vld [vmem:[#allocation3 + $0x28] sm:$0xff]  ;;  %v2544_v42 = vpack.c.bf16 %v2512_v38, %v2512_v38  ;;  %v706_v0 = vor.u32 %v705_v57, %v701_v54  ;;  %v702_v9 = vsel %vm8844_vm5, %v697_v2, %v701_v54 }
  0xcb   : > { %1433 = vst.msk [vmem:[#allocation3 + $0x30] sm:$0xff] %vm1285_vm4, %v1363_v35  ;;  %v1645_v43 = vpop.f32.mrf.mxu1  ;;  %7118 = vmatmul.msk.bf16.gmra.mxu0 %vm1285_vm4, %v8448_v30  ;;  %v342_v30 = vld [vmem:[%s8822_s8 + $0xb8] sm:$0xf] }
  0xcc   : > { %v1750_v49 = vadd.f32 %v1718_v39, %v1645_v43  ;;  %2576 = vst.msk [vmem:[%s9085_s17 + $0x4] sm:$0xf] %vm259_vm1, %v2544_v42  ;;  %v707_v7 = vrot.slane %v706_v0, 4  ;;  %v723_v35 = vshll.u32 %v342_v30, 16  ;;  %v727_v36 = vshrl.u32 %v342_v30, 16 }
  0xcd   : > { %v2345_v50 = vpop.f32.mrf.mxu3  ;;  %v2068_v51 = vld [vmem:[#allocation3 + $0x20] sm:$0xff]  ;;  %7280 = vmatmul.msk.bf16.gmra.mxu2 %vm1285_vm4, %v8480_v34  ;;  %850 = vst.msk [vmem:[#allocation2 + $0x100] sm:$0xf] %vm259_vm1, %v702_v9  ;;  %v717_v34 = vshll.u32 %v341_v29, 16 }
  0xce   : > { %v2100_v55 = vadd.f32 %v2068_v51, %v1994_v10  ;;  %1782 = vst.msk [vmem:[#allocation3 + $0x28] sm:$0xff] %vm1285_vm4, %v1750_v49  ;;  %v712_v13 = vsel %vm8844_vm5, %v707_v7, %v711_v3  ;;  %v725_v42 = vrot.slane %v723_v35, 5  ;;  %v729_v46 = vrot.slane %v727_v36, 4  ;;  %v8450_v7 = vld [vmem:[#allocation2 + $0x68] sm:$0xff] }
  0xcf   : > { %v2418_v58 = vld [vmem:[#allocation3 + $0x18] sm:$0xff]  ;;  %851 = vst.msk [vmem:[#allocation2 + $0x104] sm:$0xf] %vm259_vm1, %v712_v13  ;;  %v719_v41 = vrot.slane %v717_v34, 5  ;;  %v733_v49 = vshll.u32 %v343_v44, 16 }
  0xd0   : > { %2132 = vst.msk [vmem:[#allocation3 + $0x20] sm:$0xff] %vm1285_vm4, %v2100_v55  ;;  %v2450_v61 = vadd.f32 %v2418_v58, %v2342_v23  ;;  %v1364_v62 = vpop.f32.mrf.mxu0  ;;  %v1999_v63 = vpop.f32.mrf.mxu2  ;;  %v730_v53 = vor.u32 %v729_v46, %v725_v42  ;;  %v255_v13 = vld [vmem:[%s8822_s8 + $0xc0] sm:$0xf] }
  0xd1   : > { %v1365_v1 = vadd.f32 %v9007_v26, %v1364_v62  ;;  %v2513_v4 = vld [vmem:[#allocation3 + $0x10] sm:$0xff]  ;;  %v735_v56 = vrot.slane %v733_v49, 5  ;;  %292 = vst.msk [vmem:[#allocation2 + $0x80] sm:$0xf] %vm259_vm1, %v255_v13 }
  0xd2   : > { %2482 = vst.msk [vmem:[#allocation3 + $0x18] sm:$0xff] %vm1285_vm4, %v2450_v61  ;;  %v1719_v5 = vld [vmem:[#allocation3 + $0x30] sm:$0xff]  ;;  %v2545_v10 = vpack.c.bf16 %v2513_v4, %v2513_v4  ;;  %v731_v60 = vrot.slane %v730_v53, 4  ;;  %v8497_v4 = vld [vmem:[#allocation2 + $0xf8] sm:$0xff] }
  0xd3   : > { %1434 = vst.msk [vmem:[#allocation3 + $0x38] sm:$0xff] %vm1285_vm4, %v1365_v1  ;;  %v1648_v8 = vpop.f32.mrf.mxu1 }
  0xd4   : > { %v1751_v11 = vadd.f32 %v1719_v5, %v1648_v8  ;;  %2577 = vst.msk [vmem:[%s9085_s17 + $0x8] sm:$0xf] %vm259_vm1, %v2545_v10  ;;  %v736_v2 = vsel %vm8844_vm5, %v731_v60, %v735_v56  ;;  %v8451_v60 = vld [vmem:[#allocation2 + $0x70] sm:$0xff] }
  0xd5   : > { %v2347_v12 = vpop.f32.mrf.mxu3  ;;  %v2069_v14 = vld [vmem:[#allocation3 + $0x28] sm:$0xff]  ;;  %853 = vst.msk [vmem:[#allocation2 + $0x10c] sm:$0xf] %vm259_vm1, %v736_v2 }
  0xd6   : > { %v2101_v16 = vadd.f32 %v2069_v14, %v1996_v33  ;;  %1783 = vst.msk [vmem:[#allocation3 + $0x30] sm:$0xff] %vm1285_vm4, %v1751_v11  ;;  %7199 = vmatmul.msk.bf16.gmra.mxu1 %vm1285_vm4, %v8464_v6  ;;  %v714_v33 = vshrl.u32 %v341_v29, 16  ;;  %v8482_v11 = vld [vmem:[#allocation2 + $0x70] sm:$0xff]  ;;  %v256_v14 = vld [vmem:[%s8822_s8 + $0xc4] sm:$0xf] }
  0xd7   : > { %v2419_v17 = vld [vmem:[#allocation3 + $0x20] sm:$0xff]  ;;  %293 = vst.msk [vmem:[#allocation2 + $0x84] sm:$0xf] %vm259_vm1, %v256_v14 }
  0xd8   : > { %2133 = vst.msk [vmem:[#allocation3 + $0x28] sm:$0xff] %vm1285_vm4, %v2101_v16  ;;  %v2451_v19 = vadd.f32 %v2419_v17, %v2345_v50  ;;  %v1367_v20 = vpop.f32.mrf.mxu0  ;;  %v2001_v21 = vpop.f32.mrf.mxu2  ;;  %v716_v40 = vrot.slane %v714_v33, 4  ;;  %v344_v17 = vld [vmem:[%s8822_s8 + $0xc0] sm:$0xf]  ;;  %v346_v33 = vld [vmem:[%s8822_s8 + $0xc8] sm:$0x1] }
  0xd9   : > { %v1368_v23 = vadd.f32 %v9007_v26, %v1367_v20  ;;  %v2514_v27 = vld [vmem:[#allocation3 + $0x18] sm:$0xff] }
  0xda   : > { %7361 = vmatmul.msk.bf16.gmra.mxu3 %vm1285_vm4, %v8496_v15  ;;  %2483 = vst.msk [vmem:[#allocation3 + $0x20] sm:$0xff] %vm1285_vm4, %v2451_v19  ;;  %v1720_v28 = vld [vmem:[#allocation3 + $0x38] sm:$0xff]  ;;  %v2546_v31 = vpack.c.bf16 %v2514_v27, %v2514_v27  ;;  %v720_v48 = vor.u32 %v719_v41, %v716_v40 }
  0xdb   : > { %1435 = vst.msk [vmem:[#allocation3 + $0x40] sm:$0xff] %vm1285_vm4, %v1368_v23  ;;  %v1650_v32 = vpop.f32.mrf.mxu1  ;;  %7119 = vmatmul.msk.bf16.gmra.mxu0 %vm1285_vm4, %v8449_v18  ;;  %v345_v18 = vld [vmem:[%s8822_s8 + $0xc4] sm:$0xf] }
  0xdc   : > { %v1752_v37 = vadd.f32 %v1720_v28, %v1650_v32  ;;  %2578 = vst.msk [vmem:[%s9085_s17 + $0xc] sm:$0xf] %vm259_vm1, %v2546_v31  ;;  %v721_v55 = vrot.slane %v720_v48, 4  ;;  %v747_v23 = vshll.u32 %v345_v18, 16  ;;  %v751_v24 = vshrl.u32 %v345_v18, 16  ;;  %v8466_v48 = vld [vmem:[#allocation2 + $0xf8] sm:$0xff] }
  0xdd   : > { %v2350_v38 = vpop.f32.mrf.mxu3  ;;  %v2070_v39 = vld [vmem:[#allocation3 + $0x30] sm:$0xff]  ;;  %7281 = vmatmul.msk.bf16.gmra.mxu2 %vm1285_vm4, %v8481_v22  ;;  %v741_v22 = vshll.u32 %v344_v17, 16 }
  0xde   : > { %v2102_v43 = vadd.f32 %v2070_v39, %v1999_v63  ;;  %1784 = vst.msk [vmem:[#allocation3 + $0x38] sm:$0xff] %vm1285_vm4, %v1752_v37  ;;  %v726_v62 = vsel %vm8844_vm5, %v721_v55, %v725_v42  ;;  %v749_v31 = vrot.slane %v747_v23, 5  ;;  %v753_v34 = vrot.slane %v751_v24, 4 }
  0xdf   : > { %v2420_v47 = vld [vmem:[#allocation3 + $0x28] sm:$0xff]  ;;  %852 = vst.msk [vmem:[#allocation2 + $0x108] sm:$0xf] %vm259_vm1, %v726_v62  ;;  %v743_v30 = vrot.slane %v741_v22, 5  ;;  %v757_v37 = vshll.u32 %v346_v33, 16 }
  0xe0   : > { %2134 = vst.msk [vmem:[#allocation3 + $0x30] sm:$0xff] %vm1285_vm4, %v2102_v43  ;;  %v2452_v50 = vadd.f32 %v2420_v47, %v2347_v12  ;;  %v1369_v51 = vpop.f32.mrf.mxu0  ;;  %v2004_v52 = vpop.f32.mrf.mxu2  ;;  %v754_v41 = vor.u32 %v753_v34, %v749_v31 }
  0xe1   : > { %v1370_v54 = vadd.f32 %v9007_v26, %v1369_v51  ;;  %v2515_v57 = vld [vmem:[#allocation3 + $0x20] sm:$0xff]  ;;  %v759_v44 = vrot.slane %v757_v37, 5 }
  0xe2   : > { %2484 = vst.msk [vmem:[#allocation3 + $0x28] sm:$0xff] %vm1285_vm4, %v2452_v50  ;;  %v1721_v58 = vld [vmem:[#allocation3 + $0x40] sm:$0xff]  ;;  %v2547_v63 = vpack.c.bf16 %v2515_v57, %v2515_v57  ;;  %v755_v49 = vrot.slane %v754_v41, 4  ;;  %v8498_v57 = vld [vmem:[#allocation2 + $0x100] sm:$0xff] }
  0xe3   : > { %1436 = vst.msk [vmem:[#allocation3 + $0x48] sm:$0xff] %vm1285_vm4, %v1370_v54  ;;  %v1653_v61 = vpop.f32.mrf.mxu1 }
  0xe4   : > { %v1753_v0 = vadd.f32 %v1721_v58, %v1653_v61  ;;  %2579 = vst.msk [vmem:[%s9085_s17 + $0x10] sm:$0xf] %vm259_vm1, %v2547_v63  ;;  %v760_v55 = vsel %vm8844_vm5, %v755_v49, %v759_v44  ;;  %v859_v61 = vld [vmem:[%s8822_s8 + $0x4] sm:$0xf]  ;;  %v8452_v49 = vld [vmem:[#allocation2 + $0x78] sm:$0xff] }
  0xe5   : > { %v2352_v1 = vpop.f32.mrf.mxu3  ;;  %v2071_v3 = vld [vmem:[#allocation3 + $0x38] sm:$0xff]  ;;  %855 = vst.msk [vmem:[#allocation2 + $0x114] sm:$0xf] %vm259_vm1, %v760_v55  ;;  %v971_v2 = vrot.slane %v859_v61, 5 }
  0xe6   : > { %v2103_v5 = vadd.f32 %v2071_v3, %v2001_v21  ;;  %1785 = vst.msk [vmem:[#allocation3 + $0x40] sm:$0xff] %vm1285_vm4, %v1753_v0  ;;  %7200 = vmatmul.msk.bf16.gmra.mxu1 %vm1285_vm4, %v8465_v59  ;;  %v738_v21 = vshrl.u32 %v344_v17, 16 }
  0xe7   : > { %v2421_v6 = vld [vmem:[#allocation3 + $0x30] sm:$0xff] }
  0xe8   : > { %2135 = vst.msk [vmem:[#allocation3 + $0x38] sm:$0xff] %vm1285_vm4, %v2103_v5  ;;  %v2453_v8 = vadd.f32 %v2421_v6, %v2350_v38  ;;  %v1372_v9 = vpop.f32.mrf.mxu0  ;;  %v2006_v10 = vpop.f32.mrf.mxu2  ;;  %v740_v29 = vrot.slane %v738_v21, 4  ;;  %v860_v5 = vld [vmem:[%s8822_s8 + $0x8] sm:$0x1] }
  0xe9   : > { %v1373_v12 = vadd.f32 %v9007_v26, %v1372_v9  ;;  %v2516_v15 = vld [vmem:[#allocation3 + $0x28] sm:$0xff]  ;;  %v973_v9 = vrot.slane %v971_v2, 4 }
  0xea   : > { %7362 = vmatmul.msk.bf16.gmra.mxu3 %vm1285_vm4, %v8497_v4  ;;  %2485 = vst.msk [vmem:[#allocation3 + $0x30] sm:$0xff] %vm1285_vm4, %v2453_v8  ;;  %v1722_v16 = vld [vmem:[#allocation3 + $0x48] sm:$0xff]  ;;  %v2548_v19 = vpack.c.bf16 %v2516_v15, %v2516_v15  ;;  %v744_v36 = vor.u32 %v743_v30, %v740_v29  ;;  %v858_v4 = vld [vmem:[%s8822_s8] sm:$0xe] }
  0xeb   : > { %1437 = vst.msk [vmem:[#allocation3 + $0x50] sm:$0xff] %vm1285_vm4, %v1373_v12  ;;  %v1655_v20 = vpop.f32.mrf.mxu1  ;;  %7120 = vmatmul.msk.bf16.gmra.mxu0 %vm1285_vm4, %v8450_v7  ;;  %v7025_v8 = vrot.slane %v858_v4, 9  ;;  %v974_v12 = vrot.slane %v860_v5, 5  ;;  %v8467_v30 = vld [vmem:[#allocation2 + $0x100] sm:$0xff]  ;;  %v7803_v5 = vld [vmem:[%s10462_s1 + $0x12] sm:$0x3] }
  0xec   : > { %v1754_v25 = vadd.f32 %v1722_v16, %v1655_v20  ;;  %2580 = vst.msk [vmem:[%s9085_s17 + $0x14] sm:$0xf] %vm259_vm1, %v2548_v19  ;;  %v745_v43 = vrot.slane %v744_v36, 4  ;;  %v862_v20 = vld [vmem:[%s8822_s8 + $0x10] sm:$0xf] }
  0xed   : > { %v2355_v27 = vpop.f32.mrf.mxu3  ;;  %v2072_v28 = vld [vmem:[#allocation3 + $0x40] sm:$0xff]  ;;  %7282 = vmatmul.msk.bf16.gmra.mxu2 %vm1285_vm4, %v8482_v11  ;;  %v972_v15 = vsel %vm9194_vm8, %v7025_v8, %v971_v2  ;;  %v975_v17 = vsel %vm9194_vm8, %v973_v9, %v974_v12  ;;  %v978_v22 = vrot.slane %v862_v20, 5  ;;  %v8468_v8 = vld [vmem:[#allocation2 + $0x108] sm:$0xff]  ;;  %v4490_v9 = vsel %vm1334_vm0, %v7803_v5, 0 }
  0xee   : > { %v2104_v32 = vadd.f32 %v2072_v28, %v2004_v52  ;;  %1786 = vst.msk [vmem:[#allocation3 + $0x48] sm:$0xff] %vm1285_vm4, %v1754_v25  ;;  %v750_v51 = vsel %vm8844_vm5, %v745_v43, %v749_v31  ;;  %v863_v28 = vld [vmem:[%s8822_s8 + $0x14] sm:$0x1]  ;;  %4499 = vmatpush.bf16.msra.mxu1 %v4490_v9 }
  0xef   : > { %v2422_v35 = vld [vmem:[#allocation3 + $0x38] sm:$0xff]  ;;  %854 = vst.msk [vmem:[#allocation2 + $0x110] sm:$0xf] %vm259_vm1, %v750_v51  ;;  %v981_v33 = vrot.slane %v863_v28, 5 }
  0xf0   : > { %2136 = vst.msk [vmem:[#allocation3 + $0x40] sm:$0xff] %vm1285_vm4, %v2104_v32  ;;  %v2454_v38 = vadd.f32 %v2422_v35, %v2352_v1  ;;  %v1374_v39 = vpop.f32.mrf.mxu0  ;;  %v2009_v40 = vpop.f32.mrf.mxu2  ;;  %v8483_v1 = vld [vmem:[#allocation2 + $0x78] sm:$0xff]  ;;  %v980_v32 = vrot.slane %v978_v22, 4  ;;  %v7722_v35 = vld [vmem:[%s10462_s1 + $0x10] sm:$0x3] }
  0xf1   : > { %v1375_v42 = vadd.f32 %v9007_v26, %v1374_v39  ;;  %v2517_v46 = vld [vmem:[#allocation3 + $0x30] sm:$0xff]  ;;  %1132 = vst.msk [vmem:[#allocation2 + $0x120] sm:$0xf] %vm259_vm1, %v972_v15  ;;  %v7884_v15 = vld [vmem:[%s10462_s1 + $0x14] sm:$0x3] }
  0xf2   : > { %2486 = vst.msk [vmem:[#allocation3 + $0x38] sm:$0xff] %vm1285_vm4, %v2454_v38  ;;  %v1723_v47 = vld [vmem:[#allocation3 + $0x50] sm:$0xff]  ;;  %v2549_v52 = vpack.c.bf16 %v2517_v46, %v2517_v46  ;;  %v4204_v38 = vsel %vm1334_vm0, %v7722_v35, 0  ;;  %v8499_v46 = vld [vmem:[#allocation2 + $0x108] sm:$0xff]  ;;  %v8533_v35 = vld [vmem:[#allocation2 + $0x98] sm:$0xff] }
  0xf3   : > { %1438 = vst.msk [vmem:[#allocation3 + $0x58] sm:$0xff] %vm1285_vm4, %v1375_v42  ;;  %v1658_v50 = vpop.f32.mrf.mxu1  ;;  %4213 = vmatpush.bf16.msra.mxu0 %v4204_v38  ;;  %v7965_v38 = vld [vmem:[%s10462_s1 + $0x16] sm:$0x3] }
  0xf4   : > { %v1755_v53 = vadd.f32 %v1723_v47, %v1658_v50  ;;  %2581 = vst.msk [vmem:[%s9085_s17 + $0x18] sm:$0xf] %vm259_vm1, %v2549_v52 }
  0xf5   : > { %v2357_v54 = vpop.f32.mrf.mxu3  ;;  %v2073_v56 = vld [vmem:[#allocation3 + $0x48] sm:$0xff]  ;;  %1133 = vst.msk [vmem:[#allocation2 + $0x124] sm:$0xf] %vm259_vm1, %v975_v17 }
  0xf6   : > { %v2105_v58 = vadd.f32 %v2073_v56, %v2006_v10  ;;  %1787 = vst.msk [vmem:[#allocation3 + $0x50] sm:$0xff] %vm1285_vm4, %v1755_v53  ;;  %7201 = vmatmul.msk.bf16.gmra.mxu1 %vm1285_vm4, %v8466_v48 }
  0xf7   : > { %v2423_v59 = vld [vmem:[#allocation3 + $0x40] sm:$0xff] }
  0xf8   : > { %2137 = vst.msk [vmem:[#allocation3 + $0x48] sm:$0xff] %vm1285_vm4, %v2105_v58  ;;  %v2455_v62 = vadd.f32 %v2423_v59, %v2355_v27  ;;  %v1377_v63 = vpop.f32.mrf.mxu0  ;;  %v2011_v0 = vpop.f32.mrf.mxu2  ;;  %v861_v27 = vld [vmem:[%s8822_s8 + $0xc] sm:$0xe] }
  0xf9   : > { %v1378_v3 = vadd.f32 %v9007_v26, %v1377_v63  ;;  %v2518_v6 = vld [vmem:[#allocation3 + $0x38] sm:$0xff]  ;;  %v7026_v31 = vrot.slane %v861_v27, 9  ;;  %v865_v63 = vld [vmem:[%s8822_s8 + $0x1c] sm:$0xf] }
  0xfa   : > { %7363 = vmatmul.msk.bf16.gmra.mxu3 %vm1285_vm4, %v8498_v57  ;;  %2487 = vst.msk [vmem:[#allocation3 + $0x40] sm:$0xff] %vm1285_vm4, %v2455_v62  ;;  %v1724_v7 = vld [vmem:[#allocation3 + $0x58] sm:$0xff]  ;;  %v2550_v18 = vpack.c.bf16 %v2518_v6, %v2518_v6  ;;  %v864_v6 = vld [vmem:[%s8822_s8 + $0x18] sm:$0xe] }
  0xfb   : > { %1439 = vst.msk [vmem:[#allocation3 + $0x60] sm:$0xff] %vm1285_vm4, %v1378_v3  ;;  %v1660_v10 = vpop.f32.mrf.mxu1  ;;  %7121 = vmatmul.msk.bf16.gmra.mxu0 %vm1285_vm4, %v8451_v60  ;;  %v979_v39 = vsel %vm9194_vm8, %v7026_v31, %v978_v22  ;;  %v7027_v12 = vrot.slane %v864_v6, 9 }
  0xfc   : > { %v1756_v13 = vadd.f32 %v1724_v7, %v1660_v10  ;;  %2582 = vst.msk [vmem:[%s9085_s17 + $0x1c] sm:$0xf] %vm259_vm1, %v2550_v18  ;;  %v866_v10 = vld [vmem:[%s8822_s8 + $0x20] sm:$0x1] }
  0xfd   : > { %v2360_v14 = vpop.f32.mrf.mxu3  ;;  %v2074_v16 = vld [vmem:[#allocation3 + $0x50] sm:$0xff]  ;;  %7283 = vmatmul.msk.bf16.gmra.mxu2 %vm1285_vm4, %v8483_v1  ;;  %1134 = vst.msk [vmem:[#allocation2 + $0x128] sm:$0xf] %vm259_vm1, %v979_v39  ;;  %v985_v1 = vrot.slane %v865_v63, 5 }
  0xfe   : > { %v2106_v19 = vadd.f32 %v2074_v16, %v2009_v40  ;;  %1788 = vst.msk [vmem:[#allocation3 + $0x58] sm:$0xff] %vm1285_vm4, %v1756_v13  ;;  %v982_v40 = vsel %vm9194_vm8, %v980_v32, %v981_v33  ;;  %v988_v16 = vrot.slane %v866_v10, 5  ;;  %v9268_v33 = vld [vmem:[%s10463_s2] ss:$0 sm:$0xff] }
  0xff   : > { %v2424_v21 = vld [vmem:[#allocation3 + $0x48] sm:$0xff]  ;;  %1135 = vst.msk [vmem:[#allocation2 + $0x12c] sm:$0xf] %vm259_vm1, %v982_v40  ;;  %v987_v13 = vrot.slane %v985_v1, 4 }
 0x100   : > { %2138 = vst.msk [vmem:[#allocation3 + $0x50] sm:$0xff] %vm1285_vm4, %v2106_v19  ;;  %v2456_v23 = vadd.f32 %v2424_v21, %v2357_v54  ;;  %v1379_v24 = vpop.f32.mrf.mxu0  ;;  %v2014_v25 = vpop.f32.mrf.mxu2  ;;  %v8484_v54 = vld [vmem:[#allocation2 + $0x80] sm:$0xff]  ;;  %v986_v19 = vsel %vm9194_vm8, %v7027_v12, %v985_v1 }
 0x101   : > { %v1380_v29 = vadd.f32 %v9007_v26, %v1379_v24  ;;  %v2519_v36 = vld [vmem:[#allocation3 + $0x40] sm:$0xff]  ;;  %1136 = vst.msk [vmem:[#allocation2 + $0x130] sm:$0xf] %vm259_vm1, %v986_v19 }
 0x102   : > { %2488 = vst.msk [vmem:[#allocation3 + $0x48] sm:$0xff] %vm1285_vm4, %v2456_v23  ;;  %v1725_v34 = vld [vmem:[#allocation3 + $0x60] sm:$0xff]  ;;  %v2551_v41 = vpack.c.bf16 %v2519_v36, %v2519_v36  ;;  %v989_v23 = vsel %vm9194_vm8, %v987_v13, %v988_v16 }
 0x103   : > { %1440 = vst.msk [vmem:[#allocation3 + $0x68] sm:$0xff] %vm1285_vm4, %v1380_v29  ;;  %v1663_v37 = vpop.f32.mrf.mxu1  ;;  %v8501_v29 = vld [vmem:[#allocation2 + $0x90] sm:$0xff] }
 0x104   : > { %v1757_v42 = vadd.f32 %v1725_v34, %v1663_v37  ;;  %2583 = vst.msk [vmem:[%s9085_s17 + $0x20] sm:$0xf] %vm259_vm1, %v2551_v41  ;;  %v5192_v41 = vsel %vm1334_vm0, %v7965_v38, 0 }
 0x105   : > { %v2362_v43 = vpop.f32.mrf.mxu3  ;;  %v2075_v44 = vld [vmem:[#allocation3 + $0x58] sm:$0xff]  ;;  %1137 = vst.msk [vmem:[#allocation2 + $0x134] sm:$0xf] %vm259_vm1, %v989_v23  ;;  %5201 = vmatpush.bf16.msra.mxu3 %v5192_v41 }
 0x106   : > { %v2107_v47 = vadd.f32 %v2075_v44, %v2011_v0  ;;  %1789 = vst.msk [vmem:[#allocation3 + $0x60] sm:$0xff] %vm1285_vm4, %v1757_v42  ;;  %7202 = vmatmul.msk.bf16.gmra.mxu1 %vm1285_vm4, %v8467_v30  ;;  %v8549_v5 = vld [vmem:[#allocation2 + $0x128] sm:$0xff] }
 0x107   : > { %v2425_v48 = vld [vmem:[#allocation3 + $0x50] sm:$0xff]  ;;  %v8518_v38 = vld [vmem:[#allocation2 + $0x128] sm:$0xff] }
 0x108   : > { %2139 = vst.msk [vmem:[#allocation3 + $0x58] sm:$0xff] %vm1285_vm4, %v2107_v47  ;;  %v2457_v50 = vadd.f32 %v2425_v48, %v2360_v14  ;;  %v1382_v51 = vpop.f32.mrf.mxu0  ;;  %v2016_v52 = vpop.f32.mrf.mxu2  ;;  %v868_v47 = vld [vmem:[%s8822_s8 + $0x28] sm:$0xf] }
 0x109   : > { %v1383_v53 = vadd.f32 %v9007_v26, %v1382_v51  ;;  %v2520_v55 = vld [vmem:[#allocation3 + $0x48] sm:$0xff] }
 0x10a   : > { %7364 = vmatmul.msk.bf16.gmra.mxu3 %vm1285_vm4, %v8499_v46  ;;  %2489 = vst.msk [vmem:[#allocation3 + $0x50] sm:$0xff] %vm1285_vm4, %v2457_v50  ;;  %v1726_v56 = vld [vmem:[#allocation3 + $0x68] sm:$0xff]  ;;  %v2552_v57 = vpack.c.bf16 %v2520_v55, %v2520_v55 }
 0x10b   : > { %1441 = vst.msk [vmem:[#allocation3 + $0x70] sm:$0xff] %vm1285_vm4, %v1383_v53  ;;  %v1665_v58 = vpop.f32.mrf.mxu1  ;;  %7122 = vmatmul.msk.bf16.gmra.mxu0 %vm1285_vm4, %v8452_v49  ;;  %v992_v49 = vrot.slane %v868_v47, 5  ;;  %v867_v53 = vld [vmem:[%s8822_s8 + $0x24] sm:$0xe] }
 0x10c   : > { %v1758_v59 = vadd.f32 %v1726_v56, %v1665_v58  ;;  %2584 = vst.msk [vmem:[%s9085_s17 + $0x24] sm:$0xf] %vm259_vm1, %v2552_v57  ;;  %v7028_v56 = vrot.slane %v867_v53, 9  ;;  %v8550_v47 = vld [vmem:[#allocation2 + $0x130] sm:$0xff] }
 0x10d   : > { %v2365_v60 = vpop.f32.mrf.mxu3  ;;  %v2076_v61 = vld [vmem:[#allocation3 + $0x60] sm:$0xff]  ;;  %7284 = vmatmul.msk.bf16.gmra.mxu2 %vm1285_vm4, %v8484_v54  ;;  %v869_v54 = vld [vmem:[%s8822_s8 + $0x2c] sm:$0x1]  ;;  %v994_v57 = vrot.slane %v992_v49, 4 }
 0x10e   : > { %v2108_v62 = vadd.f32 %v2076_v61, %v2014_v25  ;;  %1790 = vst.msk [vmem:[#allocation3 + $0x68] sm:$0xff] %vm1285_vm4, %v1758_v59  ;;  %v8500_v25 = vld [vmem:[#allocation2 + $0x110] sm:$0xff]  ;;  %v995_v58 = vrot.slane %v869_v54, 5  ;;  %v8517_v61 = vld [vmem:[#allocation2 + $0x120] sm:$0xff]  ;;  %v993_v63 = vsel %vm9194_vm8, %v7028_v56, %v992_v49 }
 0x10f   : > { %v2426_v0 = vld [vmem:[#allocation3 + $0x58] sm:$0xff]  ;;  %1138 = vst.msk [vmem:[#allocation2 + $0x138] sm:$0xf] %vm259_vm1, %v993_v63 }
 0x110   : > { %2140 = vst.msk [vmem:[#allocation3 + $0x60] sm:$0xff] %vm1285_vm4, %v2108_v62  ;;  %v2458_v2 = vadd.f32 %v2426_v0, %v2362_v43  ;;  %v1384_v3 = vpop.f32.mrf.mxu0  ;;  %v2019_v4 = vpop.f32.mrf.mxu2  ;;  %v996_v0 = vsel %vm9194_vm8, %v994_v57, %v995_v58 }
 0x111   : > { %v1385_v7 = vadd.f32 %v9007_v26, %v1384_v3  ;;  %v2521_v17 = vld [vmem:[#allocation3 + $0x50] sm:$0xff]  ;;  %v4841_v26 = vsel %vm1334_vm0, %v7884_v15, 0  ;;  %1139 = vst.msk [vmem:[#allocation2 + $0x13c] sm:$0xf] %vm259_vm1, %v996_v0 }
 0x112   : > { %2490 = vst.msk [vmem:[#allocation3 + $0x58] sm:$0xff] %vm1285_vm4, %v2458_v2  ;;  %v1727_v14 = vld [vmem:[#allocation3 + $0x70] sm:$0xff]  ;;  %v2553_v20 = vpack.c.bf16 %v2521_v17, %v2521_v17  ;;  %4850 = vmatpush.bf16.msra.mxu2 %v4841_v26 }
 0x113   : > { %1442 = vst.msk [vmem:[#allocation3 + $0x78] sm:$0xff] %vm1285_vm4, %v1385_v7  ;;  %v1668_v18 = vpop.f32.mrf.mxu1  ;;  %v874_v0 = vld [vmem:[%s8822_s8 + $0x40] sm:$0xf] }
 0x114   : > { %v1759_v21 = vadd.f32 %v1727_v14, %v1668_v18  ;;  %2585 = vst.msk [vmem:[%s9085_s17 + $0x28] sm:$0xf] %vm259_vm1, %v2553_v20  ;;  %v8534_v14 = vld [vmem:[#allocation2 + $0xa0] sm:$0xff] }
 0x115   : > { %v2367_v22 = vpop.f32.mrf.mxu3  ;;  %v2077_v24 = vld [vmem:[#allocation3 + $0x68] sm:$0xff] }
 0x116   : > { %v2109_v27 = vadd.f32 %v2077_v24, %v2016_v52  ;;  %1791 = vst.msk [vmem:[#allocation3 + $0x70] sm:$0xff] %vm1285_vm4, %v1759_v21  ;;  %7203 = vmatmul.msk.bf16.gmra.mxu1 %vm1285_vm4, %v8468_v8  ;;  %v8502_v8 = vld [vmem:[#allocation2 + $0x98] sm:$0xff] }
 0x117   : > { %v2427_v28 = vld [vmem:[#allocation3 + $0x60] sm:$0xff] }
 0x118   : > { %2141 = vst.msk [vmem:[#allocation3 + $0x68] sm:$0xff] %vm1285_vm4, %v2109_v27  ;;  %v2459_v30 = vadd.f32 %v2427_v28, %v2365_v60  ;;  %v1387_v31 = vpop.f32.mrf.mxu0  ;;  %v2021_v32 = vpop.f32.mrf.mxu2 }
 0x119   : > { %v1388_v34 = vadd.f32 %v9268_v33, %v1387_v31  ;;  %v2522_v36 = vld [vmem:[#allocation3 + $0x58] sm:$0xff] }
 0x11a   : > { %7365 = vmatmul.msk.bf16.gmra.mxu3 %vm1285_vm4, %v8500_v25  ;;  %2491 = vst.msk [vmem:[#allocation3 + $0x60] sm:$0xff] %vm1285_vm4, %v2459_v30  ;;  %v1728_v37 = vld [vmem:[#allocation3 + $0x78] sm:$0xff]  ;;  %v2554_v39 = vpack.c.bf16 %v2522_v36, %v2522_v36  ;;  %v872_v30 = vld [vmem:[%s8822_s8 + $0x38] sm:$0x1] }
 0x11b   : > { %1443 = vst.msk [vmem:[#allocation3 + $0x80] sm:$0xff] %vm1285_vm4, %v1388_v34  ;;  %v1670_v40 = vpop.f32.mrf.mxu1  ;;  %7431 = vmatmul.msk.bf16.vlgmr.msrb.gmra.mxu0 %vm1285_vm4, %v8501_v29  ;;  %v870_v29 = vld [vmem:[%s8822_s8 + $0x30] sm:$0xe] }
 0x11c   : > { %v1760_v42 = vadd.f32 %v1728_v37, %v1670_v40  ;;  %2586 = vst.msk [vmem:[%s9085_s17 + $0x2c] sm:$0xf] %vm259_vm1, %v2554_v39 }
 0x11d   : > { %v2370_v43 = vpop.f32.mrf.mxu3  ;;  %v2078_v44 = vld [vmem:[#allocation3 + $0x70] sm:$0xff]  ;;  %7593 = vmatmul.msk.bf16.vlgmr.msrb.gmra.mxu2 %vm1285_vm4, %v8533_v35  ;;  %v1002_v35 = vrot.slane %v872_v30, 5 }
 0x11e   : > { %v2110_v46 = vadd.f32 %v2078_v44, %v2019_v4  ;;  %1792 = vst.msk [vmem:[#allocation3 + $0x78] sm:$0xff] %vm1285_vm4, %v1760_v42 }
 0x11f   : > { %v2428_v48 = vld [vmem:[#allocation3 + $0x68] sm:$0xff] }
 0x120   : > { %2142 = vst.msk [vmem:[#allocation3 + $0x70] sm:$0xff] %vm1285_vm4, %v2110_v46  ;;  %v2460_v50 = vadd.f32 %v2428_v48, %v2367_v22  ;;  %v1389_v51 = vpop.f32.mrf.mxu0  ;;  %v2024_v52 = vpop.f32.mrf.mxu2  ;;  %v871_v22 = vld [vmem:[%s8822_s8 + $0x34] sm:$0xf] }
 0x121   : > { %v1390_v55 = vadd.f32 %v9268_v33, %v1389_v51  ;;  %v2523_v59 = vld [vmem:[#allocation3 + $0x60] sm:$0xff]  ;;  %v999_v24 = vrot.slane %v871_v22, 5  ;;  %v8551_v22 = vld [vmem:[#allocation2 + $0x138] sm:$0xff] }
 0x122   : > { %2492 = vst.msk [vmem:[#allocation3 + $0x68] sm:$0xff] %vm1285_vm4, %v2460_v50  ;;  %v1729_v60 = vld [vmem:[#allocation3 + $0x80] sm:$0xff]  ;;  %v2555_v1 = vpack.c.bf16 %v2523_v59, %v2523_v59  ;;  %v8503_v50 = vld [vmem:[#allocation2 + $0xa0] sm:$0xff] }
 0x123   : > { %1444 = vst.msk [vmem:[#allocation3 + $0x88] sm:$0xff] %vm1285_vm4, %v1390_v55  ;;  %v1673_v62 = vpop.f32.mrf.mxu1  ;;  %v1001_v34 = vrot.slane %v999_v24, 4  ;;  %v8535_v55 = vld [vmem:[#allocation2 + $0xa8] sm:$0xff] }
 0x124   : > { %v1761_v2 = vadd.f32 %v1729_v60, %v1673_v62  ;;  %2587 = vst.msk [vmem:[%s9085_s17 + $0x30] sm:$0xf] %vm259_vm1, %v2555_v1 }
 0x125   : > { %v2372_v3 = vpop.f32.mrf.mxu3  ;;  %v2079_v4 = vld [vmem:[#allocation3 + $0x78] sm:$0xff]  ;;  %v1003_v41 = vsel %vm9194_vm8, %v1001_v34, %v1002_v35 }
 0x126   : > { %v2111_v6 = vadd.f32 %v2079_v4, %v2021_v32  ;;  %1793 = vst.msk [vmem:[#allocation3 + $0x80] sm:$0xff] %vm1285_vm4, %v1761_v2  ;;  %7512 = vmatmul.msk.bf16.vlgmr.msrb.gmra.mxu1 %vm1285_vm4, %v8517_v61  ;;  %v7029_v32 = vrot.slane %v870_v29, 9  ;;  %v1006_v2 = vrot.slane %v874_v0, 5 }
 0x127   : > { %v2429_v7 = vld [vmem:[#allocation3 + $0x70] sm:$0xff]  ;;  %1141 = vst.msk [vmem:[#allocation2 + $0x144] sm:$0xf] %vm259_vm1, %v1003_v41  ;;  %v877_v41 = vld [vmem:[%s8822_s8 + $0x4c] sm:$0xf] }
 0x128   : > { %2143 = vst.msk [vmem:[#allocation3 + $0x78] sm:$0xff] %vm1285_vm4, %v2111_v6  ;;  %v2461_v9 = vadd.f32 %v2429_v7, %v2370_v43  ;;  %v1392_v10 = vpop.f32.mrf.mxu0  ;;  %v2026_v12 = vpop.f32.mrf.mxu2  ;;  %v1000_v40 = vsel %vm9194_vm8, %v7029_v32, %v999_v24  ;;  %v873_v6 = vld [vmem:[%s8822_s8 + $0x3c] sm:$0xe]  ;;  %v875_v7 = vld [vmem:[%s8822_s8 + $0x44] sm:$0x1] }
 0x129   : > { %v1393_v13 = vadd.f32 %v9268_v33, %v1392_v10  ;;  %v2524_v15 = vld [vmem:[#allocation3 + $0x68] sm:$0xff]  ;;  %1140 = vst.msk [vmem:[#allocation2 + $0x140] sm:$0xf] %vm259_vm1, %v1000_v40  ;;  %v1008_v10 = vrot.slane %v1006_v2, 4 }
 0x12a   : > { %7674 = vmatmul.msk.bf16.vlgmr.msrb.gmra.mxu3 %vm1285_vm4, %v8549_v5  ;;  %2493 = vst.msk [vmem:[#allocation3 + $0x70] sm:$0xff] %vm1285_vm4, %v2461_v9  ;;  %v1730_v16 = vld [vmem:[#allocation3 + $0x88] sm:$0xff]  ;;  %v2556_v17 = vpack.c.bf16 %v2524_v15, %v2524_v15  ;;  %v7030_v9 = vrot.slane %v873_v6, 9  ;;  %v8519_v15 = vld [vmem:[#allocation2 + $0x130] sm:$0xff] }
 0x12b   : > { %1445 = vst.msk [vmem:[#allocation3 + $0x90] sm:$0xff] %vm1285_vm4, %v1393_v13  ;;  %v1675_v18 = vpop.f32.mrf.mxu1  ;;  %7432 = vmatmul.msk.bf16.gmra.mxu0 %vm1285_vm4, %v8502_v8 }
 0x12c   : > { %v1762_v26 = vadd.f32 %v1730_v16, %v1675_v18  ;;  %2588 = vst.msk [vmem:[%s9085_s17 + $0x34] sm:$0xf] %vm259_vm1, %v2556_v17  ;;  %v1007_v17 = vsel %vm9194_vm8, %v7030_v9, %v1006_v2 }
 0x12d   : > { %v2375_v19 = vpop.f32.mrf.mxu3  ;;  %v2080_v20 = vld [vmem:[#allocation3 + $0x80] sm:$0xff]  ;;  %7594 = vmatmul.msk.bf16.gmra.mxu2 %vm1285_vm4, %v8534_v14  ;;  %1142 = vst.msk [vmem:[#allocation2 + $0x148] sm:$0xf] %vm259_vm1, %v1007_v17 }
 0x12e   : > { %v2112_v21 = vadd.f32 %v2080_v20, %v2024_v52  ;;  %1794 = vst.msk [vmem:[#allocation3 + $0x88] sm:$0xff] %vm1285_vm4, %v1762_v26 }
 0x12f   : > { %v2430_v23 = vld [vmem:[#allocation3 + $0x78] sm:$0xff] }
 0x130   : > { %2144 = vst.msk [vmem:[#allocation3 + $0x80] sm:$0xff] %vm1285_vm4, %v2112_v21  ;;  %v2462_v25 = vadd.f32 %v2430_v23, %v2372_v3  ;;  %v1394_v27 = vpop.f32.mrf.mxu0  ;;  %v2029_v28 = vpop.f32.mrf.mxu2  ;;  %v8552_v0 = vld [vmem:[#allocation2 + $0x140] sm:$0xff] }
 0x131   : > { %v1395_v31 = vadd.f32 %v9268_v33, %v1394_v27  ;;  %v2525_v36 = vld [vmem:[#allocation3 + $0x70] sm:$0xff] }
 0x132   : > { %2494 = vst.msk [vmem:[#allocation3 + $0x78] sm:$0xff] %vm1285_vm4, %v2462_v25  ;;  %v1731_v37 = vld [vmem:[#allocation3 + $0x90] sm:$0xff]  ;;  %v2557_v42 = vpack.c.bf16 %v2525_v36, %v2525_v36  ;;  %v8504_v25 = vld [vmem:[#allocation2 + $0xa8] sm:$0xff] }
 0x133   : > { %1446 = vst.msk [vmem:[#allocation3 + $0x98] sm:$0xff] %vm1285_vm4, %v1395_v31  ;;  %v1678_v39 = vpop.f32.mrf.mxu1  ;;  %v8536_v31 = vld [vmem:[#allocation2 + $0xb0] sm:$0xff] }
 0x134   : > { %v1763_v43 = vadd.f32 %v1731_v37, %v1678_v39  ;;  %2589 = vst.msk [vmem:[%s9085_s17 + $0x38] sm:$0xf] %vm259_vm1, %v2557_v42 }
 0x135   : > { %v2377_v44 = vpop.f32.mrf.mxu3  ;;  %v2081_v46 = vld [vmem:[#allocation3 + $0x88] sm:$0xff] }
 0x136   : > { %v2113_v48 = vadd.f32 %v2081_v46, %v2026_v12  ;;  %1795 = vst.msk [vmem:[#allocation3 + $0x90] sm:$0xff] %vm1285_vm4, %v1763_v43  ;;  %7513 = vmatmul.msk.bf16.gmra.mxu1 %vm1285_vm4, %v8518_v38  ;;  %v1009_v12 = vrot.slane %v875_v7, 5  ;;  %v1013_v43 = vrot.slane %v877_v41, 5 }
 0x137   : > { %v2431_v49 = vld [vmem:[#allocation3 + $0x80] sm:$0xff] }
 0x138   : > { %2145 = vst.msk [vmem:[#allocation3 + $0x88] sm:$0xff] %vm1285_vm4, %v2113_v48  ;;  %v2463_v51 = vadd.f32 %v2431_v49, %v2375_v19  ;;  %v1397_v52 = vpop.f32.mrf.mxu0  ;;  %v2031_v53 = vpop.f32.mrf.mxu2  ;;  %v1010_v18 = vsel %vm9194_vm8, %v1008_v10, %v1009_v12  ;;  %v876_v48 = vld [vmem:[%s8822_s8 + $0x48] sm:$0xe]  ;;  %v878_v49 = vld [vmem:[%s8822_s8 + $0x50] sm:$0x1] }
 0x139   : > { %v1398_v54 = vadd.f32 %v9268_v33, %v1397_v52  ;;  %v2526_v56 = vld [vmem:[#allocation3 + $0x78] sm:$0xff]  ;;  %1143 = vst.msk [vmem:[#allocation2 + $0x14c] sm:$0xf] %vm259_vm1, %v1010_v18  ;;  %v1015_v52 = vrot.slane %v1013_v43, 4  ;;  %v880_v18 = vld [vmem:[%s8822_s8 + $0x58] sm:$0xf] }
 0x13a   : > { %7675 = vmatmul.msk.bf16.gmra.mxu3 %vm1285_vm4, %v8550_v47  ;;  %2495 = vst.msk [vmem:[#allocation3 + $0x80] sm:$0xff] %vm1285_vm4, %v2463_v51  ;;  %v1732_v57 = vld [vmem:[#allocation3 + $0x98] sm:$0xff]  ;;  %v2558_v58 = vpack.c.bf16 %v2526_v56, %v2526_v56  ;;  %v7031_v51 = vrot.slane %v876_v48, 9  ;;  %v8520_v56 = vld [vmem:[#allocation2 + $0x138] sm:$0xff] }
 0x13b   : > { %1447 = vst.msk [vmem:[#allocation3 + $0xa0] sm:$0xff] %vm1285_vm4, %v1398_v54  ;;  %v1680_v59 = vpop.f32.mrf.mxu1  ;;  %7433 = vmatmul.msk.bf16.gmra.mxu0 %vm1285_vm4, %v8503_v50 }
 0x13c   : > { %v1764_v60 = vadd.f32 %v1732_v57, %v1680_v59  ;;  %2590 = vst.msk [vmem:[%s9085_s17 + $0x3c] sm:$0xf] %vm259_vm1, %v2558_v58  ;;  %v1014_v58 = vsel %vm9194_vm8, %v7031_v51, %v1013_v43 }
 0x13d   : > { %v2380_v61 = vpop.f32.mrf.mxu3  ;;  %v2082_v62 = vld [vmem:[#allocation3 + $0x90] sm:$0xff]  ;;  %7595 = vmatmul.msk.bf16.gmra.mxu2 %vm1285_vm4, %v8535_v55  ;;  %1144 = vst.msk [vmem:[#allocation2 + $0x150] sm:$0xf] %vm259_vm1, %v1014_v58 }
 0x13e   : > { %v2114_v63 = vadd.f32 %v2082_v62, %v2029_v28  ;;  %1796 = vst.msk [vmem:[#allocation3 + $0x98] sm:$0xff] %vm1285_vm4, %v1764_v60 }
 0x13f   : > { %v2432_v1 = vld [vmem:[#allocation3 + $0x88] sm:$0xff] }
 0x140   : > { %2146 = vst.msk [vmem:[#allocation3 + $0x90] sm:$0xff] %vm1285_vm4, %v2114_v63  ;;  %v2464_v3 = vadd.f32 %v2432_v1, %v2377_v44  ;;  %v1399_v4 = vpop.f32.mrf.mxu0  ;;  %v2034_v5 = vpop.f32.mrf.mxu2  ;;  %v8553_v41 = vld [vmem:[#allocation2 + $0x148] sm:$0xff] }
 0x141   : > { %v1400_v8 = vadd.f32 %v9268_v33, %v1399_v4  ;;  %v2527_v13 = vld [vmem:[#allocation3 + $0x80] sm:$0xff] }
 0x142   : > { %2496 = vst.msk [vmem:[#allocation3 + $0x88] sm:$0xff] %vm1285_vm4, %v2464_v3  ;;  %v1733_v14 = vld [vmem:[#allocation3 + $0xa0] sm:$0xff]  ;;  %v2559_v26 = vpack.c.bf16 %v2527_v13, %v2527_v13 }
 0x143   : > { %1448 = vst.msk [vmem:[#allocation3 + $0xa8] sm:$0xff] %vm1285_vm4, %v1400_v8  ;;  %v1683_v16 = vpop.f32.mrf.mxu1  ;;  %v8505_v3 = vld [vmem:[#allocation2 + $0xb0] sm:$0xff]  ;;  %v8537_v8 = vld [vmem:[#allocation2 + $0xb8] sm:$0xff] }
 0x144   : > { %v1765_v19 = vadd.f32 %v1733_v14, %v1683_v16  ;;  %2591 = vst.msk [vmem:[%s9085_s17 + $0x40] sm:$0xf] %vm259_vm1, %v2559_v26 }
 0x145   : > { %v2382_v20 = vpop.f32.mrf.mxu3  ;;  %v2083_v21 = vld [vmem:[#allocation3 + $0x98] sm:$0xff] }
 0x146   : > { %v2115_v23 = vadd.f32 %v2083_v21, %v2031_v53  ;;  %1797 = vst.msk [vmem:[#allocation3 + $0xa0] sm:$0xff] %vm1285_vm4, %v1765_v19  ;;  %7514 = vmatmul.msk.bf16.gmra.mxu1 %vm1285_vm4, %v8519_v15  ;;  %v1016_v53 = vrot.slane %v878_v49, 5  ;;  %v1020_v19 = vrot.slane %v880_v18, 5 }
 0x147   : > { %v2433_v24 = vld [vmem:[#allocation3 + $0x90] sm:$0xff] }
 0x148   : > { %2147 = vst.msk [vmem:[#allocation3 + $0x98] sm:$0xff] %vm1285_vm4, %v2115_v23  ;;  %v2465_v27 = vadd.f32 %v2433_v24, %v2380_v61  ;;  %v1402_v28 = vpop.f32.mrf.mxu0  ;;  %v2036_v29 = vpop.f32.mrf.mxu2  ;;  %v1017_v59 = vsel %vm9194_vm8, %v1015_v52, %v1016_v53  ;;  %v879_v23 = vld [vmem:[%s8822_s8 + $0x54] sm:$0xe]  ;;  %v881_v24 = vld [vmem:[%s8822_s8 + $0x5c] sm:$0x1] }
 0x149   : > { %v1403_v30 = vadd.f32 %v9268_v33, %v1402_v28  ;;  %v2528_v32 = vld [vmem:[#allocation3 + $0x88] sm:$0xff]  ;;  %1145 = vst.msk [vmem:[#allocation2 + $0x154] sm:$0xf] %vm259_vm1, %v1017_v59  ;;  %v1022_v28 = vrot.slane %v1020_v19, 4 }
 0x14a   : > { %7676 = vmatmul.msk.bf16.gmra.mxu3 %vm1285_vm4, %v8551_v22  ;;  %2497 = vst.msk [vmem:[#allocation3 + $0x90] sm:$0xff] %vm1285_vm4, %v2465_v27  ;;  %v1734_v34 = vld [vmem:[#allocation3 + $0xa8] sm:$0xff]  ;;  %v2560_v35 = vpack.c.bf16 %v2528_v32, %v2528_v32  ;;  %v7032_v27 = vrot.slane %v879_v23, 9  ;;  %v8521_v32 = vld [vmem:[#allocation2 + $0x140] sm:$0xff] }
 0x14b   : > { %1449 = vst.msk [vmem:[#allocation3 + $0xb0] sm:$0xff] %vm1285_vm4, %v1403_v30  ;;  %v1685_v36 = vpop.f32.mrf.mxu1  ;;  %7434 = vmatmul.msk.bf16.gmra.mxu0 %vm1285_vm4, %v8504_v25 }
 0x14c   : > { %v1766_v37 = vadd.f32 %v1734_v34, %v1685_v36  ;;  %2592 = vst.msk [vmem:[%s9085_s17 + $0x44] sm:$0xf] %vm259_vm1, %v2560_v35  ;;  %v1021_v35 = vsel %vm9194_vm8, %v7032_v27, %v1020_v19 }
 0x14d   : > { %v2385_v38 = vpop.f32.mrf.mxu3  ;;  %v2084_v39 = vld [vmem:[#allocation3 + $0xa0] sm:$0xff]  ;;  %7596 = vmatmul.msk.bf16.gmra.mxu2 %vm1285_vm4, %v8536_v31  ;;  %1146 = vst.msk [vmem:[#allocation2 + $0x158] sm:$0xf] %vm259_vm1, %v1021_v35 }
 0x14e   : > { %v2116_v40 = vadd.f32 %v2084_v39, %v2034_v5  ;;  %1798 = vst.msk [vmem:[#allocation3 + $0xa8] sm:$0xff] %vm1285_vm4, %v1766_v37 }
 0x14f   : > { %v2434_v42 = vld [vmem:[#allocation3 + $0x98] sm:$0xff] }
 0x150   : > { %2148 = vst.msk [vmem:[#allocation3 + $0xa0] sm:$0xff] %vm1285_vm4, %v2116_v40  ;;  %v2466_v44 = vadd.f32 %v2434_v42, %v2382_v20  ;;  %v1404_v46 = vpop.f32.mrf.mxu0  ;;  %v2039_v47 = vpop.f32.mrf.mxu2 }
 0x151   : > { %v1405_v50 = vadd.f32 %v9268_v33, %v1404_v46  ;;  %v2529_v54 = vld [vmem:[#allocation3 + $0x90] sm:$0xff] }
 0x152   : > { %2498 = vst.msk [vmem:[#allocation3 + $0x98] sm:$0xff] %vm1285_vm4, %v2466_v44  ;;  %v1735_v55 = vld [vmem:[#allocation3 + $0xb0] sm:$0xff]  ;;  %v2561_v60 = vpack.c.bf16 %v2529_v54, %v2529_v54  ;;  %v8506_v44 = vld [vmem:[#allocation2 + $0xb8] sm:$0xff] }
 0x153   : > { %1450 = vst.msk [vmem:[#allocation3 + $0xb8] sm:$0xff] %vm1285_vm4, %v1405_v50  ;;  %v1688_v57 = vpop.f32.mrf.mxu1  ;;  %v8538_v50 = vld [vmem:[#allocation2 + $0xc0] sm:$0xff] }
 0x154   : > { %v1767_v61 = vadd.f32 %v1735_v55, %v1688_v57  ;;  %2593 = vst.msk [vmem:[%s9085_s17 + $0x48] sm:$0xf] %vm259_vm1, %v2561_v60 }
 0x155   : > { %v2387_v62 = vpop.f32.mrf.mxu3  ;;  %v2085_v63 = vld [vmem:[#allocation3 + $0xa8] sm:$0xff] }
 0x156   : > { %v2117_v1 = vadd.f32 %v2085_v63, %v2036_v29  ;;  %1799 = vst.msk [vmem:[#allocation3 + $0xb0] sm:$0xff] %vm1285_vm4, %v1767_v61  ;;  %7515 = vmatmul.msk.bf16.gmra.mxu1 %vm1285_vm4, %v8520_v56  ;;  %v1023_v29 = vrot.slane %v881_v24, 5  ;;  %v883_v63 = vld [vmem:[%s8822_s8 + $0x64] sm:$0xf] }
 0x157   : > { %v2435_v2 = vld [vmem:[#allocation3 + $0xa0] sm:$0xff] }
 0x158   : > { %2149 = vst.msk [vmem:[#allocation3 + $0xa8] sm:$0xff] %vm1285_vm4, %v2117_v1  ;;  %v2467_v4 = vadd.f32 %v2435_v2, %v2385_v38  ;;  %v1407_v5 = vpop.f32.mrf.mxu0  ;;  %v2041_v6 = vpop.f32.mrf.mxu2  ;;  %v1024_v36 = vsel %vm9194_vm8, %v1022_v28, %v1023_v29  ;;  %v8522_v1 = vld [vmem:[#allocation2 + $0x148] sm:$0xff]  ;;  %v1027_v2 = vrot.slane %v883_v63, 5 }
 0x159   : > { %v1408_v7 = vadd.f32 %v9268_v33, %v1407_v5  ;;  %v2530_v9 = vld [vmem:[#allocation3 + $0x98] sm:$0xff]  ;;  %1147 = vst.msk [vmem:[#allocation2 + $0x15c] sm:$0xf] %vm259_vm1, %v1024_v36  ;;  %v882_v5 = vld [vmem:[%s8822_s8 + $0x60] sm:$0xe] }
 0x15a   : > { %7677 = vmatmul.msk.bf16.gmra.mxu3 %vm1285_vm4, %v8552_v0  ;;  %2499 = vst.msk [vmem:[#allocation3 + $0xa0] sm:$0xff] %vm1285_vm4, %v2467_v4  ;;  %v1736_v10 = vld [vmem:[#allocation3 + $0xb8] sm:$0xff]  ;;  %v2562_v12 = vpack.c.bf16 %v2530_v9, %v2530_v9  ;;  %v7033_v9 = vrot.slane %v882_v5, 9 }
 0x15b   : > { %1451 = vst.msk [vmem:[#allocation3 + $0xc0] sm:$0xff] %vm1285_vm4, %v1408_v7  ;;  %v1690_v13 = vpop.f32.mrf.mxu1  ;;  %7435 = vmatmul.msk.bf16.gmra.mxu0 %vm1285_vm4, %v8505_v3 }
 0x15c   : > { %v1768_v14 = vadd.f32 %v1736_v10, %v1690_v13  ;;  %2594 = vst.msk [vmem:[%s9085_s17 + $0x4c] sm:$0xf] %vm259_vm1, %v2562_v12  ;;  %v1029_v10 = vrot.slane %v1027_v2, 4 }
 0x15d   : > { %v2390_v15 = vpop.f32.mrf.mxu3  ;;  %v2086_v16 = vld [vmem:[#allocation3 + $0xb0] sm:$0xff]  ;;  %7597 = vmatmul.msk.bf16.gmra.mxu2 %vm1285_vm4, %v8537_v8 }
 0x15e   : > { %v2118_v17 = vadd.f32 %v2086_v16, %v2039_v47  ;;  %1800 = vst.msk [vmem:[#allocation3 + $0xb8] sm:$0xff] %vm1285_vm4, %v1768_v14  ;;  %v8554_v16 = vld [vmem:[#allocation2 + $0x150] sm:$0xff] }
 0x15f   : > { %v2436_v26 = vld [vmem:[#allocation3 + $0xa8] sm:$0xff] }
 0x160   : > { %2150 = vst.msk [vmem:[#allocation3 + $0xb0] sm:$0xff] %vm1285_vm4, %v2118_v17  ;;  %v2468_v20 = vadd.f32 %v2436_v26, %v2387_v62  ;;  %v1409_v21 = vpop.f32.mrf.mxu0  ;;  %v2044_v22 = vpop.f32.mrf.mxu2  ;;  %v1028_v17 = vsel %vm9194_vm8, %v7033_v9, %v1027_v2 }
 0x161   : > { %v1410_v25 = vadd.f32 %v9268_v33, %v1409_v21  ;;  %v2531_v30 = vld [vmem:[#allocation3 + $0xa0] sm:$0xff]  ;;  %1148 = vst.msk [vmem:[#allocation2 + $0x160] sm:$0xf] %vm259_vm1, %v1028_v17  ;;  %v889_v17 = vld [vmem:[%s8822_s8 + $0x7c] sm:$0xf] }
 0x162   : > { %2500 = vst.msk [vmem:[#allocation3 + $0xa8] sm:$0xff] %vm1285_vm4, %v2468_v20  ;;  %v1737_v31 = vld [vmem:[#allocation3 + $0xc0] sm:$0xff]  ;;  %v2563_v37 = vpack.c.bf16 %v2531_v30, %v2531_v30  ;;  %v8507_v20 = vld [vmem:[#allocation2 + $0xc0] sm:$0xff] }
 0x163   : > { %1452 = vst.msk [vmem:[#allocation3 + $0xc8] sm:$0xff] %vm1285_vm4, %v1410_v25  ;;  %v1693_v34 = vpop.f32.mrf.mxu1  ;;  %v8539_v25 = vld [vmem:[#allocation2 + $0xc8] sm:$0xff] }
 0x164   : > { %v1769_v38 = vadd.f32 %v1737_v31, %v1693_v34  ;;  %2595 = vst.msk [vmem:[%s9085_s17 + $0x50] sm:$0xf] %vm259_vm1, %v2563_v37 }
 0x165   : > { %v2392_v39 = vpop.f32.mrf.mxu3  ;;  %v2087_v40 = vld [vmem:[#allocation3 + $0xb8] sm:$0xff] }
 0x166   : > { %v2119_v42 = vadd.f32 %v2087_v40, %v2041_v6  ;;  %1801 = vst.msk [vmem:[#allocation3 + $0xc0] sm:$0xff] %vm1285_vm4, %v1769_v38  ;;  %7516 = vmatmul.msk.bf16.gmra.mxu1 %vm1285_vm4, %v8521_v32  ;;  %v884_v6 = vld [vmem:[%s8822_s8 + $0x68] sm:$0x1]  ;;  %v886_v40 = vld [vmem:[%s8822_s8 + $0x70] sm:$0xf] }
 0x167   : > { %v2437_v43 = vld [vmem:[#allocation3 + $0xb0] sm:$0xff]  ;;  %v1030_v12 = vrot.slane %v884_v6, 5 }
 0x168   : > { %2151 = vst.msk [vmem:[#allocation3 + $0xb8] sm:$0xff] %vm1285_vm4, %v2119_v42  ;;  %v2469_v46 = vadd.f32 %v2437_v43, %v2390_v15  ;;  %v1412_v47 = vpop.f32.mrf.mxu0  ;;  %v2046_v48 = vpop.f32.mrf.mxu2  ;;  %v8523_v42 = vld [vmem:[#allocation2 + $0x150] sm:$0xff]  ;;  %v1034_v43 = vrot.slane %v886_v40, 5 }
 0x169   : > { %v1413_v49 = vadd.f32 %v9268_v33, %v1412_v47  ;;  %v2532_v51 = vld [vmem:[#allocation3 + $0xa8] sm:$0xff]  ;;  %v1031_v26 = vsel %vm9194_vm8, %v1029_v10, %v1030_v12  ;;  %v885_v47 = vld [vmem:[%s8822_s8 + $0x6c] sm:$0xe] }
 0x16a   : > { %7678 = vmatmul.msk.bf16.gmra.mxu3 %vm1285_vm4, %v8553_v41  ;;  %2501 = vst.msk [vmem:[#allocation3 + $0xb0] sm:$0xff] %vm1285_vm4, %v2469_v46  ;;  %v1738_v52 = vld [vmem:[#allocation3 + $0xc8] sm:$0xff]  ;;  %v2564_v53 = vpack.c.bf16 %v2532_v51, %v2532_v51  ;;  %v7034_v51 = vrot.slane %v885_v47, 9 }
 0x16b   : > { %1453 = vst.msk [vmem:[#allocation3 + $0xd0] sm:$0xff] %vm1285_vm4, %v1413_v49  ;;  %v1695_v54 = vpop.f32.mrf.mxu1  ;;  %7436 = vmatmul.msk.bf16.gmra.mxu0 %vm1285_vm4, %v8506_v44 }
 0x16c   : > { %v1770_v55 = vadd.f32 %v1738_v52, %v1695_v54  ;;  %2596 = vst.msk [vmem:[%s9085_s17 + $0x54] sm:$0xf] %vm259_vm1, %v2564_v53  ;;  %v1036_v52 = vrot.slane %v1034_v43, 4 }
 0x16d   : > { %v2395_v56 = vpop.f32.mrf.mxu3  ;;  %v2088_v57 = vld [vmem:[#allocation3 + $0xc0] sm:$0xff]  ;;  %7598 = vmatmul.msk.bf16.gmra.mxu2 %vm1285_vm4, %v8538_v50  ;;  %1149 = vst.msk [vmem:[#allocation2 + $0x164] sm:$0xf] %vm259_vm1, %v1031_v26  ;;  %v8524_v26 = vld [vmem:[#allocation2 + $0x158] sm:$0xff] }
 0x16e   : > { %v2120_v58 = vadd.f32 %v2088_v57, %v2044_v22  ;;  %1802 = vst.msk [vmem:[#allocation3 + $0xc8] sm:$0xff] %vm1285_vm4, %v1770_v55  ;;  %v8555_v57 = vld [vmem:[#allocation2 + $0x158] sm:$0xff] }
 0x16f   : > { %v2438_v59 = vld [vmem:[#allocation3 + $0xb8] sm:$0xff] }
 0x170   : > { %2152 = vst.msk [vmem:[#allocation3 + $0xc0] sm:$0xff] %vm1285_vm4, %v2120_v58  ;;  %v2470_v60 = vadd.f32 %v2438_v59, %v2392_v39  ;;  %v1414_v61 = vpop.f32.mrf.mxu0  ;;  %v2049_v62 = vpop.f32.mrf.mxu2  ;;  %v1035_v58 = vsel %vm9194_vm8, %v7034_v51, %v1034_v43 }
 0x171   : > { %v1415_v0 = vadd.f32 %v9268_v33, %v1414_v61  ;;  %v2533_v3 = vld [vmem:[#allocation3 + $0xb0] sm:$0xff]  ;;  %1150 = vst.msk [vmem:[#allocation2 + $0x168] sm:$0xf] %vm259_vm1, %v1035_v58  ;;  %v892_v58 = vld [vmem:[%s8822_s8 + $0x88] sm:$0xf] }
 0x172   : > { %2502 = vst.msk [vmem:[#allocation3 + $0xb8] sm:$0xff] %vm1285_vm4, %v2470_v60  ;;  %v1739_v4 = vld [vmem:[#allocation3 + $0xd0] sm:$0xff]  ;;  %v2565_v7 = vpack.c.bf16 %v2533_v3, %v2533_v3  ;;  %v8540_v3 = vld [vmem:[#allocation2 + $0xd0] sm:$0xff] }
 0x173   : > { %1454 = vst.msk [vmem:[#allocation3 + $0xd8] sm:$0xff] %vm1285_vm4, %v1415_v0  ;;  %v1698_v8 = vpop.f32.mrf.mxu1 }
 0x174   : > { %v1771_v13 = vadd.f32 %v1739_v4, %v1698_v8  ;;  %2597 = vst.msk [vmem:[%s9085_s17 + $0x58] sm:$0xf] %vm259_vm1, %v2565_v7 }
 0x175   : > { %v2397_v14 = vpop.f32.mrf.mxu3  ;;  %v2089_v15 = vld [vmem:[#allocation3 + $0xc8] sm:$0xff] }
 0x176   : > { %v2121_v18 = vadd.f32 %v2089_v15, %v2046_v48  ;;  %1803 = vst.msk [vmem:[#allocation3 + $0xd0] sm:$0xff] %vm1285_vm4, %v1771_v13  ;;  %7517 = vmatmul.msk.bf16.gmra.mxu1 %vm1285_vm4, %v8522_v1  ;;  %v887_v48 = vld [vmem:[%s8822_s8 + $0x74] sm:$0x1] }
 0x177   : > { %v2439_v19 = vld [vmem:[#allocation3 + $0xc0] sm:$0xff]  ;;  %v1037_v53 = vrot.slane %v887_v48, 5 }
 0x178   : > { %2153 = vst.msk [vmem:[#allocation3 + $0xc8] sm:$0xff] %vm1285_vm4, %v2121_v18  ;;  %v2471_v21 = vadd.f32 %v2439_v19, %v2395_v56  ;;  %v1417_v22 = vpop.f32.mrf.mxu0  ;;  %v2051_v23 = vpop.f32.mrf.mxu2  ;;  %v1041_v19 = vrot.slane %v889_v17, 5 }
 0x179   : > { %v1418_v24 = vadd.f32 %v9268_v33, %v1417_v22  ;;  %v2534_v27 = vld [vmem:[#allocation3 + $0xb8] sm:$0xff]  ;;  %v1038_v60 = vsel %vm9194_vm8, %v1036_v52, %v1037_v53  ;;  %v888_v22 = vld [vmem:[%s8822_s8 + $0x78] sm:$0xe] }
 0x17a   : > { %7679 = vmatmul.msk.bf16.gmra.mxu3 %vm1285_vm4, %v8554_v16  ;;  %2503 = vst.msk [vmem:[#allocation3 + $0xc0] sm:$0xff] %vm1285_vm4, %v2471_v21  ;;  %v1740_v28 = vld [vmem:[#allocation3 + $0xd8] sm:$0xff]  ;;  %v2566_v29 = vpack.c.bf16 %v2534_v27, %v2534_v27  ;;  %v7035_v27 = vrot.slane %v888_v22, 9 }
 0x17b   : > { %1455 = vst.msk [vmem:[#allocation3 + $0xe0] sm:$0xff] %vm1285_vm4, %v1418_v24  ;;  %v1700_v30 = vpop.f32.mrf.mxu1  ;;  %7437 = vmatmul.msk.bf16.gmra.mxu0 %vm1285_vm4, %v8507_v20 }
 0x17c   : > { %v1772_v31 = vadd.f32 %v1740_v28, %v1700_v30  ;;  %2598 = vst.msk [vmem:[%s9085_s17 + $0x5c] sm:$0xf] %vm259_vm1, %v2566_v29  ;;  %v1043_v28 = vrot.slane %v1041_v19, 4 }
 0x17d   : > { %v2400_v32 = vpop.f32.mrf.mxu3  ;;  %v2090_v34 = vld [vmem:[#allocation3 + $0xd0] sm:$0xff]  ;;  %7599 = vmatmul.msk.bf16.gmra.mxu2 %vm1285_vm4, %v8539_v25  ;;  %1151 = vst.msk [vmem:[#allocation2 + $0x16c] sm:$0xf] %vm259_vm1, %v1038_v60 }
 0x17e   : > { %v2122_v35 = vadd.f32 %v2090_v34, %v2049_v62  ;;  %1804 = vst.msk [vmem:[#allocation3 + $0xd8] sm:$0xff] %vm1285_vm4, %v1772_v31  ;;  %v8508_v62 = vld [vmem:[#allocation2 + $0xc8] sm:$0xff]  ;;  %v8556_v34 = vld [vmem:[#allocation2 + $0x160] sm:$0xff] }
 0x17f   : > { %v2440_v36 = vld [vmem:[#allocation3 + $0xc8] sm:$0xff]  ;;  %v8525_v60 = vld [vmem:[#allocation2 + $0x160] sm:$0xff] }
 0x180   : > { %2154 = vst.msk [vmem:[#allocation3 + $0xd0] sm:$0xff] %vm1285_vm4, %v2122_v35  ;;  %v2472_v37 = vadd.f32 %v2440_v36, %v2397_v14  ;;  %v1419_v38 = vpop.f32.mrf.mxu0  ;;  %v2054_v39 = vpop.f32.mrf.mxu2  ;;  %v1042_v35 = vsel %vm9194_vm8, %v7035_v27, %v1041_v19 }
 0x181   : > { %v1420_v41 = vadd.f32 %v9268_v33, %v1419_v38  ;;  %v2535_v44 = vld [vmem:[#allocation3 + $0xc0] sm:$0xff]  ;;  %1152 = vst.msk [vmem:[#allocation2 + $0x170] sm:$0xf] %vm259_vm1, %v1042_v35 }
 0x182   : > { %2504 = vst.msk [vmem:[#allocation3 + $0xc8] sm:$0xff] %vm1285_vm4, %v2472_v37  ;;  %v1741_v46 = vld [vmem:[#allocation3 + $0xe0] sm:$0xff]  ;;  %v2567_v49 = vpack.c.bf16 %v2535_v44, %v2535_v44  ;;  %v8541_v44 = vld [vmem:[#allocation2 + $0xd8] sm:$0xff] }
 0x183   : > { %1456 = vst.msk [vmem:[#allocation3 + $0xe8] sm:$0xff] %vm1285_vm4, %v1420_v41  ;;  %v1703_v50 = vpop.f32.mrf.mxu1 }
 0x184   : > { %v1773_v54 = vadd.f32 %v1741_v46, %v1703_v50  ;;  %2599 = vst.msk [vmem:[%s9085_s17 + $0x60] sm:$0xf] %vm259_vm1, %v2567_v49 }
 0x185   : > { %v2402_v55 = vpop.f32.mrf.mxu3  ;;  %v2091_v56 = vld [vmem:[#allocation3 + $0xd8] sm:$0xff] }
 0x186   : > { %v2123_v59 = vadd.f32 %v2091_v56, %v2051_v23  ;;  %1805 = vst.msk [vmem:[#allocation3 + $0xe0] sm:$0xff] %vm1285_vm4, %v1773_v54  ;;  %7518 = vmatmul.msk.bf16.gmra.mxu1 %vm1285_vm4, %v8523_v42  ;;  %v890_v23 = vld [vmem:[%s8822_s8 + $0x80] sm:$0x1] }
 0x187   : > { %v2441_v61 = vld [vmem:[#allocation3 + $0xd0] sm:$0xff]  ;;  %v1044_v29 = vrot.slane %v890_v23, 5 }
 0x188   : > { %2155 = vst.msk [vmem:[#allocation3 + $0xd8] sm:$0xff] %vm1285_vm4, %v2123_v59  ;;  %v2473_v63 = vadd.f32 %v2441_v61, %v2400_v32  ;;  %v1422_v0 = vpop.f32.mrf.mxu0  ;;  %v2056_v1 = vpop.f32.mrf.mxu2  ;;  %v1048_v61 = vrot.slane %v892_v58, 5 }
 0x189   : > { %v1423_v2 = vadd.f32 %v9268_v33, %v1422_v0  ;;  %v2536_v4 = vld [vmem:[#allocation3 + $0xc8] sm:$0xff]  ;;  %v1045_v37 = vsel %vm9194_vm8, %v1043_v28, %v1044_v29  ;;  %v891_v0 = vld [vmem:[%s8822_s8 + $0x84] sm:$0xe] }
 0x18a   : > { %7680 = vmatmul.msk.bf16.gmra.mxu3 %vm1285_vm4, %v8555_v57  ;;  %2505 = vst.msk [vmem:[#allocation3 + $0xd0] sm:$0xff] %vm1285_vm4, %v2473_v63  ;;  %v1742_v5 = vld [vmem:[#allocation3 + $0xe8] sm:$0xff]  ;;  %v2568_v6 = vpack.c.bf16 %v2536_v4, %v2536_v4  ;;  %v7036_v4 = vrot.slane %v891_v0, 9 }
 0x18b   : > { %1457 = vst.msk [vmem:[#allocation3 + $0xf0] sm:$0xff] %vm1285_vm4, %v1423_v2  ;;  %v1705_v7 = vpop.f32.mrf.mxu1  ;;  %7438 = vmatmul.msk.bf16.gmra.mxu0 %vm1285_vm4, %v8508_v62 }
 0x18c   : > { %v1774_v8 = vadd.f32 %v1742_v5, %v1705_v7  ;;  %2600 = vst.msk [vmem:[%s9085_s17 + $0x64] sm:$0xf] %vm259_vm1, %v2568_v6  ;;  %v1050_v5 = vrot.slane %v1048_v61, 4 }
 0x18d   : > { %v2405_v9 = vpop.f32.mrf.mxu3  ;;  %v2092_v10 = vld [vmem:[#allocation3 + $0xe0] sm:$0xff]  ;;  %7600 = vmatmul.msk.bf16.gmra.mxu2 %vm1285_vm4, %v8540_v3  ;;  %1153 = vst.msk [vmem:[#allocation2 + $0x174] sm:$0xf] %vm259_vm1, %v1045_v37 }
 0x18e   : > { %v2124_v12 = vadd.f32 %v2092_v10, %v2054_v39  ;;  %1806 = vst.msk [vmem:[#allocation3 + $0xe8] sm:$0xff] %vm1285_vm4, %v1774_v8  ;;  %v8509_v39 = vld [vmem:[#allocation2 + $0xd0] sm:$0xff]  ;;  %v8557_v10 = vld [vmem:[#allocation2 + $0x168] sm:$0xff] }
 0x18f   : > { %v2442_v13 = vld [vmem:[#allocation3 + $0xd8] sm:$0xff] }
 0x190   : > { %2156 = vst.msk [vmem:[#allocation3 + $0xe0] sm:$0xff] %vm1285_vm4, %v2124_v12  ;;  %v2474_v14 = vadd.f32 %v2442_v13, %v2402_v55  ;;  %v1424_v15 = vpop.f32.mrf.mxu0  ;;  %v2059_v16 = vpop.f32.mrf.mxu2  ;;  %v1049_v12 = vsel %vm9194_vm8, %v7036_v4, %v1048_v61  ;;  %v8543_v61 = vld [vmem:[#allocation2 + $0xe8] sm:$0xff] }
 0x191   : > { %v1425_v18 = vadd.f32 %v9268_v33, %v1424_v15  ;;  %v2537_v20 = vld [vmem:[#allocation3 + $0xd0] sm:$0xff]  ;;  %1154 = vst.msk [vmem:[#allocation2 + $0x178] sm:$0xf] %vm259_vm1, %v1049_v12 }
 0x192   : > { %2506 = vst.msk [vmem:[#allocation3 + $0xd8] sm:$0xff] %vm1285_vm4, %v2474_v14  ;;  %v1743_v21 = vld [vmem:[#allocation3 + $0xf0] sm:$0xff]  ;;  %v2569_v24 = vpack.c.bf16 %v2537_v20, %v2537_v20 }
 0x193   : > { %1458 = vst.msk [vmem:[#allocation3 + $0xf8] sm:$0xff] %vm1285_vm4, %v1425_v18  ;;  %v1708_v25 = vpop.f32.mrf.mxu1  ;;  %v8542_v20 = vld [vmem:[#allocation2 + $0xe0] sm:$0xff] }
 0x194   : > { %v1775_v30 = vadd.f32 %v1743_v21, %v1708_v25  ;;  %2601 = vst.msk [vmem:[%s9085_s17 + $0x68] sm:$0xf] %vm259_vm1, %v2569_v24 }
 0x195   : > { %v2407_v31 = vpop.f32.mrf.mxu3  ;;  %v2093_v32 = vld [vmem:[#allocation3 + $0xe8] sm:$0xff] }
 0x196   : > { %v2125_v36 = vadd.f32 %v2093_v32, %v2056_v1  ;;  %1807 = vst.msk [vmem:[#allocation3 + $0xf0] sm:$0xff] %vm1285_vm4, %v1775_v30  ;;  %7519 = vmatmul.msk.bf16.gmra.mxu1 %vm1285_vm4, %v8524_v26  ;;  %v893_v1 = vld [vmem:[%s8822_s8 + $0x8c] sm:$0x1] }
 0x197   : > { %v2443_v38 = vld [vmem:[#allocation3 + $0xe0] sm:$0xff]  ;;  %v1051_v6 = vrot.slane %v893_v1, 5 }
 0x198   : > { %2157 = vst.msk [vmem:[#allocation3 + $0xe8] sm:$0xff] %vm1285_vm4, %v2125_v36  ;;  %v2475_v40 = vadd.f32 %v2443_v38, %v2405_v9  ;;  %v2781_v41 = vpop.f32.mrf.mxu0  ;;  %v2061_v42 = vpop.f32.mrf.mxu2  ;;  %v8526_v38 = vld [vmem:[#allocation2 + $0x168] sm:$0xff] }
 0x199   : > { %v2782_v43 = vadd.f32 %v9268_v33, %v2781_v41  ;;  %v2538_v46 = vld [vmem:[#allocation3 + $0xd8] sm:$0xff]  ;;  %v1052_v14 = vsel %vm9194_vm8, %v1050_v5, %v1051_v6 }
 0x19a   : > { %7681 = vmatmul.msk.bf16.gmra.mxu3 %vm1285_vm4, %v8556_v34  ;;  %2507 = vst.msk [vmem:[#allocation3 + $0xe0] sm:$0xff] %vm1285_vm4, %v2475_v40  ;;  %v1744_v47 = vld [vmem:[#allocation3 + $0xf8] sm:$0xff]  ;;  %v2570_v48 = vpack.c.bf16 %v2538_v46, %v2538_v46  ;;  %v9530_v34 = vld [vmem:[%s10463_s2] ss:$0 sm:$0xff]  ;;  %v894_v46 = vld [vmem:[%s8822_s8 + $0x90] sm:$0xe] }
 0x19b   : > { %2861 = vst.msk [vmem:[#allocation3] sm:$0xff] %vm1285_vm4, %v2782_v43  ;;  %v1710_v49 = vpop.f32.mrf.mxu1  ;;  %7439 = vmatmul.msk.bf16.gmra.mxu0 %vm1285_vm4, %v8509_v39  ;;  %v895_v39 = vld [vmem:[%s8822_s8 + $0x94] sm:$0xf] }
 0x19c   : > { %v1776_v50 = vadd.f32 %v1744_v47, %v1710_v49  ;;  %2602 = vst.msk [vmem:[%s9085_s17 + $0x6c] sm:$0xf] %vm259_vm1, %v2570_v48  ;;  %v896_v47 = vld [vmem:[%s8822_s8 + $0x98] sm:$0x1]  ;;  %v8558_v49 = vld [vmem:[#allocation2 + $0x170] sm:$0xff] }
 0x19d   : > { %v2410_v51 = vpop.f32.mrf.mxu3  ;;  %v2094_v52 = vld [vmem:[#allocation3 + $0xf0] sm:$0xff]  ;;  %7601 = vmatmul.msk.bf16.gmra.mxu2 %vm1285_vm4, %v8541_v44  ;;  %1155 = vst.msk [vmem:[#allocation2 + $0x17c] sm:$0xf] %vm259_vm1, %v1052_v14 }
 0x19e   : > { %v2126_v53 = vadd.f32 %v2094_v52, %v2059_v16  ;;  %1808 = vst.msk [vmem:[#allocation3 + $0xf8] sm:$0xff] %vm1285_vm4, %v1776_v50  ;;  %v8510_v16 = vld [vmem:[#allocation2 + $0xd8] sm:$0xff]  ;;  %v7037_v50 = vrot.slane %v894_v46, 9  ;;  %v1058_v52 = vrot.slane %v896_v47, 5 }
 0x19f   : > { %v2444_v54 = vld [vmem:[#allocation3 + $0xe8] sm:$0xff] }
 0x1a0   : > { %2158 = vst.msk [vmem:[#allocation3 + $0xf0] sm:$0xff] %vm1285_vm4, %v2126_v53  ;;  %v2476_v55 = vadd.f32 %v2444_v54, %v2407_v31  ;;  %v2783_v56 = vpop.f32.mrf.mxu0  ;;  %v3417_v57 = vpop.f32.mrf.mxu2 }
 0x1a1   : > { %v2784_v59 = vadd.f32 %v9268_v33, %v2783_v56  ;;  %v2539_v62 = vld [vmem:[#allocation3 + $0xe0] sm:$0xff] }
 0x1a2   : > { %2508 = vst.msk [vmem:[#allocation3 + $0xe8] sm:$0xff] %vm1285_vm4, %v2476_v55  ;;  %v3147_v63 = vld [vmem:[#allocation3] sm:$0xff]  ;;  %v2571_v2 = vpack.c.bf16 %v2539_v62, %v2539_v62  ;;  %v8511_v55 = vld [vmem:[#allocation2 + $0xe0] sm:$0xff] }
 0x1a3   : > { %2862 = vst.msk [vmem:[#allocation3 + $0x8] sm:$0xff] %vm1285_vm4, %v2784_v59  ;;  %v3067_v3 = vpop.f32.mrf.mxu1 }
 0x1a4   : > { %v3179_v7 = vadd.f32 %v3147_v63, %v3067_v3  ;;  %2603 = vst.msk [vmem:[%s9085_s17 + $0x70] sm:$0xf] %vm259_vm1, %v2571_v2 }
 0x1a5   : > { %v2412_v8 = vpop.f32.mrf.mxu3  ;;  %v2095_v9 = vld [vmem:[#allocation3 + $0xf8] sm:$0xff] }
 0x1a6   : > { %v2127_v13 = vadd.f32 %v2095_v9, %v2061_v42  ;;  %3211 = vst.msk [vmem:[#allocation3] sm:$0xff] %vm1285_vm4, %v3179_v7  ;;  %7520 = vmatmul.msk.bf16.gmra.mxu1 %vm1285_vm4, %v8525_v60  ;;  %v1055_v42 = vrot.slane %v895_v39, 5 }
 0x1a7   : > { %v2445_v15 = vld [vmem:[#allocation3 + $0xf0] sm:$0xff] }
 0x1a8   : > { %2159 = vst.msk [vmem:[#allocation3 + $0xf8] sm:$0xff] %vm1285_vm4, %v2127_v13  ;;  %v2477_v17 = vadd.f32 %v2445_v15, %v2410_v51  ;;  %v2786_v18 = vpop.f32.mrf.mxu0  ;;  %v3419_v26 = vpop.f32.mrf.mxu2  ;;  %v1057_v51 = vrot.slane %v1055_v42, 4  ;;  %v1056_v56 = vsel %vm9194_vm8, %v7037_v50, %v1055_v42  ;;  %v8527_v15 = vld [vmem:[#allocation2 + $0x170] sm:$0xff] }
 0x1a9   : > { %v2787_v19 = vadd.f32 %v9268_v33, %v2786_v18  ;;  %v2540_v21 = vld [vmem:[#allocation3 + $0xe8] sm:$0xff]  ;;  %1156 = vst.msk [vmem:[#allocation2 + $0x180] sm:$0xf] %vm259_vm1, %v1056_v56 }
 0x1aa   : > { %7682 = vmatmul.msk.bf16.gmra.mxu3 %vm1285_vm4, %v8557_v10  ;;  %2509 = vst.msk [vmem:[#allocation3 + $0xf0] sm:$0xff] %vm1285_vm4, %v2477_v17  ;;  %v3148_v22 = vld [vmem:[#allocation3 + $0x8] sm:$0xff]  ;;  %v2572_v23 = vpack.c.bf16 %v2540_v21, %v2540_v21  ;;  %v1059_v62 = vsel %vm9194_vm8, %v1057_v51, %v1058_v52 }
 0x1ab   : > { %2863 = vst.msk [vmem:[#allocation3 + $0x10] sm:$0xff] %vm1285_vm4, %v2787_v19  ;;  %v3069_v24 = vpop.f32.mrf.mxu1  ;;  %7440 = vmatmul.msk.bf16.gmra.mxu0 %vm1285_vm4, %v8510_v16  ;;  %v898_v16 = vld [vmem:[%s8822_s8 + $0xa0] sm:$0xf]  ;;  %v897_v21 = vld [vmem:[%s8822_s8 + $0x9c] sm:$0xe] }
 0x1ac   : > { %v3180_v25 = vadd.f32 %v3148_v22, %v3069_v24  ;;  %2604 = vst.msk [vmem:[%s9085_s17 + $0x74] sm:$0xf] %vm259_vm1, %v2572_v23  ;;  %v899_v22 = vld [vmem:[%s8822_s8 + $0xa4] sm:$0x1]  ;;  %v8559_v24 = vld [vmem:[#allocation2 + $0x178] sm:$0xff] }
 0x1ad   : > { %v3768_v27 = vpop.f32.mrf.mxu3  ;;  %v3497_v33 = vld [vmem:[#allocation3] sm:$0xff]  ;;  %7602 = vmatmul.msk.bf16.gmra.mxu2 %vm1285_vm4, %v8542_v20  ;;  %1157 = vst.msk [vmem:[#allocation2 + $0x184] sm:$0xf] %vm259_vm1, %v1059_v62  ;;  %v8528_v56 = vld [vmem:[#allocation2 + $0x178] sm:$0xff] }
 0x1ae   : > { %v3529_v28 = vadd.f32 %v3497_v33, %v3417_v57  ;;  %3212 = vst.msk [vmem:[#allocation3 + $0x8] sm:$0xff] %vm1285_vm4, %v3180_v25  ;;  %v7038_v25 = vrot.slane %v897_v21, 9  ;;  %v1065_v33 = vrot.slane %v899_v22, 5 }
 0x1af   : > { %v2446_v29 = vld [vmem:[#allocation3 + $0xf8] sm:$0xff] }
 0x1b0   : > { %3561 = vst.msk [vmem:[#allocation3] sm:$0xff] %vm1285_vm4, %v3529_v28  ;;  %v2478_v30 = vadd.f32 %v2446_v29, %v2412_v8  ;;  %v2788_v31 = vpop.f32.mrf.mxu0  ;;  %v3422_v32 = vpop.f32.mrf.mxu2 }
 0x1b1   : > { %v2789_v35 = vadd.f32 %v9530_v34, %v2788_v31  ;;  %v2541_v36 = vld [vmem:[#allocation3 + $0xf0] sm:$0xff] }
 0x1b2   : > { %2510 = vst.msk [vmem:[#allocation3 + $0xf8] sm:$0xff] %vm1285_vm4, %v2478_v30  ;;  %v3149_v37 = vld [vmem:[#allocation3 + $0x10] sm:$0xff]  ;;  %v2573_v40 = vpack.c.bf16 %v2541_v36, %v2541_v36  ;;  %v8512_v30 = vld [vmem:[#allocation2 + $0xe8] sm:$0xff] }
 0x1b3   : > { %2864 = vst.msk [vmem:[#allocation3 + $0x18] sm:$0xff] %vm1285_vm4, %v2789_v35  ;;  %v3072_v41 = vpop.f32.mrf.mxu1 }
 0x1b4   : > { %v3181_v43 = vadd.f32 %v3149_v37, %v3072_v41  ;;  %2605 = vst.msk [vmem:[%s9085_s17 + $0x78] sm:$0xf] %vm259_vm1, %v2573_v40 }
 0x1b5   : > { %v3770_v44 = vpop.f32.mrf.mxu3  ;;  %v3498_v48 = vld [vmem:[#allocation3 + $0x8] sm:$0xff] }
 0x1b6   : > { %v3530_v53 = vadd.f32 %v3498_v48, %v3419_v26  ;;  %3213 = vst.msk [vmem:[#allocation3 + $0x10] sm:$0xff] %vm1285_vm4, %v3181_v43  ;;  %7521 = vmatmul.msk.bf16.gmra.mxu1 %vm1285_vm4, %v8526_v38  ;;  %v1062_v26 = vrot.slane %v898_v16, 5  ;;  %v8544_v38 = vld [vmem:[#allocation2 + $0xf0] sm:$0xff] }
 0x1b7   : > { %v3848_v54 = vld [vmem:[#allocation3] sm:$0xff] }
 0x1b8   : > { %3562 = vst.msk [vmem:[#allocation3 + $0x8] sm:$0xff] %vm1285_vm4, %v3530_v53  ;;  %v3880_v57 = vadd.f32 %v3848_v54, %v3768_v27  ;;  %v2791_v58 = vpop.f32.mrf.mxu0  ;;  %v3424_v59 = vpop.f32.mrf.mxu2  ;;  %v1064_v27 = vrot.slane %v1062_v26, 4  ;;  %v1063_v31 = vsel %vm9194_vm8, %v7038_v25, %v1062_v26 }
 0x1b9   : > { %v2792_v60 = vadd.f32 %v9530_v34, %v2791_v58  ;;  %v2542_v63 = vld [vmem:[#allocation3 + $0xf8] sm:$0xff]  ;;  %1158 = vst.msk [vmem:[#allocation2 + $0x188] sm:$0xf] %vm259_vm1, %v1063_v31  ;;  %v8529_v31 = vld [vmem:[#allocation2 + $0x180] sm:$0xff] }
 0x1ba   : > { %7683 = vmatmul.msk.bf16.gmra.mxu3 %vm1285_vm4, %v8558_v49  ;;  %3912 = vst.msk [vmem:[#allocation3] sm:$0xff] %vm1285_vm4, %v3880_v57  ;;  %v3150_v0 = vld [vmem:[#allocation3 + $0x18] sm:$0xff]  ;;  %v2574_v1 = vpack.c.bf16 %v2542_v63, %v2542_v63  ;;  %v1066_v39 = vsel %vm9194_vm8, %v1064_v27, %v1065_v33 }
 0x1bb   : > { %2865 = vst.msk [vmem:[#allocation3 + $0x20] sm:$0xff] %vm1285_vm4, %v2792_v60  ;;  %v3074_v2 = vpop.f32.mrf.mxu1  ;;  %7441 = vmatmul.msk.bf16.gmra.mxu0 %vm1285_vm4, %v8511_v55  ;;  %v901_v57 = vld [vmem:[%s8822_s8 + $0xac] sm:$0xf]  ;;  %v900_v63 = vld [vmem:[%s8822_s8 + $0xa8] sm:$0xe] }
 0x1bc   : > { %v3182_v3 = vadd.f32 %v3150_v0, %v3074_v2  ;;  %2606 = vst.msk [vmem:[%s9085_s17 + $0x7c] sm:$0xf] %vm259_vm1, %v2574_v1  ;;  %v1069_v60 = vrot.slane %v901_v57, 5  ;;  %v902_v0 = vld [vmem:[%s8822_s8 + $0xb0] sm:$0x1]  ;;  %v8560_v2 = vld [vmem:[#allocation2 + $0x180] sm:$0xff] }
 0x1bd   : > { %v3773_v4 = vpop.f32.mrf.mxu3  ;;  %v3499_v5 = vld [vmem:[#allocation3 + $0x10] sm:$0xff]  ;;  %7603 = vmatmul.msk.bf16.gmra.mxu2 %vm1285_vm4, %v8543_v61  ;;  %1159 = vst.msk [vmem:[#allocation2 + $0x18c] sm:$0xf] %vm259_vm1, %v1066_v39 }
 0x1be   : > { %v3531_v6 = vadd.f32 %v3499_v5, %v3422_v32  ;;  %3214 = vst.msk [vmem:[#allocation3 + $0x18] sm:$0xff] %vm1285_vm4, %v3182_v3  ;;  %v7039_v3 = vrot.slane %v900_v63, 9  ;;  %v1072_v5 = vrot.slane %v902_v0, 5 }
 0x1bf   : > { %v3849_v7 = vld [vmem:[#allocation3 + $0x8] sm:$0xff] }
 0x1c0   : > { %3563 = vst.msk [vmem:[#allocation3 + $0x10] sm:$0xff] %vm1285_vm4, %v3531_v6  ;;  %v3881_v8 = vadd.f32 %v3849_v7, %v3770_v44  ;;  %v2793_v9 = vpop.f32.mrf.mxu0  ;;  %v3427_v10 = vpop.f32.mrf.mxu2 }
 0x1c1   : > { %v2794_v12 = vadd.f32 %v9530_v34, %v2793_v9  ;;  %v3944_v13 = vld [vmem:[#allocation3] sm:$0xff]  ;;  %v1070_v9 = vsel %vm9194_vm8, %v7039_v3, %v1069_v60 }
 0x1c2   : > { %3913 = vst.msk [vmem:[#allocation3 + $0x8] sm:$0xff] %vm1285_vm4, %v3881_v8  ;;  %v3151_v14 = vld [vmem:[#allocation3 + $0x20] sm:$0xff]  ;;  %v3976_v17 = vpack.c.bf16 %v3944_v13, %v3944_v13 }
 0x1c3   : > { %2866 = vst.msk [vmem:[#allocation3 + $0x28] sm:$0xff] %vm1285_vm4, %v2794_v12  ;;  %v3077_v18 = vpop.f32.mrf.mxu1  ;;  %v8513_v8 = vld [vmem:[#allocation2 + $0xf0] sm:$0xff] }
 0x1c4   : > { %v3183_v19 = vadd.f32 %v3151_v14, %v3077_v18  ;;  %7690 = vst.msk [vmem:[%s9085_s17 + $0x80] sm:$0xf] %vm259_vm1, %v3976_v17 }
 0x1c5   : > { %v3775_v20 = vpop.f32.mrf.mxu3  ;;  %v3500_v23 = vld [vmem:[#allocation3 + $0x18] sm:$0xff]  ;;  %1160 = vst.msk [vmem:[#allocation2 + $0x190] sm:$0xf] %vm259_vm1, %v1070_v9 }
 0x1c6   : > { %v3532_v28 = vadd.f32 %v3500_v23, %v3424_v59  ;;  %3215 = vst.msk [vmem:[#allocation3 + $0x20] sm:$0xff] %vm1285_vm4, %v3183_v19  ;;  %7522 = vmatmul.msk.bf16.gmra.mxu1 %vm1285_vm4, %v8527_v15  ;;  %v8545_v15 = vld [vmem:[#allocation2 + $0xf8] sm:$0xff]  ;;  %v8530_v9 = vld [vmem:[#allocation2 + $0x188] sm:$0xff] }
 0x1c7   : > { %v3850_v29 = vld [vmem:[#allocation3 + $0x10] sm:$0xff] }
 0x1c8   : > { %3564 = vst.msk [vmem:[#allocation3 + $0x18] sm:$0xff] %vm1285_vm4, %v3532_v28  ;;  %v3882_v32 = vadd.f32 %v3850_v29, %v3773_v4  ;;  %v2796_v35 = vpop.f32.mrf.mxu0  ;;  %v3429_v36 = vpop.f32.mrf.mxu2  ;;  %v1071_v4 = vrot.slane %v1069_v60, 4 }
 0x1c9   : > { %v2797_v37 = vadd.f32 %v9530_v34, %v2796_v35  ;;  %v3945_v40 = vld [vmem:[#allocation3 + $0x8] sm:$0xff] }
 0x1ca   : > { %7684 = vmatmul.msk.bf16.gmra.mxu3 %vm1285_vm4, %v8559_v24  ;;  %3914 = vst.msk [vmem:[#allocation3 + $0x10] sm:$0xff] %vm1285_vm4, %v3882_v32  ;;  %v3152_v41 = vld [vmem:[#allocation3 + $0x28] sm:$0xff]  ;;  %v3977_v42 = vpack.c.bf16 %v3945_v40, %v3945_v40  ;;  %v1073_v16 = vsel %vm9194_vm8, %v1071_v4, %v1072_v5  ;;  %v903_v40 = vld [vmem:[%s8822_s8 + $0xb4] sm:$0xe] }
 0x1cb   : > { %2867 = vst.msk [vmem:[#allocation3 + $0x30] sm:$0xff] %vm1285_vm4, %v2797_v37  ;;  %v3079_v43 = vpop.f32.mrf.mxu1  ;;  %7442 = vmatmul.msk.bf16.gmra.mxu0 %vm1285_vm4, %v8512_v30  ;;  %v904_v32 = vld [vmem:[%s8822_s8 + $0xb8] sm:$0xf] }
 0x1cc   : > { %v3184_v44 = vadd.f32 %v3152_v41, %v3079_v43  ;;  %7691 = vst.msk [vmem:[%s9085_s17 + $0x84] sm:$0xf] %vm259_vm1, %v3977_v42  ;;  %v1076_v37 = vrot.slane %v904_v32, 5  ;;  %v905_v41 = vld [vmem:[%s8822_s8 + $0xbc] sm:$0x1]  ;;  %v8561_v43 = vld [vmem:[#allocation2 + $0x188] sm:$0xff] }
 0x1cd   : > { %v3778_v46 = vpop.f32.mrf.mxu3  ;;  %v3501_v47 = vld [vmem:[#allocation3 + $0x20] sm:$0xff]  ;;  %7604 = vmatmul.msk.bf16.gmra.mxu2 %vm1285_vm4, %v8544_v38  ;;  %1161 = vst.msk [vmem:[#allocation2 + $0x194] sm:$0xf] %vm259_vm1, %v1073_v16 }
 0x1ce   : > { %v3533_v48 = vadd.f32 %v3501_v47, %v3427_v10  ;;  %3216 = vst.msk [vmem:[#allocation3 + $0x28] sm:$0xff] %vm1285_vm4, %v3184_v44  ;;  %v7040_v44 = vrot.slane %v903_v40, 9  ;;  %v1079_v47 = vrot.slane %v905_v41, 5 }
 0x1cf   : > { %v3851_v49 = vld [vmem:[#allocation3 + $0x18] sm:$0xff] }
 0x1d0   : > { %3565 = vst.msk [vmem:[#allocation3 + $0x20] sm:$0xff] %vm1285_vm4, %v3533_v48  ;;  %v3883_v50 = vadd.f32 %v3851_v49, %v3775_v20  ;;  %v2798_v51 = vpop.f32.mrf.mxu0  ;;  %v3432_v52 = vpop.f32.mrf.mxu2 }
 0x1d1   : > { %v2799_v53 = vadd.f32 %v9530_v34, %v2798_v51  ;;  %v3946_v54 = vld [vmem:[#allocation3 + $0x10] sm:$0xff]  ;;  %v1077_v51 = vsel %vm9194_vm8, %v7040_v44, %v1076_v37 }
 0x1d2   : > { %3915 = vst.msk [vmem:[#allocation3 + $0x18] sm:$0xff] %vm1285_vm4, %v3883_v50  ;;  %v3153_v55 = vld [vmem:[#allocation3 + $0x30] sm:$0xff]  ;;  %v3978_v58 = vpack.c.bf16 %v3946_v54, %v3946_v54  ;;  %v8514_v50 = vld [vmem:[#allocation2 + $0xf8] sm:$0xff] }
 0x1d3   : > { %2868 = vst.msk [vmem:[#allocation3 + $0x38] sm:$0xff] %vm1285_vm4, %v2799_v53  ;;  %v3082_v59 = vpop.f32.mrf.mxu1 }
 0x1d4   : > { %v3185_v61 = vadd.f32 %v3153_v55, %v3082_v59  ;;  %7692 = vst.msk [vmem:[%s9085_s17 + $0x88] sm:$0xf] %vm259_vm1, %v3978_v58 }
 0x1d5   : > { %v3780_v62 = vpop.f32.mrf.mxu3  ;;  %v3502_v1 = vld [vmem:[#allocation3 + $0x28] sm:$0xff]  ;;  %1162 = vst.msk [vmem:[#allocation2 + $0x198] sm:$0xf] %vm259_vm1, %v1077_v51  ;;  %v8531_v51 = vld [vmem:[#allocation2 + $0x190] sm:$0xff] }
 0x1d6   : > { %v3534_v6 = vadd.f32 %v3502_v1, %v3429_v36  ;;  %3217 = vst.msk [vmem:[#allocation3 + $0x30] sm:$0xff] %vm1285_vm4, %v3185_v61  ;;  %7523 = vmatmul.msk.bf16.gmra.mxu1 %vm1285_vm4, %v8528_v56  ;;  %v8546_v56 = vld [vmem:[#allocation2 + $0x100] sm:$0xff] }
 0x1d7   : > { %v3852_v7 = vld [vmem:[#allocation3 + $0x20] sm:$0xff] }
 0x1d8   : > { %3566 = vst.msk [vmem:[#allocation3 + $0x28] sm:$0xff] %vm1285_vm4, %v3534_v6  ;;  %v3884_v10 = vadd.f32 %v3852_v7, %v3778_v46  ;;  %v2801_v12 = vpop.f32.mrf.mxu0  ;;  %v3434_v13 = vpop.f32.mrf.mxu2  ;;  %v1078_v46 = vrot.slane %v1076_v37, 4 }
 0x1d9   : > { %v2802_v14 = vadd.f32 %v9530_v34, %v2801_v12  ;;  %v3947_v17 = vld [vmem:[#allocation3 + $0x18] sm:$0xff] }
 0x1da   : > { %7685 = vmatmul.msk.bf16.gmra.mxu3 %vm1285_vm4, %v8560_v2  ;;  %3916 = vst.msk [vmem:[#allocation3 + $0x20] sm:$0xff] %vm1285_vm4, %v3884_v10  ;;  %v3154_v18 = vld [vmem:[#allocation3 + $0x38] sm:$0xff]  ;;  %v3979_v26 = vpack.c.bf16 %v3947_v17, %v3947_v17  ;;  %v1080_v57 = vsel %vm9194_vm8, %v1078_v46, %v1079_v47  ;;  %v907_v10 = vld [vmem:[%s8822_s8 + $0xc4] sm:$0xf]  ;;  %v906_v17 = vld [vmem:[%s8822_s8 + $0xc0] sm:$0xe] }
 0x1db   : > { %2869 = vst.msk [vmem:[#allocation3 + $0x40] sm:$0xff] %vm1285_vm4, %v2802_v14  ;;  %v3084_v19 = vpop.f32.mrf.mxu1  ;;  %7443 = vmatmul.msk.bf16.gmra.mxu0 %vm1285_vm4, %v8513_v8  ;;  %v1083_v14 = vrot.slane %v907_v10, 5 }
 0x1dc   : > { %v3186_v20 = vadd.f32 %v3154_v18, %v3084_v19  ;;  %7693 = vst.msk [vmem:[%s9085_s17 + $0x8c] sm:$0xf] %vm259_vm1, %v3979_v26  ;;  %v908_v18 = vld [vmem:[%s8822_s8 + $0xc8] sm:$0x1]  ;;  %v8562_v19 = vld [vmem:[#allocation2 + $0x190] sm:$0xff] }
 0x1dd   : > { %v3783_v21 = vpop.f32.mrf.mxu3  ;;  %v3503_v22 = vld [vmem:[#allocation3 + $0x30] sm:$0xff]  ;;  %7605 = vmatmul.msk.bf16.gmra.mxu2 %vm1285_vm4, %v8545_v15  ;;  %1163 = vst.msk [vmem:[#allocation2 + $0x19c] sm:$0xf] %vm259_vm1, %v1080_v57 }
 0x1de   : > { %v3535_v23 = vadd.f32 %v3503_v22, %v3432_v52  ;;  %3218 = vst.msk [vmem:[#allocation3 + $0x38] sm:$0xff] %vm1285_vm4, %v3186_v20  ;;  %v7041_v20 = vrot.slane %v906_v17, 9  ;;  %v1086_v22 = vrot.slane %v908_v18, 5  ;;  %v8159_v17 = vld [vmem:[%s10462_s1 + $0x1a] sm:$0x3] }
 0x1df   : > { %v3853_v24 = vld [vmem:[#allocation3 + $0x28] sm:$0xff] }
 0x1e0   : > { %3567 = vst.msk [vmem:[#allocation3 + $0x30] sm:$0xff] %vm1285_vm4, %v3535_v23  ;;  %v3885_v25 = vadd.f32 %v3853_v24, %v3780_v62  ;;  %v2803_v27 = vpop.f32.mrf.mxu0  ;;  %v3437_v33 = vpop.f32.mrf.mxu2 }
 0x1e1   : > { %v2804_v28 = vadd.f32 %v9530_v34, %v2803_v27  ;;  %v3948_v29 = vld [vmem:[#allocation3 + $0x20] sm:$0xff]  ;;  %v1084_v27 = vsel %vm9194_vm8, %v7041_v20, %v1083_v14 }
 0x1e2   : > { %3917 = vst.msk [vmem:[#allocation3 + $0x28] sm:$0xff] %vm1285_vm4, %v3885_v25  ;;  %v3155_v30 = vld [vmem:[#allocation3 + $0x40] sm:$0xff]  ;;  %v3980_v35 = vpack.c.bf16 %v3948_v29, %v3948_v29  ;;  %v8515_v25 = vld [vmem:[#allocation2 + $0x100] sm:$0xff] }
 0x1e3   : > { %2870 = vst.msk [vmem:[#allocation3 + $0x48] sm:$0xff] %vm1285_vm4, %v2804_v28  ;;  %v3087_v36 = vpop.f32.mrf.mxu1 }
 0x1e4   : > { %v3187_v38 = vadd.f32 %v3155_v30, %v3087_v36  ;;  %7694 = vst.msk [vmem:[%s9085_s17 + $0x90] sm:$0xf] %vm259_vm1, %v3980_v35 }
 0x1e5   : > { %v3785_v39 = vpop.f32.mrf.mxu3  ;;  %v3504_v42 = vld [vmem:[#allocation3 + $0x38] sm:$0xff]  ;;  %1164 = vst.msk [vmem:[#allocation2 + $0x1a0] sm:$0xf] %vm259_vm1, %v1084_v27 }
 0x1e6   : > { %v3536_v48 = vadd.f32 %v3504_v42, %v3434_v13  ;;  %3219 = vst.msk [vmem:[#allocation3 + $0x40] sm:$0xff] %vm1285_vm4, %v3187_v38  ;;  %7524 = vmatmul.msk.bf16.gmra.mxu1 %vm1285_vm4, %v8529_v31  ;;  %v8547_v31 = vld [vmem:[#allocation2 + $0x108] sm:$0xff] }
 0x1e7   : > { %v3854_v49 = vld [vmem:[#allocation3 + $0x30] sm:$0xff] }
 0x1e8   : > { %3568 = vst.msk [vmem:[#allocation3 + $0x38] sm:$0xff] %vm1285_vm4, %v3536_v48  ;;  %v3886_v52 = vadd.f32 %v3854_v49, %v3783_v21  ;;  %v2806_v53 = vpop.f32.mrf.mxu0  ;;  %v3439_v54 = vpop.f32.mrf.mxu2  ;;  %v1085_v21 = vrot.slane %v1083_v14, 4 }
 0x1e9   : > { %v2807_v55 = vadd.f32 %v9530_v34, %v2806_v53  ;;  %v3949_v58 = vld [vmem:[#allocation3 + $0x28] sm:$0xff] }
 0x1ea   : > { %7686 = vmatmul.msk.bf16.gmra.mxu3 %vm1285_vm4, %v8561_v43  ;;  %3918 = vst.msk [vmem:[#allocation3 + $0x30] sm:$0xff] %vm1285_vm4, %v3886_v52  ;;  %v3156_v59 = vld [vmem:[#allocation3 + $0x48] sm:$0xff]  ;;  %v3981_v60 = vpack.c.bf16 %v3949_v58, %v3949_v58  ;;  %v1087_v32 = vsel %vm9194_vm8, %v1085_v21, %v1086_v22 }
 0x1eb   : > { %2871 = vst.msk [vmem:[#allocation3 + $0x50] sm:$0xff] %vm1285_vm4, %v2807_v55  ;;  %v3089_v61 = vpop.f32.mrf.mxu1  ;;  %7444 = vmatmul.msk.bf16.gmra.mxu0 %vm1285_vm4, %v8514_v50  ;;  %v8078_v52 = vld [vmem:[%s10462_s1 + $0x18] sm:$0x3]  ;;  %v8240_v22 = vld [vmem:[%s10462_s1 + $0x1c] sm:$0x3] }
 0x1ec   : > { %v3188_v62 = vadd.f32 %v3156_v59, %v3089_v61  ;;  %7695 = vst.msk [vmem:[%s9085_s17 + $0x94] sm:$0xf] %vm259_vm1, %v3981_v60  ;;  %v5639_v55 = vsel %vm1334_vm0, %v8078_v52, 0  ;;  %v8563_v59 = vld [vmem:[#allocation2 + $0x198] sm:$0xff] }
 0x1ed   : > { %v3788_v63 = vpop.f32.mrf.mxu3  ;;  %v3505_v0 = vld [vmem:[#allocation3 + $0x40] sm:$0xff]  ;;  %7606 = vmatmul.msk.bf16.gmra.mxu2 %vm1285_vm4, %v8546_v56  ;;  %1165 = vst.msk [vmem:[#allocation2 + $0x1a4] sm:$0xf] %vm259_vm1, %v1087_v32  ;;  %5648 = vmatpush.bf16.msrb.mxu0 %v5639_v55  ;;  %v8532_v21 = vld [vmem:[#allocation2 + $0x198] sm:$0xff]  ;;  %v8565_v32 = vld [vmem:[#allocation2 + $0x8] sm:$0xff] }
 0x1ee   : > { %v3537_v1 = vadd.f32 %v3505_v0, %v3437_v33  ;;  %3220 = vst.msk [vmem:[#allocation3 + $0x48] sm:$0xff] %vm1285_vm4, %v3188_v62  ;;  %v8516_v62 = vld [vmem:[#allocation2 + $0x108] sm:$0xff] }
 0x1ef   : > { %v3855_v2 = vld [vmem:[#allocation3 + $0x38] sm:$0xff] }
 0x1f0   : > { %3569 = vst.msk [vmem:[#allocation3 + $0x40] sm:$0xff] %vm1285_vm4, %v3537_v1  ;;  %v3887_v3 = vadd.f32 %v3855_v2, %v3785_v39  ;;  %v2808_v4 = vpop.f32.mrf.mxu0  ;;  %v3442_v5 = vpop.f32.mrf.mxu2 }
 0x1f1   : > { %v2809_v6 = vadd.f32 %v9530_v34, %v2808_v4  ;;  %v3950_v7 = vld [vmem:[#allocation3 + $0x30] sm:$0xff] }
 0x1f2   : > { %3919 = vst.msk [vmem:[#allocation3 + $0x38] sm:$0xff] %vm1285_vm4, %v3887_v3  ;;  %v3157_v8 = vld [vmem:[#allocation3 + $0x50] sm:$0xff]  ;;  %v3982_v12 = vpack.c.bf16 %v3950_v7, %v3950_v7  ;;  %v8548_v3 = vld [vmem:[#allocation2 + $0x110] sm:$0xff] }
 0x1f3   : > { %2872 = vst.msk [vmem:[#allocation3 + $0x58] sm:$0xff] %vm1285_vm4, %v2809_v6  ;;  %v3092_v13 = vpop.f32.mrf.mxu1 }
 0x1f4   : > { %v3189_v15 = vadd.f32 %v3157_v8, %v3092_v13  ;;  %7696 = vst.msk [vmem:[%s9085_s17 + $0x98] sm:$0xf] %vm259_vm1, %v3982_v12 }
 0x1f5   : > { %v3790_v16 = vpop.f32.mrf.mxu3  ;;  %v3506_v26 = vld [vmem:[#allocation3 + $0x48] sm:$0xff] }
 0x1f6   : > { %v3538_v23 = vadd.f32 %v3506_v26, %v3439_v54  ;;  %3221 = vst.msk [vmem:[#allocation3 + $0x50] sm:$0xff] %vm1285_vm4, %v3189_v15  ;;  %7525 = vmatmul.msk.bf16.gmra.mxu1 %vm1285_vm4, %v8530_v9  ;;  %v5925_v26 = vsel %vm1334_vm0, %v8159_v17, 0 }
 0x1f7   : > { %v3856_v24 = vld [vmem:[#allocation3 + $0x40] sm:$0xff]  ;;  %5934 = vmatpush.bf16.msrb.mxu1 %v5925_v26 }
 0x1f8   : > { %3570 = vst.msk [vmem:[#allocation3 + $0x48] sm:$0xff] %vm1285_vm4, %v3538_v23  ;;  %v3888_v33 = vadd.f32 %v3856_v24, %v3788_v63  ;;  %v2811_v28 = vpop.f32.mrf.mxu0  ;;  %v3444_v29 = vpop.f32.mrf.mxu2 }
 0x1f9   : > { %v2812_v30 = vadd.f32 %v9530_v34, %v2811_v28  ;;  %v3951_v35 = vld [vmem:[#allocation3 + $0x38] sm:$0xff] }
 0x1fa   : > { %7687 = vmatmul.msk.bf16.gmra.mxu3 %vm1285_vm4, %v8562_v19  ;;  %3920 = vst.msk [vmem:[#allocation3 + $0x40] sm:$0xff] %vm1285_vm4, %v3888_v33  ;;  %v3158_v36 = vld [vmem:[#allocation3 + $0x58] sm:$0xff]  ;;  %v3983_v37 = vpack.c.bf16 %v3951_v35, %v3951_v35 }
 0x1fb   : > { %2873 = vst.msk [vmem:[#allocation3 + $0x60] sm:$0xff] %vm1285_vm4, %v2812_v30  ;;  %v3094_v38 = vpop.f32.mrf.mxu1  ;;  %7445 = vmatmul.msk.bf16.gmra.mxu0 %vm1285_vm4, %v8515_v25  ;;  %v6275_v25 = vsel %vm1334_vm0, %v8240_v22, 0 }
 0x1fc   : > { %v3190_v39 = vadd.f32 %v3158_v36, %v3094_v38  ;;  %7697 = vst.msk [vmem:[%s9085_s17 + $0x9c] sm:$0xf] %vm259_vm1, %v3983_v37  ;;  %6284 = vmatpush.bf16.msrb.mxu2 %v6275_v25 }
 0x1fd   : > { %v3793_v40 = vpop.f32.mrf.mxu3  ;;  %v3507_v41 = vld [vmem:[#allocation3 + $0x50] sm:$0xff]  ;;  %7607 = vmatmul.msk.bf16.gmra.mxu2 %vm1285_vm4, %v8547_v31 }
 0x1fe   : > { %v3539_v42 = vadd.f32 %v3507_v41, %v3442_v5  ;;  %3222 = vst.msk [vmem:[#allocation3 + $0x58] sm:$0xff] %vm1285_vm4, %v3190_v39  ;;  %v8597_v39 = vld [vmem:[#allocation2 + $0x10] sm:$0xff] }
 0x1ff   : > { %v3857_v43 = vld [vmem:[#allocation3 + $0x48] sm:$0xff] }
 0x200   : > { %3571 = vst.msk [vmem:[#allocation3 + $0x50] sm:$0xff] %vm1285_vm4, %v3539_v42  ;;  %v3889_v44 = vadd.f32 %v3857_v43, %v3790_v16  ;;  %v2813_v46 = vpop.f32.mrf.mxu0  ;;  %v3447_v47 = vpop.f32.mrf.mxu2  ;;  %v8321_v42 = vld [vmem:[%s10462_s1 + $0x1e] sm:$0x3] }
 0x201   : > { %v2814_v48 = vadd.f32 %v9530_v34, %v2813_v46  ;;  %v3952_v49 = vld [vmem:[#allocation3 + $0x40] sm:$0xff]  ;;  %v6626_v46 = vsel %vm1334_vm0, %v8321_v42, 0 }
 0x202   : > { %3921 = vst.msk [vmem:[#allocation3 + $0x48] sm:$0xff] %vm1285_vm4, %v3889_v44  ;;  %v3159_v50 = vld [vmem:[#allocation3 + $0x60] sm:$0xff]  ;;  %v3984_v53 = vpack.c.bf16 %v3952_v49, %v3952_v49  ;;  %6635 = vmatpush.bf16.msrb.mxu3 %v6626_v46 }
 0x203   : > { %2874 = vst.msk [vmem:[#allocation3 + $0x68] sm:$0xff] %vm1285_vm4, %v2814_v48  ;;  %v3097_v54 = vpop.f32.mrf.mxu1 }
 0x204   : > { %v3191_v56 = vadd.f32 %v3159_v50, %v3097_v54  ;;  %7698 = vst.msk [vmem:[%s9085_s17 + $0xa0] sm:$0xf] %vm259_vm1, %v3984_v53 }
 0x205   : > { %v3795_v57 = vpop.f32.mrf.mxu3  ;;  %v3508_v58 = vld [vmem:[#allocation3 + $0x58] sm:$0xff] }
 0x206   : > { %v3540_v60 = vadd.f32 %v3508_v58, %v3444_v29  ;;  %3223 = vst.msk [vmem:[#allocation3 + $0x60] sm:$0xff] %vm1285_vm4, %v3191_v56  ;;  %7526 = vmatmul.msk.bf16.gmra.mxu1 %vm1285_vm4, %v8531_v51  ;;  %v8564_v29 = vld [vmem:[#allocation2 + $0x1a0] sm:$0xff]  ;;  %v8581_v58 = vld [vmem:[#allocation2 + $0x98] sm:$0xff] }
 0x207   : > { %v3858_v61 = vld [vmem:[#allocation3 + $0x50] sm:$0xff] }
 0x208   : > { %3572 = vst.msk [vmem:[#allocation3 + $0x58] sm:$0xff] %vm1285_vm4, %v3540_v60  ;;  %v3890_v63 = vadd.f32 %v3858_v61, %v3793_v40  ;;  %v2816_v0 = vpop.f32.mrf.mxu0  ;;  %v3449_v1 = vpop.f32.mrf.mxu2 }
 0x209   : > { %v2817_v2 = vadd.f32 %v9530_v34, %v2816_v0  ;;  %v3953_v4 = vld [vmem:[#allocation3 + $0x48] sm:$0xff]  ;;  %v8613_v0 = vld [vmem:[#allocation2 + $0xa0] sm:$0xff] }
 0x20a   : > { %7688 = vmatmul.msk.bf16.gmra.mxu3 %vm1285_vm4, %v8563_v59  ;;  %3922 = vst.msk [vmem:[#allocation3 + $0x50] sm:$0xff] %vm1285_vm4, %v3890_v63  ;;  %v3160_v5 = vld [vmem:[#allocation3 + $0x68] sm:$0xff]  ;;  %v3985_v6 = vpack.c.bf16 %v3953_v4, %v3953_v4 }
 0x20b   : > { %2875 = vst.msk [vmem:[#allocation3 + $0x70] sm:$0xff] %vm1285_vm4, %v2817_v2  ;;  %v3099_v7 = vpop.f32.mrf.mxu1  ;;  %7446 = vmatmul.msk.bf16.gmra.mxu0 %vm1285_vm4, %v8516_v62 }
 0x20c   : > { %v3192_v8 = vadd.f32 %v3160_v5, %v3099_v7  ;;  %7699 = vst.msk [vmem:[%s9085_s17 + $0xa4] sm:$0xf] %vm259_vm1, %v3985_v6 }
 0x20d   : > { %v3798_v9 = vpop.f32.mrf.mxu3  ;;  %v3509_v10 = vld [vmem:[#allocation3 + $0x60] sm:$0xff]  ;;  %7608 = vmatmul.msk.bf16.gmra.mxu2 %vm1285_vm4, %v8548_v3 }
 0x20e   : > { %v3541_v12 = vadd.f32 %v3509_v10, %v3447_v47  ;;  %3224 = vst.msk [vmem:[#allocation3 + $0x68] sm:$0xff] %vm1285_vm4, %v3192_v8  ;;  %v8566_v3 = vld [vmem:[#allocation2 + $0x10] sm:$0xff]  ;;  %v8598_v8 = vld [vmem:[#allocation2 + $0x18] sm:$0xff] }
 0x20f   : > { %v3859_v13 = vld [vmem:[#allocation3 + $0x58] sm:$0xff] }
 0x210   : > { %3573 = vst.msk [vmem:[#allocation3 + $0x60] sm:$0xff] %vm1285_vm4, %v3541_v12  ;;  %v3891_v14 = vadd.f32 %v3859_v13, %v3795_v57  ;;  %v2818_v15 = vpop.f32.mrf.mxu0  ;;  %v3452_v16 = vpop.f32.mrf.mxu2 }
 0x211   : > { %v2819_v18 = vadd.f32 %v9530_v34, %v2818_v15  ;;  %v3954_v19 = vld [vmem:[#allocation3 + $0x50] sm:$0xff] }
 0x212   : > { %3923 = vst.msk [vmem:[#allocation3 + $0x58] sm:$0xff] %vm1285_vm4, %v3891_v14  ;;  %v3161_v20 = vld [vmem:[#allocation3 + $0x70] sm:$0xff]  ;;  %v3986_v23 = vpack.c.bf16 %v3954_v19, %v3954_v19 }
 0x213   : > { %2876 = vst.msk [vmem:[#allocation3 + $0x78] sm:$0xff] %vm1285_vm4, %v2819_v18  ;;  %v3102_v24 = vpop.f32.mrf.mxu1 }
 0x214   : > { %v3193_v27 = vadd.f32 %v3161_v20, %v3102_v24  ;;  %7700 = vst.msk [vmem:[%s9085_s17 + $0xa8] sm:$0xf] %vm259_vm1, %v3986_v23  ;;  %v8582_v24 = vld [vmem:[#allocation2 + $0xa0] sm:$0xff] }
 0x215   : > { %v3800_v33 = vpop.f32.mrf.mxu3  ;;  %v3510_v28 = vld [vmem:[#allocation3 + $0x68] sm:$0xff] }
 0x216   : > { %v3542_v30 = vadd.f32 %v3510_v28, %v3449_v1  ;;  %3225 = vst.msk [vmem:[#allocation3 + $0x70] sm:$0xff] %vm1285_vm4, %v3193_v27  ;;  %7527 = vmatmul.msk.bf16.gmra.mxu1 %vm1285_vm4, %v8532_v21 }
 0x217   : > { %v3860_v31 = vld [vmem:[#allocation3 + $0x60] sm:$0xff] }
 0x218   : > { %3574 = vst.msk [vmem:[#allocation3 + $0x68] sm:$0xff] %vm1285_vm4, %v3542_v30  ;;  %v3892_v35 = vadd.f32 %v3860_v31, %v3798_v9  ;;  %v2821_v36 = vpop.f32.mrf.mxu0  ;;  %v3454_v37 = vpop.f32.mrf.mxu2  ;;  %v8614_v30 = vld [vmem:[#allocation2 + $0xa8] sm:$0xff] }
 0x219   : > { %v2822_v38 = vadd.f32 %v9530_v34, %v2821_v36  ;;  %v3955_v40 = vld [vmem:[#allocation3 + $0x58] sm:$0xff] }
 0x21a   : > { %7689 = vmatmul.msk.bf16.gmra.mxu3 %vm1285_vm4, %v8564_v29  ;;  %3924 = vst.msk [vmem:[#allocation3 + $0x60] sm:$0xff] %vm1285_vm4, %v3892_v35  ;;  %v3162_v41 = vld [vmem:[#allocation3 + $0x78] sm:$0xff]  ;;  %v3987_v43 = vpack.c.bf16 %v3955_v40, %v3955_v40  ;;  %v8567_v35 = vld [vmem:[#allocation2 + $0x18] sm:$0xff]  ;;  %v8599_v40 = vld [vmem:[#allocation2 + $0x20] sm:$0xff] }
 0x21b   : > { %2877 = vst.msk [vmem:[#allocation3 + $0x80] sm:$0xff] %vm1285_vm4, %v2822_v38  ;;  %v3104_v44 = vpop.f32.mrf.mxu1  ;;  %7787 = vmatmul.msk.bf16.vlgmr.msra.gmra.mxu0 %vm1285_vm4, %v8565_v32 }
 0x21c   : > { %v3194_v47 = vadd.f32 %v3162_v41, %v3104_v44  ;;  %7701 = vst.msk [vmem:[%s9085_s17 + $0xac] sm:$0xf] %vm259_vm1, %v3987_v43 }
 0x21d   : > { %v3803_v48 = vpop.f32.mrf.mxu3  ;;  %v3511_v49 = vld [vmem:[#allocation3 + $0x70] sm:$0xff]  ;;  %7949 = vmatmul.msk.bf16.vlgmr.msra.gmra.mxu2 %vm1285_vm4, %v8597_v39 }
 0x21e   : > { %v3543_v50 = vadd.f32 %v3511_v49, %v3452_v16  ;;  %3226 = vst.msk [vmem:[#allocation3 + $0x78] sm:$0xff] %vm1285_vm4, %v3194_v47 }
 0x21f   : > { %v3861_v51 = vld [vmem:[#allocation3 + $0x68] sm:$0xff] }
 0x220   : > { %3575 = vst.msk [vmem:[#allocation3 + $0x70] sm:$0xff] %vm1285_vm4, %v3543_v50  ;;  %v3893_v52 = vadd.f32 %v3861_v51, %v3800_v33  ;;  %v2823_v53 = vpop.f32.mrf.mxu0  ;;  %v3457_v54 = vpop.f32.mrf.mxu2 }
 0x221   : > { %v2824_v55 = vadd.f32 %v9530_v34, %v2823_v53  ;;  %v3956_v56 = vld [vmem:[#allocation3 + $0x60] sm:$0xff] }
 0x222   : > { %3925 = vst.msk [vmem:[#allocation3 + $0x68] sm:$0xff] %vm1285_vm4, %v3893_v52  ;;  %v3163_v57 = vld [vmem:[#allocation3 + $0x80] sm:$0xff]  ;;  %v3988_v59 = vpack.c.bf16 %v3956_v56, %v3956_v56 }
 0x223   : > { %2878 = vst.msk [vmem:[#allocation3 + $0x88] sm:$0xff] %vm1285_vm4, %v2824_v55  ;;  %v3107_v60 = vpop.f32.mrf.mxu1 }
 0x224   : > { %v3195_v61 = vadd.f32 %v3163_v57, %v3107_v60  ;;  %7702 = vst.msk [vmem:[%s9085_s17 + $0xb0] sm:$0xf] %vm259_vm1, %v3988_v59  ;;  %v8583_v57 = vld [vmem:[#allocation2 + $0xa8] sm:$0xff] }
 0x225   : > { %v3805_v62 = vpop.f32.mrf.mxu3  ;;  %v3512_v63 = vld [vmem:[#allocation3 + $0x78] sm:$0xff] }
 0x226   : > { %v3544_v1 = vadd.f32 %v3512_v63, %v3454_v37  ;;  %3227 = vst.msk [vmem:[#allocation3 + $0x80] sm:$0xff] %vm1285_vm4, %v3195_v61  ;;  %7868 = vmatmul.msk.bf16.vlgmr.msra.gmra.mxu1 %vm1285_vm4, %v8581_v58  ;;  %v8615_v63 = vld [vmem:[#allocation2 + $0xb0] sm:$0xff] }
 0x227   : > { %v3862_v2 = vld [vmem:[#allocation3 + $0x70] sm:$0xff] }
 0x228   : > { %3576 = vst.msk [vmem:[#allocation3 + $0x78] sm:$0xff] %vm1285_vm4, %v3544_v1  ;;  %v3894_v4 = vadd.f32 %v3862_v2, %v3803_v48  ;;  %v2826_v5 = vpop.f32.mrf.mxu0  ;;  %v3459_v6 = vpop.f32.mrf.mxu2  ;;  %v8568_v2 = vld [vmem:[#allocation2 + $0x20] sm:$0xff] }
 0x229   : > { %v2827_v7 = vadd.f32 %v9530_v34, %v2826_v5  ;;  %v3957_v9 = vld [vmem:[#allocation3 + $0x68] sm:$0xff] }
 0x22a   : > { %8030 = vmatmul.msk.bf16.vlgmr.msra.gmra.mxu3 %vm1285_vm4, %v8613_v0  ;;  %3926 = vst.msk [vmem:[#allocation3 + $0x70] sm:$0xff] %vm1285_vm4, %v3894_v4  ;;  %v3164_v10 = vld [vmem:[#allocation3 + $0x88] sm:$0xff]  ;;  %v3989_v12 = vpack.c.bf16 %v3957_v9, %v3957_v9 }
 0x22b   : > { %2879 = vst.msk [vmem:[#allocation3 + $0x90] sm:$0xff] %vm1285_vm4, %v2827_v7  ;;  %v3109_v13 = vpop.f32.mrf.mxu1  ;;  %7788 = vmatmul.msk.bf16.gmra.mxu0 %vm1285_vm4, %v8566_v3  ;;  %v8600_v7 = vld [vmem:[#allocation2 + $0x28] sm:$0xff] }
 0x22c   : > { %v3196_v14 = vadd.f32 %v3164_v10, %v3109_v13  ;;  %7703 = vst.msk [vmem:[%s9085_s17 + $0xb4] sm:$0xf] %vm259_vm1, %v3989_v12 }
 0x22d   : > { %v3808_v15 = vpop.f32.mrf.mxu3  ;;  %v3513_v16 = vld [vmem:[#allocation3 + $0x80] sm:$0xff]  ;;  %7950 = vmatmul.msk.bf16.gmra.mxu2 %vm1285_vm4, %v8598_v8 }
 0x22e   : > { %v3545_v17 = vadd.f32 %v3513_v16, %v3457_v54  ;;  %3228 = vst.msk [vmem:[#allocation3 + $0x88] sm:$0xff] %vm1285_vm4, %v3196_v14 }
 0x22f   : > { %v3863_v18 = vld [vmem:[#allocation3 + $0x78] sm:$0xff] }
 0x230   : > { %3577 = vst.msk [vmem:[#allocation3 + $0x80] sm:$0xff] %vm1285_vm4, %v3545_v17  ;;  %v3895_v26 = vadd.f32 %v3863_v18, %v3805_v62  ;;  %v2828_v19 = vpop.f32.mrf.mxu0  ;;  %v3462_v20 = vpop.f32.mrf.mxu2 }
 0x231   : > { %v2829_v21 = vadd.f32 %v9530_v34, %v2828_v19  ;;  %v3958_v22 = vld [vmem:[#allocation3 + $0x70] sm:$0xff] }
 0x232   : > { %3927 = vst.msk [vmem:[#allocation3 + $0x78] sm:$0xff] %vm1285_vm4, %v3895_v26  ;;  %v3165_v23 = vld [vmem:[#allocation3 + $0x90] sm:$0xff]  ;;  %v3990_v25 = vpack.c.bf16 %v3958_v22, %v3958_v22 }
 0x233   : > { %2880 = vst.msk [vmem:[#allocation3 + $0x98] sm:$0xff] %vm1285_vm4, %v2829_v21  ;;  %v3112_v27 = vpop.f32.mrf.mxu1 }
 0x234   : > { %v3197_v33 = vadd.f32 %v3165_v23, %v3112_v27  ;;  %7704 = vst.msk [vmem:[%s9085_s17 + $0xb8] sm:$0xf] %vm259_vm1, %v3990_v25  ;;  %v8584_v23 = vld [vmem:[#allocation2 + $0xb0] sm:$0xff] }
 0x235   : > { %v3810_v28 = vpop.f32.mrf.mxu3  ;;  %v3514_v29 = vld [vmem:[#allocation3 + $0x88] sm:$0xff] }
 0x236   : > { %v3546_v31 = vadd.f32 %v3514_v29, %v3459_v6  ;;  %3229 = vst.msk [vmem:[#allocation3 + $0x90] sm:$0xff] %vm1285_vm4, %v3197_v33  ;;  %7869 = vmatmul.msk.bf16.gmra.mxu1 %vm1285_vm4, %v8582_v24  ;;  %v8616_v29 = vld [vmem:[#allocation2 + $0xb8] sm:$0xff] }
 0x237   : > { %v3864_v32 = vld [vmem:[#allocation3 + $0x80] sm:$0xff] }
 0x238   : > { %3578 = vst.msk [vmem:[#allocation3 + $0x88] sm:$0xff] %vm1285_vm4, %v3546_v31  ;;  %v3896_v36 = vadd.f32 %v3864_v32, %v3808_v15  ;;  %v2831_v37 = vpop.f32.mrf.mxu0  ;;  %v3464_v38 = vpop.f32.mrf.mxu2  ;;  %v8569_v31 = vld [vmem:[#allocation2 + $0x28] sm:$0xff] }
 0x239   : > { %v2832_v39 = vadd.f32 %v9530_v34, %v2831_v37  ;;  %v3959_v41 = vld [vmem:[#allocation3 + $0x78] sm:$0xff]  ;;  %v9784_v37 = vld [vmem:[%s10463_s2] ss:$0 sm:$0xff] }
 0x23a   : > { %8031 = vmatmul.msk.bf16.gmra.mxu3 %vm1285_vm4, %v8614_v30  ;;  %3928 = vst.msk [vmem:[#allocation3 + $0x80] sm:$0xff] %vm1285_vm4, %v3896_v36  ;;  %v3166_v42 = vld [vmem:[#allocation3 + $0x98] sm:$0xff]  ;;  %v3991_v43 = vpack.c.bf16 %v3959_v41, %v3959_v41 }
 0x23b   : > { %2881 = vst.msk [vmem:[#allocation3 + $0xa0] sm:$0xff] %vm1285_vm4, %v2832_v39  ;;  %v3114_v44 = vpop.f32.mrf.mxu1  ;;  %7789 = vmatmul.msk.bf16.gmra.mxu0 %vm1285_vm4, %v8567_v35  ;;  %v8601_v39 = vld [vmem:[#allocation2 + $0x30] sm:$0xff] }
 0x23c   : > { %v3198_v46 = vadd.f32 %v3166_v42, %v3114_v44  ;;  %7705 = vst.msk [vmem:[%s9085_s17 + $0xbc] sm:$0xf] %vm259_vm1, %v3991_v43 }
 0x23d   : > { %v3813_v47 = vpop.f32.mrf.mxu3  ;;  %v3515_v48 = vld [vmem:[#allocation3 + $0x90] sm:$0xff]  ;;  %7951 = vmatmul.msk.bf16.gmra.mxu2 %vm1285_vm4, %v8599_v40 }
 0x23e   : > { %v3547_v49 = vadd.f32 %v3515_v48, %v3462_v20  ;;  %3230 = vst.msk [vmem:[#allocation3 + $0x98] sm:$0xff] %vm1285_vm4, %v3198_v46 }
 0x23f   : > { %v3865_v50 = vld [vmem:[#allocation3 + $0x88] sm:$0xff] }
 0x240   : > { %3579 = vst.msk [vmem:[#allocation3 + $0x90] sm:$0xff] %vm1285_vm4, %v3547_v49  ;;  %v3897_v51 = vadd.f32 %v3865_v50, %v3810_v28  ;;  %v2833_v52 = vpop.f32.mrf.mxu0  ;;  %v3467_v53 = vpop.f32.mrf.mxu2 }
 0x241   : > { %v2834_v54 = vadd.f32 %v9530_v34, %v2833_v52  ;;  %v3960_v55 = vld [vmem:[#allocation3 + $0x80] sm:$0xff] }
 0x242   : > { %3929 = vst.msk [vmem:[#allocation3 + $0x88] sm:$0xff] %vm1285_vm4, %v3897_v51  ;;  %v3167_v56 = vld [vmem:[#allocation3 + $0xa0] sm:$0xff]  ;;  %v3992_v58 = vpack.c.bf16 %v3960_v55, %v3960_v55 }
 0x243   : > { %2882 = vst.msk [vmem:[#allocation3 + $0xa8] sm:$0xff] %vm1285_vm4, %v2834_v54  ;;  %v3117_v59 = vpop.f32.mrf.mxu1 }
 0x244   : > { %v3199_v60 = vadd.f32 %v3167_v56, %v3117_v59  ;;  %7706 = vst.msk [vmem:[%s9085_s17 + $0xc0] sm:$0xf] %vm259_vm1, %v3992_v58  ;;  %v8585_v56 = vld [vmem:[#allocation2 + $0xb8] sm:$0xff] }
 0x245   : > { %v3815_v61 = vpop.f32.mrf.mxu3  ;;  %v3516_v62 = vld [vmem:[#allocation3 + $0x98] sm:$0xff] }
 0x246   : > { %v3548_v0 = vadd.f32 %v3516_v62, %v3464_v38  ;;  %3231 = vst.msk [vmem:[#allocation3 + $0xa0] sm:$0xff] %vm1285_vm4, %v3199_v60  ;;  %7870 = vmatmul.msk.bf16.gmra.mxu1 %vm1285_vm4, %v8583_v57  ;;  %v8617_v62 = vld [vmem:[#allocation2 + $0xc0] sm:$0xff] }
 0x247   : > { %v3866_v1 = vld [vmem:[#allocation3 + $0x90] sm:$0xff] }
 0x248   : > { %3580 = vst.msk [vmem:[#allocation3 + $0x98] sm:$0xff] %vm1285_vm4, %v3548_v0  ;;  %v3898_v3 = vadd.f32 %v3866_v1, %v3813_v47  ;;  %v2836_v4 = vpop.f32.mrf.mxu0  ;;  %v3469_v5 = vpop.f32.mrf.mxu2  ;;  %v8570_v1 = vld [vmem:[#allocation2 + $0x30] sm:$0xff] }
 0x249   : > { %v2837_v6 = vadd.f32 %v9530_v34, %v2836_v4  ;;  %v3961_v8 = vld [vmem:[#allocation3 + $0x88] sm:$0xff] }
 0x24a   : > { %8032 = vmatmul.msk.bf16.gmra.mxu3 %vm1285_vm4, %v8615_v63  ;;  %3930 = vst.msk [vmem:[#allocation3 + $0x90] sm:$0xff] %vm1285_vm4, %v3898_v3  ;;  %v3168_v9 = vld [vmem:[#allocation3 + $0xa8] sm:$0xff]  ;;  %v3993_v10 = vpack.c.bf16 %v3961_v8, %v3961_v8 }
 0x24b   : > { %2883 = vst.msk [vmem:[#allocation3 + $0xb0] sm:$0xff] %vm1285_vm4, %v2837_v6  ;;  %v3119_v12 = vpop.f32.mrf.mxu1  ;;  %7790 = vmatmul.msk.bf16.gmra.mxu0 %vm1285_vm4, %v8568_v2  ;;  %v8602_v6 = vld [vmem:[#allocation2 + $0x38] sm:$0xff] }
 0x24c   : > { %v3200_v13 = vadd.f32 %v3168_v9, %v3119_v12  ;;  %7707 = vst.msk [vmem:[%s9085_s17 + $0xc4] sm:$0xf] %vm259_vm1, %v3993_v10 }
 0x24d   : > { %v3818_v14 = vpop.f32.mrf.mxu3  ;;  %v3517_v15 = vld [vmem:[#allocation3 + $0xa0] sm:$0xff]  ;;  %7952 = vmatmul.msk.bf16.gmra.mxu2 %vm1285_vm4, %v8600_v7 }
 0x24e   : > { %v3549_v16 = vadd.f32 %v3517_v15, %v3467_v53  ;;  %3232 = vst.msk [vmem:[#allocation3 + $0xa8] sm:$0xff] %vm1285_vm4, %v3200_v13 }
 0x24f   : > { %v3867_v17 = vld [vmem:[#allocation3 + $0x98] sm:$0xff] }
 0x250   : > { %3581 = vst.msk [vmem:[#allocation3 + $0xa0] sm:$0xff] %vm1285_vm4, %v3549_v16  ;;  %v3899_v18 = vadd.f32 %v3867_v17, %v3815_v61  ;;  %v2838_v26 = vpop.f32.mrf.mxu0  ;;  %v3472_v19 = vpop.f32.mrf.mxu2 }
 0x251   : > { %v2839_v20 = vadd.f32 %v9530_v34, %v2838_v26  ;;  %v3962_v21 = vld [vmem:[#allocation3 + $0x90] sm:$0xff] }
 0x252   : > { %3931 = vst.msk [vmem:[#allocation3 + $0x98] sm:$0xff] %vm1285_vm4, %v3899_v18  ;;  %v3169_v22 = vld [vmem:[#allocation3 + $0xb0] sm:$0xff]  ;;  %v3994_v24 = vpack.c.bf16 %v3962_v21, %v3962_v21 }
 0x253   : > { %2884 = vst.msk [vmem:[#allocation3 + $0xb8] sm:$0xff] %vm1285_vm4, %v2839_v20  ;;  %v3122_v25 = vpop.f32.mrf.mxu1 }
 0x254   : > { %v3201_v27 = vadd.f32 %v3169_v22, %v3122_v25  ;;  %7708 = vst.msk [vmem:[%s9085_s17 + $0xc8] sm:$0xf] %vm259_vm1, %v3994_v24  ;;  %v8586_v22 = vld [vmem:[#allocation2 + $0xc0] sm:$0xff] }
 0x255   : > { %v3820_v33 = vpop.f32.mrf.mxu3  ;;  %v3518_v28 = vld [vmem:[#allocation3 + $0xa8] sm:$0xff] }
 0x256   : > { %v3550_v30 = vadd.f32 %v3518_v28, %v3469_v5  ;;  %3233 = vst.msk [vmem:[#allocation3 + $0xb0] sm:$0xff] %vm1285_vm4, %v3201_v27  ;;  %7871 = vmatmul.msk.bf16.gmra.mxu1 %vm1285_vm4, %v8584_v23  ;;  %v8618_v28 = vld [vmem:[#allocation2 + $0xc8] sm:$0xff] }
 0x257   : > { %v3868_v34 = vld [vmem:[#allocation3 + $0xa0] sm:$0xff] }
 0x258   : > { %3582 = vst.msk [vmem:[#allocation3 + $0xa8] sm:$0xff] %vm1285_vm4, %v3550_v30  ;;  %v3900_v32 = vadd.f32 %v3868_v34, %v3818_v14  ;;  %v2841_v35 = vpop.f32.mrf.mxu0  ;;  %v3474_v36 = vpop.f32.mrf.mxu2  ;;  %v8571_v34 = vld [vmem:[#allocation2 + $0x38] sm:$0xff] }
 0x259   : > { %v2842_v38 = vadd.f32 %v9784_v37, %v2841_v35  ;;  %v3963_v40 = vld [vmem:[#allocation3 + $0x98] sm:$0xff] }
 0x25a   : > { %8033 = vmatmul.msk.bf16.gmra.mxu3 %vm1285_vm4, %v8616_v29  ;;  %3932 = vst.msk [vmem:[#allocation3 + $0xa0] sm:$0xff] %vm1285_vm4, %v3900_v32  ;;  %v3170_v41 = vld [vmem:[#allocation3 + $0xb8] sm:$0xff]  ;;  %v3995_v42 = vpack.c.bf16 %v3963_v40, %v3963_v40 }
 0x25b   : > { %2885 = vst.msk [vmem:[#allocation3 + $0xc0] sm:$0xff] %vm1285_vm4, %v2842_v38  ;;  %v3124_v43 = vpop.f32.mrf.mxu1  ;;  %7791 = vmatmul.msk.bf16.gmra.mxu0 %vm1285_vm4, %v8569_v31  ;;  %v8603_v38 = vld [vmem:[#allocation2 + $0x40] sm:$0xff] }
 0x25c   : > { %v3202_v44 = vadd.f32 %v3170_v41, %v3124_v43  ;;  %7709 = vst.msk [vmem:[%s9085_s17 + $0xcc] sm:$0xf] %vm259_vm1, %v3995_v42 }
 0x25d   : > { %v3823_v46 = vpop.f32.mrf.mxu3  ;;  %v3519_v47 = vld [vmem:[#allocation3 + $0xb0] sm:$0xff]  ;;  %7953 = vmatmul.msk.bf16.gmra.mxu2 %vm1285_vm4, %v8601_v39 }
 0x25e   : > { %v3551_v48 = vadd.f32 %v3519_v47, %v3472_v19  ;;  %3234 = vst.msk [vmem:[#allocation3 + $0xb8] sm:$0xff] %vm1285_vm4, %v3202_v44 }
 0x25f   : > { %v3869_v49 = vld [vmem:[#allocation3 + $0xa8] sm:$0xff] }
 0x260   : > { %3583 = vst.msk [vmem:[#allocation3 + $0xb0] sm:$0xff] %vm1285_vm4, %v3551_v48  ;;  %v3901_v50 = vadd.f32 %v3869_v49, %v3820_v33  ;;  %v2843_v51 = vpop.f32.mrf.mxu0  ;;  %v3477_v52 = vpop.f32.mrf.mxu2 }
 0x261   : > { %v2844_v53 = vadd.f32 %v9784_v37, %v2843_v51  ;;  %v3964_v54 = vld [vmem:[#allocation3 + $0xa0] sm:$0xff] }
 0x262   : > { %3933 = vst.msk [vmem:[#allocation3 + $0xa8] sm:$0xff] %vm1285_vm4, %v3901_v50  ;;  %v3171_v55 = vld [vmem:[#allocation3 + $0xc0] sm:$0xff]  ;;  %v3996_v57 = vpack.c.bf16 %v3964_v54, %v3964_v54 }
 0x263   : > { %2886 = vst.msk [vmem:[#allocation3 + $0xc8] sm:$0xff] %vm1285_vm4, %v2844_v53  ;;  %v3127_v58 = vpop.f32.mrf.mxu1 }
 0x264   : > { %v3203_v59 = vadd.f32 %v3171_v55, %v3127_v58  ;;  %7710 = vst.msk [vmem:[%s9085_s17 + $0xd0] sm:$0xf] %vm259_vm1, %v3996_v57  ;;  %v8587_v55 = vld [vmem:[#allocation2 + $0xc8] sm:$0xff] }
 0x265   : > { %v3825_v60 = vpop.f32.mrf.mxu3  ;;  %v3520_v61 = vld [vmem:[#allocation3 + $0xb8] sm:$0xff] }
 0x266   : > { %v3552_v63 = vadd.f32 %v3520_v61, %v3474_v36  ;;  %3235 = vst.msk [vmem:[#allocation3 + $0xc0] sm:$0xff] %vm1285_vm4, %v3203_v59  ;;  %7872 = vmatmul.msk.bf16.gmra.mxu1 %vm1285_vm4, %v8585_v56  ;;  %v8619_v61 = vld [vmem:[#allocation2 + $0xd0] sm:$0xff] }
 0x267   : > { %v3870_v0 = vld [vmem:[#allocation3 + $0xb0] sm:$0xff] }
 0x268   : > { %3584 = vst.msk [vmem:[#allocation3 + $0xb8] sm:$0xff] %vm1285_vm4, %v3552_v63  ;;  %v3902_v2 = vadd.f32 %v3870_v0, %v3823_v46  ;;  %v2846_v3 = vpop.f32.mrf.mxu0  ;;  %v3479_v4 = vpop.f32.mrf.mxu2  ;;  %v8572_v0 = vld [vmem:[#allocation2 + $0x40] sm:$0xff] }
 0x269   : > { %v2847_v5 = vadd.f32 %v9784_v37, %v2846_v3  ;;  %v3965_v7 = vld [vmem:[#allocation3 + $0xa8] sm:$0xff] }
 0x26a   : > { %8034 = vmatmul.msk.bf16.gmra.mxu3 %vm1285_vm4, %v8617_v62  ;;  %3934 = vst.msk [vmem:[#allocation3 + $0xb0] sm:$0xff] %vm1285_vm4, %v3902_v2  ;;  %v3172_v8 = vld [vmem:[#allocation3 + $0xc8] sm:$0xff]  ;;  %v3997_v9 = vpack.c.bf16 %v3965_v7, %v3965_v7 }
 0x26b   : > { %2887 = vst.msk [vmem:[#allocation3 + $0xd0] sm:$0xff] %vm1285_vm4, %v2847_v5  ;;  %v3129_v10 = vpop.f32.mrf.mxu1  ;;  %7792 = vmatmul.msk.bf16.gmra.mxu0 %vm1285_vm4, %v8570_v1  ;;  %v8604_v5 = vld [vmem:[#allocation2 + $0x48] sm:$0xff] }
 0x26c   : > { %v3204_v12 = vadd.f32 %v3172_v8, %v3129_v10  ;;  %7711 = vst.msk [vmem:[%s9085_s17 + $0xd4] sm:$0xf] %vm259_vm1, %v3997_v9 }
 0x26d   : > { %v3828_v13 = vpop.f32.mrf.mxu3  ;;  %v3521_v14 = vld [vmem:[#allocation3 + $0xc0] sm:$0xff]  ;;  %7954 = vmatmul.msk.bf16.gmra.mxu2 %vm1285_vm4, %v8602_v6 }
 0x26e   : > { %v3553_v15 = vadd.f32 %v3521_v14, %v3477_v52  ;;  %3236 = vst.msk [vmem:[#allocation3 + $0xc8] sm:$0xff] %vm1285_vm4, %v3204_v12 }
 0x26f   : > { %v3871_v16 = vld [vmem:[#allocation3 + $0xb8] sm:$0xff] }
 0x270   : > { %3585 = vst.msk [vmem:[#allocation3 + $0xc0] sm:$0xff] %vm1285_vm4, %v3553_v15  ;;  %v3903_v17 = vadd.f32 %v3871_v16, %v3825_v60  ;;  %v2848_v18 = vpop.f32.mrf.mxu0  ;;  %v3482_v26 = vpop.f32.mrf.mxu2 }
 0x271   : > { %v2849_v19 = vadd.f32 %v9784_v37, %v2848_v18  ;;  %v3966_v20 = vld [vmem:[#allocation3 + $0xb0] sm:$0xff] }
 0x272   : > { %3935 = vst.msk [vmem:[#allocation3 + $0xb8] sm:$0xff] %vm1285_vm4, %v3903_v17  ;;  %v3173_v21 = vld [vmem:[#allocation3 + $0xd0] sm:$0xff]  ;;  %v3998_v23 = vpack.c.bf16 %v3966_v20, %v3966_v20 }
 0x273   : > { %2888 = vst.msk [vmem:[#allocation3 + $0xd8] sm:$0xff] %vm1285_vm4, %v2849_v19  ;;  %v3132_v24 = vpop.f32.mrf.mxu1 }
 0x274   : > { %v3205_v25 = vadd.f32 %v3173_v21, %v3132_v24  ;;  %7712 = vst.msk [vmem:[%s9085_s17 + $0xd8] sm:$0xf] %vm259_vm1, %v3998_v23  ;;  %v8588_v21 = vld [vmem:[#allocation2 + $0xd0] sm:$0xff] }
 0x275   : > { %v3830_v27 = vpop.f32.mrf.mxu3  ;;  %v3522_v33 = vld [vmem:[#allocation3 + $0xc8] sm:$0xff] }
 0x276   : > { %v3554_v29 = vadd.f32 %v3522_v33, %v3479_v4  ;;  %3237 = vst.msk [vmem:[#allocation3 + $0xd0] sm:$0xff] %vm1285_vm4, %v3205_v25  ;;  %7873 = vmatmul.msk.bf16.gmra.mxu1 %vm1285_vm4, %v8586_v22  ;;  %v8620_v33 = vld [vmem:[#allocation2 + $0xd8] sm:$0xff] }
 0x277   : > { %v3872_v30 = vld [vmem:[#allocation3 + $0xc0] sm:$0xff] }
 0x278   : > { %3586 = vst.msk [vmem:[#allocation3 + $0xc8] sm:$0xff] %vm1285_vm4, %v3554_v29  ;;  %v3904_v31 = vadd.f32 %v3872_v30, %v3828_v13  ;;  %v2851_v32 = vpop.f32.mrf.mxu0  ;;  %v3484_v35 = vpop.f32.mrf.mxu2  ;;  %v8573_v30 = vld [vmem:[#allocation2 + $0x48] sm:$0xff] }
 0x279   : > { %v2852_v36 = vadd.f32 %v9784_v37, %v2851_v32  ;;  %v3967_v39 = vld [vmem:[#allocation3 + $0xb8] sm:$0xff] }
 0x27a   : > { %8035 = vmatmul.msk.bf16.gmra.mxu3 %vm1285_vm4, %v8618_v28  ;;  %3936 = vst.msk [vmem:[#allocation3 + $0xc0] sm:$0xff] %vm1285_vm4, %v3904_v31  ;;  %v3174_v40 = vld [vmem:[#allocation3 + $0xd8] sm:$0xff]  ;;  %v3999_v41 = vpack.c.bf16 %v3967_v39, %v3967_v39 }
 0x27b   : > { %2889 = vst.msk [vmem:[#allocation3 + $0xe0] sm:$0xff] %vm1285_vm4, %v2852_v36  ;;  %v3134_v42 = vpop.f32.mrf.mxu1  ;;  %7793 = vmatmul.msk.bf16.gmra.mxu0 %vm1285_vm4, %v8571_v34  ;;  %v8605_v36 = vld [vmem:[#allocation2 + $0x50] sm:$0xff] }
 0x27c   : > { %v3206_v43 = vadd.f32 %v3174_v40, %v3134_v42  ;;  %7713 = vst.msk [vmem:[%s9085_s17 + $0xdc] sm:$0xf] %vm259_vm1, %v3999_v41 }
 0x27d   : > { %v3833_v44 = vpop.f32.mrf.mxu3  ;;  %v3523_v46 = vld [vmem:[#allocation3 + $0xd0] sm:$0xff]  ;;  %7955 = vmatmul.msk.bf16.gmra.mxu2 %vm1285_vm4, %v8603_v38 }
 0x27e   : > { %v3555_v47 = vadd.f32 %v3523_v46, %v3482_v26  ;;  %3238 = vst.msk [vmem:[#allocation3 + $0xd8] sm:$0xff] %vm1285_vm4, %v3206_v43 }
 0x27f   : > { %v3873_v48 = vld [vmem:[#allocation3 + $0xc8] sm:$0xff] }
 0x280   : > { %3587 = vst.msk [vmem:[#allocation3 + $0xd0] sm:$0xff] %vm1285_vm4, %v3555_v47  ;;  %v3905_v49 = vadd.f32 %v3873_v48, %v3830_v27  ;;  %v2853_v50 = vpop.f32.mrf.mxu0  ;;  %v3487_v51 = vpop.f32.mrf.mxu2 }
 0x281   : > { %v2854_v52 = vadd.f32 %v9784_v37, %v2853_v50  ;;  %v3968_v53 = vld [vmem:[#allocation3 + $0xc0] sm:$0xff] }
 0x282   : > { %3937 = vst.msk [vmem:[#allocation3 + $0xc8] sm:$0xff] %vm1285_vm4, %v3905_v49  ;;  %v3175_v54 = vld [vmem:[#allocation3 + $0xe0] sm:$0xff]  ;;  %v4000_v56 = vpack.c.bf16 %v3968_v53, %v3968_v53 }
 0x283   : > { %2890 = vst.msk [vmem:[#allocation3 + $0xe8] sm:$0xff] %vm1285_vm4, %v2854_v52  ;;  %v3137_v57 = vpop.f32.mrf.mxu1 }
 0x284   : > { %v3207_v58 = vadd.f32 %v3175_v54, %v3137_v57  ;;  %7714 = vst.msk [vmem:[%s9085_s17 + $0xe0] sm:$0xf] %vm259_vm1, %v4000_v56  ;;  %v8589_v54 = vld [vmem:[#allocation2 + $0xd8] sm:$0xff] }
 0x285   : > { %v3835_v59 = vpop.f32.mrf.mxu3  ;;  %v3524_v60 = vld [vmem:[#allocation3 + $0xd8] sm:$0xff] }
 0x286   : > { %v3556_v62 = vadd.f32 %v3524_v60, %v3484_v35  ;;  %3239 = vst.msk [vmem:[#allocation3 + $0xe0] sm:$0xff] %vm1285_vm4, %v3207_v58  ;;  %7874 = vmatmul.msk.bf16.gmra.mxu1 %vm1285_vm4, %v8587_v55  ;;  %v8621_v60 = vld [vmem:[#allocation2 + $0xe0] sm:$0xff] }
 0x287   : > { %v3874_v63 = vld [vmem:[#allocation3 + $0xd0] sm:$0xff] }
 0x288   : > { %3588 = vst.msk [vmem:[#allocation3 + $0xd8] sm:$0xff] %vm1285_vm4, %v3556_v62  ;;  %v3906_v1 = vadd.f32 %v3874_v63, %v3833_v44  ;;  %v2856_v2 = vpop.f32.mrf.mxu0  ;;  %v3489_v3 = vpop.f32.mrf.mxu2  ;;  %v8574_v63 = vld [vmem:[#allocation2 + $0x50] sm:$0xff] }
 0x289   : > { %v2857_v4 = vadd.f32 %v9784_v37, %v2856_v2  ;;  %v3969_v6 = vld [vmem:[#allocation3 + $0xc8] sm:$0xff] }
 0x28a   : > { %8036 = vmatmul.msk.bf16.gmra.mxu3 %vm1285_vm4, %v8619_v61  ;;  %3938 = vst.msk [vmem:[#allocation3 + $0xd0] sm:$0xff] %vm1285_vm4, %v3906_v1  ;;  %v3176_v7 = vld [vmem:[#allocation3 + $0xe8] sm:$0xff]  ;;  %v4001_v8 = vpack.c.bf16 %v3969_v6, %v3969_v6 }
 0x28b   : > { %2891 = vst.msk [vmem:[#allocation3 + $0xf0] sm:$0xff] %vm1285_vm4, %v2857_v4  ;;  %v3139_v9 = vpop.f32.mrf.mxu1  ;;  %7794 = vmatmul.msk.bf16.gmra.mxu0 %vm1285_vm4, %v8572_v0  ;;  %v8606_v4 = vld [vmem:[#allocation2 + $0x58] sm:$0xff] }
 0x28c   : > { %v3208_v10 = vadd.f32 %v3176_v7, %v3139_v9  ;;  %7715 = vst.msk [vmem:[%s9085_s17 + $0xe4] sm:$0xf] %vm259_vm1, %v4001_v8 }
 0x28d   : > { %v3838_v12 = vpop.f32.mrf.mxu3  ;;  %v3525_v13 = vld [vmem:[#allocation3 + $0xe0] sm:$0xff]  ;;  %7956 = vmatmul.msk.bf16.gmra.mxu2 %vm1285_vm4, %v8604_v5 }
 0x28e   : > { %v3557_v14 = vadd.f32 %v3525_v13, %v3487_v51  ;;  %3240 = vst.msk [vmem:[#allocation3 + $0xe8] sm:$0xff] %vm1285_vm4, %v3208_v10 }
 0x28f   : > { %v3875_v15 = vld [vmem:[#allocation3 + $0xd8] sm:$0xff] }
 0x290   : > { %3589 = vst.msk [vmem:[#allocation3 + $0xe0] sm:$0xff] %vm1285_vm4, %v3557_v14  ;;  %v3907_v16 = vadd.f32 %v3875_v15, %v3835_v59  ;;  %v2858_v17 = vpop.f32.mrf.mxu0  ;;  %v3492_v18 = vpop.f32.mrf.mxu2 }
 0x291   : > { %v2859_v26 = vadd.f32 %v9784_v37, %v2858_v17  ;;  %v3970_v19 = vld [vmem:[#allocation3 + $0xd0] sm:$0xff] }
 0x292   : > { %3939 = vst.msk [vmem:[#allocation3 + $0xd8] sm:$0xff] %vm1285_vm4, %v3907_v16  ;;  %v3177_v20 = vld [vmem:[#allocation3 + $0xf0] sm:$0xff]  ;;  %v4002_v22 = vpack.c.bf16 %v3970_v19, %v3970_v19 }
 0x293   : > { %2892 = vst.msk [vmem:[#allocation3 + $0xf8] sm:$0xff] %vm1285_vm4, %v2859_v26  ;;  %v3142_v23 = vpop.f32.mrf.mxu1 }
 0x294   : > { %v3209_v24 = vadd.f32 %v3177_v20, %v3142_v23  ;;  %7716 = vst.msk [vmem:[%s9085_s17 + $0xe8] sm:$0xf] %vm259_vm1, %v4002_v22  ;;  %v8590_v20 = vld [vmem:[#allocation2 + $0xe0] sm:$0xff] }
 0x295   : > { %v3840_v25 = vpop.f32.mrf.mxu3  ;;  %v3526_v27 = vld [vmem:[#allocation3 + $0xe8] sm:$0xff] }
 0x296   : > { %v3558_v28 = vadd.f32 %v3526_v27, %v3489_v3  ;;  %3241 = vst.msk [vmem:[#allocation3 + $0xf0] sm:$0xff] %vm1285_vm4, %v3209_v24  ;;  %7875 = vmatmul.msk.bf16.gmra.mxu1 %vm1285_vm4, %v8588_v21  ;;  %v8622_v27 = vld [vmem:[#allocation2 + $0xe8] sm:$0xff] }
 0x297   : > { %v3876_v29 = vld [vmem:[#allocation3 + $0xe0] sm:$0xff] }
 0x298   : > { %3590 = vst.msk [vmem:[#allocation3 + $0xe8] sm:$0xff] %vm1285_vm4, %v3558_v28  ;;  %v3908_v34 = vadd.f32 %v3876_v29, %v3838_v12  ;;  %v4215_v31 = vpop.f32.mrf.mxu0  ;;  %v3494_v32 = vpop.f32.mrf.mxu2  ;;  %v8575_v29 = vld [vmem:[#allocation2 + $0x58] sm:$0xff] }
 0x299   : > { %v4216_v35 = vadd.f32 %v9784_v37, %v4215_v31  ;;  %v3971_v38 = vld [vmem:[#allocation3 + $0xd8] sm:$0xff] }
 0x29a   : > { %8037 = vmatmul.msk.bf16.gmra.mxu3 %vm1285_vm4, %v8620_v33  ;;  %3940 = vst.msk [vmem:[#allocation3 + $0xe0] sm:$0xff] %vm1285_vm4, %v3908_v34  ;;  %v3178_v39 = vld [vmem:[#allocation3 + $0xf8] sm:$0xff]  ;;  %v4003_v40 = vpack.c.bf16 %v3971_v38, %v3971_v38 }
 0x29b   : > { %4295 = vst.msk [vmem:[#allocation3] sm:$0xff] %vm1285_vm4, %v4216_v35  ;;  %v3144_v41 = vpop.f32.mrf.mxu1  ;;  %7795 = vmatmul.msk.bf16.gmra.mxu0 %vm1285_vm4, %v8573_v30  ;;  %v8607_v35 = vld [vmem:[#allocation2 + $0x60] sm:$0xff] }
 0x29c   : > { %v3210_v42 = vadd.f32 %v3178_v39, %v3144_v41  ;;  %7717 = vst.msk [vmem:[%s9085_s17 + $0xec] sm:$0xf] %vm259_vm1, %v4003_v40 }
 0x29d   : > { %v3843_v43 = vpop.f32.mrf.mxu3  ;;  %v3527_v44 = vld [vmem:[#allocation3 + $0xf0] sm:$0xff]  ;;  %7957 = vmatmul.msk.bf16.gmra.mxu2 %vm1285_vm4, %v8605_v36 }
 0x29e   : > { %v3559_v46 = vadd.f32 %v3527_v44, %v3492_v18  ;;  %3242 = vst.msk [vmem:[#allocation3 + $0xf8] sm:$0xff] %vm1285_vm4, %v3210_v42 }
 0x29f   : > { %v3877_v47 = vld [vmem:[#allocation3 + $0xe8] sm:$0xff] }
 0x2a0   : > { %3591 = vst.msk [vmem:[#allocation3 + $0xf0] sm:$0xff] %vm1285_vm4, %v3559_v46  ;;  %v3909_v48 = vadd.f32 %v3877_v47, %v3840_v25  ;;  %v4217_v49 = vpop.f32.mrf.mxu0  ;;  %v4852_v50 = vpop.f32.mrf.mxu2 }
 0x2a1   : > { %v4218_v51 = vadd.f32 %v9784_v37, %v4217_v49  ;;  %v3972_v52 = vld [vmem:[#allocation3 + $0xe0] sm:$0xff] }
 0x2a2   : > { %3941 = vst.msk [vmem:[#allocation3 + $0xe8] sm:$0xff] %vm1285_vm4, %v3909_v48  ;;  %v4581_v53 = vld [vmem:[#allocation3] sm:$0xff]  ;;  %v4004_v55 = vpack.c.bf16 %v3972_v52, %v3972_v52 }
 0x2a3   : > { %4296 = vst.msk [vmem:[#allocation3 + $0x8] sm:$0xff] %vm1285_vm4, %v4218_v51  ;;  %v4501_v56 = vpop.f32.mrf.mxu1 }
 0x2a4   : > { %v4613_v57 = vadd.f32 %v4581_v53, %v4501_v56  ;;  %7718 = vst.msk [vmem:[%s9085_s17 + $0xf0] sm:$0xf] %vm259_vm1, %v4004_v55  ;;  %v8591_v53 = vld [vmem:[#allocation2 + $0xe8] sm:$0xff] }
 0x2a5   : > { %v3845_v58 = vpop.f32.mrf.mxu3  ;;  %v3528_v59 = vld [vmem:[#allocation3 + $0xf8] sm:$0xff] }
 0x2a6   : > { %v3560_v61 = vadd.f32 %v3528_v59, %v3494_v32  ;;  %4645 = vst.msk [vmem:[#allocation3] sm:$0xff] %vm1285_vm4, %v4613_v57  ;;  %7876 = vmatmul.msk.bf16.gmra.mxu1 %vm1285_vm4, %v8589_v54  ;;  %v8623_v59 = vld [vmem:[#allocation2 + $0xf0] sm:$0xff] }
 0x2a7   : > { %v3878_v62 = vld [vmem:[#allocation3 + $0xf0] sm:$0xff] }
 0x2a8   : > { %3592 = vst.msk [vmem:[#allocation3 + $0xf8] sm:$0xff] %vm1285_vm4, %v3560_v61  ;;  %v3910_v0 = vadd.f32 %v3878_v62, %v3843_v43  ;;  %v4220_v1 = vpop.f32.mrf.mxu0  ;;  %v4854_v2 = vpop.f32.mrf.mxu2  ;;  %v8576_v62 = vld [vmem:[#allocation2 + $0x60] sm:$0xff] }
 0x2a9   : > { %v4221_v3 = vadd.f32 %v9784_v37, %v4220_v1  ;;  %v3973_v5 = vld [vmem:[#allocation3 + $0xe8] sm:$0xff] }
 0x2aa   : > { %8038 = vmatmul.msk.bf16.gmra.mxu3 %vm1285_vm4, %v8621_v60  ;;  %3942 = vst.msk [vmem:[#allocation3 + $0xf0] sm:$0xff] %vm1285_vm4, %v3910_v0  ;;  %v4582_v6 = vld [vmem:[#allocation3 + $0x8] sm:$0xff]  ;;  %v4005_v7 = vpack.c.bf16 %v3973_v5, %v3973_v5 }
 0x2ab   : > { %4297 = vst.msk [vmem:[#allocation3 + $0x10] sm:$0xff] %vm1285_vm4, %v4221_v3  ;;  %v4503_v8 = vpop.f32.mrf.mxu1  ;;  %7796 = vmatmul.msk.bf16.gmra.mxu0 %vm1285_vm4, %v8574_v63  ;;  %v8608_v3 = vld [vmem:[#allocation2 + $0x68] sm:$0xff] }
 0x2ac   : > { %v4614_v9 = vadd.f32 %v4582_v6, %v4503_v8  ;;  %7719 = vst.msk [vmem:[%s9085_s17 + $0xf4] sm:$0xf] %vm259_vm1, %v4005_v7 }
 0x2ad   : > { %v5203_v10 = vpop.f32.mrf.mxu3  ;;  %v4932_v12 = vld [vmem:[#allocation3] sm:$0xff]  ;;  %7958 = vmatmul.msk.bf16.gmra.mxu2 %vm1285_vm4, %v8606_v4 }
 0x2ae   : > { %v4964_v13 = vadd.f32 %v4932_v12, %v4852_v50  ;;  %4646 = vst.msk [vmem:[#allocation3 + $0x8] sm:$0xff] %vm1285_vm4, %v4614_v9 }
 0x2af   : > { %v3879_v14 = vld [vmem:[#allocation3 + $0xf8] sm:$0xff] }
 0x2b0   : > { %4996 = vst.msk [vmem:[#allocation3] sm:$0xff] %vm1285_vm4, %v4964_v13  ;;  %v3911_v15 = vadd.f32 %v3879_v14, %v3845_v58  ;;  %v4222_v16 = vpop.f32.mrf.mxu0  ;;  %v4857_v17 = vpop.f32.mrf.mxu2 }
 0x2b1   : > { %v4223_v18 = vadd.f32 %v9784_v37, %v4222_v16  ;;  %v3974_v26 = vld [vmem:[#allocation3 + $0xf0] sm:$0xff] }
 0x2b2   : > { %3943 = vst.msk [vmem:[#allocation3 + $0xf8] sm:$0xff] %vm1285_vm4, %v3911_v15  ;;  %v4583_v19 = vld [vmem:[#allocation3 + $0x10] sm:$0xff]  ;;  %v4006_v21 = vpack.c.bf16 %v3974_v26, %v3974_v26 }
 0x2b3   : > { %4298 = vst.msk [vmem:[#allocation3 + $0x18] sm:$0xff] %vm1285_vm4, %v4223_v18  ;;  %v4506_v22 = vpop.f32.mrf.mxu1 }
 0x2b4   : > { %v4615_v23 = vadd.f32 %v4583_v19, %v4506_v22  ;;  %7720 = vst.msk [vmem:[%s9085_s17 + $0xf8] sm:$0xf] %vm259_vm1, %v4006_v21  ;;  %v8592_v19 = vld [vmem:[#allocation2 + $0xf0] sm:$0xff] }
 0x2b5   : > { %v5205_v24 = vpop.f32.mrf.mxu3  ;;  %v4933_v25 = vld [vmem:[#allocation3 + $0x8] sm:$0xff] }
 0x2b6   : > { %v4965_v33 = vadd.f32 %v4933_v25, %v4854_v2  ;;  %4647 = vst.msk [vmem:[#allocation3 + $0x10] sm:$0xff] %vm1285_vm4, %v4615_v23  ;;  %7877 = vmatmul.msk.bf16.gmra.mxu1 %vm1285_vm4, %v8590_v20  ;;  %v8624_v25 = vld [vmem:[#allocation2 + $0xf8] sm:$0xff] }
 0x2b7   : > { %v5283_v28 = vld [vmem:[#allocation3] sm:$0xff] }
 0x2b8   : > { %4997 = vst.msk [vmem:[#allocation3 + $0x8] sm:$0xff] %vm1285_vm4, %v4965_v33  ;;  %v5315_v30 = vadd.f32 %v5283_v28, %v5203_v10  ;;  %v4225_v34 = vpop.f32.mrf.mxu0  ;;  %v4859_v31 = vpop.f32.mrf.mxu2  ;;  %v8577_v28 = vld [vmem:[#allocation2 + $0x68] sm:$0xff] }
 0x2b9   : > { %v4226_v32 = vadd.f32 %v9784_v37, %v4225_v34  ;;  %v3975_v36 = vld [vmem:[#allocation3 + $0xf8] sm:$0xff] }
 0x2ba   : > { %8039 = vmatmul.msk.bf16.gmra.mxu3 %vm1285_vm4, %v8622_v27  ;;  %5347 = vst.msk [vmem:[#allocation3] sm:$0xff] %vm1285_vm4, %v5315_v30  ;;  %v4584_v38 = vld [vmem:[#allocation3 + $0x18] sm:$0xff]  ;;  %v4007_v39 = vpack.c.bf16 %v3975_v36, %v3975_v36 }
 0x2bb   : > { %4299 = vst.msk [vmem:[#allocation3 + $0x20] sm:$0xff] %vm1285_vm4, %v4226_v32  ;;  %v4508_v40 = vpop.f32.mrf.mxu1  ;;  %7797 = vmatmul.msk.bf16.gmra.mxu0 %vm1285_vm4, %v8575_v29  ;;  %v8609_v32 = vld [vmem:[#allocation2 + $0x70] sm:$0xff] }
 0x2bc   : > { %v4616_v41 = vadd.f32 %v4584_v38, %v4508_v40  ;;  %7721 = vst.msk [vmem:[%s9085_s17 + $0xfc] sm:$0xf] %vm259_vm1, %v4007_v39 }
 0x2bd   : > { %v5208_v42 = vpop.f32.mrf.mxu3  ;;  %v4934_v43 = vld [vmem:[#allocation3 + $0x10] sm:$0xff]  ;;  %7959 = vmatmul.msk.bf16.gmra.mxu2 %vm1285_vm4, %v8607_v35 }
 0x2be   : > { %v4966_v44 = vadd.f32 %v4934_v43, %v4857_v17  ;;  %4648 = vst.msk [vmem:[#allocation3 + $0x18] sm:$0xff] %vm1285_vm4, %v4616_v41 }
 0x2bf   : > { %v5284_v46 = vld [vmem:[#allocation3 + $0x8] sm:$0xff] }
 0x2c0   : > { %4998 = vst.msk [vmem:[#allocation3 + $0x10] sm:$0xff] %vm1285_vm4, %v4966_v44  ;;  %v5316_v47 = vadd.f32 %v5284_v46, %v5205_v24  ;;  %v4227_v48 = vpop.f32.mrf.mxu0  ;;  %v4862_v49 = vpop.f32.mrf.mxu2 }
 0x2c1   : > { %v4228_v50 = vadd.f32 %v9784_v37, %v4227_v48  ;;  %v5379_v51 = vld [vmem:[#allocation3] sm:$0xff] }
 0x2c2   : > { %5348 = vst.msk [vmem:[#allocation3 + $0x8] sm:$0xff] %vm1285_vm4, %v5316_v47  ;;  %v4585_v52 = vld [vmem:[#allocation3 + $0x20] sm:$0xff]  ;;  %v5411_v54 = vpack.c.bf16 %v5379_v51, %v5379_v51 }
 0x2c3   : > { %4300 = vst.msk [vmem:[#allocation3 + $0x28] sm:$0xff] %vm1285_vm4, %v4228_v50  ;;  %v4511_v55 = vpop.f32.mrf.mxu1 }
 0x2c4   : > { %v4617_v56 = vadd.f32 %v4585_v52, %v4511_v55  ;;  %8046 = vst.msk [vmem:[%s9085_s17 + $0x100] sm:$0xf] %vm259_vm1, %v5411_v54  ;;  %v8593_v52 = vld [vmem:[#allocation2 + $0xf8] sm:$0xff] }
 0x2c5   : > { %v5210_v57 = vpop.f32.mrf.mxu3  ;;  %v4935_v58 = vld [vmem:[#allocation3 + $0x18] sm:$0xff] }
 0x2c6   : > { %v4967_v60 = vadd.f32 %v4935_v58, %v4859_v31  ;;  %4649 = vst.msk [vmem:[#allocation3 + $0x20] sm:$0xff] %vm1285_vm4, %v4617_v56  ;;  %7878 = vmatmul.msk.bf16.gmra.mxu1 %vm1285_vm4, %v8591_v53  ;;  %v8625_v58 = vld [vmem:[#allocation2 + $0x100] sm:$0xff] }
 0x2c7   : > { %v5285_v61 = vld [vmem:[#allocation3 + $0x10] sm:$0xff] }
 0x2c8   : > { %4999 = vst.msk [vmem:[#allocation3 + $0x18] sm:$0xff] %vm1285_vm4, %v4967_v60  ;;  %v5317_v63 = vadd.f32 %v5285_v61, %v5208_v42  ;;  %v4230_v0 = vpop.f32.mrf.mxu0  ;;  %v4864_v1 = vpop.f32.mrf.mxu2  ;;  %v8578_v61 = vld [vmem:[#allocation2 + $0x70] sm:$0xff] }
 0x2c9   : > { %v4231_v2 = vadd.f32 %v9784_v37, %v4230_v0  ;;  %v5380_v4 = vld [vmem:[#allocation3 + $0x8] sm:$0xff] }
 0x2ca   : > { %8040 = vmatmul.msk.bf16.gmra.mxu3 %vm1285_vm4, %v8623_v59  ;;  %5349 = vst.msk [vmem:[#allocation3 + $0x10] sm:$0xff] %vm1285_vm4, %v5317_v63  ;;  %v4586_v5 = vld [vmem:[#allocation3 + $0x28] sm:$0xff]  ;;  %v5412_v6 = vpack.c.bf16 %v5380_v4, %v5380_v4 }
 0x2cb   : > { %4301 = vst.msk [vmem:[#allocation3 + $0x30] sm:$0xff] %vm1285_vm4, %v4231_v2  ;;  %v4513_v7 = vpop.f32.mrf.mxu1  ;;  %7798 = vmatmul.msk.bf16.gmra.mxu0 %vm1285_vm4, %v8576_v62  ;;  %v8610_v2 = vld [vmem:[#allocation2 + $0x78] sm:$0xff] }
 0x2cc   : > { %v4618_v8 = vadd.f32 %v4586_v5, %v4513_v7  ;;  %8047 = vst.msk [vmem:[%s9085_s17 + $0x104] sm:$0xf] %vm259_vm1, %v5412_v6 }
 0x2cd   : > { %v5213_v9 = vpop.f32.mrf.mxu3  ;;  %v4936_v10 = vld [vmem:[#allocation3 + $0x20] sm:$0xff]  ;;  %7960 = vmatmul.msk.bf16.gmra.mxu2 %vm1285_vm4, %v8608_v3 }
 0x2ce   : > { %v4968_v12 = vadd.f32 %v4936_v10, %v4862_v49  ;;  %4650 = vst.msk [vmem:[#allocation3 + $0x28] sm:$0xff] %vm1285_vm4, %v4618_v8  ;;  %v257_v10 = vld [vmem:[%s8822_s8 + $0xcc] sm:$0xf] }
 0x2cf   : > { %v5286_v13 = vld [vmem:[#allocation3 + $0x18] sm:$0xff]  ;;  %294 = vst.msk [vmem:[#allocation2 + $0x88] sm:$0xf] %vm259_vm1, %v257_v10 }
 0x2d0   : > { %5000 = vst.msk [vmem:[#allocation3 + $0x20] sm:$0xff] %vm1285_vm4, %v4968_v12  ;;  %v5318_v14 = vadd.f32 %v5286_v13, %v5210_v57  ;;  %v4232_v15 = vpop.f32.mrf.mxu0  ;;  %v4867_v16 = vpop.f32.mrf.mxu2  ;;  %v258_v12 = vld [vmem:[%s8822_s8 + $0xd0] sm:$0xf] }
 0x2d1   : > { %v4233_v17 = vadd.f32 %v9784_v37, %v4232_v15  ;;  %v5381_v18 = vld [vmem:[#allocation3 + $0x10] sm:$0xff]  ;;  %v348_v15 = vld [vmem:[%s8822_s8 + $0xd0] sm:$0xf]  ;;  %295 = vst.msk [vmem:[#allocation2 + $0x8c] sm:$0xf] %vm259_vm1, %v258_v12 }
 0x2d2   : > { %5350 = vst.msk [vmem:[#allocation3 + $0x18] sm:$0xff] %vm1285_vm4, %v5318_v14  ;;  %v4587_v26 = vld [vmem:[#allocation3 + $0x30] sm:$0xff]  ;;  %v5413_v20 = vpack.c.bf16 %v5381_v18, %v5381_v18  ;;  %v347_v14 = vld [vmem:[%s8822_s8 + $0xcc] sm:$0xf] }
 0x2d3   : > { %4302 = vst.msk [vmem:[#allocation3 + $0x38] sm:$0xff] %vm1285_vm4, %v4233_v17  ;;  %v4516_v21 = vpop.f32.mrf.mxu1  ;;  %v762_v17 = vshrl.u32 %v347_v14, 16 }
 0x2d4   : > { %v4619_v22 = vadd.f32 %v4587_v26, %v4516_v21  ;;  %8048 = vst.msk [vmem:[%s9085_s17 + $0x108] sm:$0xf] %vm259_vm1, %v5413_v20  ;;  %v765_v20 = vshll.u32 %v347_v14, 16  ;;  %v771_v21 = vshll.u32 %v348_v15, 16  ;;  %v8627_v14 = vld [vmem:[#allocation2 + $0x110] sm:$0xff] }
 0x2d5   : > { %v5215_v23 = vpop.f32.mrf.mxu3  ;;  %v4937_v24 = vld [vmem:[#allocation3 + $0x28] sm:$0xff] }
 0x2d6   : > { %v4969_v27 = vadd.f32 %v4937_v24, %v4864_v1  ;;  %4651 = vst.msk [vmem:[#allocation3 + $0x30] sm:$0xff] %vm1285_vm4, %v4619_v22  ;;  %7879 = vmatmul.msk.bf16.gmra.mxu1 %vm1285_vm4, %v8592_v19  ;;  %v775_v22 = vshrl.u32 %v348_v15, 16  ;;  %v8594_v24 = vld [vmem:[#allocation2 + $0x100] sm:$0xff] }
 0x2d7   : > { %v5287_v33 = vld [vmem:[#allocation3 + $0x20] sm:$0xff] }
 0x2d8   : > { %5001 = vst.msk [vmem:[#allocation3 + $0x28] sm:$0xff] %vm1285_vm4, %v4969_v27  ;;  %v5319_v29 = vadd.f32 %v5287_v33, %v5213_v9  ;;  %v4235_v30 = vpop.f32.mrf.mxu0  ;;  %v4869_v34 = vpop.f32.mrf.mxu2 }
 0x2d9   : > { %v4236_v31 = vadd.f32 %v9784_v37, %v4235_v30  ;;  %v5382_v35 = vld [vmem:[#allocation3 + $0x18] sm:$0xff]  ;;  %v773_v30 = vrot.slane %v771_v21, 5 }
 0x2da   : > { %8041 = vmatmul.msk.bf16.gmra.mxu3 %vm1285_vm4, %v8624_v25  ;;  %5351 = vst.msk [vmem:[#allocation3 + $0x20] sm:$0xff] %vm1285_vm4, %v5319_v29  ;;  %v4588_v36 = vld [vmem:[#allocation3 + $0x38] sm:$0xff]  ;;  %v5414_v38 = vpack.c.bf16 %v5382_v35, %v5382_v35  ;;  %v764_v25 = vrot.slane %v762_v17, 4  ;;  %v767_v29 = vrot.slane %v765_v20, 5  ;;  %v8580_v17 = vld [vmem:[#allocation2 + $0x80] sm:$0xff] }
 0x2db   : > { %4303 = vst.msk [vmem:[#allocation3 + $0x40] sm:$0xff] %vm1285_vm4, %v4236_v31  ;;  %v4518_v39 = vpop.f32.mrf.mxu1  ;;  %7799 = vmatmul.msk.bf16.gmra.mxu0 %vm1285_vm4, %v8577_v28  ;;  %v349_v28 = vld [vmem:[%s8822_s8 + $0xd4] sm:$0x1]  ;;  %v8612_v21 = vld [vmem:[#allocation2 + $0x88] sm:$0xff] }
 0x2dc   : > { %v4620_v40 = vadd.f32 %v4588_v36, %v4518_v39  ;;  %8049 = vst.msk [vmem:[%s9085_s17 + $0x10c] sm:$0xf] %vm259_vm1, %v5414_v38  ;;  %v781_v35 = vshll.u32 %v349_v28, 16  ;;  %v768_v39 = vor.u32 %v767_v29, %v764_v25 }
 0x2dd   : > { %v5218_v41 = vpop.f32.mrf.mxu3  ;;  %v4938_v42 = vld [vmem:[#allocation3 + $0x30] sm:$0xff]  ;;  %7961 = vmatmul.msk.bf16.gmra.mxu2 %vm1285_vm4, %v8609_v32  ;;  %v777_v32 = vrot.slane %v775_v22, 4 }
 0x2de   : > { %v4970_v43 = vadd.f32 %v4938_v42, %v4867_v16  ;;  %4652 = vst.msk [vmem:[#allocation3 + $0x38] sm:$0xff] %vm1285_vm4, %v4620_v40 }
 0x2df   : > { %v5288_v44 = vld [vmem:[#allocation3 + $0x28] sm:$0xff]  ;;  %v778_v42 = vor.u32 %v777_v32, %v773_v30  ;;  %v10010_v32 = vld [vmem:[%s10463_s2] ss:$0 sm:$0xff] }
 0x2e0   : > { %5002 = vst.msk [vmem:[#allocation3 + $0x30] sm:$0xff] %vm1285_vm4, %v4970_v43  ;;  %v5320_v46 = vadd.f32 %v5288_v44, %v5215_v23  ;;  %v4237_v47 = vpop.f32.mrf.mxu0  ;;  %v4872_v48 = vpop.f32.mrf.mxu2  ;;  %v783_v43 = vrot.slane %v781_v35, 5 }
 0x2e1   : > { %v4238_v49 = vadd.f32 %v9784_v37, %v4237_v47  ;;  %v5383_v50 = vld [vmem:[#allocation3 + $0x20] sm:$0xff] }
 0x2e2   : > { %5352 = vst.msk [vmem:[#allocation3 + $0x28] sm:$0xff] %vm1285_vm4, %v5320_v46  ;;  %v4589_v51 = vld [vmem:[#allocation3 + $0x40] sm:$0xff]  ;;  %v5415_v53 = vpack.c.bf16 %v5383_v50, %v5383_v50  ;;  %v769_v46 = vrot.slane %v768_v39, 4 }
 0x2e3   : > { %4304 = vst.msk [vmem:[#allocation3 + $0x48] sm:$0xff] %vm1285_vm4, %v4238_v49  ;;  %v4521_v54 = vpop.f32.mrf.mxu1  ;;  %v779_v49 = vrot.slane %v778_v42, 4  ;;  %v8596_v39 = vld [vmem:[#allocation2 + $0x110] sm:$0xff] }
 0x2e4   : > { %v4621_v55 = vadd.f32 %v4589_v51, %v4521_v54  ;;  %8050 = vst.msk [vmem:[%s9085_s17 + $0x110] sm:$0xf] %vm259_vm1, %v5415_v53  ;;  %v774_v53 = vsel %vm8844_vm5, %v769_v46, %v773_v30 }
 0x2e5   : > { %v5220_v56 = vpop.f32.mrf.mxu3  ;;  %v4939_v57 = vld [vmem:[#allocation3 + $0x38] sm:$0xff]  ;;  %856 = vst.msk [vmem:[#allocation2 + $0x118] sm:$0xf] %vm259_vm1, %v774_v53 }
 0x2e6   : > { %v4971_v59 = vadd.f32 %v4939_v57, %v4869_v34  ;;  %4653 = vst.msk [vmem:[#allocation3 + $0x40] sm:$0xff] %vm1285_vm4, %v4621_v55  ;;  %7880 = vmatmul.msk.bf16.gmra.mxu1 %vm1285_vm4, %v8593_v52  ;;  %v8611_v55 = vld [vmem:[#allocation2 + $0x80] sm:$0xff] }
 0x2e7   : > { %v5289_v60 = vld [vmem:[#allocation3 + $0x30] sm:$0xff] }
 0x2e8   : > { %5003 = vst.msk [vmem:[#allocation3 + $0x38] sm:$0xff] %vm1285_vm4, %v4971_v59  ;;  %v5321_v62 = vadd.f32 %v5289_v60, %v5218_v41  ;;  %v4240_v63 = vpop.f32.mrf.mxu0  ;;  %v4874_v0 = vpop.f32.mrf.mxu2  ;;  %v8626_v41 = vld [vmem:[#allocation2 + $0x108] sm:$0xff] }
 0x2e9   : > { %v4241_v1 = vadd.f32 %v9784_v37, %v4240_v63  ;;  %v5384_v3 = vld [vmem:[#allocation3 + $0x28] sm:$0xff] }
 0x2ea   : > { %8042 = vmatmul.msk.bf16.gmra.mxu3 %vm1285_vm4, %v8625_v58  ;;  %5353 = vst.msk [vmem:[#allocation3 + $0x30] sm:$0xff] %vm1285_vm4, %v5321_v62  ;;  %v4590_v4 = vld [vmem:[#allocation3 + $0x48] sm:$0xff]  ;;  %v5416_v5 = vpack.c.bf16 %v5384_v3, %v5384_v3 }
 0x2eb   : > { %4305 = vst.msk [vmem:[#allocation3 + $0x50] sm:$0xff] %vm1285_vm4, %v4241_v1  ;;  %v4523_v6 = vpop.f32.mrf.mxu1  ;;  %7800 = vmatmul.msk.bf16.gmra.mxu0 %vm1285_vm4, %v8578_v61 }
 0x2ec   : > { %v4622_v7 = vadd.f32 %v4590_v4, %v4523_v6  ;;  %8051 = vst.msk [vmem:[%s9085_s17 + $0x114] sm:$0xf] %vm259_vm1, %v5416_v5 }
 0x2ed   : > { %v5223_v8 = vpop.f32.mrf.mxu3  ;;  %v4940_v9 = vld [vmem:[#allocation3 + $0x40] sm:$0xff]  ;;  %7962 = vmatmul.msk.bf16.gmra.mxu2 %vm1285_vm4, %v8610_v2 }
 0x2ee   : > { %v4972_v13 = vadd.f32 %v4940_v9, %v4872_v48  ;;  %4654 = vst.msk [vmem:[#allocation3 + $0x48] sm:$0xff] %vm1285_vm4, %v4622_v7  ;;  %v8579_v48 = vld [vmem:[#allocation2 + $0x78] sm:$0xff]  ;;  %v8595_v7 = vld [vmem:[#allocation2 + $0x108] sm:$0xff] }
 0x2ef   : > { %v5290_v16 = vld [vmem:[#allocation3 + $0x38] sm:$0xff] }
 0x2f0   : > { %5004 = vst.msk [vmem:[#allocation3 + $0x40] sm:$0xff] %vm1285_vm4, %v4972_v13  ;;  %v5322_v18 = vadd.f32 %v5290_v16, %v5220_v56  ;;  %v4242_v26 = vpop.f32.mrf.mxu0  ;;  %v4877_v19 = vpop.f32.mrf.mxu2  ;;  %v784_v56 = vsel %vm8844_vm5, %v779_v49, %v783_v43  ;;  %v8629_v49 = vld [vmem:[#allocation2 + $0x98] sm:$0xff] }
 0x2f1   : > { %v4243_v23 = vadd.f32 %v9784_v37, %v4242_v26  ;;  %v5385_v27 = vld [vmem:[#allocation3 + $0x30] sm:$0xff]  ;;  %857 = vst.msk [vmem:[#allocation2 + $0x11c] sm:$0xf] %vm259_vm1, %v784_v56 }
 0x2f2   : > { %5354 = vst.msk [vmem:[#allocation3 + $0x38] sm:$0xff] %vm1285_vm4, %v5322_v18  ;;  %v4591_v33 = vld [vmem:[#allocation3 + $0x50] sm:$0xff]  ;;  %v5417_v34 = vpack.c.bf16 %v5385_v27, %v5385_v27 }
 0x2f3   : > { %4306 = vst.msk [vmem:[#allocation3 + $0x58] sm:$0xff] %vm1285_vm4, %v4243_v23  ;;  %v4526_v31 = vpop.f32.mrf.mxu1 }
 0x2f4   : > { %v4623_v36 = vadd.f32 %v4591_v33, %v4526_v31  ;;  %8052 = vst.msk [vmem:[%s9085_s17 + $0x118] sm:$0xf] %vm259_vm1, %v5417_v34 }
 0x2f5   : > { %v5225_v38 = vpop.f32.mrf.mxu3  ;;  %v4941_v40 = vld [vmem:[#allocation3 + $0x48] sm:$0xff] }
 0x2f6   : > { %v4973_v44 = vadd.f32 %v4941_v40, %v4874_v0  ;;  %4655 = vst.msk [vmem:[#allocation3 + $0x50] sm:$0xff] %vm1285_vm4, %v4623_v36  ;;  %7881 = vmatmul.msk.bf16.gmra.mxu1 %vm1285_vm4, %v8594_v24 }
 0x2f7   : > { %v5291_v47 = vld [vmem:[#allocation3 + $0x40] sm:$0xff] }
 0x2f8   : > { %5005 = vst.msk [vmem:[#allocation3 + $0x48] sm:$0xff] %vm1285_vm4, %v4973_v44  ;;  %v5323_v50 = vadd.f32 %v5291_v47, %v5223_v8  ;;  %v4245_v51 = vpop.f32.mrf.mxu0  ;;  %v4879_v52 = vpop.f32.mrf.mxu2  ;;  %v8628_v46 = vld [vmem:[#allocation2 + $0x118] sm:$0xff] }
 0x2f9   : > { %v4246_v54 = vadd.f32 %v9784_v37, %v4245_v51  ;;  %v5386_v57 = vld [vmem:[#allocation3 + $0x38] sm:$0xff] }
 0x2fa   : > { %8043 = vmatmul.msk.bf16.gmra.mxu3 %vm1285_vm4, %v8626_v41  ;;  %5355 = vst.msk [vmem:[#allocation3 + $0x40] sm:$0xff] %vm1285_vm4, %v5323_v50  ;;  %v4592_v58 = vld [vmem:[#allocation3 + $0x58] sm:$0xff]  ;;  %v5418_v59 = vpack.c.bf16 %v5386_v57, %v5386_v57 }
 0x2fb   : > { %4307 = vst.msk [vmem:[#allocation3 + $0x60] sm:$0xff] %vm1285_vm4, %v4246_v54  ;;  %v4528_v60 = vpop.f32.mrf.mxu1  ;;  %7801 = vmatmul.msk.bf16.gmra.mxu0 %vm1285_vm4, %v8579_v48  ;;  %v8661_v54 = vld [vmem:[#allocation2 + $0xa0] sm:$0xff] }
 0x2fc   : > { %v4624_v61 = vadd.f32 %v4592_v58, %v4528_v60  ;;  %8053 = vst.msk [vmem:[%s9085_s17 + $0x11c] sm:$0xf] %vm259_vm1, %v5418_v59 }
 0x2fd   : > { %v5228_v62 = vpop.f32.mrf.mxu3  ;;  %v4942_v63 = vld [vmem:[#allocation3 + $0x50] sm:$0xff]  ;;  %7963 = vmatmul.msk.bf16.gmra.mxu2 %vm1285_vm4, %v8611_v55 }
 0x2fe   : > { %v4974_v45 = vadd.f32 %v4942_v63, %v4877_v19  ;;  %4656 = vst.msk [vmem:[#allocation3 + $0x58] sm:$0xff] %vm1285_vm4, %v4624_v61 }
 0x2ff   : > { %v5292_v0 = vld [vmem:[#allocation3 + $0x48] sm:$0xff] }
 0x300   : > { %5006 = vst.msk [vmem:[#allocation3 + $0x50] sm:$0xff] %vm1285_vm4, %v4974_v45  ;;  %v5324_v1 = vadd.f32 %v5292_v0, %v5225_v38  ;;  %v4247_v2 = vpop.f32.mrf.mxu0  ;;  %v4882_v3 = vpop.f32.mrf.mxu2 }
 0x301   : > { %v4248_v4 = vadd.f32 %v9784_v37, %v4247_v2  ;;  %v5387_v5 = vld [vmem:[#allocation3 + $0x40] sm:$0xff] }
 0x302   : > { %5356 = vst.msk [vmem:[#allocation3 + $0x48] sm:$0xff] %vm1285_vm4, %v5324_v1  ;;  %v4593_v6 = vld [vmem:[#allocation3 + $0x60] sm:$0xff]  ;;  %v5419_v8 = vpack.c.bf16 %v5387_v5, %v5387_v5  ;;  %v8645_v5 = vld [vmem:[#allocation2 + $0x128] sm:$0xff] }
 0x303   : > { %4308 = vst.msk [vmem:[#allocation3 + $0x68] sm:$0xff] %vm1285_vm4, %v4248_v4  ;;  %v4531_v9 = vpop.f32.mrf.mxu1 }
 0x304   : > { %v4625_v10 = vadd.f32 %v4593_v6, %v4531_v9  ;;  %8054 = vst.msk [vmem:[%s9085_s17 + $0x120] sm:$0xf] %vm259_vm1, %v5419_v8 }
 0x305   : > { %v5230_v12 = vpop.f32.mrf.mxu3  ;;  %v4943_v13 = vld [vmem:[#allocation3 + $0x58] sm:$0xff] }
 0x306   : > { %v4975_v15 = vadd.f32 %v4943_v13, %v4879_v52  ;;  %4657 = vst.msk [vmem:[#allocation3 + $0x60] sm:$0xff] %vm1285_vm4, %v4625_v10  ;;  %7882 = vmatmul.msk.bf16.gmra.mxu1 %vm1285_vm4, %v8595_v7 }
 0x307   : > { %v5293_v16 = vld [vmem:[#allocation3 + $0x50] sm:$0xff] }
 0x308   : > { %5007 = vst.msk [vmem:[#allocation3 + $0x58] sm:$0xff] %vm1285_vm4, %v4975_v15  ;;  %v5325_v18 = vadd.f32 %v5293_v16, %v5228_v62  ;;  %v4250_v26 = vpop.f32.mrf.mxu0  ;;  %v4884_v19 = vpop.f32.mrf.mxu2  ;;  %v8630_v15 = vld [vmem:[#allocation2 + $0xa0] sm:$0xff] }
 0x309   : > { %v4251_v20 = vadd.f32 %v9784_v37, %v4250_v26  ;;  %v5388_v22 = vld [vmem:[#allocation3 + $0x48] sm:$0xff] }
 0x30a   : > { %8044 = vmatmul.msk.bf16.gmra.mxu3 %vm1285_vm4, %v8627_v14  ;;  %5357 = vst.msk [vmem:[#allocation3 + $0x50] sm:$0xff] %vm1285_vm4, %v5325_v18  ;;  %v4594_v23 = vld [vmem:[#allocation3 + $0x68] sm:$0xff]  ;;  %v5420_v24 = vpack.c.bf16 %v5388_v22, %v5388_v22 }
 0x30b   : > { %4309 = vst.msk [vmem:[#allocation3 + $0x70] sm:$0xff] %vm1285_vm4, %v4251_v20  ;;  %v4533_v25 = vpop.f32.mrf.mxu1  ;;  %7802 = vmatmul.msk.bf16.gmra.mxu0 %vm1285_vm4, %v8580_v17 }
 0x30c   : > { %v4626_v27 = vadd.f32 %v4594_v23, %v4533_v25  ;;  %8055 = vst.msk [vmem:[%s9085_s17 + $0x124] sm:$0xf] %vm259_vm1, %v5420_v24 }
 0x30d   : > { %v5233_v33 = vpop.f32.mrf.mxu3  ;;  %v4944_v28 = vld [vmem:[#allocation3 + $0x60] sm:$0xff]  ;;  %7964 = vmatmul.msk.bf16.gmra.mxu2 %vm1285_vm4, %v8612_v21 }
 0x30e   : > { %v4976_v37 = vadd.f32 %v4944_v28, %v4882_v3  ;;  %4658 = vst.msk [vmem:[#allocation3 + $0x68] sm:$0xff] %vm1285_vm4, %v4626_v27 }
 0x30f   : > { %v5294_v29 = vld [vmem:[#allocation3 + $0x58] sm:$0xff] }
 0x310   : > { %5008 = vst.msk [vmem:[#allocation3 + $0x60] sm:$0xff] %vm1285_vm4, %v4976_v37  ;;  %v5326_v30 = vadd.f32 %v5294_v29, %v5230_v12  ;;  %v4252_v34 = vpop.f32.mrf.mxu0  ;;  %v4887_v31 = vpop.f32.mrf.mxu2  ;;  %v8677_v12 = vld [vmem:[#allocation2 + $0x130] sm:$0xff] }
 0x311   : > { %v4253_v35 = vadd.f32 %v10010_v32, %v4252_v34  ;;  %v5389_v36 = vld [vmem:[#allocation3 + $0x50] sm:$0xff] }
 0x312   : > { %5358 = vst.msk [vmem:[#allocation3 + $0x58] sm:$0xff] %vm1285_vm4, %v5326_v30  ;;  %v4595_v38 = vld [vmem:[#allocation3 + $0x70] sm:$0xff]  ;;  %v5421_v40 = vpack.c.bf16 %v5389_v36, %v5389_v36  ;;  %v8646_v36 = vld [vmem:[#allocation2 + $0x130] sm:$0xff] }
 0x313   : > { %4310 = vst.msk [vmem:[#allocation3 + $0x78] sm:$0xff] %vm1285_vm4, %v4253_v35  ;;  %v4536_v41 = vpop.f32.mrf.mxu1 }
 0x314   : > { %v4627_v42 = vadd.f32 %v4595_v38, %v4536_v41  ;;  %8056 = vst.msk [vmem:[%s9085_s17 + $0x128] sm:$0xf] %vm259_vm1, %v5421_v40 }
 0x315   : > { %v5235_v43 = vpop.f32.mrf.mxu3  ;;  %v4945_v44 = vld [vmem:[#allocation3 + $0x68] sm:$0xff] }
 0x316   : > { %v4977_v47 = vadd.f32 %v4945_v44, %v4884_v19  ;;  %4659 = vst.msk [vmem:[#allocation3 + $0x70] sm:$0xff] %vm1285_vm4, %v4627_v42  ;;  %7883 = vmatmul.msk.bf16.gmra.mxu1 %vm1285_vm4, %v8596_v39  ;;  %v8662_v19 = vld [vmem:[#allocation2 + $0xa8] sm:$0xff] }
 0x317   : > { %v5295_v48 = vld [vmem:[#allocation3 + $0x60] sm:$0xff] }
 0x318   : > { %5009 = vst.msk [vmem:[#allocation3 + $0x68] sm:$0xff] %vm1285_vm4, %v4977_v47  ;;  %v5327_v50 = vadd.f32 %v5295_v48, %v5233_v33  ;;  %v4255_v51 = vpop.f32.mrf.mxu0  ;;  %v4889_v52 = vpop.f32.mrf.mxu2  ;;  %v8631_v47 = vld [vmem:[#allocation2 + $0xa8] sm:$0xff] }
 0x319   : > { %v4256_v53 = vadd.f32 %v10010_v32, %v4255_v51  ;;  %v5390_v55 = vld [vmem:[#allocation3 + $0x58] sm:$0xff] }
 0x31a   : > { %8045 = vmatmul.msk.bf16.gmra.mxu3 %vm1285_vm4, %v8628_v46  ;;  %5359 = vst.msk [vmem:[#allocation3 + $0x60] sm:$0xff] %vm1285_vm4, %v5327_v50  ;;  %v4596_v56 = vld [vmem:[#allocation3 + $0x78] sm:$0xff]  ;;  %v5422_v57 = vpack.c.bf16 %v5390_v55, %v5390_v55 }
 0x31b   : > { %4311 = vst.msk [vmem:[#allocation3 + $0x80] sm:$0xff] %vm1285_vm4, %v4256_v53  ;;  %v4538_v58 = vpop.f32.mrf.mxu1  ;;  %8143 = vmatmul.msk.bf16.vlgmr.msrb.gmra.mxu0 %vm1285_vm4, %v8629_v49 }
 0x31c   : > { %v4628_v59 = vadd.f32 %v4596_v56, %v4538_v58  ;;  %8057 = vst.msk [vmem:[%s9085_s17 + $0x12c] sm:$0xf] %vm259_vm1, %v5422_v57 }
 0x31d   : > { %v5238_v60 = vpop.f32.mrf.mxu3  ;;  %v4946_v61 = vld [vmem:[#allocation3 + $0x70] sm:$0xff]  ;;  %8305 = vmatmul.msk.bf16.vlgmr.msrb.gmra.mxu2 %vm1285_vm4, %v8661_v54 }
 0x31e   : > { %v4978_v62 = vadd.f32 %v4946_v61, %v4887_v31  ;;  %4660 = vst.msk [vmem:[#allocation3 + $0x78] sm:$0xff] %vm1285_vm4, %v4628_v59 }
 0x31f   : > { %v5296_v63 = vld [vmem:[#allocation3 + $0x68] sm:$0xff] }
 0x320   : > { %5010 = vst.msk [vmem:[#allocation3 + $0x70] sm:$0xff] %vm1285_vm4, %v4978_v62  ;;  %v5328_v45 = vadd.f32 %v5296_v63, %v5235_v43  ;;  %v4257_v0 = vpop.f32.mrf.mxu0  ;;  %v4892_v1 = vpop.f32.mrf.mxu2  ;;  %v8678_v43 = vld [vmem:[#allocation2 + $0x138] sm:$0xff] }
 0x321   : > { %v4258_v2 = vadd.f32 %v10010_v32, %v4257_v0  ;;  %v5391_v3 = vld [vmem:[#allocation3 + $0x60] sm:$0xff] }
 0x322   : > { %5360 = vst.msk [vmem:[#allocation3 + $0x68] sm:$0xff] %vm1285_vm4, %v5328_v45  ;;  %v4597_v4 = vld [vmem:[#allocation3 + $0x80] sm:$0xff]  ;;  %v5423_v6 = vpack.c.bf16 %v5391_v3, %v5391_v3  ;;  %v8647_v3 = vld [vmem:[#allocation2 + $0x138] sm:$0xff] }
 0x323   : > { %4312 = vst.msk [vmem:[#allocation3 + $0x88] sm:$0xff] %vm1285_vm4, %v4258_v2  ;;  %v4541_v7 = vpop.f32.mrf.mxu1 }
 0x324   : > { %v4629_v8 = vadd.f32 %v4597_v4, %v4541_v7  ;;  %8058 = vst.msk [vmem:[%s9085_s17 + $0x130] sm:$0xf] %vm259_vm1, %v5423_v6 }
 0x325   : > { %v5240_v9 = vpop.f32.mrf.mxu3  ;;  %v4947_v10 = vld [vmem:[#allocation3 + $0x78] sm:$0xff] }
 0x326   : > { %v4979_v13 = vadd.f32 %v4947_v10, %v4889_v52  ;;  %4661 = vst.msk [vmem:[#allocation3 + $0x80] sm:$0xff] %vm1285_vm4, %v4629_v8  ;;  %8224 = vmatmul.msk.bf16.vlgmr.msrb.gmra.mxu1 %vm1285_vm4, %v8645_v5  ;;  %v8663_v52 = vld [vmem:[#allocation2 + $0xb0] sm:$0xff] }
 0x327   : > { %v5297_v14 = vld [vmem:[#allocation3 + $0x70] sm:$0xff] }
 0x328   : > { %5011 = vst.msk [vmem:[#allocation3 + $0x78] sm:$0xff] %vm1285_vm4, %v4979_v13  ;;  %v5329_v16 = vadd.f32 %v5297_v14, %v5238_v60  ;;  %v4260_v17 = vpop.f32.mrf.mxu0  ;;  %v4894_v18 = vpop.f32.mrf.mxu2  ;;  %v8632_v13 = vld [vmem:[#allocation2 + $0xb0] sm:$0xff] }
 0x329   : > { %v4261_v26 = vadd.f32 %v10010_v32, %v4260_v17  ;;  %v5392_v20 = vld [vmem:[#allocation3 + $0x68] sm:$0xff] }
 0x32a   : > { %8386 = vmatmul.msk.bf16.vlgmr.msrb.gmra.mxu3 %vm1285_vm4, %v8677_v12  ;;  %5361 = vst.msk [vmem:[#allocation3 + $0x70] sm:$0xff] %vm1285_vm4, %v5329_v16  ;;  %v4598_v21 = vld [vmem:[#allocation3 + $0x88] sm:$0xff]  ;;  %v5424_v22 = vpack.c.bf16 %v5392_v20, %v5392_v20 }
 0x32b   : > { %4313 = vst.msk [vmem:[#allocation3 + $0x90] sm:$0xff] %vm1285_vm4, %v4261_v26  ;;  %v4543_v23 = vpop.f32.mrf.mxu1  ;;  %8144 = vmatmul.msk.bf16.gmra.mxu0 %vm1285_vm4, %v8630_v15 }
 0x32c   : > { %v4630_v24 = vadd.f32 %v4598_v21, %v4543_v23  ;;  %8059 = vst.msk [vmem:[%s9085_s17 + $0x134] sm:$0xf] %vm259_vm1, %v5424_v22 }
 0x32d   : > { %v5243_v25 = vpop.f32.mrf.mxu3  ;;  %v4948_v27 = vld [vmem:[#allocation3 + $0x80] sm:$0xff]  ;;  %8306 = vmatmul.msk.bf16.gmra.mxu2 %vm1285_vm4, %v8662_v19 }
 0x32e   : > { %v4980_v33 = vadd.f32 %v4948_v27, %v4892_v1  ;;  %4662 = vst.msk [vmem:[#allocation3 + $0x88] sm:$0xff] %vm1285_vm4, %v4630_v24 }
 0x32f   : > { %v5298_v28 = vld [vmem:[#allocation3 + $0x78] sm:$0xff] }
 0x330   : > { %5012 = vst.msk [vmem:[#allocation3 + $0x80] sm:$0xff] %vm1285_vm4, %v4980_v33  ;;  %v5330_v37 = vadd.f32 %v5298_v28, %v5240_v9  ;;  %v4262_v29 = vpop.f32.mrf.mxu0  ;;  %v4897_v30 = vpop.f32.mrf.mxu2  ;;  %v8679_v9 = vld [vmem:[#allocation2 + $0x140] sm:$0xff] }
 0x331   : > { %v4263_v34 = vadd.f32 %v10010_v32, %v4262_v29  ;;  %v5393_v31 = vld [vmem:[#allocation3 + $0x70] sm:$0xff] }
 0x332   : > { %5362 = vst.msk [vmem:[#allocation3 + $0x78] sm:$0xff] %vm1285_vm4, %v5330_v37  ;;  %v4599_v35 = vld [vmem:[#allocation3 + $0x90] sm:$0xff]  ;;  %v5425_v38 = vpack.c.bf16 %v5393_v31, %v5393_v31 }
 0x333   : > { %4314 = vst.msk [vmem:[#allocation3 + $0x98] sm:$0xff] %vm1285_vm4, %v4263_v34  ;;  %v4546_v39 = vpop.f32.mrf.mxu1  ;;  %v8648_v31 = vld [vmem:[#allocation2 + $0x140] sm:$0xff] }
 0x334   : > { %v4631_v40 = vadd.f32 %v4599_v35, %v4546_v39  ;;  %8060 = vst.msk [vmem:[%s9085_s17 + $0x138] sm:$0xf] %vm259_vm1, %v5425_v38 }
 0x335   : > { %v5245_v41 = vpop.f32.mrf.mxu3  ;;  %v4949_v42 = vld [vmem:[#allocation3 + $0x88] sm:$0xff] }
 0x336   : > { %v4981_v44 = vadd.f32 %v4949_v42, %v4894_v18  ;;  %4663 = vst.msk [vmem:[#allocation3 + $0x90] sm:$0xff] %vm1285_vm4, %v4631_v40  ;;  %8225 = vmatmul.msk.bf16.gmra.mxu1 %vm1285_vm4, %v8646_v36  ;;  %v8664_v18 = vld [vmem:[#allocation2 + $0xb8] sm:$0xff] }
 0x337   : > { %v5299_v46 = vld [vmem:[#allocation3 + $0x80] sm:$0xff] }
 0x338   : > { %5013 = vst.msk [vmem:[#allocation3 + $0x88] sm:$0xff] %vm1285_vm4, %v4981_v44  ;;  %v5331_v48 = vadd.f32 %v5299_v46, %v5243_v25  ;;  %v4265_v49 = vpop.f32.mrf.mxu0  ;;  %v4899_v50 = vpop.f32.mrf.mxu2  ;;  %v8633_v44 = vld [vmem:[#allocation2 + $0xb8] sm:$0xff] }
 0x339   : > { %v4266_v51 = vadd.f32 %v10010_v32, %v4265_v49  ;;  %v5394_v53 = vld [vmem:[#allocation3 + $0x78] sm:$0xff] }
 0x33a   : > { %8387 = vmatmul.msk.bf16.gmra.mxu3 %vm1285_vm4, %v8678_v43  ;;  %5363 = vst.msk [vmem:[#allocation3 + $0x80] sm:$0xff] %vm1285_vm4, %v5331_v48  ;;  %v4600_v54 = vld [vmem:[#allocation3 + $0x98] sm:$0xff]  ;;  %v5426_v55 = vpack.c.bf16 %v5394_v53, %v5394_v53 }
 0x33b   : > { %4315 = vst.msk [vmem:[#allocation3 + $0xa0] sm:$0xff] %vm1285_vm4, %v4266_v51  ;;  %v4548_v56 = vpop.f32.mrf.mxu1  ;;  %8145 = vmatmul.msk.bf16.gmra.mxu0 %vm1285_vm4, %v8631_v47 }
 0x33c   : > { %v4632_v57 = vadd.f32 %v4600_v54, %v4548_v56  ;;  %8061 = vst.msk [vmem:[%s9085_s17 + $0x13c] sm:$0xf] %vm259_vm1, %v5426_v55 }
 0x33d   : > { %v5248_v58 = vpop.f32.mrf.mxu3  ;;  %v4950_v59 = vld [vmem:[#allocation3 + $0x90] sm:$0xff]  ;;  %8307 = vmatmul.msk.bf16.gmra.mxu2 %vm1285_vm4, %v8663_v52 }
 0x33e   : > { %v4982_v60 = vadd.f32 %v4950_v59, %v4897_v30  ;;  %4664 = vst.msk [vmem:[#allocation3 + $0x98] sm:$0xff] %vm1285_vm4, %v4632_v57 }
 0x33f   : > { %v5300_v61 = vld [vmem:[#allocation3 + $0x88] sm:$0xff] }
 0x340   : > { %5014 = vst.msk [vmem:[#allocation3 + $0x90] sm:$0xff] %vm1285_vm4, %v4982_v60  ;;  %v5332_v62 = vadd.f32 %v5300_v61, %v5245_v41  ;;  %v4267_v63 = vpop.f32.mrf.mxu0  ;;  %v4902_v45 = vpop.f32.mrf.mxu2  ;;  %v8680_v41 = vld [vmem:[#allocation2 + $0x148] sm:$0xff] }
 0x341   : > { %v4268_v0 = vadd.f32 %v10010_v32, %v4267_v63  ;;  %v5395_v1 = vld [vmem:[#allocation3 + $0x80] sm:$0xff] }
 0x342   : > { %5364 = vst.msk [vmem:[#allocation3 + $0x88] sm:$0xff] %vm1285_vm4, %v5332_v62  ;;  %v4601_v2 = vld [vmem:[#allocation3 + $0xa0] sm:$0xff]  ;;  %v5427_v4 = vpack.c.bf16 %v5395_v1, %v5395_v1  ;;  %v8649_v1 = vld [vmem:[#allocation2 + $0x148] sm:$0xff] }
 0x343   : > { %4316 = vst.msk [vmem:[#allocation3 + $0xa8] sm:$0xff] %vm1285_vm4, %v4268_v0  ;;  %v4551_v5 = vpop.f32.mrf.mxu1 }
 0x344   : > { %v4633_v6 = vadd.f32 %v4601_v2, %v4551_v5  ;;  %8062 = vst.msk [vmem:[%s9085_s17 + $0x140] sm:$0xf] %vm259_vm1, %v5427_v4 }
 0x345   : > { %v5250_v7 = vpop.f32.mrf.mxu3  ;;  %v4951_v8 = vld [vmem:[#allocation3 + $0x98] sm:$0xff] }
 0x346   : > { %v4983_v10 = vadd.f32 %v4951_v8, %v4899_v50  ;;  %4665 = vst.msk [vmem:[#allocation3 + $0xa0] sm:$0xff] %vm1285_vm4, %v4633_v6  ;;  %8226 = vmatmul.msk.bf16.gmra.mxu1 %vm1285_vm4, %v8647_v3  ;;  %v8665_v50 = vld [vmem:[#allocation2 + $0xc0] sm:$0xff] }
 0x347   : > { %v5301_v12 = vld [vmem:[#allocation3 + $0x90] sm:$0xff] }
 0x348   : > { %5015 = vst.msk [vmem:[#allocation3 + $0x98] sm:$0xff] %vm1285_vm4, %v4983_v10  ;;  %v5333_v14 = vadd.f32 %v5301_v12, %v5248_v58  ;;  %v4270_v15 = vpop.f32.mrf.mxu0  ;;  %v4904_v16 = vpop.f32.mrf.mxu2  ;;  %v8634_v10 = vld [vmem:[#allocation2 + $0xc0] sm:$0xff] }
 0x349   : > { %v4271_v17 = vadd.f32 %v10010_v32, %v4270_v15  ;;  %v5396_v26 = vld [vmem:[#allocation3 + $0x88] sm:$0xff] }
 0x34a   : > { %8388 = vmatmul.msk.bf16.gmra.mxu3 %vm1285_vm4, %v8679_v9  ;;  %5365 = vst.msk [vmem:[#allocation3 + $0x90] sm:$0xff] %vm1285_vm4, %v5333_v14  ;;  %v4602_v19 = vld [vmem:[#allocation3 + $0xa8] sm:$0xff]  ;;  %v5428_v20 = vpack.c.bf16 %v5396_v26, %v5396_v26 }
 0x34b   : > { %4317 = vst.msk [vmem:[#allocation3 + $0xb0] sm:$0xff] %vm1285_vm4, %v4271_v17  ;;  %v4553_v21 = vpop.f32.mrf.mxu1  ;;  %8146 = vmatmul.msk.bf16.gmra.mxu0 %vm1285_vm4, %v8632_v13 }
 0x34c   : > { %v4634_v22 = vadd.f32 %v4602_v19, %v4553_v21  ;;  %8063 = vst.msk [vmem:[%s9085_s17 + $0x144] sm:$0xf] %vm259_vm1, %v5428_v20 }
 0x34d   : > { %v5253_v23 = vpop.f32.mrf.mxu3  ;;  %v4952_v24 = vld [vmem:[#allocation3 + $0xa0] sm:$0xff]  ;;  %8308 = vmatmul.msk.bf16.gmra.mxu2 %vm1285_vm4, %v8664_v18 }
 0x34e   : > { %v4984_v25 = vadd.f32 %v4952_v24, %v4902_v45  ;;  %4666 = vst.msk [vmem:[#allocation3 + $0xa8] sm:$0xff] %vm1285_vm4, %v4634_v22 }
 0x34f   : > { %v5302_v27 = vld [vmem:[#allocation3 + $0x98] sm:$0xff] }
 0x350   : > { %5016 = vst.msk [vmem:[#allocation3 + $0xa0] sm:$0xff] %vm1285_vm4, %v4984_v25  ;;  %v5334_v33 = vadd.f32 %v5302_v27, %v5250_v7  ;;  %v4272_v28 = vpop.f32.mrf.mxu0  ;;  %v4907_v37 = vpop.f32.mrf.mxu2  ;;  %v8681_v7 = vld [vmem:[#allocation2 + $0x150] sm:$0xff] }
 0x351   : > { %v4273_v29 = vadd.f32 %v10010_v32, %v4272_v28  ;;  %v5397_v30 = vld [vmem:[#allocation3 + $0x90] sm:$0xff] }
 0x352   : > { %5366 = vst.msk [vmem:[#allocation3 + $0x98] sm:$0xff] %vm1285_vm4, %v5334_v33  ;;  %v4603_v34 = vld [vmem:[#allocation3 + $0xb0] sm:$0xff]  ;;  %v5429_v35 = vpack.c.bf16 %v5397_v30, %v5397_v30  ;;  %v8650_v30 = vld [vmem:[#allocation2 + $0x150] sm:$0xff] }
 0x353   : > { %4318 = vst.msk [vmem:[#allocation3 + $0xb8] sm:$0xff] %vm1285_vm4, %v4273_v29  ;;  %v4556_v36 = vpop.f32.mrf.mxu1 }
 0x354   : > { %v4635_v38 = vadd.f32 %v4603_v34, %v4556_v36  ;;  %8064 = vst.msk [vmem:[%s9085_s17 + $0x148] sm:$0xf] %vm259_vm1, %v5429_v35 }
 0x355   : > { %v5255_v39 = vpop.f32.mrf.mxu3  ;;  %v4953_v40 = vld [vmem:[#allocation3 + $0xa8] sm:$0xff] }
 0x356   : > { %v4985_v42 = vadd.f32 %v4953_v40, %v4904_v16  ;;  %4667 = vst.msk [vmem:[#allocation3 + $0xb0] sm:$0xff] %vm1285_vm4, %v4635_v38  ;;  %8227 = vmatmul.msk.bf16.gmra.mxu1 %vm1285_vm4, %v8648_v31  ;;  %v8666_v16 = vld [vmem:[#allocation2 + $0xc8] sm:$0xff] }
 0x357   : > { %v5303_v43 = vld [vmem:[#allocation3 + $0xa0] sm:$0xff] }
 0x358   : > { %5017 = vst.msk [vmem:[#allocation3 + $0xa8] sm:$0xff] %vm1285_vm4, %v4985_v42  ;;  %v5335_v46 = vadd.f32 %v5303_v43, %v5253_v23  ;;  %v4275_v47 = vpop.f32.mrf.mxu0  ;;  %v4909_v48 = vpop.f32.mrf.mxu2  ;;  %v8635_v42 = vld [vmem:[#allocation2 + $0xc8] sm:$0xff] }
 0x359   : > { %v4276_v49 = vadd.f32 %v10010_v32, %v4275_v47  ;;  %v5398_v51 = vld [vmem:[#allocation3 + $0x98] sm:$0xff] }
 0x35a   : > { %8389 = vmatmul.msk.bf16.gmra.mxu3 %vm1285_vm4, %v8680_v41  ;;  %5367 = vst.msk [vmem:[#allocation3 + $0xa0] sm:$0xff] %vm1285_vm4, %v5335_v46  ;;  %v4604_v52 = vld [vmem:[#allocation3 + $0xb8] sm:$0xff]  ;;  %v5430_v53 = vpack.c.bf16 %v5398_v51, %v5398_v51 }
 0x35b   : > { %4319 = vst.msk [vmem:[#allocation3 + $0xc0] sm:$0xff] %vm1285_vm4, %v4276_v49  ;;  %v4558_v54 = vpop.f32.mrf.mxu1  ;;  %8147 = vmatmul.msk.bf16.gmra.mxu0 %vm1285_vm4, %v8633_v44 }
 0x35c   : > { %v4636_v55 = vadd.f32 %v4604_v52, %v4558_v54  ;;  %8065 = vst.msk [vmem:[%s9085_s17 + $0x14c] sm:$0xf] %vm259_vm1, %v5430_v53 }
 0x35d   : > { %v5258_v56 = vpop.f32.mrf.mxu3  ;;  %v4954_v57 = vld [vmem:[#allocation3 + $0xb0] sm:$0xff]  ;;  %8309 = vmatmul.msk.bf16.gmra.mxu2 %vm1285_vm4, %v8665_v50 }
 0x35e   : > { %v4986_v58 = vadd.f32 %v4954_v57, %v4907_v37  ;;  %4668 = vst.msk [vmem:[#allocation3 + $0xb8] sm:$0xff] %vm1285_vm4, %v4636_v55 }
 0x35f   : > { %v5304_v59 = vld [vmem:[#allocation3 + $0xa8] sm:$0xff] }
 0x360   : > { %5018 = vst.msk [vmem:[#allocation3 + $0xb0] sm:$0xff] %vm1285_vm4, %v4986_v58  ;;  %v5336_v60 = vadd.f32 %v5304_v59, %v5255_v39  ;;  %v4277_v61 = vpop.f32.mrf.mxu0  ;;  %v4912_v62 = vpop.f32.mrf.mxu2  ;;  %v8682_v39 = vld [vmem:[#allocation2 + $0x158] sm:$0xff] }
 0x361   : > { %v4278_v63 = vadd.f32 %v10010_v32, %v4277_v61  ;;  %v5399_v45 = vld [vmem:[#allocation3 + $0xa0] sm:$0xff] }
 0x362   : > { %5368 = vst.msk [vmem:[#allocation3 + $0xa8] sm:$0xff] %vm1285_vm4, %v5336_v60  ;;  %v4605_v0 = vld [vmem:[#allocation3 + $0xc0] sm:$0xff]  ;;  %v5431_v2 = vpack.c.bf16 %v5399_v45, %v5399_v45  ;;  %v8651_v45 = vld [vmem:[#allocation2 + $0x158] sm:$0xff] }
 0x363   : > { %4320 = vst.msk [vmem:[#allocation3 + $0xc8] sm:$0xff] %vm1285_vm4, %v4278_v63  ;;  %v4561_v3 = vpop.f32.mrf.mxu1 }
 0x364   : > { %v4637_v4 = vadd.f32 %v4605_v0, %v4561_v3  ;;  %8066 = vst.msk [vmem:[%s9085_s17 + $0x150] sm:$0xf] %vm259_vm1, %v5431_v2 }
 0x365   : > { %v5260_v5 = vpop.f32.mrf.mxu3  ;;  %v4955_v6 = vld [vmem:[#allocation3 + $0xb8] sm:$0xff] }
 0x366   : > { %v4987_v8 = vadd.f32 %v4955_v6, %v4909_v48  ;;  %4669 = vst.msk [vmem:[#allocation3 + $0xc0] sm:$0xff] %vm1285_vm4, %v4637_v4  ;;  %8228 = vmatmul.msk.bf16.gmra.mxu1 %vm1285_vm4, %v8649_v1  ;;  %v8667_v48 = vld [vmem:[#allocation2 + $0xd0] sm:$0xff] }
 0x367   : > { %v5305_v9 = vld [vmem:[#allocation3 + $0xb0] sm:$0xff] }
 0x368   : > { %5019 = vst.msk [vmem:[#allocation3 + $0xb8] sm:$0xff] %vm1285_vm4, %v4987_v8  ;;  %v5337_v12 = vadd.f32 %v5305_v9, %v5258_v56  ;;  %v4280_v13 = vpop.f32.mrf.mxu0  ;;  %v4914_v14 = vpop.f32.mrf.mxu2  ;;  %v8636_v8 = vld [vmem:[#allocation2 + $0xd0] sm:$0xff] }
 0x369   : > { %v4281_v15 = vadd.f32 %v10010_v32, %v4280_v13  ;;  %v5400_v17 = vld [vmem:[#allocation3 + $0xa8] sm:$0xff] }
 0x36a   : > { %8390 = vmatmul.msk.bf16.gmra.mxu3 %vm1285_vm4, %v8681_v7  ;;  %5369 = vst.msk [vmem:[#allocation3 + $0xb0] sm:$0xff] %vm1285_vm4, %v5337_v12  ;;  %v4606_v18 = vld [vmem:[#allocation3 + $0xc8] sm:$0xff]  ;;  %v5432_v26 = vpack.c.bf16 %v5400_v17, %v5400_v17 }
 0x36b   : > { %4321 = vst.msk [vmem:[#allocation3 + $0xd0] sm:$0xff] %vm1285_vm4, %v4281_v15  ;;  %v4563_v19 = vpop.f32.mrf.mxu1  ;;  %8148 = vmatmul.msk.bf16.gmra.mxu0 %vm1285_vm4, %v8634_v10 }
 0x36c   : > { %v4638_v20 = vadd.f32 %v4606_v18, %v4563_v19  ;;  %8067 = vst.msk [vmem:[%s9085_s17 + $0x154] sm:$0xf] %vm259_vm1, %v5432_v26 }
 0x36d   : > { %v5263_v21 = vpop.f32.mrf.mxu3  ;;  %v4956_v22 = vld [vmem:[#allocation3 + $0xc0] sm:$0xff]  ;;  %8310 = vmatmul.msk.bf16.gmra.mxu2 %vm1285_vm4, %v8666_v16 }
 0x36e   : > { %v4988_v23 = vadd.f32 %v4956_v22, %v4912_v62  ;;  %4670 = vst.msk [vmem:[#allocation3 + $0xc8] sm:$0xff] %vm1285_vm4, %v4638_v20 }
 0x36f   : > { %v5306_v24 = vld [vmem:[#allocation3 + $0xb8] sm:$0xff] }
 0x370   : > { %5020 = vst.msk [vmem:[#allocation3 + $0xc0] sm:$0xff] %vm1285_vm4, %v4988_v23  ;;  %v5338_v25 = vadd.f32 %v5306_v24, %v5260_v5  ;;  %v4282_v27 = vpop.f32.mrf.mxu0  ;;  %v4917_v33 = vpop.f32.mrf.mxu2  ;;  %v8683_v5 = vld [vmem:[#allocation2 + $0x160] sm:$0xff] }
 0x371   : > { %v4283_v28 = vadd.f32 %v10010_v32, %v4282_v27  ;;  %v5401_v37 = vld [vmem:[#allocation3 + $0xb0] sm:$0xff] }
 0x372   : > { %5370 = vst.msk [vmem:[#allocation3 + $0xb8] sm:$0xff] %vm1285_vm4, %v5338_v25  ;;  %v4607_v29 = vld [vmem:[#allocation3 + $0xd0] sm:$0xff]  ;;  %v5433_v34 = vpack.c.bf16 %v5401_v37, %v5401_v37 }
 0x373   : > { %4322 = vst.msk [vmem:[#allocation3 + $0xd8] sm:$0xff] %vm1285_vm4, %v4283_v28  ;;  %v4566_v31 = vpop.f32.mrf.mxu1  ;;  %v8652_v37 = vld [vmem:[#allocation2 + $0x160] sm:$0xff] }
 0x374   : > { %v4639_v35 = vadd.f32 %v4607_v29, %v4566_v31  ;;  %8068 = vst.msk [vmem:[%s9085_s17 + $0x158] sm:$0xf] %vm259_vm1, %v5433_v34 }
 0x375   : > { %v5265_v36 = vpop.f32.mrf.mxu3  ;;  %v4957_v38 = vld [vmem:[#allocation3 + $0xc8] sm:$0xff] }
 0x376   : > { %v4989_v40 = vadd.f32 %v4957_v38, %v4914_v14  ;;  %4671 = vst.msk [vmem:[#allocation3 + $0xd0] sm:$0xff] %vm1285_vm4, %v4639_v35  ;;  %8229 = vmatmul.msk.bf16.gmra.mxu1 %vm1285_vm4, %v8650_v30  ;;  %v8668_v14 = vld [vmem:[#allocation2 + $0xd8] sm:$0xff] }
 0x377   : > { %v5307_v41 = vld [vmem:[#allocation3 + $0xc0] sm:$0xff] }
 0x378   : > { %5021 = vst.msk [vmem:[#allocation3 + $0xc8] sm:$0xff] %vm1285_vm4, %v4989_v40  ;;  %v5339_v43 = vadd.f32 %v5307_v41, %v5263_v21  ;;  %v4285_v44 = vpop.f32.mrf.mxu0  ;;  %v4919_v46 = vpop.f32.mrf.mxu2  ;;  %v8637_v40 = vld [vmem:[#allocation2 + $0xd8] sm:$0xff] }
 0x379   : > { %v4286_v47 = vadd.f32 %v10010_v32, %v4285_v44  ;;  %v5402_v49 = vld [vmem:[#allocation3 + $0xb8] sm:$0xff] }
 0x37a   : > { %8391 = vmatmul.msk.bf16.gmra.mxu3 %vm1285_vm4, %v8682_v39  ;;  %5371 = vst.msk [vmem:[#allocation3 + $0xc0] sm:$0xff] %vm1285_vm4, %v5339_v43  ;;  %v4608_v50 = vld [vmem:[#allocation3 + $0xd8] sm:$0xff]  ;;  %v5434_v51 = vpack.c.bf16 %v5402_v49, %v5402_v49 }
 0x37b   : > { %4323 = vst.msk [vmem:[#allocation3 + $0xe0] sm:$0xff] %vm1285_vm4, %v4286_v47  ;;  %v4568_v52 = vpop.f32.mrf.mxu1  ;;  %8149 = vmatmul.msk.bf16.gmra.mxu0 %vm1285_vm4, %v8635_v42 }
 0x37c   : > { %v4640_v53 = vadd.f32 %v4608_v50, %v4568_v52  ;;  %8069 = vst.msk [vmem:[%s9085_s17 + $0x15c] sm:$0xf] %vm259_vm1, %v5434_v51 }
 0x37d   : > { %v5268_v54 = vpop.f32.mrf.mxu3  ;;  %v4958_v55 = vld [vmem:[#allocation3 + $0xd0] sm:$0xff]  ;;  %8311 = vmatmul.msk.bf16.gmra.mxu2 %vm1285_vm4, %v8667_v48 }
 0x37e   : > { %v4990_v56 = vadd.f32 %v4958_v55, %v4917_v33  ;;  %4672 = vst.msk [vmem:[#allocation3 + $0xd8] sm:$0xff] %vm1285_vm4, %v4640_v53 }
 0x37f   : > { %v5308_v57 = vld [vmem:[#allocation3 + $0xc8] sm:$0xff] }
 0x380   : > { %5022 = vst.msk [vmem:[#allocation3 + $0xd0] sm:$0xff] %vm1285_vm4, %v4990_v56  ;;  %v5340_v58 = vadd.f32 %v5308_v57, %v5265_v36  ;;  %v4287_v59 = vpop.f32.mrf.mxu0  ;;  %v4922_v60 = vpop.f32.mrf.mxu2  ;;  %v8684_v36 = vld [vmem:[#allocation2 + $0x168] sm:$0xff] }
 0x381   : > { %v4288_v61 = vadd.f32 %v10010_v32, %v4287_v59  ;;  %v5403_v62 = vld [vmem:[#allocation3 + $0xc0] sm:$0xff] }
 0x382   : > { %5372 = vst.msk [vmem:[#allocation3 + $0xc8] sm:$0xff] %vm1285_vm4, %v5340_v58  ;;  %v4609_v63 = vld [vmem:[#allocation3 + $0xe0] sm:$0xff]  ;;  %v5435_v0 = vpack.c.bf16 %v5403_v62, %v5403_v62  ;;  %v8653_v62 = vld [vmem:[#allocation2 + $0x168] sm:$0xff] }
 0x383   : > { %4324 = vst.msk [vmem:[#allocation3 + $0xe8] sm:$0xff] %vm1285_vm4, %v4288_v61  ;;  %v4571_v1 = vpop.f32.mrf.mxu1 }
 0x384   : > { %v4641_v2 = vadd.f32 %v4609_v63, %v4571_v1  ;;  %8070 = vst.msk [vmem:[%s9085_s17 + $0x160] sm:$0xf] %vm259_vm1, %v5435_v0 }
 0x385   : > { %v5270_v3 = vpop.f32.mrf.mxu3  ;;  %v4959_v4 = vld [vmem:[#allocation3 + $0xd8] sm:$0xff] }
 0x386   : > { %v4991_v6 = vadd.f32 %v4959_v4, %v4919_v46  ;;  %4673 = vst.msk [vmem:[#allocation3 + $0xe0] sm:$0xff] %vm1285_vm4, %v4641_v2  ;;  %8230 = vmatmul.msk.bf16.gmra.mxu1 %vm1285_vm4, %v8651_v45  ;;  %v8669_v46 = vld [vmem:[#allocation2 + $0xe0] sm:$0xff] }
 0x387   : > { %v5309_v7 = vld [vmem:[#allocation3 + $0xd0] sm:$0xff] }
 0x388   : > { %5023 = vst.msk [vmem:[#allocation3 + $0xd8] sm:$0xff] %vm1285_vm4, %v4991_v6  ;;  %v5341_v9 = vadd.f32 %v5309_v7, %v5268_v54  ;;  %v4290_v10 = vpop.f32.mrf.mxu0  ;;  %v4924_v12 = vpop.f32.mrf.mxu2  ;;  %v8638_v6 = vld [vmem:[#allocation2 + $0xe0] sm:$0xff] }
 0x389   : > { %v4291_v13 = vadd.f32 %v10010_v32, %v4290_v10  ;;  %v5404_v15 = vld [vmem:[#allocation3 + $0xc8] sm:$0xff] }
 0x38a   : > { %8392 = vmatmul.msk.bf16.gmra.mxu3 %vm1285_vm4, %v8683_v5  ;;  %5373 = vst.msk [vmem:[#allocation3 + $0xd0] sm:$0xff] %vm1285_vm4, %v5341_v9  ;;  %v4610_v16 = vld [vmem:[#allocation3 + $0xe8] sm:$0xff]  ;;  %v5436_v17 = vpack.c.bf16 %v5404_v15, %v5404_v15 }
 0x38b   : > { %4325 = vst.msk [vmem:[#allocation3 + $0xf0] sm:$0xff] %vm1285_vm4, %v4291_v13  ;;  %v4573_v18 = vpop.f32.mrf.mxu1  ;;  %8150 = vmatmul.msk.bf16.gmra.mxu0 %vm1285_vm4, %v8636_v8 }
 0x38c   : > { %v4642_v26 = vadd.f32 %v4610_v16, %v4573_v18  ;;  %8071 = vst.msk [vmem:[%s9085_s17 + $0x164] sm:$0xf] %vm259_vm1, %v5436_v17 }
 0x38d   : > { %v5273_v19 = vpop.f32.mrf.mxu3  ;;  %v4960_v20 = vld [vmem:[#allocation3 + $0xe0] sm:$0xff]  ;;  %8312 = vmatmul.msk.bf16.gmra.mxu2 %vm1285_vm4, %v8668_v14 }
 0x38e   : > { %v4992_v21 = vadd.f32 %v4960_v20, %v4922_v60  ;;  %4674 = vst.msk [vmem:[#allocation3 + $0xe8] sm:$0xff] %vm1285_vm4, %v4642_v26 }
 0x38f   : > { %v5310_v22 = vld [vmem:[#allocation3 + $0xd8] sm:$0xff] }
 0x390   : > { %5024 = vst.msk [vmem:[#allocation3 + $0xe0] sm:$0xff] %vm1285_vm4, %v4992_v21  ;;  %v5342_v23 = vadd.f32 %v5310_v22, %v5270_v3  ;;  %v4292_v24 = vpop.f32.mrf.mxu0  ;;  %v4927_v25 = vpop.f32.mrf.mxu2  ;;  %v8685_v3 = vld [vmem:[#allocation2 + $0x170] sm:$0xff] }
 0x391   : > { %v4293_v27 = vadd.f32 %v10010_v32, %v4292_v24  ;;  %v5405_v33 = vld [vmem:[#allocation3 + $0xd0] sm:$0xff] }
 0x392   : > { %5374 = vst.msk [vmem:[#allocation3 + $0xd8] sm:$0xff] %vm1285_vm4, %v5342_v23  ;;  %v4611_v28 = vld [vmem:[#allocation3 + $0xf0] sm:$0xff]  ;;  %v5437_v29 = vpack.c.bf16 %v5405_v33, %v5405_v33  ;;  %v8654_v33 = vld [vmem:[#allocation2 + $0x170] sm:$0xff] }
 0x393   : > { %4326 = vst.msk [vmem:[#allocation3 + $0xf8] sm:$0xff] %vm1285_vm4, %v4293_v27  ;;  %v4576_v30 = vpop.f32.mrf.mxu1 }
 0x394   : > { %v4643_v34 = vadd.f32 %v4611_v28, %v4576_v30  ;;  %8072 = vst.msk [vmem:[%s9085_s17 + $0x168] sm:$0xf] %vm259_vm1, %v5437_v29 }
 0x395   : > { %v5275_v31 = vpop.f32.mrf.mxu3  ;;  %v4961_v35 = vld [vmem:[#allocation3 + $0xe8] sm:$0xff] }
 0x396   : > { %v4993_v38 = vadd.f32 %v4961_v35, %v4924_v12  ;;  %4675 = vst.msk [vmem:[#allocation3 + $0xf0] sm:$0xff] %vm1285_vm4, %v4643_v34  ;;  %8231 = vmatmul.msk.bf16.gmra.mxu1 %vm1285_vm4, %v8652_v37  ;;  %v8670_v12 = vld [vmem:[#allocation2 + $0xe8] sm:$0xff] }
 0x397   : > { %v5311_v39 = vld [vmem:[#allocation3 + $0xe0] sm:$0xff] }
 0x398   : > { %5025 = vst.msk [vmem:[#allocation3 + $0xe8] sm:$0xff] %vm1285_vm4, %v4993_v38  ;;  %v5343_v41 = vadd.f32 %v5311_v39, %v5273_v19  ;;  %v5650_v42 = vpop.f32.mrf.mxu0  ;;  %v4929_v43 = vpop.f32.mrf.mxu2  ;;  %v8639_v38 = vld [vmem:[#allocation2 + $0xe8] sm:$0xff] }
 0x399   : > { %v5651_v44 = vadd.f32 %v10010_v32, %v5650_v42  ;;  %v5406_v47 = vld [vmem:[#allocation3 + $0xd8] sm:$0xff] }
 0x39a   : > { %8393 = vmatmul.msk.bf16.gmra.mxu3 %vm1285_vm4, %v8684_v36  ;;  %5375 = vst.msk [vmem:[#allocation3 + $0xe0] sm:$0xff] %vm1285_vm4, %v5343_v41  ;;  %v4612_v48 = vld [vmem:[#allocation3 + $0xf8] sm:$0xff]  ;;  %v5438_v49 = vpack.c.bf16 %v5406_v47, %v5406_v47 }
 0x39b   : > { %5730 = vst.msk [vmem:[#allocation3] sm:$0xff] %vm1285_vm4, %v5651_v44  ;;  %v4578_v50 = vpop.f32.mrf.mxu1  ;;  %8151 = vmatmul.msk.bf16.gmra.mxu0 %vm1285_vm4, %v8637_v40 }
 0x39c   : > { %v4644_v51 = vadd.f32 %v4612_v48, %v4578_v50  ;;  %8073 = vst.msk [vmem:[%s9085_s17 + $0x16c] sm:$0xf] %vm259_vm1, %v5438_v49 }
 0x39d   : > { %v5278_v52 = vpop.f32.mrf.mxu3  ;;  %v4962_v53 = vld [vmem:[#allocation3 + $0xf0] sm:$0xff]  ;;  %8313 = vmatmul.msk.bf16.gmra.mxu2 %vm1285_vm4, %v8669_v46 }
 0x39e   : > { %v4994_v54 = vadd.f32 %v4962_v53, %v4927_v25  ;;  %4676 = vst.msk [vmem:[#allocation3 + $0xf8] sm:$0xff] %vm1285_vm4, %v4644_v51 }
 0x39f   : > { %v5312_v55 = vld [vmem:[#allocation3 + $0xe8] sm:$0xff] }
 0x3a0   : > { %5026 = vst.msk [vmem:[#allocation3 + $0xf0] sm:$0xff] %vm1285_vm4, %v4994_v54  ;;  %v5344_v56 = vadd.f32 %v5312_v55, %v5275_v31  ;;  %v5652_v57 = vpop.f32.mrf.mxu0  ;;  %v6286_v58 = vpop.f32.mrf.mxu2  ;;  %v8686_v31 = vld [vmem:[#allocation2 + $0x178] sm:$0xff] }
 0x3a1   : > { %v5653_v59 = vadd.f32 %v10010_v32, %v5652_v57  ;;  %v5407_v60 = vld [vmem:[#allocation3 + $0xe0] sm:$0xff] }
 0x3a2   : > { %5376 = vst.msk [vmem:[#allocation3 + $0xe8] sm:$0xff] %vm1285_vm4, %v5344_v56  ;;  %v6016_v61 = vld [vmem:[#allocation3] sm:$0xff]  ;;  %v5439_v63 = vpack.c.bf16 %v5407_v60, %v5407_v60 }
 0x3a3   : > { %5731 = vst.msk [vmem:[#allocation3 + $0x8] sm:$0xff] %vm1285_vm4, %v5653_v59  ;;  %v5936_v45 = vpop.f32.mrf.mxu1 }
 0x3a4   : > { %v6048_v0 = vadd.f32 %v6016_v61, %v5936_v45  ;;  %8074 = vst.msk [vmem:[%s9085_s17 + $0x170] sm:$0xf] %vm259_vm1, %v5439_v63  ;;  %v8655_v61 = vld [vmem:[#allocation2 + $0x178] sm:$0xff] }
 0x3a5   : > { %v5280_v1 = vpop.f32.mrf.mxu3  ;;  %v4963_v2 = vld [vmem:[#allocation3 + $0xf8] sm:$0xff] }
 0x3a6   : > { %v4995_v4 = vadd.f32 %v4963_v2, %v4929_v43  ;;  %6080 = vst.msk [vmem:[#allocation3] sm:$0xff] %vm1285_vm4, %v6048_v0  ;;  %8232 = vmatmul.msk.bf16.gmra.mxu1 %vm1285_vm4, %v8653_v62  ;;  %v8671_v43 = vld [vmem:[#allocation2 + $0xf0] sm:$0xff] }
 0x3a7   : > { %v5313_v5 = vld [vmem:[#allocation3 + $0xf0] sm:$0xff] }
 0x3a8   : > { %5027 = vst.msk [vmem:[#allocation3 + $0xf8] sm:$0xff] %vm1285_vm4, %v4995_v4  ;;  %v5345_v7 = vadd.f32 %v5313_v5, %v5278_v52  ;;  %v5655_v8 = vpop.f32.mrf.mxu0  ;;  %v6288_v9 = vpop.f32.mrf.mxu2  ;;  %v8640_v4 = vld [vmem:[#allocation2 + $0xf0] sm:$0xff] }
 0x3a9   : > { %v5656_v10 = vadd.f32 %v10010_v32, %v5655_v8  ;;  %v5408_v13 = vld [vmem:[#allocation3 + $0xe8] sm:$0xff] }
 0x3aa   : > { %8394 = vmatmul.msk.bf16.gmra.mxu3 %vm1285_vm4, %v8685_v3  ;;  %5377 = vst.msk [vmem:[#allocation3 + $0xf0] sm:$0xff] %vm1285_vm4, %v5345_v7  ;;  %v6017_v14 = vld [vmem:[#allocation3 + $0x8] sm:$0xff]  ;;  %v5440_v15 = vpack.c.bf16 %v5408_v13, %v5408_v13 }
 0x3ab   : > { %5732 = vst.msk [vmem:[#allocation3 + $0x10] sm:$0xff] %vm1285_vm4, %v5656_v10  ;;  %v5938_v16 = vpop.f32.mrf.mxu1  ;;  %8152 = vmatmul.msk.bf16.gmra.mxu0 %vm1285_vm4, %v8638_v6  ;;  %v8672_v10 = vld [vmem:[#allocation2 + $0xf8] sm:$0xff] }
 0x3ac   : > { %v6049_v17 = vadd.f32 %v6017_v14, %v5938_v16  ;;  %8075 = vst.msk [vmem:[%s9085_s17 + $0x174] sm:$0xf] %vm259_vm1, %v5440_v15 }
 0x3ad   : > { %v6637_v18 = vpop.f32.mrf.mxu3  ;;  %v6366_v26 = vld [vmem:[#allocation3] sm:$0xff]  ;;  %8314 = vmatmul.msk.bf16.gmra.mxu2 %vm1285_vm4, %v8670_v12 }
 0x3ae   : > { %v6398_v19 = vadd.f32 %v6366_v26, %v6286_v58  ;;  %6081 = vst.msk [vmem:[#allocation3 + $0x8] sm:$0xff] %vm1285_vm4, %v6049_v17 }
 0x3af   : > { %v5314_v20 = vld [vmem:[#allocation3 + $0xf8] sm:$0xff] }
 0x3b0   : > { %6430 = vst.msk [vmem:[#allocation3] sm:$0xff] %vm1285_vm4, %v6398_v19  ;;  %v5346_v21 = vadd.f32 %v5314_v20, %v5280_v1  ;;  %v5657_v22 = vpop.f32.mrf.mxu0  ;;  %v6291_v23 = vpop.f32.mrf.mxu2  ;;  %v8687_v1 = vld [vmem:[#allocation2 + $0x180] sm:$0xff] }
 0x3b1   : > { %v5658_v24 = vadd.f32 %v10010_v32, %v5657_v22  ;;  %v5409_v25 = vld [vmem:[#allocation3 + $0xf0] sm:$0xff] }
 0x3b2   : > { %5378 = vst.msk [vmem:[#allocation3 + $0xf8] sm:$0xff] %vm1285_vm4, %v5346_v21  ;;  %v6018_v27 = vld [vmem:[#allocation3 + $0x10] sm:$0xff]  ;;  %v5441_v28 = vpack.c.bf16 %v5409_v25, %v5409_v25 }
 0x3b3   : > { %5733 = vst.msk [vmem:[#allocation3 + $0x18] sm:$0xff] %vm1285_vm4, %v5658_v24  ;;  %v5941_v37 = vpop.f32.mrf.mxu1  ;;  %v10231_v22 = vld [vmem:[%s10463_s2] ss:$0 sm:$0xff] }
 0x3b4   : > { %v6050_v29 = vadd.f32 %v6018_v27, %v5941_v37  ;;  %8076 = vst.msk [vmem:[%s9085_s17 + $0x178] sm:$0xf] %vm259_vm1, %v5441_v28  ;;  %v8656_v27 = vld [vmem:[#allocation2 + $0x180] sm:$0xff] }
 0x3b5   : > { %v6639_v30 = vpop.f32.mrf.mxu3  ;;  %v6367_v34 = vld [vmem:[#allocation3 + $0x8] sm:$0xff] }
 0x3b6   : > { %v6399_v35 = vadd.f32 %v6367_v34, %v6288_v9  ;;  %6082 = vst.msk [vmem:[#allocation3 + $0x10] sm:$0xff] %vm1285_vm4, %v6050_v29  ;;  %8233 = vmatmul.msk.bf16.gmra.mxu1 %vm1285_vm4, %v8654_v33 }
 0x3b7   : > { %v6717_v36 = vld [vmem:[#allocation3] sm:$0xff] }
 0x3b8   : > { %6431 = vst.msk [vmem:[#allocation3 + $0x8] sm:$0xff] %vm1285_vm4, %v6399_v35  ;;  %v6749_v39 = vadd.f32 %v6717_v36, %v6637_v18  ;;  %v5660_v40 = vpop.f32.mrf.mxu0  ;;  %v6293_v41 = vpop.f32.mrf.mxu2  ;;  %v8641_v35 = vld [vmem:[#allocation2 + $0xf8] sm:$0xff] }
 0x3b9   : > { %v5661_v42 = vadd.f32 %v10010_v32, %v5660_v40  ;;  %v5410_v44 = vld [vmem:[#allocation3 + $0xf8] sm:$0xff] }
 0x3ba   : > { %8395 = vmatmul.msk.bf16.gmra.mxu3 %vm1285_vm4, %v8686_v31  ;;  %6781 = vst.msk [vmem:[#allocation3] sm:$0xff] %vm1285_vm4, %v6749_v39  ;;  %v6019_v46 = vld [vmem:[#allocation3 + $0x18] sm:$0xff]  ;;  %v5442_v47 = vpack.c.bf16 %v5410_v44, %v5410_v44 }
 0x3bb   : > { %5734 = vst.msk [vmem:[#allocation3 + $0x20] sm:$0xff] %vm1285_vm4, %v5661_v42  ;;  %v5943_v48 = vpop.f32.mrf.mxu1  ;;  %8153 = vmatmul.msk.bf16.gmra.mxu0 %vm1285_vm4, %v8639_v38  ;;  %v8673_v42 = vld [vmem:[#allocation2 + $0x100] sm:$0xff] }
 0x3bc   : > { %v6051_v49 = vadd.f32 %v6019_v46, %v5943_v48  ;;  %8077 = vst.msk [vmem:[%s9085_s17 + $0x17c] sm:$0xf] %vm259_vm1, %v5442_v47 }
 0x3bd   : > { %v6642_v50 = vpop.f32.mrf.mxu3  ;;  %v6368_v51 = vld [vmem:[#allocation3 + $0x10] sm:$0xff]  ;;  %8315 = vmatmul.msk.bf16.gmra.mxu2 %vm1285_vm4, %v8671_v43 }
 0x3be   : > { %v6400_v52 = vadd.f32 %v6368_v51, %v6291_v23  ;;  %6083 = vst.msk [vmem:[#allocation3 + $0x18] sm:$0xff] %vm1285_vm4, %v6051_v49 }
 0x3bf   : > { %v6718_v53 = vld [vmem:[#allocation3 + $0x8] sm:$0xff] }
 0x3c0   : > { %6432 = vst.msk [vmem:[#allocation3 + $0x10] sm:$0xff] %vm1285_vm4, %v6400_v52  ;;  %v6750_v54 = vadd.f32 %v6718_v53, %v6639_v30  ;;  %v5662_v55 = vpop.f32.mrf.mxu0  ;;  %v6296_v56 = vpop.f32.mrf.mxu2  ;;  %v8688_v30 = vld [vmem:[#allocation2 + $0x188] sm:$0xff] }
 0x3c1   : > { %v6813_v57 = vld [vmem:[#allocation3] sm:$0xff]  ;;  %v5663_v58 = vadd.f32 %v10010_v32, %v5662_v55 }
 0x3c2   : > { %v6845_v59 = vpack.c.bf16 %v6813_v57, %v6813_v57  ;;  %6782 = vst.msk [vmem:[#allocation3 + $0x8] sm:$0xff] %vm1285_vm4, %v6750_v54  ;;  %v6020_v60 = vld [vmem:[#allocation3 + $0x20] sm:$0xff] }
 0x3c3   : > { %5735 = vst.msk [vmem:[#allocation3 + $0x28] sm:$0xff] %vm1285_vm4, %v5663_v58  ;;  %v5946_v62 = vpop.f32.mrf.mxu1 }
 0x3c4   : > { %8402 = vst.msk [vmem:[%s9085_s17 + $0x180] sm:$0xf] %vm259_vm1, %v6845_v59  ;;  %v6052_v63 = vadd.f32 %v6020_v60, %v5946_v62  ;;  %v8657_v59 = vld [vmem:[#allocation2 + $0x188] sm:$0xff] }
 0x3c5   : > { %v6644_v45 = vpop.f32.mrf.mxu3  ;;  %v6369_v0 = vld [vmem:[#allocation3 + $0x18] sm:$0xff] }
 0x3c6   : > { %v6401_v2 = vadd.f32 %v6369_v0, %v6293_v41  ;;  %6084 = vst.msk [vmem:[#allocation3 + $0x20] sm:$0xff] %vm1285_vm4, %v6052_v63  ;;  %8234 = vmatmul.msk.bf16.gmra.mxu1 %vm1285_vm4, %v8655_v61 }
 0x3c7   : > { %v6719_v3 = vld [vmem:[#allocation3 + $0x10] sm:$0xff] }
 0x3c8   : > { %6433 = vst.msk [vmem:[#allocation3 + $0x18] sm:$0xff] %vm1285_vm4, %v6401_v2  ;;  %v6751_v5 = vadd.f32 %v6719_v3, %v6642_v50  ;;  %v5665_v6 = vpop.f32.mrf.mxu0  ;;  %v6298_v7 = vpop.f32.mrf.mxu2  ;;  %v8642_v2 = vld [vmem:[#allocation2 + $0x100] sm:$0xff] }
 0x3c9   : > { %v6814_v8 = vld [vmem:[#allocation3 + $0x8] sm:$0xff]  ;;  %v5666_v9 = vadd.f32 %v10010_v32, %v5665_v6 }
 0x3ca   : > { %8396 = vmatmul.msk.bf16.gmra.mxu3 %vm1285_vm4, %v8687_v1  ;;  %v6846_v12 = vpack.c.bf16 %v6814_v8, %v6814_v8  ;;  %6783 = vst.msk [vmem:[#allocation3 + $0x10] sm:$0xff] %vm1285_vm4, %v6751_v5  ;;  %v6021_v13 = vld [vmem:[#allocation3 + $0x28] sm:$0xff]  ;;  %v8674_v8 = vld [vmem:[#allocation2 + $0x108] sm:$0xff] }
 0x3cb   : > { %5736 = vst.msk [vmem:[#allocation3 + $0x30] sm:$0xff] %vm1285_vm4, %v5666_v9  ;;  %v5948_v14 = vpop.f32.mrf.mxu1  ;;  %8154 = vmatmul.msk.bf16.gmra.mxu0 %vm1285_vm4, %v8640_v4 }
 0x3cc   : > { %8403 = vst.msk [vmem:[%s9085_s17 + $0x184] sm:$0xf] %vm259_vm1, %v6846_v12  ;;  %v6053_v15 = vadd.f32 %v6021_v13, %v5948_v14 }
 0x3cd   : > { %v6647_v16 = vpop.f32.mrf.mxu3  ;;  %v6370_v17 = vld [vmem:[#allocation3 + $0x20] sm:$0xff]  ;;  %8316 = vmatmul.msk.bf16.gmra.mxu2 %vm1285_vm4, %v8672_v10 }
 0x3ce   : > { %v6402_v32 = vadd.f32 %v6370_v17, %v6296_v56  ;;  %6085 = vst.msk [vmem:[#allocation3 + $0x28] sm:$0xff] %vm1285_vm4, %v6053_v15 }
 0x3cf   : > { %v6720_v18 = vld [vmem:[#allocation3 + $0x18] sm:$0xff] }
 0x3d0   : > { %6434 = vst.msk [vmem:[#allocation3 + $0x20] sm:$0xff] %vm1285_vm4, %v6402_v32  ;;  %v6752_v26 = vadd.f32 %v6720_v18, %v6644_v45  ;;  %v5667_v19 = vpop.f32.mrf.mxu0  ;;  %v6301_v20 = vpop.f32.mrf.mxu2  ;;  %v8689_v45 = vld [vmem:[#allocation2 + $0x190] sm:$0xff] }
 0x3d1   : > { %v6815_v21 = vld [vmem:[#allocation3 + $0x10] sm:$0xff]  ;;  %v5668_v23 = vadd.f32 %v10231_v22, %v5667_v19 }
 0x3d2   : > { %v6847_v24 = vpack.c.bf16 %v6815_v21, %v6815_v21  ;;  %6784 = vst.msk [vmem:[#allocation3 + $0x18] sm:$0xff] %vm1285_vm4, %v6752_v26  ;;  %v6022_v25 = vld [vmem:[#allocation3 + $0x30] sm:$0xff] }
 0x3d3   : > { %5737 = vst.msk [vmem:[#allocation3 + $0x38] sm:$0xff] %vm1285_vm4, %v5668_v23  ;;  %v5951_v33 = vpop.f32.mrf.mxu1 }
 0x3d4   : > { %8404 = vst.msk [vmem:[%s9085_s17 + $0x188] sm:$0xf] %vm259_vm1, %v6847_v24  ;;  %v6054_v28 = vadd.f32 %v6022_v25, %v5951_v33  ;;  %v8658_v24 = vld [vmem:[#allocation2 + $0x190] sm:$0xff] }
 0x3d5   : > { %v6649_v37 = vpop.f32.mrf.mxu3  ;;  %v6371_v29 = vld [vmem:[#allocation3 + $0x28] sm:$0xff]  ;;  %v910_v25 = vld [vmem:[%s8822_s8 + $0xd0] sm:$0xf] }
 0x3d6   : > { %v6403_v34 = vadd.f32 %v6371_v29, %v6298_v7  ;;  %6086 = vst.msk [vmem:[#allocation3 + $0x30] sm:$0xff] %vm1285_vm4, %v6054_v28  ;;  %8235 = vmatmul.msk.bf16.gmra.mxu1 %vm1285_vm4, %v8656_v27  ;;  %v1090_v33 = vrot.slane %v910_v25, 5  ;;  %v909_v29 = vld [vmem:[%s8822_s8 + $0xcc] sm:$0xe] }
 0x3d7   : > { %v6721_v31 = vld [vmem:[#allocation3 + $0x20] sm:$0xff] }
 0x3d8   : > { %6435 = vst.msk [vmem:[#allocation3 + $0x28] sm:$0xff] %vm1285_vm4, %v6403_v34  ;;  %v6753_v36 = vadd.f32 %v6721_v31, %v6647_v16  ;;  %v5670_v38 = vpop.f32.mrf.mxu0  ;;  %v6303_v39 = vpop.f32.mrf.mxu2  ;;  %v8690_v31 = vld [vmem:[#allocation2 + $0x198] sm:$0xff] }
 0x3d9   : > { %v6816_v40 = vld [vmem:[#allocation3 + $0x18] sm:$0xff]  ;;  %v5671_v41 = vadd.f32 %v10231_v22, %v5670_v38  ;;  %v1092_v38 = vrot.slane %v1090_v33, 4 }
 0x3da   : > { %8397 = vmatmul.msk.bf16.gmra.mxu3 %vm1285_vm4, %v8688_v30  ;;  %v6848_v43 = vpack.c.bf16 %v6816_v40, %v6816_v40  ;;  %6785 = vst.msk [vmem:[#allocation3 + $0x20] sm:$0xff] %vm1285_vm4, %v6753_v36  ;;  %v6023_v44 = vld [vmem:[#allocation3 + $0x38] sm:$0xff]  ;;  %v911_v30 = vld [vmem:[%s8822_s8 + $0xd4] sm:$0x1] }
 0x3db   : > { %5738 = vst.msk [vmem:[#allocation3 + $0x40] sm:$0xff] %vm1285_vm4, %v5671_v41  ;;  %v5953_v46 = vpop.f32.mrf.mxu1  ;;  %8155 = vmatmul.msk.bf16.gmra.mxu0 %vm1285_vm4, %v8641_v35  ;;  %v7042_v35 = vrot.slane %v909_v29, 9  ;;  %v8643_v41 = vld [vmem:[#allocation2 + $0x108] sm:$0xff]  ;;  %v8660_v29 = vld [vmem:[#allocation2 + $0x1a0] sm:$0xff] }
 0x3dc   : > { %8405 = vst.msk [vmem:[%s9085_s17 + $0x18c] sm:$0xf] %vm259_vm1, %v6848_v43  ;;  %v6055_v47 = vadd.f32 %v6023_v44, %v5953_v46 }
 0x3dd   : > { %v6652_v48 = vpop.f32.mrf.mxu3  ;;  %v6372_v49 = vld [vmem:[#allocation3 + $0x30] sm:$0xff]  ;;  %8317 = vmatmul.msk.bf16.gmra.mxu2 %vm1285_vm4, %v8673_v42  ;;  %v1091_v42 = vsel %vm9194_vm8, %v7042_v35, %v1090_v33 }
 0x3de   : > { %v6404_v50 = vadd.f32 %v6372_v49, %v6301_v20  ;;  %6087 = vst.msk [vmem:[#allocation3 + $0x38] sm:$0xff] %vm1285_vm4, %v6055_v47  ;;  %v8675_v49 = vld [vmem:[#allocation2 + $0x110] sm:$0xff] }
 0x3df   : > { %v6722_v51 = vld [vmem:[#allocation3 + $0x28] sm:$0xff]  ;;  %1166 = vst.msk [vmem:[#allocation2 + $0x1a8] sm:$0xf] %vm259_vm1, %v1091_v42 }
 0x3e0   : > { %6436 = vst.msk [vmem:[#allocation3 + $0x30] sm:$0xff] %vm1285_vm4, %v6404_v50  ;;  %v6754_v52 = vadd.f32 %v6722_v51, %v6649_v37  ;;  %v5672_v53 = vpop.f32.mrf.mxu0  ;;  %v6306_v54 = vpop.f32.mrf.mxu2 }
 0x3e1   : > { %v6817_v55 = vld [vmem:[#allocation3 + $0x20] sm:$0xff]  ;;  %v5673_v56 = vadd.f32 %v10231_v22, %v5672_v53 }
 0x3e2   : > { %v6849_v57 = vpack.c.bf16 %v6817_v55, %v6817_v55  ;;  %6786 = vst.msk [vmem:[#allocation3 + $0x28] sm:$0xff] %vm1285_vm4, %v6754_v52  ;;  %v6024_v58 = vld [vmem:[#allocation3 + $0x40] sm:$0xff] }
 0x3e3   : > { %5739 = vst.msk [vmem:[#allocation3 + $0x48] sm:$0xff] %vm1285_vm4, %v5673_v56  ;;  %v5956_v60 = vpop.f32.mrf.mxu1 }
 0x3e4   : > { %8406 = vst.msk [vmem:[%s9085_s17 + $0x190] sm:$0xf] %vm259_vm1, %v6849_v57  ;;  %v6056_v61 = vadd.f32 %v6024_v58, %v5956_v60 }
 0x3e5   : > { %v6654_v62 = vpop.f32.mrf.mxu3  ;;  %v6373_v63 = vld [vmem:[#allocation3 + $0x38] sm:$0xff] }
 0x3e6   : > { %v6405_v0 = vadd.f32 %v6373_v63, %v6303_v39  ;;  %6088 = vst.msk [vmem:[#allocation3 + $0x40] sm:$0xff] %vm1285_vm4, %v6056_v61  ;;  %8236 = vmatmul.msk.bf16.gmra.mxu1 %vm1285_vm4, %v8657_v59  ;;  %v1093_v39 = vrot.slane %v911_v30, 5 }
 0x3e7   : > { %v6723_v1 = vld [vmem:[#allocation3 + $0x30] sm:$0xff] }
 0x3e8   : > { %6437 = vst.msk [vmem:[#allocation3 + $0x38] sm:$0xff] %vm1285_vm4, %v6405_v0  ;;  %v6755_v3 = vadd.f32 %v6723_v1, %v6652_v48  ;;  %v5675_v4 = vpop.f32.mrf.mxu0  ;;  %v6308_v5 = vpop.f32.mrf.mxu2  ;;  %v1094_v52 = vsel %vm9194_vm8, %v1092_v38, %v1093_v39  ;;  %v8659_v0 = vld [vmem:[#allocation2 + $0x198] sm:$0xff] }
 0x3e9   : > { %v6818_v6 = vld [vmem:[#allocation3 + $0x28] sm:$0xff]  ;;  %v5676_v7 = vadd.f32 %v10231_v22, %v5675_v4  ;;  %1167 = vst.msk [vmem:[#allocation2 + $0x1ac] sm:$0xf] %vm259_vm1, %v1094_v52 }
 0x3ea   : > { %8398 = vmatmul.msk.bf16.gmra.mxu3 %vm1285_vm4, %v8689_v45  ;;  %v6850_v9 = vpack.c.bf16 %v6818_v6, %v6818_v6  ;;  %6787 = vst.msk [vmem:[#allocation3 + $0x30] sm:$0xff] %vm1285_vm4, %v6755_v3  ;;  %v6025_v10 = vld [vmem:[#allocation3 + $0x48] sm:$0xff] }
 0x3eb   : > { %5740 = vst.msk [vmem:[#allocation3 + $0x50] sm:$0xff] %vm1285_vm4, %v5676_v7  ;;  %v5958_v12 = vpop.f32.mrf.mxu1  ;;  %8156 = vmatmul.msk.bf16.gmra.mxu0 %vm1285_vm4, %v8642_v2 }
 0x3ec   : > { %8407 = vst.msk [vmem:[%s9085_s17 + $0x194] sm:$0xf] %vm259_vm1, %v6850_v9  ;;  %v6057_v13 = vadd.f32 %v6025_v10, %v5958_v12 }
 0x3ed   : > { %v6657_v14 = vpop.f32.mrf.mxu3  ;;  %v6374_v15 = vld [vmem:[#allocation3 + $0x40] sm:$0xff]  ;;  %8318 = vmatmul.msk.bf16.gmra.mxu2 %vm1285_vm4, %v8674_v8 }
 0x3ee   : > { %v6406_v16 = vadd.f32 %v6374_v15, %v6306_v54  ;;  %6089 = vst.msk [vmem:[#allocation3 + $0x48] sm:$0xff] %vm1285_vm4, %v6057_v13  ;;  %v8644_v8 = vld [vmem:[#allocation2 + $0x110] sm:$0xff]  ;;  %v8676_v15 = vld [vmem:[#allocation2 + $0x118] sm:$0xff] }
 0x3ef   : > { %v6724_v17 = vld [vmem:[#allocation3 + $0x38] sm:$0xff] }
 0x3f0   : > { %6438 = vst.msk [vmem:[#allocation3 + $0x40] sm:$0xff] %vm1285_vm4, %v6406_v16  ;;  %v6756_v32 = vadd.f32 %v6724_v17, %v6654_v62  ;;  %v5677_v18 = vpop.f32.mrf.mxu0  ;;  %v6311_v26 = vpop.f32.mrf.mxu2 }
 0x3f1   : > { %v6819_v19 = vld [vmem:[#allocation3 + $0x30] sm:$0xff]  ;;  %v5678_v20 = vadd.f32 %v10231_v22, %v5677_v18 }
 0x3f2   : > { %v6851_v21 = vpack.c.bf16 %v6819_v19, %v6819_v19  ;;  %6788 = vst.msk [vmem:[#allocation3 + $0x38] sm:$0xff] %vm1285_vm4, %v6756_v32  ;;  %v6026_v23 = vld [vmem:[#allocation3 + $0x50] sm:$0xff] }
 0x3f3   : > { %5741 = vst.msk [vmem:[#allocation3 + $0x58] sm:$0xff] %vm1285_vm4, %v5678_v20  ;;  %v5961_v27 = vpop.f32.mrf.mxu1 }
 0x3f4   : > { %8408 = vst.msk [vmem:[%s9085_s17 + $0x198] sm:$0xf] %vm259_vm1, %v6851_v21  ;;  %v6058_v28 = vadd.f32 %v6026_v23, %v5961_v27 }
 0x3f5   : > { %v6659_v37 = vpop.f32.mrf.mxu3  ;;  %v6375_v34 = vld [vmem:[#allocation3 + $0x48] sm:$0xff] }
 0x3f6   : > { %v6407_v36 = vadd.f32 %v6375_v34, %v6308_v5  ;;  %6090 = vst.msk [vmem:[#allocation3 + $0x50] sm:$0xff] %vm1285_vm4, %v6058_v28  ;;  %8237 = vmatmul.msk.bf16.gmra.mxu1 %vm1285_vm4, %v8658_v24  ;;  %v8691_v5 = vld [vmem:[#allocation2 + $0x1a0] sm:$0xff] }
 0x3f7   : > { %v6725_v40 = vld [vmem:[#allocation3 + $0x40] sm:$0xff] }
 0x3f8   : > { %6439 = vst.msk [vmem:[#allocation3 + $0x48] sm:$0xff] %vm1285_vm4, %v6407_v36  ;;  %v6757_v43 = vadd.f32 %v6725_v40, %v6657_v14  ;;  %v5680_v44 = vpop.f32.mrf.mxu0  ;;  %v6313_v46 = vpop.f32.mrf.mxu2  ;;  %v8692_v36 = vld [vmem:[#allocation2 + $0x1a8] sm:$0xff] }
 0x3f9   : > { %v6820_v47 = vld [vmem:[#allocation3 + $0x38] sm:$0xff]  ;;  %v5681_v48 = vadd.f32 %v10231_v22, %v5680_v44 }
 0x3fa   : > { %8399 = vmatmul.msk.bf16.gmra.mxu3 %vm1285_vm4, %v8690_v31  ;;  %v6852_v50 = vpack.c.bf16 %v6820_v47, %v6820_v47  ;;  %6789 = vst.msk [vmem:[#allocation3 + $0x40] sm:$0xff] %vm1285_vm4, %v6757_v43  ;;  %v6027_v51 = vld [vmem:[#allocation3 + $0x58] sm:$0xff] }
 0x3fb   : > { %5742 = vst.msk [vmem:[#allocation3 + $0x60] sm:$0xff] %vm1285_vm4, %v5681_v48  ;;  %v5963_v53 = vpop.f32.mrf.mxu1  ;;  %8157 = vmatmul.msk.bf16.gmra.mxu0 %vm1285_vm4, %v8643_v41 }
 0x3fc   : > { %8409 = vst.msk [vmem:[%s9085_s17 + $0x19c] sm:$0xf] %vm259_vm1, %v6852_v50  ;;  %v6059_v54 = vadd.f32 %v6027_v51, %v5963_v53 }
 0x3fd   : > { %v6662_v55 = vpop.f32.mrf.mxu3  ;;  %v6376_v56 = vld [vmem:[#allocation3 + $0x50] sm:$0xff]  ;;  %8319 = vmatmul.msk.bf16.gmra.mxu2 %vm1285_vm4, %v8675_v49 }
 0x3fe   : > { %v6408_v57 = vadd.f32 %v6376_v56, %v6311_v26  ;;  %6091 = vst.msk [vmem:[#allocation3 + $0x58] sm:$0xff] %vm1285_vm4, %v6059_v54 }
 0x3ff   : > { %v6726_v11 = vld [vmem:[#allocation3 + $0x48] sm:$0xff] }
 0x400   : > { %6440 = vst.msk [vmem:[#allocation3 + $0x50] sm:$0xff] %vm1285_vm4, %v6408_v57  ;;  %v6758_v58 = vadd.f32 %v6726_v11, %v6659_v37  ;;  %v5682_v59 = vpop.f32.mrf.mxu0  ;;  %v6316_v60 = vpop.f32.mrf.mxu2 }
 0x401   : > { %v6821_v61 = vld [vmem:[#allocation3 + $0x40] sm:$0xff]  ;;  %v5683_v62 = vadd.f32 %v10231_v22, %v5682_v59 }
 0x402   : > { %v6853_v63 = vpack.c.bf16 %v6821_v61, %v6821_v61  ;;  %6790 = vst.msk [vmem:[#allocation3 + $0x48] sm:$0xff] %vm1285_vm4, %v6758_v58  ;;  %v6028_v45 = vld [vmem:[#allocation3 + $0x60] sm:$0xff] }
 0x403   : > { %5743 = vst.msk [vmem:[#allocation3 + $0x68] sm:$0xff] %vm1285_vm4, %v5683_v62  ;;  %v5966_v1 = vpop.f32.mrf.mxu1 }
 0x404   : > { %8410 = vst.msk [vmem:[%s9085_s17 + $0x1a0] sm:$0xf] %vm259_vm1, %v6853_v63  ;;  %v6060_v2 = vadd.f32 %v6028_v45, %v5966_v1 }
 0x405   : > { %v6664_v3 = vpop.f32.mrf.mxu3  ;;  %v6377_v4 = vld [vmem:[#allocation3 + $0x58] sm:$0xff] }
 0x406   : > { %v6409_v6 = vadd.f32 %v6377_v4, %v6313_v46  ;;  %6092 = vst.msk [vmem:[#allocation3 + $0x60] sm:$0xff] %vm1285_vm4, %v6060_v2  ;;  %8238 = vmatmul.msk.bf16.gmra.mxu1 %vm1285_vm4, %v8659_v0 }
 0x407   : > { %v6727_v7 = vld [vmem:[#allocation3 + $0x50] sm:$0xff] }
 0x408   : > { %6441 = vst.msk [vmem:[#allocation3 + $0x58] sm:$0xff] %vm1285_vm4, %v6409_v6  ;;  %v6759_v9 = vadd.f32 %v6727_v7, %v6662_v55  ;;  %v5685_v10 = vpop.f32.mrf.mxu0  ;;  %v6318_v12 = vpop.f32.mrf.mxu2 }
 0x409   : > { %v6822_v13 = vld [vmem:[#allocation3 + $0x48] sm:$0xff]  ;;  %v5686_v14 = vadd.f32 %v10231_v22, %v5685_v10 }
 0x40a   : > { %8400 = vmatmul.msk.bf16.gmra.mxu3 %vm1285_vm4, %v8691_v5  ;;  %v6854_v16 = vpack.c.bf16 %v6822_v13, %v6822_v13  ;;  %6791 = vst.msk [vmem:[#allocation3 + $0x50] sm:$0xff] %vm1285_vm4, %v6759_v9  ;;  %v6029_v17 = vld [vmem:[#allocation3 + $0x68] sm:$0xff] }
 0x40b   : > { %5744 = vst.msk [vmem:[#allocation3 + $0x70] sm:$0xff] %vm1285_vm4, %v5686_v14  ;;  %v5968_v32 = vpop.f32.mrf.mxu1  ;;  %8158 = vmatmul.msk.bf16.gmra.mxu0 %vm1285_vm4, %v8644_v8 }
 0x40c   : > { %8411 = vst.msk [vmem:[%s9085_s17 + $0x1a4] sm:$0xf] %vm259_vm1, %v6854_v16  ;;  %v6061_v18 = vadd.f32 %v6029_v17, %v5968_v32 }
 0x40d   : > { %v6667_v26 = vpop.f32.mrf.mxu3  ;;  %v6378_v19 = vld [vmem:[#allocation3 + $0x60] sm:$0xff]  ;;  %8320 = vmatmul.msk.bf16.gmra.mxu2 %vm1285_vm4, %v8676_v15 }
 0x40e   : > { %v6410_v20 = vadd.f32 %v6378_v19, %v6316_v60  ;;  %6093 = vst.msk [vmem:[#allocation3 + $0x68] sm:$0xff] %vm1285_vm4, %v6061_v18 }
 0x40f   : > { %v6728_v21 = vld [vmem:[#allocation3 + $0x58] sm:$0xff] }
 0x410   : > { %6442 = vst.msk [vmem:[#allocation3 + $0x60] sm:$0xff] %vm1285_vm4, %v6410_v20  ;;  %v6760_v23 = vadd.f32 %v6728_v21, %v6664_v3  ;;  %v5687_v24 = vpop.f32.mrf.mxu0  ;;  %v6321_v25 = vpop.f32.mrf.mxu2 }
 0x411   : > { %v6823_v27 = vld [vmem:[#allocation3 + $0x50] sm:$0xff]  ;;  %v5688_v33 = vadd.f32 %v10231_v22, %v5687_v24 }
 0x412   : > { %v6855_v28 = vpack.c.bf16 %v6823_v27, %v6823_v27  ;;  %6792 = vst.msk [vmem:[#allocation3 + $0x58] sm:$0xff] %vm1285_vm4, %v6760_v23  ;;  %v6030_v37 = vld [vmem:[#allocation3 + $0x70] sm:$0xff] }
 0x413   : > { %5745 = vst.msk [vmem:[#allocation3 + $0x78] sm:$0xff] %vm1285_vm4, %v5688_v33  ;;  %v5971_v30 = vpop.f32.mrf.mxu1 }
 0x414   : > { %8412 = vst.msk [vmem:[%s9085_s17 + $0x1a8] sm:$0xf] %vm259_vm1, %v6855_v28  ;;  %v6062_v34 = vadd.f32 %v6030_v37, %v5971_v30 }
 0x415   : > { %v6669_v31 = vpop.f32.mrf.mxu3  ;;  %v6379_v35 = vld [vmem:[#allocation3 + $0x68] sm:$0xff] }
 0x416   : > { %v6411_v38 = vadd.f32 %v6379_v35, %v6318_v12  ;;  %6094 = vst.msk [vmem:[#allocation3 + $0x70] sm:$0xff] %vm1285_vm4, %v6062_v34  ;;  %8239 = vmatmul.msk.bf16.gmra.mxu1 %vm1285_vm4, %v8660_v29 }
 0x417   : > { %v6729_v39 = vld [vmem:[#allocation3 + $0x60] sm:$0xff] }
 0x418   : > { %6443 = vst.msk [vmem:[#allocation3 + $0x68] sm:$0xff] %vm1285_vm4, %v6411_v38  ;;  %v6761_v40 = vadd.f32 %v6729_v39, %v6667_v26  ;;  %v5690_v41 = vpop.f32.mrf.mxu0  ;;  %v6323_v42 = vpop.f32.mrf.mxu2 }
 0x419   : > { %v6824_v43 = vld [vmem:[#allocation3 + $0x58] sm:$0xff]  ;;  %v5691_v44 = vadd.f32 %v10231_v22, %v5690_v41 }
 0x41a   : > { %8401 = vmatmul.msk.bf16.gmra.mxu3 %vm1285_vm4, %v8692_v36  ;;  %v6856_v46 = vpack.c.bf16 %v6824_v43, %v6824_v43  ;;  %6793 = vst.msk [vmem:[#allocation3 + $0x60] sm:$0xff] %vm1285_vm4, %v6761_v40  ;;  %v6031_v47 = vld [vmem:[#allocation3 + $0x78] sm:$0xff] }
 0x41b   : > { %5746 = vst.msk [vmem:[#allocation3 + $0x80] sm:$0xff] %vm1285_vm4, %v5691_v44  ;;  %v5973_v48 = vpop.f32.mrf.mxu1 }
 0x41c   : > { %8413 = vst.msk [vmem:[%s9085_s17 + $0x1ac] sm:$0xf] %vm259_vm1, %v6856_v46  ;;  %v6063_v49 = vadd.f32 %v6031_v47, %v5973_v48 }
 0x41d   : > { %v6672_v50 = vpop.f32.mrf.mxu3  ;;  %v6380_v51 = vld [vmem:[#allocation3 + $0x70] sm:$0xff] }
 0x41e   : > { %v6412_v52 = vadd.f32 %v6380_v51, %v6321_v25  ;;  %6095 = vst.msk [vmem:[#allocation3 + $0x78] sm:$0xff] %vm1285_vm4, %v6063_v49 }
 0x41f   : > { %v6730_v53 = vld [vmem:[#allocation3 + $0x68] sm:$0xff] }
 0x420   : > { %6444 = vst.msk [vmem:[#allocation3 + $0x70] sm:$0xff] %vm1285_vm4, %v6412_v52  ;;  %v6762_v54 = vadd.f32 %v6730_v53, %v6669_v31  ;;  %v5692_v55 = vpop.f32.mrf.mxu0  ;;  %v6326_v56 = vpop.f32.mrf.mxu2 }
 0x421   : > { %v6825_v57 = vld [vmem:[#allocation3 + $0x60] sm:$0xff]  ;;  %v5693_v11 = vadd.f32 %v10231_v22, %v5692_v55 }
 0x422   : > { %v6857_v58 = vpack.c.bf16 %v6825_v57, %v6825_v57  ;;  %6794 = vst.msk [vmem:[#allocation3 + $0x68] sm:$0xff] %vm1285_vm4, %v6762_v54  ;;  %v6032_v59 = vld [vmem:[#allocation3 + $0x80] sm:$0xff] }
 0x423   : > { %5747 = vst.msk [vmem:[#allocation3 + $0x88] sm:$0xff] %vm1285_vm4, %v5693_v11  ;;  %v5976_v60 = vpop.f32.mrf.mxu1 }
 0x424   : > { %8414 = vst.msk [vmem:[%s9085_s17 + $0x1b0] sm:$0xf] %vm259_vm1, %v6857_v58  ;;  %v6064_v61 = vadd.f32 %v6032_v59, %v5976_v60 }
 0x425   : > { %v6674_v62 = vpop.f32.mrf.mxu3  ;;  %v6381_v63 = vld [vmem:[#allocation3 + $0x78] sm:$0xff] }
 0x426   : > { %v6413_v45 = vadd.f32 %v6381_v63, %v6323_v42  ;;  %6096 = vst.msk [vmem:[#allocation3 + $0x80] sm:$0xff] %vm1285_vm4, %v6064_v61 }
 0x427   : > { %v6731_v0 = vld [vmem:[#allocation3 + $0x70] sm:$0xff] }
 0x428   : > { %6445 = vst.msk [vmem:[#allocation3 + $0x78] sm:$0xff] %vm1285_vm4, %v6413_v45  ;;  %v6763_v1 = vadd.f32 %v6731_v0, %v6672_v50  ;;  %v5695_v2 = vpop.f32.mrf.mxu0  ;;  %v6328_v3 = vpop.f32.mrf.mxu2 }
 0x429   : > { %v6826_v4 = vld [vmem:[#allocation3 + $0x68] sm:$0xff]  ;;  %v5696_v5 = vadd.f32 %v10231_v22, %v5695_v2 }
 0x42a   : > { %v6858_v6 = vpack.c.bf16 %v6826_v4, %v6826_v4  ;;  %6795 = vst.msk [vmem:[#allocation3 + $0x70] sm:$0xff] %vm1285_vm4, %v6763_v1  ;;  %v6033_v7 = vld [vmem:[#allocation3 + $0x88] sm:$0xff] }
 0x42b   : > { %5748 = vst.msk [vmem:[#allocation3 + $0x90] sm:$0xff] %vm1285_vm4, %v5696_v5  ;;  %v5978_v8 = vpop.f32.mrf.mxu1 }
 0x42c   : > { %8415 = vst.msk [vmem:[%s9085_s17 + $0x1b4] sm:$0xf] %vm259_vm1, %v6858_v6  ;;  %v6065_v9 = vadd.f32 %v6033_v7, %v5978_v8 }
 0x42d   : > { %v6677_v10 = vpop.f32.mrf.mxu3  ;;  %v6382_v12 = vld [vmem:[#allocation3 + $0x80] sm:$0xff] }
 0x42e   : > { %v6414_v13 = vadd.f32 %v6382_v12, %v6326_v56  ;;  %6097 = vst.msk [vmem:[#allocation3 + $0x88] sm:$0xff] %vm1285_vm4, %v6065_v9 }
 0x42f   : > { %v6732_v14 = vld [vmem:[#allocation3 + $0x78] sm:$0xff] }
 0x430   : > { %6446 = vst.msk [vmem:[#allocation3 + $0x80] sm:$0xff] %vm1285_vm4, %v6414_v13  ;;  %v6764_v15 = vadd.f32 %v6732_v14, %v6674_v62  ;;  %v5697_v16 = vpop.f32.mrf.mxu0  ;;  %v6331_v17 = vpop.f32.mrf.mxu2 }
 0x431   : > { %v6827_v32 = vld [vmem:[#allocation3 + $0x70] sm:$0xff]  ;;  %v5698_v18 = vadd.f32 %v10231_v22, %v5697_v16 }
 0x432   : > { %v6859_v26 = vpack.c.bf16 %v6827_v32, %v6827_v32  ;;  %6796 = vst.msk [vmem:[#allocation3 + $0x78] sm:$0xff] %vm1285_vm4, %v6764_v15  ;;  %v6034_v19 = vld [vmem:[#allocation3 + $0x90] sm:$0xff] }
 0x433   : > { %5749 = vst.msk [vmem:[#allocation3 + $0x98] sm:$0xff] %vm1285_vm4, %v5698_v18  ;;  %v5981_v20 = vpop.f32.mrf.mxu1 }
 0x434   : > { %8416 = vst.msk [vmem:[%s9085_s17 + $0x1b8] sm:$0xf] %vm259_vm1, %v6859_v26  ;;  %v6066_v21 = vadd.f32 %v6034_v19, %v5981_v20 }
 0x435   : > { %v6679_v23 = vpop.f32.mrf.mxu3  ;;  %v6383_v24 = vld [vmem:[#allocation3 + $0x88] sm:$0xff] }
 0x436   : > { %v6415_v25 = vadd.f32 %v6383_v24, %v6328_v3  ;;  %6098 = vst.msk [vmem:[#allocation3 + $0x90] sm:$0xff] %vm1285_vm4, %v6066_v21 }
 0x437   : > { %v6733_v27 = vld [vmem:[#allocation3 + $0x80] sm:$0xff] }
 0x438   : > { %6447 = vst.msk [vmem:[#allocation3 + $0x88] sm:$0xff] %vm1285_vm4, %v6415_v25  ;;  %v6765_v33 = vadd.f32 %v6733_v27, %v6677_v10  ;;  %v5700_v28 = vpop.f32.mrf.mxu0  ;;  %v6333_v37 = vpop.f32.mrf.mxu2 }
 0x439   : > { %v6828_v29 = vld [vmem:[#allocation3 + $0x78] sm:$0xff]  ;;  %v5701_v30 = vadd.f32 %v10231_v22, %v5700_v28 }
 0x43a   : > { %v6860_v34 = vpack.c.bf16 %v6828_v29, %v6828_v29  ;;  %6797 = vst.msk [vmem:[#allocation3 + $0x80] sm:$0xff] %vm1285_vm4, %v6765_v33  ;;  %v6035_v31 = vld [vmem:[#allocation3 + $0x98] sm:$0xff] }
 0x43b   : > { %5750 = vst.msk [vmem:[#allocation3 + $0xa0] sm:$0xff] %vm1285_vm4, %v5701_v30  ;;  %v5983_v35 = vpop.f32.mrf.mxu1 }
 0x43c   : > { %8417 = vst.msk [vmem:[%s9085_s17 + $0x1bc] sm:$0xf] %vm259_vm1, %v6860_v34  ;;  %v6067_v36 = vadd.f32 %v6035_v31, %v5983_v35 }
 0x43d   : > { %v6682_v38 = vpop.f32.mrf.mxu3  ;;  %v6384_v39 = vld [vmem:[#allocation3 + $0x90] sm:$0xff] }
 0x43e   : > { %v6416_v40 = vadd.f32 %v6384_v39, %v6331_v17  ;;  %6099 = vst.msk [vmem:[#allocation3 + $0x98] sm:$0xff] %vm1285_vm4, %v6067_v36 }
 0x43f   : > { %v6734_v41 = vld [vmem:[#allocation3 + $0x88] sm:$0xff] }
 0x440   : > { %6448 = vst.msk [vmem:[#allocation3 + $0x90] sm:$0xff] %vm1285_vm4, %v6416_v40  ;;  %v6766_v42 = vadd.f32 %v6734_v41, %v6679_v23  ;;  %v5702_v43 = vpop.f32.mrf.mxu0  ;;  %v6336_v44 = vpop.f32.mrf.mxu2 }
 0x441   : > { %v6829_v46 = vld [vmem:[#allocation3 + $0x80] sm:$0xff]  ;;  %v5703_v47 = vadd.f32 %v10231_v22, %v5702_v43 }
 0x442   : > { %v6861_v48 = vpack.c.bf16 %v6829_v46, %v6829_v46  ;;  %6798 = vst.msk [vmem:[#allocation3 + $0x88] sm:$0xff] %vm1285_vm4, %v6766_v42  ;;  %v6036_v49 = vld [vmem:[#allocation3 + $0xa0] sm:$0xff] }
 0x443   : > { %5751 = vst.msk [vmem:[#allocation3 + $0xa8] sm:$0xff] %vm1285_vm4, %v5703_v47  ;;  %v5986_v50 = vpop.f32.mrf.mxu1 }
 0x444   : > { %8418 = vst.msk [vmem:[%s9085_s17 + $0x1c0] sm:$0xf] %vm259_vm1, %v6861_v48  ;;  %v6068_v51 = vadd.f32 %v6036_v49, %v5986_v50 }
 0x445   : > { %v6684_v52 = vpop.f32.mrf.mxu3  ;;  %v6385_v53 = vld [vmem:[#allocation3 + $0x98] sm:$0xff] }
 0x446   : > { %v6417_v54 = vadd.f32 %v6385_v53, %v6333_v37  ;;  %6100 = vst.msk [vmem:[#allocation3 + $0xa0] sm:$0xff] %vm1285_vm4, %v6068_v51 }
 0x447   : > { %v6735_v55 = vld [vmem:[#allocation3 + $0x90] sm:$0xff] }
 0x448   : > { %6449 = vst.msk [vmem:[#allocation3 + $0x98] sm:$0xff] %vm1285_vm4, %v6417_v54  ;;  %v6767_v56 = vadd.f32 %v6735_v55, %v6682_v38  ;;  %v5705_v57 = vpop.f32.mrf.mxu0  ;;  %v6338_v11 = vpop.f32.mrf.mxu2 }
 0x449   : > { %v6830_v58 = vld [vmem:[#allocation3 + $0x88] sm:$0xff]  ;;  %v5706_v59 = vadd.f32 %v10231_v22, %v5705_v57 }
 0x44a   : > { %v6862_v60 = vpack.c.bf16 %v6830_v58, %v6830_v58  ;;  %6799 = vst.msk [vmem:[#allocation3 + $0x90] sm:$0xff] %vm1285_vm4, %v6767_v56  ;;  %v6037_v61 = vld [vmem:[#allocation3 + $0xa8] sm:$0xff] }
 0x44b   : > { %5752 = vst.msk [vmem:[#allocation3 + $0xb0] sm:$0xff] %vm1285_vm4, %v5706_v59  ;;  %v5988_v62 = vpop.f32.mrf.mxu1 }
 0x44c   : > { %8419 = vst.msk [vmem:[%s9085_s17 + $0x1c4] sm:$0xf] %vm259_vm1, %v6862_v60  ;;  %v6069_v63 = vadd.f32 %v6037_v61, %v5988_v62 }
 0x44d   : > { %v6687_v45 = vpop.f32.mrf.mxu3  ;;  %v6386_v0 = vld [vmem:[#allocation3 + $0xa0] sm:$0xff] }
 0x44e   : > { %v6418_v1 = vadd.f32 %v6386_v0, %v6336_v44  ;;  %6101 = vst.msk [vmem:[#allocation3 + $0xa8] sm:$0xff] %vm1285_vm4, %v6069_v63 }
 0x44f   : > { %v6736_v2 = vld [vmem:[#allocation3 + $0x98] sm:$0xff] }
 0x450   : > { %6450 = vst.msk [vmem:[#allocation3 + $0xa0] sm:$0xff] %vm1285_vm4, %v6418_v1  ;;  %v6768_v3 = vadd.f32 %v6736_v2, %v6684_v52  ;;  %v5707_v4 = vpop.f32.mrf.mxu0  ;;  %v6341_v5 = vpop.f32.mrf.mxu2 }
 0x451   : > { %v6831_v6 = vld [vmem:[#allocation3 + $0x90] sm:$0xff]  ;;  %v5708_v7 = vadd.f32 %v10231_v22, %v5707_v4 }
 0x452   : > { %v6863_v8 = vpack.c.bf16 %v6831_v6, %v6831_v6  ;;  %6800 = vst.msk [vmem:[#allocation3 + $0x98] sm:$0xff] %vm1285_vm4, %v6768_v3  ;;  %v6038_v9 = vld [vmem:[#allocation3 + $0xb0] sm:$0xff] }
 0x453   : > { %5753 = vst.msk [vmem:[#allocation3 + $0xb8] sm:$0xff] %vm1285_vm4, %v5708_v7  ;;  %v5991_v10 = vpop.f32.mrf.mxu1 }
 0x454   : > { %8420 = vst.msk [vmem:[%s9085_s17 + $0x1c8] sm:$0xf] %vm259_vm1, %v6863_v8  ;;  %v6070_v12 = vadd.f32 %v6038_v9, %v5991_v10 }
 0x455   : > { %v6689_v13 = vpop.f32.mrf.mxu3  ;;  %v6387_v14 = vld [vmem:[#allocation3 + $0xa8] sm:$0xff] }
 0x456   : > { %v6419_v15 = vadd.f32 %v6387_v14, %v6338_v11  ;;  %6102 = vst.msk [vmem:[#allocation3 + $0xb0] sm:$0xff] %vm1285_vm4, %v6070_v12 }
 0x457   : > { %v6737_v16 = vld [vmem:[#allocation3 + $0xa0] sm:$0xff] }
 0x458   : > { %6451 = vst.msk [vmem:[#allocation3 + $0xa8] sm:$0xff] %vm1285_vm4, %v6419_v15  ;;  %v6769_v17 = vadd.f32 %v6737_v16, %v6687_v45  ;;  %v5710_v32 = vpop.f32.mrf.mxu0  ;;  %v6343_v18 = vpop.f32.mrf.mxu2 }
 0x459   : > { %v6832_v26 = vld [vmem:[#allocation3 + $0x98] sm:$0xff]  ;;  %v5711_v19 = vadd.f32 %v10231_v22, %v5710_v32 }
 0x45a   : > { %v6864_v20 = vpack.c.bf16 %v6832_v26, %v6832_v26  ;;  %6801 = vst.msk [vmem:[#allocation3 + $0xa0] sm:$0xff] %vm1285_vm4, %v6769_v17  ;;  %v6039_v21 = vld [vmem:[#allocation3 + $0xb8] sm:$0xff] }
 0x45b   : > { %5754 = vst.msk [vmem:[#allocation3 + $0xc0] sm:$0xff] %vm1285_vm4, %v5711_v19  ;;  %v5993_v23 = vpop.f32.mrf.mxu1 }
 0x45c   : > { %8421 = vst.msk [vmem:[%s9085_s17 + $0x1cc] sm:$0xf] %vm259_vm1, %v6864_v20  ;;  %v6071_v24 = vadd.f32 %v6039_v21, %v5993_v23 }
 0x45d   : > { %v6692_v25 = vpop.f32.mrf.mxu3  ;;  %v6388_v27 = vld [vmem:[#allocation3 + $0xb0] sm:$0xff] }
 0x45e   : > { %v6420_v33 = vadd.f32 %v6388_v27, %v6341_v5  ;;  %6103 = vst.msk [vmem:[#allocation3 + $0xb8] sm:$0xff] %vm1285_vm4, %v6071_v24 }
 0x45f   : > { %v6738_v28 = vld [vmem:[#allocation3 + $0xa8] sm:$0xff] }
 0x460   : > { %6452 = vst.msk [vmem:[#allocation3 + $0xb0] sm:$0xff] %vm1285_vm4, %v6420_v33  ;;  %v6770_v37 = vadd.f32 %v6738_v28, %v6689_v13  ;;  %v5712_v29 = vpop.f32.mrf.mxu0  ;;  %v6346_v30 = vpop.f32.mrf.mxu2 }
 0x461   : > { %v6833_v34 = vld [vmem:[#allocation3 + $0xa0] sm:$0xff]  ;;  %v5713_v31 = vadd.f32 %v10231_v22, %v5712_v29 }
 0x462   : > { %v6865_v35 = vpack.c.bf16 %v6833_v34, %v6833_v34  ;;  %6802 = vst.msk [vmem:[#allocation3 + $0xa8] sm:$0xff] %vm1285_vm4, %v6770_v37  ;;  %v6040_v36 = vld [vmem:[#allocation3 + $0xc0] sm:$0xff] }
 0x463   : > { %5755 = vst.msk [vmem:[#allocation3 + $0xc8] sm:$0xff] %vm1285_vm4, %v5713_v31  ;;  %v5996_v38 = vpop.f32.mrf.mxu1 }
 0x464   : > { %8422 = vst.msk [vmem:[%s9085_s17 + $0x1d0] sm:$0xf] %vm259_vm1, %v6865_v35  ;;  %v6072_v39 = vadd.f32 %v6040_v36, %v5996_v38 }
 0x465   : > { %v6694_v40 = vpop.f32.mrf.mxu3  ;;  %v6389_v41 = vld [vmem:[#allocation3 + $0xb8] sm:$0xff] }
 0x466   : > { %v6421_v42 = vadd.f32 %v6389_v41, %v6343_v18  ;;  %6104 = vst.msk [vmem:[#allocation3 + $0xc0] sm:$0xff] %vm1285_vm4, %v6072_v39 }
 0x467   : > { %v6739_v43 = vld [vmem:[#allocation3 + $0xb0] sm:$0xff] }
 0x468   : > { %6453 = vst.msk [vmem:[#allocation3 + $0xb8] sm:$0xff] %vm1285_vm4, %v6421_v42  ;;  %v6771_v44 = vadd.f32 %v6739_v43, %v6692_v25  ;;  %v5715_v46 = vpop.f32.mrf.mxu0  ;;  %v6348_v47 = vpop.f32.mrf.mxu2 }
 0x469   : > { %v6834_v48 = vld [vmem:[#allocation3 + $0xa8] sm:$0xff]  ;;  %v5716_v49 = vadd.f32 %v10231_v22, %v5715_v46 }
 0x46a   : > { %v6866_v50 = vpack.c.bf16 %v6834_v48, %v6834_v48  ;;  %6803 = vst.msk [vmem:[#allocation3 + $0xb0] sm:$0xff] %vm1285_vm4, %v6771_v44  ;;  %v6041_v51 = vld [vmem:[#allocation3 + $0xc8] sm:$0xff] }
 0x46b   : > { %5756 = vst.msk [vmem:[#allocation3 + $0xd0] sm:$0xff] %vm1285_vm4, %v5716_v49  ;;  %v5998_v52 = vpop.f32.mrf.mxu1 }
 0x46c   : > { %8423 = vst.msk [vmem:[%s9085_s17 + $0x1d4] sm:$0xf] %vm259_vm1, %v6866_v50  ;;  %v6073_v53 = vadd.f32 %v6041_v51, %v5998_v52 }
 0x46d   : > { %v6697_v54 = vpop.f32.mrf.mxu3  ;;  %v6390_v55 = vld [vmem:[#allocation3 + $0xc0] sm:$0xff] }
 0x46e   : > { %v6422_v56 = vadd.f32 %v6390_v55, %v6346_v30  ;;  %6105 = vst.msk [vmem:[#allocation3 + $0xc8] sm:$0xff] %vm1285_vm4, %v6073_v53 }
 0x46f   : > { %v6740_v57 = vld [vmem:[#allocation3 + $0xb8] sm:$0xff] }
 0x470   : > { %6454 = vst.msk [vmem:[#allocation3 + $0xc0] sm:$0xff] %vm1285_vm4, %v6422_v56  ;;  %v6772_v11 = vadd.f32 %v6740_v57, %v6694_v40  ;;  %v5717_v58 = vpop.f32.mrf.mxu0  ;;  %v6351_v63 = vpop.f32.mrf.mxu2 }
 0x471   : > { %v6835_v59 = vld [vmem:[#allocation3 + $0xb0] sm:$0xff]  ;;  %v5718_v60 = vadd.f32 %v10231_v22, %v5717_v58 }
 0x472   : > { %v6867_v61 = vpack.c.bf16 %v6835_v59, %v6835_v59  ;;  %6804 = vst.msk [vmem:[#allocation3 + $0xb8] sm:$0xff] %vm1285_vm4, %v6772_v11  ;;  %v6042_v62 = vld [vmem:[#allocation3 + $0xd0] sm:$0xff] }
 0x473   : > { %5757 = vst.msk [vmem:[#allocation3 + $0xd8] sm:$0xff] %vm1285_vm4, %v5718_v60  ;;  %v6001_v45 = vpop.f32.mrf.mxu1 }
 0x474   : > { %8424 = vst.msk [vmem:[%s9085_s17 + $0x1d8] sm:$0xf] %vm259_vm1, %v6867_v61  ;;  %v6074_v0 = vadd.f32 %v6042_v62, %v6001_v45 }
 0x475   : > { %v6699_v1 = vpop.f32.mrf.mxu3  ;;  %v6391_v2 = vld [vmem:[#allocation3 + $0xc8] sm:$0xff] }
 0x476   : > { %v6423_v3 = vadd.f32 %v6391_v2, %v6348_v47  ;;  %6106 = vst.msk [vmem:[#allocation3 + $0xd0] sm:$0xff] %vm1285_vm4, %v6074_v0 }
 0x477   : > { %v6741_v4 = vld [vmem:[#allocation3 + $0xc0] sm:$0xff] }
 0x478   : > { %6455 = vst.msk [vmem:[#allocation3 + $0xc8] sm:$0xff] %vm1285_vm4, %v6423_v3  ;;  %v6773_v5 = vadd.f32 %v6741_v4, %v6697_v54  ;;  %v5720_v6 = vpop.f32.mrf.mxu0  ;;  %v6353_v14 = vpop.f32.mrf.mxu2 }
 0x479   : > { %v6836_v7 = vld [vmem:[#allocation3 + $0xb8] sm:$0xff]  ;;  %v5721_v8 = vadd.f32 %v10231_v22, %v5720_v6 }
 0x47a   : > { %v6868_v9 = vpack.c.bf16 %v6836_v7, %v6836_v7  ;;  %6805 = vst.msk [vmem:[#allocation3 + $0xc0] sm:$0xff] %vm1285_vm4, %v6773_v5  ;;  %v6043_v10 = vld [vmem:[#allocation3 + $0xd8] sm:$0xff] }
 0x47b   : > { %5758 = vst.msk [vmem:[#allocation3 + $0xe0] sm:$0xff] %vm1285_vm4, %v5721_v8  ;;  %v6003_v12 = vpop.f32.mrf.mxu1 }
 0x47c   : > { %8425 = vst.msk [vmem:[%s9085_s17 + $0x1dc] sm:$0xf] %vm259_vm1, %v6868_v9  ;;  %v6075_v13 = vadd.f32 %v6043_v10, %v6003_v12 }
 0x47d   : > { %v6392_v15 = vld [vmem:[#allocation3 + $0xd0] sm:$0xff]  ;;  %v6702_v16 = vpop.f32.mrf.mxu3 }
 0x47e   : > { %v6424_v17 = vadd.f32 %v6392_v15, %v6351_v63  ;;  %6107 = vst.msk [vmem:[#allocation3 + $0xd8] sm:$0xff] %vm1285_vm4, %v6075_v13 }
 0x47f   : > { %v6742_v32 = vld [vmem:[#allocation3 + $0xc8] sm:$0xff] }
 0x480   : > { %6456 = vst.msk [vmem:[#allocation3 + $0xd0] sm:$0xff] %vm1285_vm4, %v6424_v17  ;;  %v6774_v18 = vadd.f32 %v6742_v32, %v6699_v1  ;;  %v5722_v26 = vpop.f32.mrf.mxu0  ;;  %v6356_v28 = vpop.f32.mrf.mxu2 }
 0x481   : > { %v6837_v19 = vld [vmem:[#allocation3 + $0xc0] sm:$0xff]  ;;  %v5723_v20 = vadd.f32 %v10231_v22, %v5722_v26 }
 0x482   : > { %v6869_v21 = vpack.c.bf16 %v6837_v19, %v6837_v19  ;;  %6806 = vst.msk [vmem:[#allocation3 + $0xc8] sm:$0xff] %vm1285_vm4, %v6774_v18  ;;  %v6044_v23 = vld [vmem:[#allocation3 + $0xe0] sm:$0xff] }
 0x483   : > { %5759 = vst.msk [vmem:[#allocation3 + $0xe8] sm:$0xff] %vm1285_vm4, %v5723_v20  ;;  %v6006_v24 = vpop.f32.mrf.mxu1 }
 0x484   : > { %8426 = vst.msk [vmem:[%s9085_s17 + $0x1e0] sm:$0xf] %vm259_vm1, %v6869_v21  ;;  %v6076_v25 = vadd.f32 %v6044_v23, %v6006_v24 }
 0x485   : > { %v6393_v27 = vld [vmem:[#allocation3 + $0xd8] sm:$0xff]  ;;  %v6704_v29 = vpop.f32.mrf.mxu3 }
 0x486   : > { %v6425_v33 = vadd.f32 %v6393_v27, %v6353_v14  ;;  %6108 = vst.msk [vmem:[#allocation3 + $0xe0] sm:$0xff] %vm1285_vm4, %v6076_v25 }
 0x487   : > { %v6743_v37 = vld [vmem:[#allocation3 + $0xd0] sm:$0xff] }
 0x488   : > { %6457 = vst.msk [vmem:[#allocation3 + $0xd8] sm:$0xff] %vm1285_vm4, %v6425_v33  ;;  %v6775_v30 = vadd.f32 %v6743_v37, %v6702_v16  ;;  %v5725_v34 = vpop.f32.mrf.mxu0  ;;  %v6358_v46 = vpop.f32.mrf.mxu2 }
 0x489   : > { %v6838_v31 = vld [vmem:[#allocation3 + $0xc8] sm:$0xff]  ;;  %v5726_v35 = vadd.f32 %v10231_v22, %v5725_v34 }
 0x48a   : > { %v6870_v36 = vpack.c.bf16 %v6838_v31, %v6838_v31  ;;  %6807 = vst.msk [vmem:[#allocation3 + $0xd0] sm:$0xff] %vm1285_vm4, %v6775_v30  ;;  %v6045_v38 = vld [vmem:[#allocation3 + $0xe8] sm:$0xff] }
 0x48b   : > { %5760 = vst.msk [vmem:[#allocation3 + $0xf0] sm:$0xff] %vm1285_vm4, %v5726_v35  ;;  %v6008_v39 = vpop.f32.mrf.mxu1 }
 0x48c   : > { %8427 = vst.msk [vmem:[%s9085_s17 + $0x1e4] sm:$0xf] %vm259_vm1, %v6870_v36  ;;  %v6077_v40 = vadd.f32 %v6045_v38, %v6008_v39 }
 0x48d   : > { %v6394_v41 = vld [vmem:[#allocation3 + $0xe0] sm:$0xff]  ;;  %v6707_v49 = vpop.f32.mrf.mxu3 }
 0x48e   : > { %v6426_v42 = vadd.f32 %v6394_v41, %v6356_v28  ;;  %6109 = vst.msk [vmem:[#allocation3 + $0xe8] sm:$0xff] %vm1285_vm4, %v6077_v40 }
 0x48f   : > { %v6744_v43 = vld [vmem:[#allocation3 + $0xd8] sm:$0xff] }
 0x490   : > { %6458 = vst.msk [vmem:[#allocation3 + $0xe0] sm:$0xff] %vm1285_vm4, %v6426_v42  ;;  %v6776_v44 = vadd.f32 %v6744_v43, %v6704_v29  ;;  %v5727_v47 = vpop.f32.mrf.mxu0  ;;  %v6361_v59 = vpop.f32.mrf.mxu2 }
 0x491   : > { %v6839_v48 = vld [vmem:[#allocation3 + $0xd0] sm:$0xff]  ;;  %v5728_v50 = vadd.f32 %v10231_v22, %v5727_v47 }
 0x492   : > { %v6871_v51 = vpack.c.bf16 %v6839_v48, %v6839_v48  ;;  %6808 = vst.msk [vmem:[#allocation3 + $0xd8] sm:$0xff] %vm1285_vm4, %v6776_v44  ;;  %v6046_v52 = vld [vmem:[#allocation3 + $0xf0] sm:$0xff] }
 0x493   : > { %5761 = vst.msk [vmem:[#allocation3 + $0xf8] sm:$0xff] %vm1285_vm4, %v5728_v50  ;;  %v6011_v53 = vpop.f32.mrf.mxu1 }
 0x494   : > { %8428 = vst.msk [vmem:[%s9085_s17 + $0x1e8] sm:$0xf] %vm259_vm1, %v6871_v51  ;;  %v6078_v54 = vadd.f32 %v6046_v52, %v6011_v53 }
 0x495   : > { %v6395_v55 = vld [vmem:[#allocation3 + $0xe8] sm:$0xff]  ;;  %v6709_v61 = vpop.f32.mrf.mxu3 }
 0x496   : > { %v6427_v56 = vadd.f32 %v6395_v55, %v6358_v46  ;;  %6110 = vst.msk [vmem:[#allocation3 + $0xf0] sm:$0xff] %vm1285_vm4, %v6078_v54 }
 0x497   : > { %v6745_v57 = vld [vmem:[#allocation3 + $0xe0] sm:$0xff] }
 0x498   : > { %6459 = vst.msk [vmem:[#allocation3 + $0xe8] sm:$0xff] %vm1285_vm4, %v6427_v56  ;;  %v6777_v11 = vadd.f32 %v6745_v57, %v6707_v49  ;;  %v6363_v5 = vpop.f32.mrf.mxu2 }
 0x499   : > { %v6840_v22 = vld [vmem:[#allocation3 + $0xd8] sm:$0xff] }
 0x49a   : > { %v6872_v58 = vpack.c.bf16 %v6840_v22, %v6840_v22  ;;  %6809 = vst.msk [vmem:[#allocation3 + $0xe0] sm:$0xff] %vm1285_vm4, %v6777_v11  ;;  %v6047_v60 = vld [vmem:[#allocation3 + $0xf8] sm:$0xff] }
 0x49b   : > { %v6013_v62 = vpop.f32.mrf.mxu1 }
 0x49c   : > { %8429 = vst.msk [vmem:[%s9085_s17 + $0x1ec] sm:$0xf] %vm259_vm1, %v6872_v58  ;;  %v6079_v63 = vadd.f32 %v6047_v60, %v6013_v62 }
 0x49d   : > { %v6396_v45 = vld [vmem:[#allocation3 + $0xf0] sm:$0xff]  ;;  %v6712_v7 = vpop.f32.mrf.mxu3 }
 0x49e   : > { %v6428_v0 = vadd.f32 %v6396_v45, %v6361_v59  ;;  %6111 = vst.msk [vmem:[#allocation3 + $0xf8] sm:$0xff] %vm1285_vm4, %v6079_v63 }
 0x49f   : > { %v6746_v1 = vld [vmem:[#allocation3 + $0xe8] sm:$0xff] }
 0x4a0   : > { %6460 = vst.msk [vmem:[#allocation3 + $0xf0] sm:$0xff] %vm1285_vm4, %v6428_v0  ;;  %v6778_v2 = vadd.f32 %v6746_v1, %v6709_v61 }
 0x4a1   : > { %v6841_v3 = vld [vmem:[#allocation3 + $0xe0] sm:$0xff] }
 0x4a2   : > { %v6873_v4 = vpack.c.bf16 %v6841_v3, %v6841_v3  ;;  %6810 = vst.msk [vmem:[#allocation3 + $0xe8] sm:$0xff] %vm1285_vm4, %v6778_v2 }
 0x4a4   : > { %8430 = vst.msk [vmem:[%s9085_s17 + $0x1f0] sm:$0xf] %vm259_vm1, %v6873_v4 }
 0x4a5   : > { %v6397_v6 = vld [vmem:[#allocation3 + $0xf8] sm:$0xff]  ;;  %v6714_v14 = vpop.f32.mrf.mxu3 }
 0x4a6   : > { %v6429_v8 = vadd.f32 %v6397_v6, %v6363_v5 }
 0x4a7   : > { %v6747_v9 = vld [vmem:[#allocation3 + $0xf0] sm:$0xff] }
 0x4a8   : > { %6461 = vst.msk [vmem:[#allocation3 + $0xf8] sm:$0xff] %vm1285_vm4, %v6429_v8  ;;  %v6779_v10 = vadd.f32 %v6747_v9, %v6712_v7 }
 0x4a9   : > { %v6842_v12 = vld [vmem:[#allocation3 + $0xe8] sm:$0xff] }
 0x4aa   : > { %v6874_v13 = vpack.c.bf16 %v6842_v12, %v6842_v12  ;;  %6811 = vst.msk [vmem:[#allocation3 + $0xf0] sm:$0xff] %vm1285_vm4, %v6779_v10 }
 0x4ac   : > { %8431 = vst.msk [vmem:[%s9085_s17 + $0x1f4] sm:$0xf] %vm259_vm1, %v6874_v13 }
 0x4af   : > { %v6748_v15 = vld [vmem:[#allocation3 + $0xf8] sm:$0xff] }
 0x4b0   : > { %v6780_v16 = vadd.f32 %v6748_v15, %v6714_v14 }
 0x4b1   : > { %v6843_v17 = vld [vmem:[#allocation3 + $0xf0] sm:$0xff] }
 0x4b2   : > { %v6875_v32 = vpack.c.bf16 %v6843_v17, %v6843_v17  ;;  %6812 = vst.msk [vmem:[#allocation3 + $0xf8] sm:$0xff] %vm1285_vm4, %v6780_v16 }
 0x4b4   : > { %8432 = vst.msk [vmem:[%s9085_s17 + $0x1f8] sm:$0xf] %vm259_vm1, %v6875_v32 }
 0x4b9   : > { %v6844_v18 = vld [vmem:[#allocation3 + $0xf8] sm:$0xff] }
 0x4ba   : > { %v6876_v26 = vpack.c.bf16 %v6844_v18, %v6844_v18 }
 0x4bc   : > { %8433 = vst.msk [vmem:[%s9085_s17 + $0x1fc] sm:$0xf] %vm259_vm1, %v6876_v26 }
 0x4bd PF: > { %s13_s14 = sadd.s32 1, %s8746_s14   ;;  %s10469_s12 = smov %s8742_s13 }
 0x4be   : > { %p10_p5 = scmp.ge.s32.totalorder %s13_s14, 4   ;;  %s10470_s13 = smov %s10472_s15 }
 0x4c0   :  { %12 = sbr.rel (!%p10_p5) target bundleno = 2 (0x2), region = 94 }

</bundles_post_ra>
